<compile_context>
chip_gen: v7x
topology: tpu7x:2x2x1
jax: 0.10.0
libtpu: 0.0.40
codegen_flags: <defaults>
</compile_context>

<pallas_src>
import functools

import jax
import jax.numpy as jnp
from jax import lax
from jax.experimental import pallas as pl
from jax.experimental.pallas import tpu as pltpu

NB_HM = 10  # number of flow heat-map channels (self.nb_hm in the reference)


# --------------------------------------------------------------------------
# Fused kernel: flow head for both frame pairs + all 9 reconstructions.
# --------------------------------------------------------------------------
def _fused_flow_reconstruct_kernel(C, H, W,
                                   w_ref, b_ref,
                                   f0_ref, f1_ref, f2_ref,
                                   roi_ref, bnd_ref,
                                   flow01_ref, flow10_ref,
                                   flow12_ref, flow21_ref, rec_ref):
    roi = roi_ref[0, 0]          # (H, W)
    bnd = bnd_ref[0, 0]          # (H, W)

    fr0 = [f0_ref[0, c] for c in range(C)]
    fr1 = [f1_ref[0, c] for c in range(C)]
    fr2 = [f2_ref[0, c] for c in range(C)]

    # TODO(synk): MultiNet's architecture is not provided in the reference
    # source; this deterministic per-pixel linear head stands in for it and
    # ignores the homography.
    def head(fa, fb):
        # y[o] = (sum_c w[c,o]*fa[c] + sum_c w[C+c,o]*fb[c] + b[o]) * roi
        outs = []
        for o in range(2 * NB_HM):
            acc = w_ref[0, o] * fa[0]
            for c in range(1, C):
                acc = acc + w_ref[c, o] * fa[c]
            for c in range(C):
                acc = acc + w_ref[C + c, o] * fb[c]
            outs.append((acc + b_ref[0, o]) * roi)
        return outs

    p01 = head(fr0, fr1)   # channels 0..9 -> flow_0_1f, 10..19 -> flow_1_0b
    p12 = head(fr1, fr2)   # channels 0..9 -> flow_1_2f, 10..19 -> flow_2_1b

    fl01 = p01[:NB_HM]
    fl10 = p01[NB_HM:]
    fl12 = p12[:NB_HM]
    fl21 = p12[NB_HM:]

    for k in range(NB_HM):
        flow01_ref[0, k] = fl01[k]
        flow10_ref[0, k] = fl10[k]
        flow12_ref[0, k] = fl12[k]
        flow21_ref[0, k] = fl21[k]

    # ---- reconstructions from the in-VMEM flows (rolls + border masks) ----
    row = lax.broadcasted_iota(jnp.int32, (H, W), 0)
    col = lax.broadcasted_iota(jnp.int32, (H, W), 1)
    not_last_col = col < (W - 1)
    not_first_col = col > 0
    not_last_row = row < (H - 1)
    not_first_row = row > 0

    def sh_w_plus(x):    # out[h, w] = x[h, w+1], 0 at w == W-1
        return jnp.where(not_last_col, pltpu.roll(x, W - 1, 1), 0.0)

    def sh_w_minus(x):   # out[h, w] = x[h, w-1], 0 at w == 0
        return jnp.where(not_first_col, pltpu.roll(x, 1, 1), 0.0)

    def sh_h_plus(x):    # out[h, w] = x[h+1, w], 0 at h == H-1
        return jnp.where(not_last_row, pltpu.roll(x, H - 1, 0), 0.0)

    def sh_h_minus(x):   # out[h, w] = x[h-1, w], 0 at h == 0
        return jnp.where(not_first_row, pltpu.roll(x, 1, 0), 0.0)

    def rec_prev(ch):
        # reconstruct_from_prev: channels 0..8 carry implicit (dh, dw) shifts
        # (dh=+1: ch 0,1,2; dh=0: ch 3,4,5; dh=-1: ch 6,7,8; dw=+1,0,-1 within
        # each group). Group by dh so only 6 lane + 2 sublane rolls are needed.
        g_p1 = sh_w_plus(ch[0]) + ch[1] + sh_w_minus(ch[2])
        g_0 = sh_w_plus(ch[3]) + ch[4] + sh_w_minus(ch[5])
        g_m1 = sh_w_plus(ch[6]) + ch[7] + sh_w_minus(ch[8])
        return sh_h_plus(g_p1) + g_0 + sh_h_minus(g_m1) + ch[9] * bnd

    def rec_post(ch):
        acc = ch[0]
        for k in range(1, 9):
            acc = acc + ch[k]
        return acc

    rec_1pf = rec_prev(fl01)
    rec_1pb = rec_post(fl10)
    rec_1nf = rec_post(fl12)
    rec_1nb = rec_prev(fl21)
    rec_0f = rec_post(fl01)
    rec_0b = rec_prev(fl10)
    rec_2f = rec_prev(fl12)
    rec_2b = rec_post(fl21)
    rec_1o = (rec_1pf + rec_1pb + rec_1nf + rec_1nb) * 0.25

    rec_ref[0, 0] = rec_1pf
    rec_ref[0, 1] = rec_1pb
    rec_ref[0, 2] = rec_1nf
    rec_ref[0, 3] = rec_1nb
    rec_ref[0, 4] = rec_0f
    rec_ref[0, 5] = rec_0b
    rec_ref[0, 6] = rec_2f
    rec_ref[0, 7] = rec_2b
    rec_ref[0, 8] = rec_1o


def people_flow_prob_forward(frame_0, frame_1, frame_2, homography,
                             roi_mask, mask_boundry, w, b):
    del homography  # unused by the stand-in flow head (see TODO in kernel)
    B, C, H, W = frame_0.shape
    kernel = functools.partial(_fused_flow_reconstruct_kernel, C, H, W)

    frame_spec = pl.BlockSpec((1, C, H, W), lambda i: (i, 0, 0, 0))
    mask_spec = pl.BlockSpec((1, 1, H, W), lambda i: (i, 0, 0, 0))
    flow_spec = pl.BlockSpec((1, NB_HM, H, W), lambda i: (i, 0, 0, 0))
    rec_spec = pl.BlockSpec((1, 9, H, W), lambda i: (i, 0, 0, 0))
    smem_spec = pl.BlockSpec(memory_space=pltpu.MemorySpace.SMEM)

    flow_shape = jax.ShapeDtypeStruct((B, NB_HM, H, W), jnp.float32)
    outs = pl.pallas_call(
        kernel,
        out_shape=(flow_shape, flow_shape, flow_shape, flow_shape,
                   jax.ShapeDtypeStruct((B, 9, H, W), jnp.float32)),
        grid_spec=pl.GridSpec(
            grid=(B,),
            in_specs=[smem_spec, smem_spec,
                      frame_spec, frame_spec, frame_spec,
                      mask_spec, mask_spec],
            out_specs=(flow_spec, flow_spec, flow_spec, flow_spec, rec_spec),
        ),
        compiler_params=pltpu.CompilerParams(
            dimension_semantics=("parallel",)),
    )(w, b, frame_0, frame_1, frame_2, roi_mask, mask_boundry)

    flow_0_1f, flow_1_0b, flow_1_2f, flow_2_1b, recs = outs
    rec_names = ['rec_1pf', 'rec_1pb', 'rec_1nf', 'rec_1nb',
                 'rec_0f', 'rec_0b', 'rec_2f', 'rec_2b', 'rec_1o']
    out = {'flow_0_1f': flow_0_1f, 'flow_1_2f': flow_1_2f,
           'flow_1_0b': flow_1_0b, 'flow_2_1b': flow_2_1b}
    out.update({n: recs[:, i:i + 1] for i, n in enumerate(rec_names)})
    return out


class PeopleFlowProbPallas:
    def __init__(self, data_spec, frame_channels, key):
        self.nb_hm = NB_HM
        self.homography_input_size = data_spec['homography_input_size']
        self.homography_output_size = data_spec['homography_output_size']
        self.hm_size = data_spec['hm_size']
        kw, kb = jax.random.split(key)
        in_ch = 2 * frame_channels
        self.w = jax.random.normal(kw, (in_ch, 2 * NB_HM), jnp.float32) * 0.1
        self.b = jax.random.normal(kb, (1, 2 * NB_HM), jnp.float32) * 0.1

    def __call__(self, input_data):
        return people_flow_prob_forward(
            input_data['frame_0'], input_data['frame_1'], input_data['frame_2'],
            input_data['homography'], input_data['ROI_mask'],
            input_data['ROI_boundary_mask'], self.w, self.b)


# ------------------------- pure-JAX references ----------------------------
def _ref_head(frame_a, frame_b, roi_mask, w, b):
    B, C, H, W = frame_a.shape
    x = jnp.concatenate([frame_a, frame_b], axis=1)
    x = x.transpose(0, 2, 3, 1).reshape(B * H * W, 2 * C)
    roi = roi_mask.transpose(0, 2, 3, 1).reshape(B * H * W, 1)
    y = (jnp.dot(x, w, precision=lax.Precision.HIGHEST) + b) * roi
    return y.reshape(B, H, W, 2 * NB_HM).transpose(0, 3, 1, 2)


def _ref_rec_prev(pf, mask_boundry):
    def P(x, l, r, t, bo):
        return jnp.pad(x, ((0, 0), (t, bo), (l, r)))
    stacked = jnp.stack([
        P(pf[:, 0, 1:, 1:], 0, 1, 0, 1),
        P(pf[:, 1, 1:, :], 0, 0, 0, 1),
        P(pf[:, 2, 1:, :-1], 1, 0, 0, 1),
        P(pf[:, 3, :, 1:], 0, 1, 0, 0),
        pf[:, 4],
        P(pf[:, 5, :, :-1], 1, 0, 0, 0),
        P(pf[:, 6, :-1, 1:], 0, 1, 1, 0),
        P(pf[:, 7, :-1, :], 0, 0, 1, 0),
        P(pf[:, 8, :-1, :-1], 1, 0, 1, 0),
        pf[:, 9] * mask_boundry[:, 0]], axis=1)
    return jnp.sum(stacked, axis=1, keepdims=True)


def _ref_rec_post(pf):
    return jnp.sum(pf[:, :9], axis=1, keepdims=True)


if __name__ == "__main__":
    key = jax.random.PRNGKey(0)
    # W = 128 keeps the lane dimension native-aligned (H on sublanes).
    B, C, H, W = 2, 3, 16, 128
    data_spec = {
        'homography_input_size': (H, W),
        'homography_output_size': (H, W),
        'hm_size': (H, W),
        'view_ids': [0, 1, 2],
    }
    keys = jax.random.split(key, 8)
    model = PeopleFlowProbPallas(data_spec, frame_channels=C, key=keys[0])

    frame_0 = jax.random.normal(keys[1], (B, C, H, W), jnp.float32)
    frame_1 = jax.random.normal(keys[2], (B, C, H, W), jnp.float32)
    frame_2 = jax.random.normal(keys[3], (B, C, H, W), jnp.float32)
    homography = jax.random.normal(keys[4], (B, len(data_spec['view_ids']), 3, 3),
                                   jnp.float32)
    roi_mask = (jax.random.uniform(keys[5], (B, 1, H, W)) > 0.2).astype(jnp.float32)
    roi_boundary = (jax.random.uniform(keys[6], (B, 1, H, W)) > 0.5).astype(jnp.float32)

    input_data = {
        'frame_0': frame_0, 'frame_1': frame_1, 'frame_2': frame_2,
        'homography': homography, 'ROI_mask': roi_mask,
        'ROI_boundary_mask': roi_boundary,
    }

    out = jax.block_until_ready(model(input_data))

    # --- correctness checks against pure-JAX references ---
    ref01 = _ref_head(frame_0, frame_1, roi_mask, model.w, model.b)
    ref12 = _ref_head(frame_1, frame_2, roi_mask, model.w, model.b)
    assert jnp.allclose(out['flow_0_1f'], ref01[:, :NB_HM], atol=1e-4)
    assert jnp.allclose(out['flow_1_0b'], ref01[:, NB_HM:], atol=1e-4)
    assert jnp.allclose(out['flow_1_2f'], ref12[:, :NB_HM], atol=1e-4)
    assert jnp.allclose(out['flow_2_1b'], ref12[:, NB_HM:], atol=1e-4)

    assert jnp.allclose(out['rec_1pf'],
                        _ref_rec_prev(out['flow_0_1f'], roi_boundary), atol=1e-4)
    assert jnp.allclose(out['rec_1pb'], _ref_rec_post(out['flow_1_0b']), atol=1e-4)
    assert jnp.allclose(out['rec_1nf'], _ref_rec_post(out['flow_1_2f']), atol=1e-4)
    assert jnp.allclose(out['rec_1nb'],
                        _ref_rec_prev(out['flow_2_1b'], roi_boundary), atol=1e-4)
    assert jnp.allclose(out['rec_0f'], _ref_rec_post(out['flow_0_1f']), atol=1e-4)
    assert jnp.allclose(out['rec_0b'],
                        _ref_rec_prev(out['flow_1_0b'], roi_boundary), atol=1e-4)
    assert jnp.allclose(out['rec_2f'],
                        _ref_rec_prev(out['flow_1_2f'], roi_boundary), atol=1e-4)
    assert jnp.allclose(out['rec_2b'], _ref_rec_post(out['flow_2_1b']), atol=1e-4)
    ref_1o = (out['rec_1pf'] + out['rec_1pb'] + out['rec_1nf'] + out['rec_1nb']) / 4
    assert jnp.allclose(out['rec_1o'], ref_1o, atol=1e-4)

    print("KERNEL_OK")
</pallas_src>

<mosaic_0001>
module attributes {stable_mosaic.version = 11 : i64} {
  func.func @_fused_flow_reconstruct_kernel(%arg0: i32, %arg1: memref<6x20xf32, #tpu.memory_space<smem>>, %arg2: memref<1x20xf32, #tpu.memory_space<smem>>, %arg3: memref<1x3x16x128xf32, #tpu.memory_space<vmem>>, %arg4: memref<1x3x16x128xf32, #tpu.memory_space<vmem>>, %arg5: memref<1x3x16x128xf32, #tpu.memory_space<vmem>>, %arg6: memref<1x1x16x128xf32, #tpu.memory_space<vmem>>, %arg7: memref<1x1x16x128xf32, #tpu.memory_space<vmem>>, %arg8: memref<1x10x16x128xf32, #tpu.memory_space<vmem>>, %arg9: memref<1x10x16x128xf32, #tpu.memory_space<vmem>>, %arg10: memref<1x10x16x128xf32, #tpu.memory_space<vmem>>, %arg11: memref<1x10x16x128xf32, #tpu.memory_space<vmem>>, %arg12: memref<1x9x16x128xf32, #tpu.memory_space<vmem>>) attributes {dimension_semantics = [#tpu.dimension_semantics<parallel>], iteration_bounds = array<i64: 2>, scalar_prefetch = 0 : i64, scratch_operands = 0 : i64, tpu.core_type = #tpu.core_type<tc>, window_params = [{transform_indices = @transform_0, window_bounds = array<i64: 6, 20>}, {transform_indices = @transform_1, window_bounds = array<i64: 1, 20>}, {transform_indices = @transform_2, window_bounds = array<i64: 1, 3, 16, 128>}, {transform_indices = @transform_3, window_bounds = array<i64: 1, 3, 16, 128>}, {transform_indices = @transform_4, window_bounds = array<i64: 1, 3, 16, 128>}, {transform_indices = @transform_5, window_bounds = array<i64: 1, 1, 16, 128>}, {transform_indices = @transform_6, window_bounds = array<i64: 1, 1, 16, 128>}, {transform_indices = @transform_7, window_bounds = array<i64: 1, 10, 16, 128>}, {transform_indices = @transform_8, window_bounds = array<i64: 1, 10, 16, 128>}, {transform_indices = @transform_9, window_bounds = array<i64: 1, 10, 16, 128>}, {transform_indices = @transform_10, window_bounds = array<i64: 1, 10, 16, 128>}, {transform_indices = @transform_11, window_bounds = array<i64: 1, 9, 16, 128>}]} {
    %c0 = arith.constant 0 : index
    %c0_0 = arith.constant 0 : index
    %c0_1 = arith.constant 0 : index
    %c0_2 = arith.constant 0 : index
    %0 = vector.load %arg6[%c0, %c0_0, %c0_1, %c0_2] : memref<1x1x16x128xf32, #tpu.memory_space<vmem>>, vector<1x1x16x128xf32>
    %1 = vector.shape_cast %0 : vector<1x1x16x128xf32> to vector<16x128xf32>
    %c0_3 = arith.constant 0 : index
    %c0_4 = arith.constant 0 : index
    %c0_5 = arith.constant 0 : index
    %c0_6 = arith.constant 0 : index
    %2 = vector.load %arg7[%c0_3, %c0_4, %c0_5, %c0_6] : memref<1x1x16x128xf32, #tpu.memory_space<vmem>>, vector<1x1x16x128xf32>
    %3 = vector.shape_cast %2 : vector<1x1x16x128xf32> to vector<16x128xf32>
    %c0_7 = arith.constant 0 : index
    %c0_8 = arith.constant 0 : index
    %c0_9 = arith.constant 0 : index
    %c0_10 = arith.constant 0 : index
    %4 = vector.load %arg3[%c0_7, %c0_8, %c0_9, %c0_10] : memref<1x3x16x128xf32, #tpu.memory_space<vmem>>, vector<1x1x16x128xf32>
    %5 = vector.shape_cast %4 : vector<1x1x16x128xf32> to vector<16x128xf32>
    %c0_11 = arith.constant 0 : index
    %c1 = arith.constant 1 : index
    %c0_12 = arith.constant 0 : index
    %c0_13 = arith.constant 0 : index
    %6 = vector.load %arg3[%c0_11, %c1, %c0_12, %c0_13] : memref<1x3x16x128xf32, #tpu.memory_space<vmem>>, vector<1x1x16x128xf32>
    %7 = vector.shape_cast %6 : vector<1x1x16x128xf32> to vector<16x128xf32>
    %c0_14 = arith.constant 0 : index
    %c2 = arith.constant 2 : index
    %c0_15 = arith.constant 0 : index
    %c0_16 = arith.constant 0 : index
    %8 = vector.load %arg3[%c0_14, %c2, %c0_15, %c0_16] : memref<1x3x16x128xf32, #tpu.memory_space<vmem>>, vector<1x1x16x128xf32>
    %9 = vector.shape_cast %8 : vector<1x1x16x128xf32> to vector<16x128xf32>
    %c0_17 = arith.constant 0 : index
    %c0_18 = arith.constant 0 : index
    %c0_19 = arith.constant 0 : index
    %c0_20 = arith.constant 0 : index
    %10 = vector.load %arg4[%c0_17, %c0_18, %c0_19, %c0_20] : memref<1x3x16x128xf32, #tpu.memory_space<vmem>>, vector<1x1x16x128xf32>
    %11 = vector.shape_cast %10 : vector<1x1x16x128xf32> to vector<16x128xf32>
    %c0_21 = arith.constant 0 : index
    %c1_22 = arith.constant 1 : index
    %c0_23 = arith.constant 0 : index
    %c0_24 = arith.constant 0 : index
    %12 = vector.load %arg4[%c0_21, %c1_22, %c0_23, %c0_24] : memref<1x3x16x128xf32, #tpu.memory_space<vmem>>, vector<1x1x16x128xf32>
    %13 = vector.shape_cast %12 : vector<1x1x16x128xf32> to vector<16x128xf32>
    %c0_25 = arith.constant 0 : index
    %c2_26 = arith.constant 2 : index
    %c0_27 = arith.constant 0 : index
    %c0_28 = arith.constant 0 : index
    %14 = vector.load %arg4[%c0_25, %c2_26, %c0_27, %c0_28] : memref<1x3x16x128xf32, #tpu.memory_space<vmem>>, vector<1x1x16x128xf32>
    %15 = vector.shape_cast %14 : vector<1x1x16x128xf32> to vector<16x128xf32>
    %c0_29 = arith.constant 0 : index
    %c0_30 = arith.constant 0 : index
    %c0_31 = arith.constant 0 : index
    %c0_32 = arith.constant 0 : index
    %16 = vector.load %arg5[%c0_29, %c0_30, %c0_31, %c0_32] : memref<1x3x16x128xf32, #tpu.memory_space<vmem>>, vector<1x1x16x128xf32>
    %17 = vector.shape_cast %16 : vector<1x1x16x128xf32> to vector<16x128xf32>
    %c0_33 = arith.constant 0 : index
    %c1_34 = arith.constant 1 : index
    %c0_35 = arith.constant 0 : index
    %c0_36 = arith.constant 0 : index
    %18 = vector.load %arg5[%c0_33, %c1_34, %c0_35, %c0_36] : memref<1x3x16x128xf32, #tpu.memory_space<vmem>>, vector<1x1x16x128xf32>
    %19 = vector.shape_cast %18 : vector<1x1x16x128xf32> to vector<16x128xf32>
    %c0_37 = arith.constant 0 : index
    %c2_38 = arith.constant 2 : index
    %c0_39 = arith.constant 0 : index
    %c0_40 = arith.constant 0 : index
    %20 = vector.load %arg5[%c0_37, %c2_38, %c0_39, %c0_40] : memref<1x3x16x128xf32, #tpu.memory_space<vmem>>, vector<1x1x16x128xf32>
    %21 = vector.shape_cast %20 : vector<1x1x16x128xf32> to vector<16x128xf32>
    %c0_41 = arith.constant 0 : index
    %c0_42 = arith.constant 0 : index
    %22 = memref.load %arg1[%c0_41, %c0_42] : memref<6x20xf32, #tpu.memory_space<smem>>
    %23 = vector.broadcast %22 : f32 to vector<16x128xf32>
    %24 = arith.mulf %23, %5 : vector<16x128xf32>
    %c1_43 = arith.constant 1 : index
    %c0_44 = arith.constant 0 : index
    %25 = memref.load %arg1[%c1_43, %c0_44] : memref<6x20xf32, #tpu.memory_space<smem>>
    %26 = vector.broadcast %25 : f32 to vector<16x128xf32>
    %27 = arith.mulf %26, %7 : vector<16x128xf32>
    %28 = arith.addf %24, %27 : vector<16x128xf32>
    %c2_45 = arith.constant 2 : index
    %c0_46 = arith.constant 0 : index
    %29 = memref.load %arg1[%c2_45, %c0_46] : memref<6x20xf32, #tpu.memory_space<smem>>
    %30 = vector.broadcast %29 : f32 to vector<16x128xf32>
    %31 = arith.mulf %30, %9 : vector<16x128xf32>
    %32 = arith.addf %28, %31 : vector<16x128xf32>
    %c3 = arith.constant 3 : index
    %c0_47 = arith.constant 0 : index
    %33 = memref.load %arg1[%c3, %c0_47] : memref<6x20xf32, #tpu.memory_space<smem>>
    %34 = vector.broadcast %33 : f32 to vector<16x128xf32>
    %35 = arith.mulf %34, %11 : vector<16x128xf32>
    %36 = arith.addf %32, %35 : vector<16x128xf32>
    %c4 = arith.constant 4 : index
    %c0_48 = arith.constant 0 : index
    %37 = memref.load %arg1[%c4, %c0_48] : memref<6x20xf32, #tpu.memory_space<smem>>
    %38 = vector.broadcast %37 : f32 to vector<16x128xf32>
    %39 = arith.mulf %38, %13 : vector<16x128xf32>
    %40 = arith.addf %36, %39 : vector<16x128xf32>
    %c5 = arith.constant 5 : index
    %c0_49 = arith.constant 0 : index
    %41 = memref.load %arg1[%c5, %c0_49] : memref<6x20xf32, #tpu.memory_space<smem>>
    %42 = vector.broadcast %41 : f32 to vector<16x128xf32>
    %43 = arith.mulf %42, %15 : vector<16x128xf32>
    %44 = arith.addf %40, %43 : vector<16x128xf32>
    %c0_50 = arith.constant 0 : index
    %c0_51 = arith.constant 0 : index
    %45 = memref.load %arg2[%c0_50, %c0_51] : memref<1x20xf32, #tpu.memory_space<smem>>
    %46 = vector.broadcast %45 : f32 to vector<16x128xf32>
    %47 = arith.addf %44, %46 : vector<16x128xf32>
    %48 = arith.mulf %47, %1 : vector<16x128xf32>
    %c0_52 = arith.constant 0 : index
    %c1_53 = arith.constant 1 : index
    %49 = memref.load %arg1[%c0_52, %c1_53] : memref<6x20xf32, #tpu.memory_space<smem>>
    %50 = vector.broadcast %49 : f32 to vector<16x128xf32>
    %51 = arith.mulf %50, %5 : vector<16x128xf32>
    %c1_54 = arith.constant 1 : index
    %c1_55 = arith.constant 1 : index
    %52 = memref.load %arg1[%c1_54, %c1_55] : memref<6x20xf32, #tpu.memory_space<smem>>
    %53 = vector.broadcast %52 : f32 to vector<16x128xf32>
    %54 = arith.mulf %53, %7 : vector<16x128xf32>
    %55 = arith.addf %51, %54 : vector<16x128xf32>
    %c2_56 = arith.constant 2 : index
    %c1_57 = arith.constant 1 : index
    %56 = memref.load %arg1[%c2_56, %c1_57] : memref<6x20xf32, #tpu.memory_space<smem>>
    %57 = vector.broadcast %56 : f32 to vector<16x128xf32>
    %58 = arith.mulf %57, %9 : vector<16x128xf32>
    %59 = arith.addf %55, %58 : vector<16x128xf32>
    %c3_58 = arith.constant 3 : index
    %c1_59 = arith.constant 1 : index
    %60 = memref.load %arg1[%c3_58, %c1_59] : memref<6x20xf32, #tpu.memory_space<smem>>
    %61 = vector.broadcast %60 : f32 to vector<16x128xf32>
    %62 = arith.mulf %61, %11 : vector<16x128xf32>
    %63 = arith.addf %59, %62 : vector<16x128xf32>
    %c4_60 = arith.constant 4 : index
    %c1_61 = arith.constant 1 : index
    %64 = memref.load %arg1[%c4_60, %c1_61] : memref<6x20xf32, #tpu.memory_space<smem>>
    %65 = vector.broadcast %64 : f32 to vector<16x128xf32>
    %66 = arith.mulf %65, %13 : vector<16x128xf32>
    %67 = arith.addf %63, %66 : vector<16x128xf32>
    %c5_62 = arith.constant 5 : index
    %c1_63 = arith.constant 1 : index
    %68 = memref.load %arg1[%c5_62, %c1_63] : memref<6x20xf32, #tpu.memory_space<smem>>
    %69 = vector.broadcast %68 : f32 to vector<16x128xf32>
    %70 = arith.mulf %69, %15 : vector<16x128xf32>
    %71 = arith.addf %67, %70 : vector<16x128xf32>
    %c0_64 = arith.constant 0 : index
    %c1_65 = arith.constant 1 : index
    %72 = memref.load %arg2[%c0_64, %c1_65] : memref<1x20xf32, #tpu.memory_space<smem>>
    %73 = vector.broadcast %72 : f32 to vector<16x128xf32>
    %74 = arith.addf %71, %73 : vector<16x128xf32>
    %75 = arith.mulf %74, %1 : vector<16x128xf32>
    %c0_66 = arith.constant 0 : index
    %c2_67 = arith.constant 2 : index
    %76 = memref.load %arg1[%c0_66, %c2_67] : memref<6x20xf32, #tpu.memory_space<smem>>
    %77 = vector.broadcast %76 : f32 to vector<16x128xf32>
    %78 = arith.mulf %77, %5 : vector<16x128xf32>
    %c1_68 = arith.constant 1 : index
    %c2_69 = arith.constant 2 : index
    %79 = memref.load %arg1[%c1_68, %c2_69] : memref<6x20xf32, #tpu.memory_space<smem>>
    %80 = vector.broadcast %79 : f32 to vector<16x128xf32>
    %81 = arith.mulf %80, %7 : vector<16x128xf32>
    %82 = arith.addf %78, %81 : vector<16x128xf32>
    %c2_70 = arith.constant 2 : index
    %c2_71 = arith.constant 2 : index
    %83 = memref.load %arg1[%c2_70, %c2_71] : memref<6x20xf32, #tpu.memory_space<smem>>
    %84 = vector.broadcast %83 : f32 to vector<16x128xf32>
    %85 = arith.mulf %84, %9 : vector<16x128xf32>
    %86 = arith.addf %82, %85 : vector<16x128xf32>
    %c3_72 = arith.constant 3 : index
    %c2_73 = arith.constant 2 : index
    %87 = memref.load %arg1[%c3_72, %c2_73] : memref<6x20xf32, #tpu.memory_space<smem>>
    %88 = vector.broadcast %87 : f32 to vector<16x128xf32>
    %89 = arith.mulf %88, %11 : vector<16x128xf32>
    %90 = arith.addf %86, %89 : vector<16x128xf32>
    %c4_74 = arith.constant 4 : index
    %c2_75 = arith.constant 2 : index
    %91 = memref.load %arg1[%c4_74, %c2_75] : memref<6x20xf32, #tpu.memory_space<smem>>
    %92 = vector.broadcast %91 : f32 to vector<16x128xf32>
    %93 = arith.mulf %92, %13 : vector<16x128xf32>
    %94 = arith.addf %90, %93 : vector<16x128xf32>
    %c5_76 = arith.constant 5 : index
    %c2_77 = arith.constant 2 : index
    %95 = memref.load %arg1[%c5_76, %c2_77] : memref<6x20xf32, #tpu.memory_space<smem>>
    %96 = vector.broadcast %95 : f32 to vector<16x128xf32>
    %97 = arith.mulf %96, %15 : vector<16x128xf32>
    %98 = arith.addf %94, %97 : vector<16x128xf32>
    %c0_78 = arith.constant 0 : index
    %c2_79 = arith.constant 2 : index
    %99 = memref.load %arg2[%c0_78, %c2_79] : memref<1x20xf32, #tpu.memory_space<smem>>
    %100 = vector.broadcast %99 : f32 to vector<16x128xf32>
    %101 = arith.addf %98, %100 : vector<16x128xf32>
    %102 = arith.mulf %101, %1 : vector<16x128xf32>
    %c0_80 = arith.constant 0 : index
    %c3_81 = arith.constant 3 : index
    %103 = memref.load %arg1[%c0_80, %c3_81] : memref<6x20xf32, #tpu.memory_space<smem>>
    %104 = vector.broadcast %103 : f32 to vector<16x128xf32>
    %105 = arith.mulf %104, %5 : vector<16x128xf32>
    %c1_82 = arith.constant 1 : index
    %c3_83 = arith.constant 3 : index
    %106 = memref.load %arg1[%c1_82, %c3_83] : memref<6x20xf32, #tpu.memory_space<smem>>
    %107 = vector.broadcast %106 : f32 to vector<16x128xf32>
    %108 = arith.mulf %107, %7 : vector<16x128xf32>
    %109 = arith.addf %105, %108 : vector<16x128xf32>
    %c2_84 = arith.constant 2 : index
    %c3_85 = arith.constant 3 : index
    %110 = memref.load %arg1[%c2_84, %c3_85] : memref<6x20xf32, #tpu.memory_space<smem>>
    %111 = vector.broadcast %110 : f32 to vector<16x128xf32>
    %112 = arith.mulf %111, %9 : vector<16x128xf32>
    %113 = arith.addf %109, %112 : vector<16x128xf32>
    %c3_86 = arith.constant 3 : index
    %c3_87 = arith.constant 3 : index
    %114 = memref.load %arg1[%c3_86, %c3_87] : memref<6x20xf32, #tpu.memory_space<smem>>
    %115 = vector.broadcast %114 : f32 to vector<16x128xf32>
    %116 = arith.mulf %115, %11 : vector<16x128xf32>
    %117 = arith.addf %113, %116 : vector<16x128xf32>
    %c4_88 = arith.constant 4 : index
    %c3_89 = arith.constant 3 : index
    %118 = memref.load %arg1[%c4_88, %c3_89] : memref<6x20xf32, #tpu.memory_space<smem>>
    %119 = vector.broadcast %118 : f32 to vector<16x128xf32>
    %120 = arith.mulf %119, %13 : vector<16x128xf32>
    %121 = arith.addf %117, %120 : vector<16x128xf32>
    %c5_90 = arith.constant 5 : index
    %c3_91 = arith.constant 3 : index
    %122 = memref.load %arg1[%c5_90, %c3_91] : memref<6x20xf32, #tpu.memory_space<smem>>
    %123 = vector.broadcast %122 : f32 to vector<16x128xf32>
    %124 = arith.mulf %123, %15 : vector<16x128xf32>
    %125 = arith.addf %121, %124 : vector<16x128xf32>
    %c0_92 = arith.constant 0 : index
    %c3_93 = arith.constant 3 : index
    %126 = memref.load %arg2[%c0_92, %c3_93] : memref<1x20xf32, #tpu.memory_space<smem>>
    %127 = vector.broadcast %126 : f32 to vector<16x128xf32>
    %128 = arith.addf %125, %127 : vector<16x128xf32>
    %129 = arith.mulf %128, %1 : vector<16x128xf32>
    %c0_94 = arith.constant 0 : index
    %c4_95 = arith.constant 4 : index
    %130 = memref.load %arg1[%c0_94, %c4_95] : memref<6x20xf32, #tpu.memory_space<smem>>
    %131 = vector.broadcast %130 : f32 to vector<16x128xf32>
    %132 = arith.mulf %131, %5 : vector<16x128xf32>
    %c1_96 = arith.constant 1 : index
    %c4_97 = arith.constant 4 : index
    %133 = memref.load %arg1[%c1_96, %c4_97] : memref<6x20xf32, #tpu.memory_space<smem>>
    %134 = vector.broadcast %133 : f32 to vector<16x128xf32>
    %135 = arith.mulf %134, %7 : vector<16x128xf32>
    %136 = arith.addf %132, %135 : vector<16x128xf32>
    %c2_98 = arith.constant 2 : index
    %c4_99 = arith.constant 4 : index
    %137 = memref.load %arg1[%c2_98, %c4_99] : memref<6x20xf32, #tpu.memory_space<smem>>
    %138 = vector.broadcast %137 : f32 to vector<16x128xf32>
    %139 = arith.mulf %138, %9 : vector<16x128xf32>
    %140 = arith.addf %136, %139 : vector<16x128xf32>
    %c3_100 = arith.constant 3 : index
    %c4_101 = arith.constant 4 : index
    %141 = memref.load %arg1[%c3_100, %c4_101] : memref<6x20xf32, #tpu.memory_space<smem>>
    %142 = vector.broadcast %141 : f32 to vector<16x128xf32>
    %143 = arith.mulf %142, %11 : vector<16x128xf32>
    %144 = arith.addf %140, %143 : vector<16x128xf32>
    %c4_102 = arith.constant 4 : index
    %c4_103 = arith.constant 4 : index
    %145 = memref.load %arg1[%c4_102, %c4_103] : memref<6x20xf32, #tpu.memory_space<smem>>
    %146 = vector.broadcast %145 : f32 to vector<16x128xf32>
    %147 = arith.mulf %146, %13 : vector<16x128xf32>
    %148 = arith.addf %144, %147 : vector<16x128xf32>
    %c5_104 = arith.constant 5 : index
    %c4_105 = arith.constant 4 : index
    %149 = memref.load %arg1[%c5_104, %c4_105] : memref<6x20xf32, #tpu.memory_space<smem>>
    %150 = vector.broadcast %149 : f32 to vector<16x128xf32>
    %151 = arith.mulf %150, %15 : vector<16x128xf32>
    %152 = arith.addf %148, %151 : vector<16x128xf32>
    %c0_106 = arith.constant 0 : index
    %c4_107 = arith.constant 4 : index
    %153 = memref.load %arg2[%c0_106, %c4_107] : memref<1x20xf32, #tpu.memory_space<smem>>
    %154 = vector.broadcast %153 : f32 to vector<16x128xf32>
    %155 = arith.addf %152, %154 : vector<16x128xf32>
    %156 = arith.mulf %155, %1 : vector<16x128xf32>
    %c0_108 = arith.constant 0 : index
    %c5_109 = arith.constant 5 : index
    %157 = memref.load %arg1[%c0_108, %c5_109] : memref<6x20xf32, #tpu.memory_space<smem>>
    %158 = vector.broadcast %157 : f32 to vector<16x128xf32>
    %159 = arith.mulf %158, %5 : vector<16x128xf32>
    %c1_110 = arith.constant 1 : index
    %c5_111 = arith.constant 5 : index
    %160 = memref.load %arg1[%c1_110, %c5_111] : memref<6x20xf32, #tpu.memory_space<smem>>
    %161 = vector.broadcast %160 : f32 to vector<16x128xf32>
    %162 = arith.mulf %161, %7 : vector<16x128xf32>
    %163 = arith.addf %159, %162 : vector<16x128xf32>
    %c2_112 = arith.constant 2 : index
    %c5_113 = arith.constant 5 : index
    %164 = memref.load %arg1[%c2_112, %c5_113] : memref<6x20xf32, #tpu.memory_space<smem>>
    %165 = vector.broadcast %164 : f32 to vector<16x128xf32>
    %166 = arith.mulf %165, %9 : vector<16x128xf32>
    %167 = arith.addf %163, %166 : vector<16x128xf32>
    %c3_114 = arith.constant 3 : index
    %c5_115 = arith.constant 5 : index
    %168 = memref.load %arg1[%c3_114, %c5_115] : memref<6x20xf32, #tpu.memory_space<smem>>
    %169 = vector.broadcast %168 : f32 to vector<16x128xf32>
    %170 = arith.mulf %169, %11 : vector<16x128xf32>
    %171 = arith.addf %167, %170 : vector<16x128xf32>
    %c4_116 = arith.constant 4 : index
    %c5_117 = arith.constant 5 : index
    %172 = memref.load %arg1[%c4_116, %c5_117] : memref<6x20xf32, #tpu.memory_space<smem>>
    %173 = vector.broadcast %172 : f32 to vector<16x128xf32>
    %174 = arith.mulf %173, %13 : vector<16x128xf32>
    %175 = arith.addf %171, %174 : vector<16x128xf32>
    %c5_118 = arith.constant 5 : index
    %c5_119 = arith.constant 5 : index
    %176 = memref.load %arg1[%c5_118, %c5_119] : memref<6x20xf32, #tpu.memory_space<smem>>
    %177 = vector.broadcast %176 : f32 to vector<16x128xf32>
    %178 = arith.mulf %177, %15 : vector<16x128xf32>
    %179 = arith.addf %175, %178 : vector<16x128xf32>
    %c0_120 = arith.constant 0 : index
    %c5_121 = arith.constant 5 : index
    %180 = memref.load %arg2[%c0_120, %c5_121] : memref<1x20xf32, #tpu.memory_space<smem>>
    %181 = vector.broadcast %180 : f32 to vector<16x128xf32>
    %182 = arith.addf %179, %181 : vector<16x128xf32>
    %183 = arith.mulf %182, %1 : vector<16x128xf32>
    %c0_122 = arith.constant 0 : index
    %c6 = arith.constant 6 : index
    %184 = memref.load %arg1[%c0_122, %c6] : memref<6x20xf32, #tpu.memory_space<smem>>
    %185 = vector.broadcast %184 : f32 to vector<16x128xf32>
    %186 = arith.mulf %185, %5 : vector<16x128xf32>
    %c1_123 = arith.constant 1 : index
    %c6_124 = arith.constant 6 : index
    %187 = memref.load %arg1[%c1_123, %c6_124] : memref<6x20xf32, #tpu.memory_space<smem>>
    %188 = vector.broadcast %187 : f32 to vector<16x128xf32>
    %189 = arith.mulf %188, %7 : vector<16x128xf32>
    %190 = arith.addf %186, %189 : vector<16x128xf32>
    %c2_125 = arith.constant 2 : index
    %c6_126 = arith.constant 6 : index
    %191 = memref.load %arg1[%c2_125, %c6_126] : memref<6x20xf32, #tpu.memory_space<smem>>
    %192 = vector.broadcast %191 : f32 to vector<16x128xf32>
    %193 = arith.mulf %192, %9 : vector<16x128xf32>
    %194 = arith.addf %190, %193 : vector<16x128xf32>
    %c3_127 = arith.constant 3 : index
    %c6_128 = arith.constant 6 : index
    %195 = memref.load %arg1[%c3_127, %c6_128] : memref<6x20xf32, #tpu.memory_space<smem>>
    %196 = vector.broadcast %195 : f32 to vector<16x128xf32>
    %197 = arith.mulf %196, %11 : vector<16x128xf32>
    %198 = arith.addf %194, %197 : vector<16x128xf32>
    %c4_129 = arith.constant 4 : index
    %c6_130 = arith.constant 6 : index
    %199 = memref.load %arg1[%c4_129, %c6_130] : memref<6x20xf32, #tpu.memory_space<smem>>
    %200 = vector.broadcast %199 : f32 to vector<16x128xf32>
    %201 = arith.mulf %200, %13 : vector<16x128xf32>
    %202 = arith.addf %198, %201 : vector<16x128xf32>
    %c5_131 = arith.constant 5 : index
    %c6_132 = arith.constant 6 : index
    %203 = memref.load %arg1[%c5_131, %c6_132] : memref<6x20xf32, #tpu.memory_space<smem>>
    %204 = vector.broadcast %203 : f32 to vector<16x128xf32>
    %205 = arith.mulf %204, %15 : vector<16x128xf32>
    %206 = arith.addf %202, %205 : vector<16x128xf32>
    %c0_133 = arith.constant 0 : index
    %c6_134 = arith.constant 6 : index
    %207 = memref.load %arg2[%c0_133, %c6_134] : memref<1x20xf32, #tpu.memory_space<smem>>
    %208 = vector.broadcast %207 : f32 to vector<16x128xf32>
    %209 = arith.addf %206, %208 : vector<16x128xf32>
    %210 = arith.mulf %209, %1 : vector<16x128xf32>
    %c0_135 = arith.constant 0 : index
    %c7 = arith.constant 7 : index
    %211 = memref.load %arg1[%c0_135, %c7] : memref<6x20xf32, #tpu.memory_space<smem>>
    %212 = vector.broadcast %211 : f32 to vector<16x128xf32>
    %213 = arith.mulf %212, %5 : vector<16x128xf32>
    %c1_136 = arith.constant 1 : index
    %c7_137 = arith.constant 7 : index
    %214 = memref.load %arg1[%c1_136, %c7_137] : memref<6x20xf32, #tpu.memory_space<smem>>
    %215 = vector.broadcast %214 : f32 to vector<16x128xf32>
    %216 = arith.mulf %215, %7 : vector<16x128xf32>
    %217 = arith.addf %213, %216 : vector<16x128xf32>
    %c2_138 = arith.constant 2 : index
    %c7_139 = arith.constant 7 : index
    %218 = memref.load %arg1[%c2_138, %c7_139] : memref<6x20xf32, #tpu.memory_space<smem>>
    %219 = vector.broadcast %218 : f32 to vector<16x128xf32>
    %220 = arith.mulf %219, %9 : vector<16x128xf32>
    %221 = arith.addf %217, %220 : vector<16x128xf32>
    %c3_140 = arith.constant 3 : index
    %c7_141 = arith.constant 7 : index
    %222 = memref.load %arg1[%c3_140, %c7_141] : memref<6x20xf32, #tpu.memory_space<smem>>
    %223 = vector.broadcast %222 : f32 to vector<16x128xf32>
    %224 = arith.mulf %223, %11 : vector<16x128xf32>
    %225 = arith.addf %221, %224 : vector<16x128xf32>
    %c4_142 = arith.constant 4 : index
    %c7_143 = arith.constant 7 : index
    %226 = memref.load %arg1[%c4_142, %c7_143] : memref<6x20xf32, #tpu.memory_space<smem>>
    %227 = vector.broadcast %226 : f32 to vector<16x128xf32>
    %228 = arith.mulf %227, %13 : vector<16x128xf32>
    %229 = arith.addf %225, %228 : vector<16x128xf32>
    %c5_144 = arith.constant 5 : index
    %c7_145 = arith.constant 7 : index
    %230 = memref.load %arg1[%c5_144, %c7_145] : memref<6x20xf32, #tpu.memory_space<smem>>
    %231 = vector.broadcast %230 : f32 to vector<16x128xf32>
    %232 = arith.mulf %231, %15 : vector<16x128xf32>
    %233 = arith.addf %229, %232 : vector<16x128xf32>
    %c0_146 = arith.constant 0 : index
    %c7_147 = arith.constant 7 : index
    %234 = memref.load %arg2[%c0_146, %c7_147] : memref<1x20xf32, #tpu.memory_space<smem>>
    %235 = vector.broadcast %234 : f32 to vector<16x128xf32>
    %236 = arith.addf %233, %235 : vector<16x128xf32>
    %237 = arith.mulf %236, %1 : vector<16x128xf32>
    %c0_148 = arith.constant 0 : index
    %c8 = arith.constant 8 : index
    %238 = memref.load %arg1[%c0_148, %c8] : memref<6x20xf32, #tpu.memory_space<smem>>
    %239 = vector.broadcast %238 : f32 to vector<16x128xf32>
    %240 = arith.mulf %239, %5 : vector<16x128xf32>
    %c1_149 = arith.constant 1 : index
    %c8_150 = arith.constant 8 : index
    %241 = memref.load %arg1[%c1_149, %c8_150] : memref<6x20xf32, #tpu.memory_space<smem>>
    %242 = vector.broadcast %241 : f32 to vector<16x128xf32>
    %243 = arith.mulf %242, %7 : vector<16x128xf32>
    %244 = arith.addf %240, %243 : vector<16x128xf32>
    %c2_151 = arith.constant 2 : index
    %c8_152 = arith.constant 8 : index
    %245 = memref.load %arg1[%c2_151, %c8_152] : memref<6x20xf32, #tpu.memory_space<smem>>
    %246 = vector.broadcast %245 : f32 to vector<16x128xf32>
    %247 = arith.mulf %246, %9 : vector<16x128xf32>
    %248 = arith.addf %244, %247 : vector<16x128xf32>
    %c3_153 = arith.constant 3 : index
    %c8_154 = arith.constant 8 : index
    %249 = memref.load %arg1[%c3_153, %c8_154] : memref<6x20xf32, #tpu.memory_space<smem>>
    %250 = vector.broadcast %249 : f32 to vector<16x128xf32>
    %251 = arith.mulf %250, %11 : vector<16x128xf32>
    %252 = arith.addf %248, %251 : vector<16x128xf32>
    %c4_155 = arith.constant 4 : index
    %c8_156 = arith.constant 8 : index
    %253 = memref.load %arg1[%c4_155, %c8_156] : memref<6x20xf32, #tpu.memory_space<smem>>
    %254 = vector.broadcast %253 : f32 to vector<16x128xf32>
    %255 = arith.mulf %254, %13 : vector<16x128xf32>
    %256 = arith.addf %252, %255 : vector<16x128xf32>
    %c5_157 = arith.constant 5 : index
    %c8_158 = arith.constant 8 : index
    %257 = memref.load %arg1[%c5_157, %c8_158] : memref<6x20xf32, #tpu.memory_space<smem>>
    %258 = vector.broadcast %257 : f32 to vector<16x128xf32>
    %259 = arith.mulf %258, %15 : vector<16x128xf32>
    %260 = arith.addf %256, %259 : vector<16x128xf32>
    %c0_159 = arith.constant 0 : index
    %c8_160 = arith.constant 8 : index
    %261 = memref.load %arg2[%c0_159, %c8_160] : memref<1x20xf32, #tpu.memory_space<smem>>
    %262 = vector.broadcast %261 : f32 to vector<16x128xf32>
    %263 = arith.addf %260, %262 : vector<16x128xf32>
    %264 = arith.mulf %263, %1 : vector<16x128xf32>
    %c0_161 = arith.constant 0 : index
    %c9 = arith.constant 9 : index
    %265 = memref.load %arg1[%c0_161, %c9] : memref<6x20xf32, #tpu.memory_space<smem>>
    %266 = vector.broadcast %265 : f32 to vector<16x128xf32>
    %267 = arith.mulf %266, %5 : vector<16x128xf32>
    %c1_162 = arith.constant 1 : index
    %c9_163 = arith.constant 9 : index
    %268 = memref.load %arg1[%c1_162, %c9_163] : memref<6x20xf32, #tpu.memory_space<smem>>
    %269 = vector.broadcast %268 : f32 to vector<16x128xf32>
    %270 = arith.mulf %269, %7 : vector<16x128xf32>
    %271 = arith.addf %267, %270 : vector<16x128xf32>
    %c2_164 = arith.constant 2 : index
    %c9_165 = arith.constant 9 : index
    %272 = memref.load %arg1[%c2_164, %c9_165] : memref<6x20xf32, #tpu.memory_space<smem>>
    %273 = vector.broadcast %272 : f32 to vector<16x128xf32>
    %274 = arith.mulf %273, %9 : vector<16x128xf32>
    %275 = arith.addf %271, %274 : vector<16x128xf32>
    %c3_166 = arith.constant 3 : index
    %c9_167 = arith.constant 9 : index
    %276 = memref.load %arg1[%c3_166, %c9_167] : memref<6x20xf32, #tpu.memory_space<smem>>
    %277 = vector.broadcast %276 : f32 to vector<16x128xf32>
    %278 = arith.mulf %277, %11 : vector<16x128xf32>
    %279 = arith.addf %275, %278 : vector<16x128xf32>
    %c4_168 = arith.constant 4 : index
    %c9_169 = arith.constant 9 : index
    %280 = memref.load %arg1[%c4_168, %c9_169] : memref<6x20xf32, #tpu.memory_space<smem>>
    %281 = vector.broadcast %280 : f32 to vector<16x128xf32>
    %282 = arith.mulf %281, %13 : vector<16x128xf32>
    %283 = arith.addf %279, %282 : vector<16x128xf32>
    %c5_170 = arith.constant 5 : index
    %c9_171 = arith.constant 9 : index
    %284 = memref.load %arg1[%c5_170, %c9_171] : memref<6x20xf32, #tpu.memory_space<smem>>
    %285 = vector.broadcast %284 : f32 to vector<16x128xf32>
    %286 = arith.mulf %285, %15 : vector<16x128xf32>
    %287 = arith.addf %283, %286 : vector<16x128xf32>
    %c0_172 = arith.constant 0 : index
    %c9_173 = arith.constant 9 : index
    %288 = memref.load %arg2[%c0_172, %c9_173] : memref<1x20xf32, #tpu.memory_space<smem>>
    %289 = vector.broadcast %288 : f32 to vector<16x128xf32>
    %290 = arith.addf %287, %289 : vector<16x128xf32>
    %291 = arith.mulf %290, %1 : vector<16x128xf32>
    %c0_174 = arith.constant 0 : index
    %c10 = arith.constant 10 : index
    %292 = memref.load %arg1[%c0_174, %c10] : memref<6x20xf32, #tpu.memory_space<smem>>
    %293 = vector.broadcast %292 : f32 to vector<16x128xf32>
    %294 = arith.mulf %293, %5 : vector<16x128xf32>
    %c1_175 = arith.constant 1 : index
    %c10_176 = arith.constant 10 : index
    %295 = memref.load %arg1[%c1_175, %c10_176] : memref<6x20xf32, #tpu.memory_space<smem>>
    %296 = vector.broadcast %295 : f32 to vector<16x128xf32>
    %297 = arith.mulf %296, %7 : vector<16x128xf32>
    %298 = arith.addf %294, %297 : vector<16x128xf32>
    %c2_177 = arith.constant 2 : index
    %c10_178 = arith.constant 10 : index
    %299 = memref.load %arg1[%c2_177, %c10_178] : memref<6x20xf32, #tpu.memory_space<smem>>
    %300 = vector.broadcast %299 : f32 to vector<16x128xf32>
    %301 = arith.mulf %300, %9 : vector<16x128xf32>
    %302 = arith.addf %298, %301 : vector<16x128xf32>
    %c3_179 = arith.constant 3 : index
    %c10_180 = arith.constant 10 : index
    %303 = memref.load %arg1[%c3_179, %c10_180] : memref<6x20xf32, #tpu.memory_space<smem>>
    %304 = vector.broadcast %303 : f32 to vector<16x128xf32>
    %305 = arith.mulf %304, %11 : vector<16x128xf32>
    %306 = arith.addf %302, %305 : vector<16x128xf32>
    %c4_181 = arith.constant 4 : index
    %c10_182 = arith.constant 10 : index
    %307 = memref.load %arg1[%c4_181, %c10_182] : memref<6x20xf32, #tpu.memory_space<smem>>
    %308 = vector.broadcast %307 : f32 to vector<16x128xf32>
    %309 = arith.mulf %308, %13 : vector<16x128xf32>
    %310 = arith.addf %306, %309 : vector<16x128xf32>
    %c5_183 = arith.constant 5 : index
    %c10_184 = arith.constant 10 : index
    %311 = memref.load %arg1[%c5_183, %c10_184] : memref<6x20xf32, #tpu.memory_space<smem>>
    %312 = vector.broadcast %311 : f32 to vector<16x128xf32>
    %313 = arith.mulf %312, %15 : vector<16x128xf32>
    %314 = arith.addf %310, %313 : vector<16x128xf32>
    %c0_185 = arith.constant 0 : index
    %c10_186 = arith.constant 10 : index
    %315 = memref.load %arg2[%c0_185, %c10_186] : memref<1x20xf32, #tpu.memory_space<smem>>
    %316 = vector.broadcast %315 : f32 to vector<16x128xf32>
    %317 = arith.addf %314, %316 : vector<16x128xf32>
    %318 = arith.mulf %317, %1 : vector<16x128xf32>
    %c0_187 = arith.constant 0 : index
    %c11 = arith.constant 11 : index
    %319 = memref.load %arg1[%c0_187, %c11] : memref<6x20xf32, #tpu.memory_space<smem>>
    %320 = vector.broadcast %319 : f32 to vector<16x128xf32>
    %321 = arith.mulf %320, %5 : vector<16x128xf32>
    %c1_188 = arith.constant 1 : index
    %c11_189 = arith.constant 11 : index
    %322 = memref.load %arg1[%c1_188, %c11_189] : memref<6x20xf32, #tpu.memory_space<smem>>
    %323 = vector.broadcast %322 : f32 to vector<16x128xf32>
    %324 = arith.mulf %323, %7 : vector<16x128xf32>
    %325 = arith.addf %321, %324 : vector<16x128xf32>
    %c2_190 = arith.constant 2 : index
    %c11_191 = arith.constant 11 : index
    %326 = memref.load %arg1[%c2_190, %c11_191] : memref<6x20xf32, #tpu.memory_space<smem>>
    %327 = vector.broadcast %326 : f32 to vector<16x128xf32>
    %328 = arith.mulf %327, %9 : vector<16x128xf32>
    %329 = arith.addf %325, %328 : vector<16x128xf32>
    %c3_192 = arith.constant 3 : index
    %c11_193 = arith.constant 11 : index
    %330 = memref.load %arg1[%c3_192, %c11_193] : memref<6x20xf32, #tpu.memory_space<smem>>
    %331 = vector.broadcast %330 : f32 to vector<16x128xf32>
    %332 = arith.mulf %331, %11 : vector<16x128xf32>
    %333 = arith.addf %329, %332 : vector<16x128xf32>
    %c4_194 = arith.constant 4 : index
    %c11_195 = arith.constant 11 : index
    %334 = memref.load %arg1[%c4_194, %c11_195] : memref<6x20xf32, #tpu.memory_space<smem>>
    %335 = vector.broadcast %334 : f32 to vector<16x128xf32>
    %336 = arith.mulf %335, %13 : vector<16x128xf32>
    %337 = arith.addf %333, %336 : vector<16x128xf32>
    %c5_196 = arith.constant 5 : index
    %c11_197 = arith.constant 11 : index
    %338 = memref.load %arg1[%c5_196, %c11_197] : memref<6x20xf32, #tpu.memory_space<smem>>
    %339 = vector.broadcast %338 : f32 to vector<16x128xf32>
    %340 = arith.mulf %339, %15 : vector<16x128xf32>
    %341 = arith.addf %337, %340 : vector<16x128xf32>
    %c0_198 = arith.constant 0 : index
    %c11_199 = arith.constant 11 : index
    %342 = memref.load %arg2[%c0_198, %c11_199] : memref<1x20xf32, #tpu.memory_space<smem>>
    %343 = vector.broadcast %342 : f32 to vector<16x128xf32>
    %344 = arith.addf %341, %343 : vector<16x128xf32>
    %345 = arith.mulf %344, %1 : vector<16x128xf32>
    %c0_200 = arith.constant 0 : index
    %c12 = arith.constant 12 : index
    %346 = memref.load %arg1[%c0_200, %c12] : memref<6x20xf32, #tpu.memory_space<smem>>
    %347 = vector.broadcast %346 : f32 to vector<16x128xf32>
    %348 = arith.mulf %347, %5 : vector<16x128xf32>
    %c1_201 = arith.constant 1 : index
    %c12_202 = arith.constant 12 : index
    %349 = memref.load %arg1[%c1_201, %c12_202] : memref<6x20xf32, #tpu.memory_space<smem>>
    %350 = vector.broadcast %349 : f32 to vector<16x128xf32>
    %351 = arith.mulf %350, %7 : vector<16x128xf32>
    %352 = arith.addf %348, %351 : vector<16x128xf32>
    %c2_203 = arith.constant 2 : index
    %c12_204 = arith.constant 12 : index
    %353 = memref.load %arg1[%c2_203, %c12_204] : memref<6x20xf32, #tpu.memory_space<smem>>
    %354 = vector.broadcast %353 : f32 to vector<16x128xf32>
    %355 = arith.mulf %354, %9 : vector<16x128xf32>
    %356 = arith.addf %352, %355 : vector<16x128xf32>
    %c3_205 = arith.constant 3 : index
    %c12_206 = arith.constant 12 : index
    %357 = memref.load %arg1[%c3_205, %c12_206] : memref<6x20xf32, #tpu.memory_space<smem>>
    %358 = vector.broadcast %357 : f32 to vector<16x128xf32>
    %359 = arith.mulf %358, %11 : vector<16x128xf32>
    %360 = arith.addf %356, %359 : vector<16x128xf32>
    %c4_207 = arith.constant 4 : index
    %c12_208 = arith.constant 12 : index
    %361 = memref.load %arg1[%c4_207, %c12_208] : memref<6x20xf32, #tpu.memory_space<smem>>
    %362 = vector.broadcast %361 : f32 to vector<16x128xf32>
    %363 = arith.mulf %362, %13 : vector<16x128xf32>
    %364 = arith.addf %360, %363 : vector<16x128xf32>
    %c5_209 = arith.constant 5 : index
    %c12_210 = arith.constant 12 : index
    %365 = memref.load %arg1[%c5_209, %c12_210] : memref<6x20xf32, #tpu.memory_space<smem>>
    %366 = vector.broadcast %365 : f32 to vector<16x128xf32>
    %367 = arith.mulf %366, %15 : vector<16x128xf32>
    %368 = arith.addf %364, %367 : vector<16x128xf32>
    %c0_211 = arith.constant 0 : index
    %c12_212 = arith.constant 12 : index
    %369 = memref.load %arg2[%c0_211, %c12_212] : memref<1x20xf32, #tpu.memory_space<smem>>
    %370 = vector.broadcast %369 : f32 to vector<16x128xf32>
    %371 = arith.addf %368, %370 : vector<16x128xf32>
    %372 = arith.mulf %371, %1 : vector<16x128xf32>
    %c0_213 = arith.constant 0 : index
    %c13 = arith.constant 13 : index
    %373 = memref.load %arg1[%c0_213, %c13] : memref<6x20xf32, #tpu.memory_space<smem>>
    %374 = vector.broadcast %373 : f32 to vector<16x128xf32>
    %375 = arith.mulf %374, %5 : vector<16x128xf32>
    %c1_214 = arith.constant 1 : index
    %c13_215 = arith.constant 13 : index
    %376 = memref.load %arg1[%c1_214, %c13_215] : memref<6x20xf32, #tpu.memory_space<smem>>
    %377 = vector.broadcast %376 : f32 to vector<16x128xf32>
    %378 = arith.mulf %377, %7 : vector<16x128xf32>
    %379 = arith.addf %375, %378 : vector<16x128xf32>
    %c2_216 = arith.constant 2 : index
    %c13_217 = arith.constant 13 : index
    %380 = memref.load %arg1[%c2_216, %c13_217] : memref<6x20xf32, #tpu.memory_space<smem>>
    %381 = vector.broadcast %380 : f32 to vector<16x128xf32>
    %382 = arith.mulf %381, %9 : vector<16x128xf32>
    %383 = arith.addf %379, %382 : vector<16x128xf32>
    %c3_218 = arith.constant 3 : index
    %c13_219 = arith.constant 13 : index
    %384 = memref.load %arg1[%c3_218, %c13_219] : memref<6x20xf32, #tpu.memory_space<smem>>
    %385 = vector.broadcast %384 : f32 to vector<16x128xf32>
    %386 = arith.mulf %385, %11 : vector<16x128xf32>
    %387 = arith.addf %383, %386 : vector<16x128xf32>
    %c4_220 = arith.constant 4 : index
    %c13_221 = arith.constant 13 : index
    %388 = memref.load %arg1[%c4_220, %c13_221] : memref<6x20xf32, #tpu.memory_space<smem>>
    %389 = vector.broadcast %388 : f32 to vector<16x128xf32>
    %390 = arith.mulf %389, %13 : vector<16x128xf32>
    %391 = arith.addf %387, %390 : vector<16x128xf32>
    %c5_222 = arith.constant 5 : index
    %c13_223 = arith.constant 13 : index
    %392 = memref.load %arg1[%c5_222, %c13_223] : memref<6x20xf32, #tpu.memory_space<smem>>
    %393 = vector.broadcast %392 : f32 to vector<16x128xf32>
    %394 = arith.mulf %393, %15 : vector<16x128xf32>
    %395 = arith.addf %391, %394 : vector<16x128xf32>
    %c0_224 = arith.constant 0 : index
    %c13_225 = arith.constant 13 : index
    %396 = memref.load %arg2[%c0_224, %c13_225] : memref<1x20xf32, #tpu.memory_space<smem>>
    %397 = vector.broadcast %396 : f32 to vector<16x128xf32>
    %398 = arith.addf %395, %397 : vector<16x128xf32>
    %399 = arith.mulf %398, %1 : vector<16x128xf32>
    %c0_226 = arith.constant 0 : index
    %c14 = arith.constant 14 : index
    %400 = memref.load %arg1[%c0_226, %c14] : memref<6x20xf32, #tpu.memory_space<smem>>
    %401 = vector.broadcast %400 : f32 to vector<16x128xf32>
    %402 = arith.mulf %401, %5 : vector<16x128xf32>
    %c1_227 = arith.constant 1 : index
    %c14_228 = arith.constant 14 : index
    %403 = memref.load %arg1[%c1_227, %c14_228] : memref<6x20xf32, #tpu.memory_space<smem>>
    %404 = vector.broadcast %403 : f32 to vector<16x128xf32>
    %405 = arith.mulf %404, %7 : vector<16x128xf32>
    %406 = arith.addf %402, %405 : vector<16x128xf32>
    %c2_229 = arith.constant 2 : index
    %c14_230 = arith.constant 14 : index
    %407 = memref.load %arg1[%c2_229, %c14_230] : memref<6x20xf32, #tpu.memory_space<smem>>
    %408 = vector.broadcast %407 : f32 to vector<16x128xf32>
    %409 = arith.mulf %408, %9 : vector<16x128xf32>
    %410 = arith.addf %406, %409 : vector<16x128xf32>
    %c3_231 = arith.constant 3 : index
    %c14_232 = arith.constant 14 : index
    %411 = memref.load %arg1[%c3_231, %c14_232] : memref<6x20xf32, #tpu.memory_space<smem>>
    %412 = vector.broadcast %411 : f32 to vector<16x128xf32>
    %413 = arith.mulf %412, %11 : vector<16x128xf32>
    %414 = arith.addf %410, %413 : vector<16x128xf32>
    %c4_233 = arith.constant 4 : index
    %c14_234 = arith.constant 14 : index
    %415 = memref.load %arg1[%c4_233, %c14_234] : memref<6x20xf32, #tpu.memory_space<smem>>
    %416 = vector.broadcast %415 : f32 to vector<16x128xf32>
    %417 = arith.mulf %416, %13 : vector<16x128xf32>
    %418 = arith.addf %414, %417 : vector<16x128xf32>
    %c5_235 = arith.constant 5 : index
    %c14_236 = arith.constant 14 : index
    %419 = memref.load %arg1[%c5_235, %c14_236] : memref<6x20xf32, #tpu.memory_space<smem>>
    %420 = vector.broadcast %419 : f32 to vector<16x128xf32>
    %421 = arith.mulf %420, %15 : vector<16x128xf32>
    %422 = arith.addf %418, %421 : vector<16x128xf32>
    %c0_237 = arith.constant 0 : index
    %c14_238 = arith.constant 14 : index
    %423 = memref.load %arg2[%c0_237, %c14_238] : memref<1x20xf32, #tpu.memory_space<smem>>
    %424 = vector.broadcast %423 : f32 to vector<16x128xf32>
    %425 = arith.addf %422, %424 : vector<16x128xf32>
    %426 = arith.mulf %425, %1 : vector<16x128xf32>
    %c0_239 = arith.constant 0 : index
    %c15 = arith.constant 15 : index
    %427 = memref.load %arg1[%c0_239, %c15] : memref<6x20xf32, #tpu.memory_space<smem>>
    %428 = vector.broadcast %427 : f32 to vector<16x128xf32>
    %429 = arith.mulf %428, %5 : vector<16x128xf32>
    %c1_240 = arith.constant 1 : index
    %c15_241 = arith.constant 15 : index
    %430 = memref.load %arg1[%c1_240, %c15_241] : memref<6x20xf32, #tpu.memory_space<smem>>
    %431 = vector.broadcast %430 : f32 to vector<16x128xf32>
    %432 = arith.mulf %431, %7 : vector<16x128xf32>
    %433 = arith.addf %429, %432 : vector<16x128xf32>
    %c2_242 = arith.constant 2 : index
    %c15_243 = arith.constant 15 : index
    %434 = memref.load %arg1[%c2_242, %c15_243] : memref<6x20xf32, #tpu.memory_space<smem>>
    %435 = vector.broadcast %434 : f32 to vector<16x128xf32>
    %436 = arith.mulf %435, %9 : vector<16x128xf32>
    %437 = arith.addf %433, %436 : vector<16x128xf32>
    %c3_244 = arith.constant 3 : index
    %c15_245 = arith.constant 15 : index
    %438 = memref.load %arg1[%c3_244, %c15_245] : memref<6x20xf32, #tpu.memory_space<smem>>
    %439 = vector.broadcast %438 : f32 to vector<16x128xf32>
    %440 = arith.mulf %439, %11 : vector<16x128xf32>
    %441 = arith.addf %437, %440 : vector<16x128xf32>
    %c4_246 = arith.constant 4 : index
    %c15_247 = arith.constant 15 : index
    %442 = memref.load %arg1[%c4_246, %c15_247] : memref<6x20xf32, #tpu.memory_space<smem>>
    %443 = vector.broadcast %442 : f32 to vector<16x128xf32>
    %444 = arith.mulf %443, %13 : vector<16x128xf32>
    %445 = arith.addf %441, %444 : vector<16x128xf32>
    %c5_248 = arith.constant 5 : index
    %c15_249 = arith.constant 15 : index
    %446 = memref.load %arg1[%c5_248, %c15_249] : memref<6x20xf32, #tpu.memory_space<smem>>
    %447 = vector.broadcast %446 : f32 to vector<16x128xf32>
    %448 = arith.mulf %447, %15 : vector<16x128xf32>
    %449 = arith.addf %445, %448 : vector<16x128xf32>
    %c0_250 = arith.constant 0 : index
    %c15_251 = arith.constant 15 : index
    %450 = memref.load %arg2[%c0_250, %c15_251] : memref<1x20xf32, #tpu.memory_space<smem>>
    %451 = vector.broadcast %450 : f32 to vector<16x128xf32>
    %452 = arith.addf %449, %451 : vector<16x128xf32>
    %453 = arith.mulf %452, %1 : vector<16x128xf32>
    %c0_252 = arith.constant 0 : index
    %c16 = arith.constant 16 : index
    %454 = memref.load %arg1[%c0_252, %c16] : memref<6x20xf32, #tpu.memory_space<smem>>
    %455 = vector.broadcast %454 : f32 to vector<16x128xf32>
    %456 = arith.mulf %455, %5 : vector<16x128xf32>
    %c1_253 = arith.constant 1 : index
    %c16_254 = arith.constant 16 : index
    %457 = memref.load %arg1[%c1_253, %c16_254] : memref<6x20xf32, #tpu.memory_space<smem>>
    %458 = vector.broadcast %457 : f32 to vector<16x128xf32>
    %459 = arith.mulf %458, %7 : vector<16x128xf32>
    %460 = arith.addf %456, %459 : vector<16x128xf32>
    %c2_255 = arith.constant 2 : index
    %c16_256 = arith.constant 16 : index
    %461 = memref.load %arg1[%c2_255, %c16_256] : memref<6x20xf32, #tpu.memory_space<smem>>
    %462 = vector.broadcast %461 : f32 to vector<16x128xf32>
    %463 = arith.mulf %462, %9 : vector<16x128xf32>
    %464 = arith.addf %460, %463 : vector<16x128xf32>
    %c3_257 = arith.constant 3 : index
    %c16_258 = arith.constant 16 : index
    %465 = memref.load %arg1[%c3_257, %c16_258] : memref<6x20xf32, #tpu.memory_space<smem>>
    %466 = vector.broadcast %465 : f32 to vector<16x128xf32>
    %467 = arith.mulf %466, %11 : vector<16x128xf32>
    %468 = arith.addf %464, %467 : vector<16x128xf32>
    %c4_259 = arith.constant 4 : index
    %c16_260 = arith.constant 16 : index
    %469 = memref.load %arg1[%c4_259, %c16_260] : memref<6x20xf32, #tpu.memory_space<smem>>
    %470 = vector.broadcast %469 : f32 to vector<16x128xf32>
    %471 = arith.mulf %470, %13 : vector<16x128xf32>
    %472 = arith.addf %468, %471 : vector<16x128xf32>
    %c5_261 = arith.constant 5 : index
    %c16_262 = arith.constant 16 : index
    %473 = memref.load %arg1[%c5_261, %c16_262] : memref<6x20xf32, #tpu.memory_space<smem>>
    %474 = vector.broadcast %473 : f32 to vector<16x128xf32>
    %475 = arith.mulf %474, %15 : vector<16x128xf32>
    %476 = arith.addf %472, %475 : vector<16x128xf32>
    %c0_263 = arith.constant 0 : index
    %c16_264 = arith.constant 16 : index
    %477 = memref.load %arg2[%c0_263, %c16_264] : memref<1x20xf32, #tpu.memory_space<smem>>
    %478 = vector.broadcast %477 : f32 to vector<16x128xf32>
    %479 = arith.addf %476, %478 : vector<16x128xf32>
    %480 = arith.mulf %479, %1 : vector<16x128xf32>
    %c0_265 = arith.constant 0 : index
    %c17 = arith.constant 17 : index
    %481 = memref.load %arg1[%c0_265, %c17] : memref<6x20xf32, #tpu.memory_space<smem>>
    %482 = vector.broadcast %481 : f32 to vector<16x128xf32>
    %483 = arith.mulf %482, %5 : vector<16x128xf32>
    %c1_266 = arith.constant 1 : index
    %c17_267 = arith.constant 17 : index
    %484 = memref.load %arg1[%c1_266, %c17_267] : memref<6x20xf32, #tpu.memory_space<smem>>
    %485 = vector.broadcast %484 : f32 to vector<16x128xf32>
    %486 = arith.mulf %485, %7 : vector<16x128xf32>
    %487 = arith.addf %483, %486 : vector<16x128xf32>
    %c2_268 = arith.constant 2 : index
    %c17_269 = arith.constant 17 : index
    %488 = memref.load %arg1[%c2_268, %c17_269] : memref<6x20xf32, #tpu.memory_space<smem>>
    %489 = vector.broadcast %488 : f32 to vector<16x128xf32>
    %490 = arith.mulf %489, %9 : vector<16x128xf32>
    %491 = arith.addf %487, %490 : vector<16x128xf32>
    %c3_270 = arith.constant 3 : index
    %c17_271 = arith.constant 17 : index
    %492 = memref.load %arg1[%c3_270, %c17_271] : memref<6x20xf32, #tpu.memory_space<smem>>
    %493 = vector.broadcast %492 : f32 to vector<16x128xf32>
    %494 = arith.mulf %493, %11 : vector<16x128xf32>
    %495 = arith.addf %491, %494 : vector<16x128xf32>
    %c4_272 = arith.constant 4 : index
    %c17_273 = arith.constant 17 : index
    %496 = memref.load %arg1[%c4_272, %c17_273] : memref<6x20xf32, #tpu.memory_space<smem>>
    %497 = vector.broadcast %496 : f32 to vector<16x128xf32>
    %498 = arith.mulf %497, %13 : vector<16x128xf32>
    %499 = arith.addf %495, %498 : vector<16x128xf32>
    %c5_274 = arith.constant 5 : index
    %c17_275 = arith.constant 17 : index
    %500 = memref.load %arg1[%c5_274, %c17_275] : memref<6x20xf32, #tpu.memory_space<smem>>
    %501 = vector.broadcast %500 : f32 to vector<16x128xf32>
    %502 = arith.mulf %501, %15 : vector<16x128xf32>
    %503 = arith.addf %499, %502 : vector<16x128xf32>
    %c0_276 = arith.constant 0 : index
    %c17_277 = arith.constant 17 : index
    %504 = memref.load %arg2[%c0_276, %c17_277] : memref<1x20xf32, #tpu.memory_space<smem>>
    %505 = vector.broadcast %504 : f32 to vector<16x128xf32>
    %506 = arith.addf %503, %505 : vector<16x128xf32>
    %507 = arith.mulf %506, %1 : vector<16x128xf32>
    %c0_278 = arith.constant 0 : index
    %c18 = arith.constant 18 : index
    %508 = memref.load %arg1[%c0_278, %c18] : memref<6x20xf32, #tpu.memory_space<smem>>
    %509 = vector.broadcast %508 : f32 to vector<16x128xf32>
    %510 = arith.mulf %509, %5 : vector<16x128xf32>
    %c1_279 = arith.constant 1 : index
    %c18_280 = arith.constant 18 : index
    %511 = memref.load %arg1[%c1_279, %c18_280] : memref<6x20xf32, #tpu.memory_space<smem>>
    %512 = vector.broadcast %511 : f32 to vector<16x128xf32>
    %513 = arith.mulf %512, %7 : vector<16x128xf32>
    %514 = arith.addf %510, %513 : vector<16x128xf32>
    %c2_281 = arith.constant 2 : index
    %c18_282 = arith.constant 18 : index
    %515 = memref.load %arg1[%c2_281, %c18_282] : memref<6x20xf32, #tpu.memory_space<smem>>
    %516 = vector.broadcast %515 : f32 to vector<16x128xf32>
    %517 = arith.mulf %516, %9 : vector<16x128xf32>
    %518 = arith.addf %514, %517 : vector<16x128xf32>
    %c3_283 = arith.constant 3 : index
    %c18_284 = arith.constant 18 : index
    %519 = memref.load %arg1[%c3_283, %c18_284] : memref<6x20xf32, #tpu.memory_space<smem>>
    %520 = vector.broadcast %519 : f32 to vector<16x128xf32>
    %521 = arith.mulf %520, %11 : vector<16x128xf32>
    %522 = arith.addf %518, %521 : vector<16x128xf32>
    %c4_285 = arith.constant 4 : index
    %c18_286 = arith.constant 18 : index
    %523 = memref.load %arg1[%c4_285, %c18_286] : memref<6x20xf32, #tpu.memory_space<smem>>
    %524 = vector.broadcast %523 : f32 to vector<16x128xf32>
    %525 = arith.mulf %524, %13 : vector<16x128xf32>
    %526 = arith.addf %522, %525 : vector<16x128xf32>
    %c5_287 = arith.constant 5 : index
    %c18_288 = arith.constant 18 : index
    %527 = memref.load %arg1[%c5_287, %c18_288] : memref<6x20xf32, #tpu.memory_space<smem>>
    %528 = vector.broadcast %527 : f32 to vector<16x128xf32>
    %529 = arith.mulf %528, %15 : vector<16x128xf32>
    %530 = arith.addf %526, %529 : vector<16x128xf32>
    %c0_289 = arith.constant 0 : index
    %c18_290 = arith.constant 18 : index
    %531 = memref.load %arg2[%c0_289, %c18_290] : memref<1x20xf32, #tpu.memory_space<smem>>
    %532 = vector.broadcast %531 : f32 to vector<16x128xf32>
    %533 = arith.addf %530, %532 : vector<16x128xf32>
    %534 = arith.mulf %533, %1 : vector<16x128xf32>
    %c0_291 = arith.constant 0 : index
    %c19 = arith.constant 19 : index
    %535 = memref.load %arg1[%c0_291, %c19] : memref<6x20xf32, #tpu.memory_space<smem>>
    %536 = vector.broadcast %535 : f32 to vector<16x128xf32>
    %537 = arith.mulf %536, %5 : vector<16x128xf32>
    %c1_292 = arith.constant 1 : index
    %c19_293 = arith.constant 19 : index
    %538 = memref.load %arg1[%c1_292, %c19_293] : memref<6x20xf32, #tpu.memory_space<smem>>
    %539 = vector.broadcast %538 : f32 to vector<16x128xf32>
    %540 = arith.mulf %539, %7 : vector<16x128xf32>
    %541 = arith.addf %537, %540 : vector<16x128xf32>
    %c2_294 = arith.constant 2 : index
    %c19_295 = arith.constant 19 : index
    %542 = memref.load %arg1[%c2_294, %c19_295] : memref<6x20xf32, #tpu.memory_space<smem>>
    %543 = vector.broadcast %542 : f32 to vector<16x128xf32>
    %544 = arith.mulf %543, %9 : vector<16x128xf32>
    %545 = arith.addf %541, %544 : vector<16x128xf32>
    %c3_296 = arith.constant 3 : index
    %c19_297 = arith.constant 19 : index
    %546 = memref.load %arg1[%c3_296, %c19_297] : memref<6x20xf32, #tpu.memory_space<smem>>
    %547 = vector.broadcast %546 : f32 to vector<16x128xf32>
    %548 = arith.mulf %547, %11 : vector<16x128xf32>
    %549 = arith.addf %545, %548 : vector<16x128xf32>
    %c4_298 = arith.constant 4 : index
    %c19_299 = arith.constant 19 : index
    %550 = memref.load %arg1[%c4_298, %c19_299] : memref<6x20xf32, #tpu.memory_space<smem>>
    %551 = vector.broadcast %550 : f32 to vector<16x128xf32>
    %552 = arith.mulf %551, %13 : vector<16x128xf32>
    %553 = arith.addf %549, %552 : vector<16x128xf32>
    %c5_300 = arith.constant 5 : index
    %c19_301 = arith.constant 19 : index
    %554 = memref.load %arg1[%c5_300, %c19_301] : memref<6x20xf32, #tpu.memory_space<smem>>
    %555 = vector.broadcast %554 : f32 to vector<16x128xf32>
    %556 = arith.mulf %555, %15 : vector<16x128xf32>
    %557 = arith.addf %553, %556 : vector<16x128xf32>
    %c0_302 = arith.constant 0 : index
    %c19_303 = arith.constant 19 : index
    %558 = memref.load %arg2[%c0_302, %c19_303] : memref<1x20xf32, #tpu.memory_space<smem>>
    %559 = vector.broadcast %558 : f32 to vector<16x128xf32>
    %560 = arith.addf %557, %559 : vector<16x128xf32>
    %561 = arith.mulf %560, %1 : vector<16x128xf32>
    %c0_304 = arith.constant 0 : index
    %c0_305 = arith.constant 0 : index
    %562 = memref.load %arg1[%c0_304, %c0_305] : memref<6x20xf32, #tpu.memory_space<smem>>
    %563 = vector.broadcast %562 : f32 to vector<16x128xf32>
    %564 = arith.mulf %563, %11 : vector<16x128xf32>
    %c1_306 = arith.constant 1 : index
    %c0_307 = arith.constant 0 : index
    %565 = memref.load %arg1[%c1_306, %c0_307] : memref<6x20xf32, #tpu.memory_space<smem>>
    %566 = vector.broadcast %565 : f32 to vector<16x128xf32>
    %567 = arith.mulf %566, %13 : vector<16x128xf32>
    %568 = arith.addf %564, %567 : vector<16x128xf32>
    %c2_308 = arith.constant 2 : index
    %c0_309 = arith.constant 0 : index
    %569 = memref.load %arg1[%c2_308, %c0_309] : memref<6x20xf32, #tpu.memory_space<smem>>
    %570 = vector.broadcast %569 : f32 to vector<16x128xf32>
    %571 = arith.mulf %570, %15 : vector<16x128xf32>
    %572 = arith.addf %568, %571 : vector<16x128xf32>
    %c3_310 = arith.constant 3 : index
    %c0_311 = arith.constant 0 : index
    %573 = memref.load %arg1[%c3_310, %c0_311] : memref<6x20xf32, #tpu.memory_space<smem>>
    %574 = vector.broadcast %573 : f32 to vector<16x128xf32>
    %575 = arith.mulf %574, %17 : vector<16x128xf32>
    %576 = arith.addf %572, %575 : vector<16x128xf32>
    %c4_312 = arith.constant 4 : index
    %c0_313 = arith.constant 0 : index
    %577 = memref.load %arg1[%c4_312, %c0_313] : memref<6x20xf32, #tpu.memory_space<smem>>
    %578 = vector.broadcast %577 : f32 to vector<16x128xf32>
    %579 = arith.mulf %578, %19 : vector<16x128xf32>
    %580 = arith.addf %576, %579 : vector<16x128xf32>
    %c5_314 = arith.constant 5 : index
    %c0_315 = arith.constant 0 : index
    %581 = memref.load %arg1[%c5_314, %c0_315] : memref<6x20xf32, #tpu.memory_space<smem>>
    %582 = vector.broadcast %581 : f32 to vector<16x128xf32>
    %583 = arith.mulf %582, %21 : vector<16x128xf32>
    %584 = arith.addf %580, %583 : vector<16x128xf32>
    %c0_316 = arith.constant 0 : index
    %c0_317 = arith.constant 0 : index
    %585 = memref.load %arg2[%c0_316, %c0_317] : memref<1x20xf32, #tpu.memory_space<smem>>
    %586 = vector.broadcast %585 : f32 to vector<16x128xf32>
    %587 = arith.addf %584, %586 : vector<16x128xf32>
    %588 = arith.mulf %587, %1 : vector<16x128xf32>
    %c0_318 = arith.constant 0 : index
    %c1_319 = arith.constant 1 : index
    %589 = memref.load %arg1[%c0_318, %c1_319] : memref<6x20xf32, #tpu.memory_space<smem>>
    %590 = vector.broadcast %589 : f32 to vector<16x128xf32>
    %591 = arith.mulf %590, %11 : vector<16x128xf32>
    %c1_320 = arith.constant 1 : index
    %c1_321 = arith.constant 1 : index
    %592 = memref.load %arg1[%c1_320, %c1_321] : memref<6x20xf32, #tpu.memory_space<smem>>
    %593 = vector.broadcast %592 : f32 to vector<16x128xf32>
    %594 = arith.mulf %593, %13 : vector<16x128xf32>
    %595 = arith.addf %591, %594 : vector<16x128xf32>
    %c2_322 = arith.constant 2 : index
    %c1_323 = arith.constant 1 : index
    %596 = memref.load %arg1[%c2_322, %c1_323] : memref<6x20xf32, #tpu.memory_space<smem>>
    %597 = vector.broadcast %596 : f32 to vector<16x128xf32>
    %598 = arith.mulf %597, %15 : vector<16x128xf32>
    %599 = arith.addf %595, %598 : vector<16x128xf32>
    %c3_324 = arith.constant 3 : index
    %c1_325 = arith.constant 1 : index
    %600 = memref.load %arg1[%c3_324, %c1_325] : memref<6x20xf32, #tpu.memory_space<smem>>
    %601 = vector.broadcast %600 : f32 to vector<16x128xf32>
    %602 = arith.mulf %601, %17 : vector<16x128xf32>
    %603 = arith.addf %599, %602 : vector<16x128xf32>
    %c4_326 = arith.constant 4 : index
    %c1_327 = arith.constant 1 : index
    %604 = memref.load %arg1[%c4_326, %c1_327] : memref<6x20xf32, #tpu.memory_space<smem>>
    %605 = vector.broadcast %604 : f32 to vector<16x128xf32>
    %606 = arith.mulf %605, %19 : vector<16x128xf32>
    %607 = arith.addf %603, %606 : vector<16x128xf32>
    %c5_328 = arith.constant 5 : index
    %c1_329 = arith.constant 1 : index
    %608 = memref.load %arg1[%c5_328, %c1_329] : memref<6x20xf32, #tpu.memory_space<smem>>
    %609 = vector.broadcast %608 : f32 to vector<16x128xf32>
    %610 = arith.mulf %609, %21 : vector<16x128xf32>
    %611 = arith.addf %607, %610 : vector<16x128xf32>
    %c0_330 = arith.constant 0 : index
    %c1_331 = arith.constant 1 : index
    %612 = memref.load %arg2[%c0_330, %c1_331] : memref<1x20xf32, #tpu.memory_space<smem>>
    %613 = vector.broadcast %612 : f32 to vector<16x128xf32>
    %614 = arith.addf %611, %613 : vector<16x128xf32>
    %615 = arith.mulf %614, %1 : vector<16x128xf32>
    %c0_332 = arith.constant 0 : index
    %c2_333 = arith.constant 2 : index
    %616 = memref.load %arg1[%c0_332, %c2_333] : memref<6x20xf32, #tpu.memory_space<smem>>
    %617 = vector.broadcast %616 : f32 to vector<16x128xf32>
    %618 = arith.mulf %617, %11 : vector<16x128xf32>
    %c1_334 = arith.constant 1 : index
    %c2_335 = arith.constant 2 : index
    %619 = memref.load %arg1[%c1_334, %c2_335] : memref<6x20xf32, #tpu.memory_space<smem>>
    %620 = vector.broadcast %619 : f32 to vector<16x128xf32>
    %621 = arith.mulf %620, %13 : vector<16x128xf32>
    %622 = arith.addf %618, %621 : vector<16x128xf32>
    %c2_336 = arith.constant 2 : index
    %c2_337 = arith.constant 2 : index
    %623 = memref.load %arg1[%c2_336, %c2_337] : memref<6x20xf32, #tpu.memory_space<smem>>
    %624 = vector.broadcast %623 : f32 to vector<16x128xf32>
    %625 = arith.mulf %624, %15 : vector<16x128xf32>
    %626 = arith.addf %622, %625 : vector<16x128xf32>
    %c3_338 = arith.constant 3 : index
    %c2_339 = arith.constant 2 : index
    %627 = memref.load %arg1[%c3_338, %c2_339] : memref<6x20xf32, #tpu.memory_space<smem>>
    %628 = vector.broadcast %627 : f32 to vector<16x128xf32>
    %629 = arith.mulf %628, %17 : vector<16x128xf32>
    %630 = arith.addf %626, %629 : vector<16x128xf32>
    %c4_340 = arith.constant 4 : index
    %c2_341 = arith.constant 2 : index
    %631 = memref.load %arg1[%c4_340, %c2_341] : memref<6x20xf32, #tpu.memory_space<smem>>
    %632 = vector.broadcast %631 : f32 to vector<16x128xf32>
    %633 = arith.mulf %632, %19 : vector<16x128xf32>
    %634 = arith.addf %630, %633 : vector<16x128xf32>
    %c5_342 = arith.constant 5 : index
    %c2_343 = arith.constant 2 : index
    %635 = memref.load %arg1[%c5_342, %c2_343] : memref<6x20xf32, #tpu.memory_space<smem>>
    %636 = vector.broadcast %635 : f32 to vector<16x128xf32>
    %637 = arith.mulf %636, %21 : vector<16x128xf32>
    %638 = arith.addf %634, %637 : vector<16x128xf32>
    %c0_344 = arith.constant 0 : index
    %c2_345 = arith.constant 2 : index
    %639 = memref.load %arg2[%c0_344, %c2_345] : memref<1x20xf32, #tpu.memory_space<smem>>
    %640 = vector.broadcast %639 : f32 to vector<16x128xf32>
    %641 = arith.addf %638, %640 : vector<16x128xf32>
    %642 = arith.mulf %641, %1 : vector<16x128xf32>
    %c0_346 = arith.constant 0 : index
    %c3_347 = arith.constant 3 : index
    %643 = memref.load %arg1[%c0_346, %c3_347] : memref<6x20xf32, #tpu.memory_space<smem>>
    %644 = vector.broadcast %643 : f32 to vector<16x128xf32>
    %645 = arith.mulf %644, %11 : vector<16x128xf32>
    %c1_348 = arith.constant 1 : index
    %c3_349 = arith.constant 3 : index
    %646 = memref.load %arg1[%c1_348, %c3_349] : memref<6x20xf32, #tpu.memory_space<smem>>
    %647 = vector.broadcast %646 : f32 to vector<16x128xf32>
    %648 = arith.mulf %647, %13 : vector<16x128xf32>
    %649 = arith.addf %645, %648 : vector<16x128xf32>
    %c2_350 = arith.constant 2 : index
    %c3_351 = arith.constant 3 : index
    %650 = memref.load %arg1[%c2_350, %c3_351] : memref<6x20xf32, #tpu.memory_space<smem>>
    %651 = vector.broadcast %650 : f32 to vector<16x128xf32>
    %652 = arith.mulf %651, %15 : vector<16x128xf32>
    %653 = arith.addf %649, %652 : vector<16x128xf32>
    %c3_352 = arith.constant 3 : index
    %c3_353 = arith.constant 3 : index
    %654 = memref.load %arg1[%c3_352, %c3_353] : memref<6x20xf32, #tpu.memory_space<smem>>
    %655 = vector.broadcast %654 : f32 to vector<16x128xf32>
    %656 = arith.mulf %655, %17 : vector<16x128xf32>
    %657 = arith.addf %653, %656 : vector<16x128xf32>
    %c4_354 = arith.constant 4 : index
    %c3_355 = arith.constant 3 : index
    %658 = memref.load %arg1[%c4_354, %c3_355] : memref<6x20xf32, #tpu.memory_space<smem>>
    %659 = vector.broadcast %658 : f32 to vector<16x128xf32>
    %660 = arith.mulf %659, %19 : vector<16x128xf32>
    %661 = arith.addf %657, %660 : vector<16x128xf32>
    %c5_356 = arith.constant 5 : index
    %c3_357 = arith.constant 3 : index
    %662 = memref.load %arg1[%c5_356, %c3_357] : memref<6x20xf32, #tpu.memory_space<smem>>
    %663 = vector.broadcast %662 : f32 to vector<16x128xf32>
    %664 = arith.mulf %663, %21 : vector<16x128xf32>
    %665 = arith.addf %661, %664 : vector<16x128xf32>
    %c0_358 = arith.constant 0 : index
    %c3_359 = arith.constant 3 : index
    %666 = memref.load %arg2[%c0_358, %c3_359] : memref<1x20xf32, #tpu.memory_space<smem>>
    %667 = vector.broadcast %666 : f32 to vector<16x128xf32>
    %668 = arith.addf %665, %667 : vector<16x128xf32>
    %669 = arith.mulf %668, %1 : vector<16x128xf32>
    %c0_360 = arith.constant 0 : index
    %c4_361 = arith.constant 4 : index
    %670 = memref.load %arg1[%c0_360, %c4_361] : memref<6x20xf32, #tpu.memory_space<smem>>
    %671 = vector.broadcast %670 : f32 to vector<16x128xf32>
    %672 = arith.mulf %671, %11 : vector<16x128xf32>
    %c1_362 = arith.constant 1 : index
    %c4_363 = arith.constant 4 : index
    %673 = memref.load %arg1[%c1_362, %c4_363] : memref<6x20xf32, #tpu.memory_space<smem>>
    %674 = vector.broadcast %673 : f32 to vector<16x128xf32>
    %675 = arith.mulf %674, %13 : vector<16x128xf32>
    %676 = arith.addf %672, %675 : vector<16x128xf32>
    %c2_364 = arith.constant 2 : index
    %c4_365 = arith.constant 4 : index
    %677 = memref.load %arg1[%c2_364, %c4_365] : memref<6x20xf32, #tpu.memory_space<smem>>
    %678 = vector.broadcast %677 : f32 to vector<16x128xf32>
    %679 = arith.mulf %678, %15 : vector<16x128xf32>
    %680 = arith.addf %676, %679 : vector<16x128xf32>
    %c3_366 = arith.constant 3 : index
    %c4_367 = arith.constant 4 : index
    %681 = memref.load %arg1[%c3_366, %c4_367] : memref<6x20xf32, #tpu.memory_space<smem>>
    %682 = vector.broadcast %681 : f32 to vector<16x128xf32>
    %683 = arith.mulf %682, %17 : vector<16x128xf32>
    %684 = arith.addf %680, %683 : vector<16x128xf32>
    %c4_368 = arith.constant 4 : index
    %c4_369 = arith.constant 4 : index
    %685 = memref.load %arg1[%c4_368, %c4_369] : memref<6x20xf32, #tpu.memory_space<smem>>
    %686 = vector.broadcast %685 : f32 to vector<16x128xf32>
    %687 = arith.mulf %686, %19 : vector<16x128xf32>
    %688 = arith.addf %684, %687 : vector<16x128xf32>
    %c5_370 = arith.constant 5 : index
    %c4_371 = arith.constant 4 : index
    %689 = memref.load %arg1[%c5_370, %c4_371] : memref<6x20xf32, #tpu.memory_space<smem>>
    %690 = vector.broadcast %689 : f32 to vector<16x128xf32>
    %691 = arith.mulf %690, %21 : vector<16x128xf32>
    %692 = arith.addf %688, %691 : vector<16x128xf32>
    %c0_372 = arith.constant 0 : index
    %c4_373 = arith.constant 4 : index
    %693 = memref.load %arg2[%c0_372, %c4_373] : memref<1x20xf32, #tpu.memory_space<smem>>
    %694 = vector.broadcast %693 : f32 to vector<16x128xf32>
    %695 = arith.addf %692, %694 : vector<16x128xf32>
    %696 = arith.mulf %695, %1 : vector<16x128xf32>
    %c0_374 = arith.constant 0 : index
    %c5_375 = arith.constant 5 : index
    %697 = memref.load %arg1[%c0_374, %c5_375] : memref<6x20xf32, #tpu.memory_space<smem>>
    %698 = vector.broadcast %697 : f32 to vector<16x128xf32>
    %699 = arith.mulf %698, %11 : vector<16x128xf32>
    %c1_376 = arith.constant 1 : index
    %c5_377 = arith.constant 5 : index
    %700 = memref.load %arg1[%c1_376, %c5_377] : memref<6x20xf32, #tpu.memory_space<smem>>
    %701 = vector.broadcast %700 : f32 to vector<16x128xf32>
    %702 = arith.mulf %701, %13 : vector<16x128xf32>
    %703 = arith.addf %699, %702 : vector<16x128xf32>
    %c2_378 = arith.constant 2 : index
    %c5_379 = arith.constant 5 : index
    %704 = memref.load %arg1[%c2_378, %c5_379] : memref<6x20xf32, #tpu.memory_space<smem>>
    %705 = vector.broadcast %704 : f32 to vector<16x128xf32>
    %706 = arith.mulf %705, %15 : vector<16x128xf32>
    %707 = arith.addf %703, %706 : vector<16x128xf32>
    %c3_380 = arith.constant 3 : index
    %c5_381 = arith.constant 5 : index
    %708 = memref.load %arg1[%c3_380, %c5_381] : memref<6x20xf32, #tpu.memory_space<smem>>
    %709 = vector.broadcast %708 : f32 to vector<16x128xf32>
    %710 = arith.mulf %709, %17 : vector<16x128xf32>
    %711 = arith.addf %707, %710 : vector<16x128xf32>
    %c4_382 = arith.constant 4 : index
    %c5_383 = arith.constant 5 : index
    %712 = memref.load %arg1[%c4_382, %c5_383] : memref<6x20xf32, #tpu.memory_space<smem>>
    %713 = vector.broadcast %712 : f32 to vector<16x128xf32>
    %714 = arith.mulf %713, %19 : vector<16x128xf32>
    %715 = arith.addf %711, %714 : vector<16x128xf32>
    %c5_384 = arith.constant 5 : index
    %c5_385 = arith.constant 5 : index
    %716 = memref.load %arg1[%c5_384, %c5_385] : memref<6x20xf32, #tpu.memory_space<smem>>
    %717 = vector.broadcast %716 : f32 to vector<16x128xf32>
    %718 = arith.mulf %717, %21 : vector<16x128xf32>
    %719 = arith.addf %715, %718 : vector<16x128xf32>
    %c0_386 = arith.constant 0 : index
    %c5_387 = arith.constant 5 : index
    %720 = memref.load %arg2[%c0_386, %c5_387] : memref<1x20xf32, #tpu.memory_space<smem>>
    %721 = vector.broadcast %720 : f32 to vector<16x128xf32>
    %722 = arith.addf %719, %721 : vector<16x128xf32>
    %723 = arith.mulf %722, %1 : vector<16x128xf32>
    %c0_388 = arith.constant 0 : index
    %c6_389 = arith.constant 6 : index
    %724 = memref.load %arg1[%c0_388, %c6_389] : memref<6x20xf32, #tpu.memory_space<smem>>
    %725 = vector.broadcast %724 : f32 to vector<16x128xf32>
    %726 = arith.mulf %725, %11 : vector<16x128xf32>
    %c1_390 = arith.constant 1 : index
    %c6_391 = arith.constant 6 : index
    %727 = memref.load %arg1[%c1_390, %c6_391] : memref<6x20xf32, #tpu.memory_space<smem>>
    %728 = vector.broadcast %727 : f32 to vector<16x128xf32>
    %729 = arith.mulf %728, %13 : vector<16x128xf32>
    %730 = arith.addf %726, %729 : vector<16x128xf32>
    %c2_392 = arith.constant 2 : index
    %c6_393 = arith.constant 6 : index
    %731 = memref.load %arg1[%c2_392, %c6_393] : memref<6x20xf32, #tpu.memory_space<smem>>
    %732 = vector.broadcast %731 : f32 to vector<16x128xf32>
    %733 = arith.mulf %732, %15 : vector<16x128xf32>
    %734 = arith.addf %730, %733 : vector<16x128xf32>
    %c3_394 = arith.constant 3 : index
    %c6_395 = arith.constant 6 : index
    %735 = memref.load %arg1[%c3_394, %c6_395] : memref<6x20xf32, #tpu.memory_space<smem>>
    %736 = vector.broadcast %735 : f32 to vector<16x128xf32>
    %737 = arith.mulf %736, %17 : vector<16x128xf32>
    %738 = arith.addf %734, %737 : vector<16x128xf32>
    %c4_396 = arith.constant 4 : index
    %c6_397 = arith.constant 6 : index
    %739 = memref.load %arg1[%c4_396, %c6_397] : memref<6x20xf32, #tpu.memory_space<smem>>
    %740 = vector.broadcast %739 : f32 to vector<16x128xf32>
    %741 = arith.mulf %740, %19 : vector<16x128xf32>
    %742 = arith.addf %738, %741 : vector<16x128xf32>
    %c5_398 = arith.constant 5 : index
    %c6_399 = arith.constant 6 : index
    %743 = memref.load %arg1[%c5_398, %c6_399] : memref<6x20xf32, #tpu.memory_space<smem>>
    %744 = vector.broadcast %743 : f32 to vector<16x128xf32>
    %745 = arith.mulf %744, %21 : vector<16x128xf32>
    %746 = arith.addf %742, %745 : vector<16x128xf32>
    %c0_400 = arith.constant 0 : index
    %c6_401 = arith.constant 6 : index
    %747 = memref.load %arg2[%c0_400, %c6_401] : memref<1x20xf32, #tpu.memory_space<smem>>
    %748 = vector.broadcast %747 : f32 to vector<16x128xf32>
    %749 = arith.addf %746, %748 : vector<16x128xf32>
    %750 = arith.mulf %749, %1 : vector<16x128xf32>
    %c0_402 = arith.constant 0 : index
    %c7_403 = arith.constant 7 : index
    %751 = memref.load %arg1[%c0_402, %c7_403] : memref<6x20xf32, #tpu.memory_space<smem>>
    %752 = vector.broadcast %751 : f32 to vector<16x128xf32>
    %753 = arith.mulf %752, %11 : vector<16x128xf32>
    %c1_404 = arith.constant 1 : index
    %c7_405 = arith.constant 7 : index
    %754 = memref.load %arg1[%c1_404, %c7_405] : memref<6x20xf32, #tpu.memory_space<smem>>
    %755 = vector.broadcast %754 : f32 to vector<16x128xf32>
    %756 = arith.mulf %755, %13 : vector<16x128xf32>
    %757 = arith.addf %753, %756 : vector<16x128xf32>
    %c2_406 = arith.constant 2 : index
    %c7_407 = arith.constant 7 : index
    %758 = memref.load %arg1[%c2_406, %c7_407] : memref<6x20xf32, #tpu.memory_space<smem>>
    %759 = vector.broadcast %758 : f32 to vector<16x128xf32>
    %760 = arith.mulf %759, %15 : vector<16x128xf32>
    %761 = arith.addf %757, %760 : vector<16x128xf32>
    %c3_408 = arith.constant 3 : index
    %c7_409 = arith.constant 7 : index
    %762 = memref.load %arg1[%c3_408, %c7_409] : memref<6x20xf32, #tpu.memory_space<smem>>
    %763 = vector.broadcast %762 : f32 to vector<16x128xf32>
    %764 = arith.mulf %763, %17 : vector<16x128xf32>
    %765 = arith.addf %761, %764 : vector<16x128xf32>
    %c4_410 = arith.constant 4 : index
    %c7_411 = arith.constant 7 : index
    %766 = memref.load %arg1[%c4_410, %c7_411] : memref<6x20xf32, #tpu.memory_space<smem>>
    %767 = vector.broadcast %766 : f32 to vector<16x128xf32>
    %768 = arith.mulf %767, %19 : vector<16x128xf32>
    %769 = arith.addf %765, %768 : vector<16x128xf32>
    %c5_412 = arith.constant 5 : index
    %c7_413 = arith.constant 7 : index
    %770 = memref.load %arg1[%c5_412, %c7_413] : memref<6x20xf32, #tpu.memory_space<smem>>
    %771 = vector.broadcast %770 : f32 to vector<16x128xf32>
    %772 = arith.mulf %771, %21 : vector<16x128xf32>
    %773 = arith.addf %769, %772 : vector<16x128xf32>
    %c0_414 = arith.constant 0 : index
    %c7_415 = arith.constant 7 : index
    %774 = memref.load %arg2[%c0_414, %c7_415] : memref<1x20xf32, #tpu.memory_space<smem>>
    %775 = vector.broadcast %774 : f32 to vector<16x128xf32>
    %776 = arith.addf %773, %775 : vector<16x128xf32>
    %777 = arith.mulf %776, %1 : vector<16x128xf32>
    %c0_416 = arith.constant 0 : index
    %c8_417 = arith.constant 8 : index
    %778 = memref.load %arg1[%c0_416, %c8_417] : memref<6x20xf32, #tpu.memory_space<smem>>
    %779 = vector.broadcast %778 : f32 to vector<16x128xf32>
    %780 = arith.mulf %779, %11 : vector<16x128xf32>
    %c1_418 = arith.constant 1 : index
    %c8_419 = arith.constant 8 : index
    %781 = memref.load %arg1[%c1_418, %c8_419] : memref<6x20xf32, #tpu.memory_space<smem>>
    %782 = vector.broadcast %781 : f32 to vector<16x128xf32>
    %783 = arith.mulf %782, %13 : vector<16x128xf32>
    %784 = arith.addf %780, %783 : vector<16x128xf32>
    %c2_420 = arith.constant 2 : index
    %c8_421 = arith.constant 8 : index
    %785 = memref.load %arg1[%c2_420, %c8_421] : memref<6x20xf32, #tpu.memory_space<smem>>
    %786 = vector.broadcast %785 : f32 to vector<16x128xf32>
    %787 = arith.mulf %786, %15 : vector<16x128xf32>
    %788 = arith.addf %784, %787 : vector<16x128xf32>
    %c3_422 = arith.constant 3 : index
    %c8_423 = arith.constant 8 : index
    %789 = memref.load %arg1[%c3_422, %c8_423] : memref<6x20xf32, #tpu.memory_space<smem>>
    %790 = vector.broadcast %789 : f32 to vector<16x128xf32>
    %791 = arith.mulf %790, %17 : vector<16x128xf32>
    %792 = arith.addf %788, %791 : vector<16x128xf32>
    %c4_424 = arith.constant 4 : index
    %c8_425 = arith.constant 8 : index
    %793 = memref.load %arg1[%c4_424, %c8_425] : memref<6x20xf32, #tpu.memory_space<smem>>
    %794 = vector.broadcast %793 : f32 to vector<16x128xf32>
    %795 = arith.mulf %794, %19 : vector<16x128xf32>
    %796 = arith.addf %792, %795 : vector<16x128xf32>
    %c5_426 = arith.constant 5 : index
    %c8_427 = arith.constant 8 : index
    %797 = memref.load %arg1[%c5_426, %c8_427] : memref<6x20xf32, #tpu.memory_space<smem>>
    %798 = vector.broadcast %797 : f32 to vector<16x128xf32>
    %799 = arith.mulf %798, %21 : vector<16x128xf32>
    %800 = arith.addf %796, %799 : vector<16x128xf32>
    %c0_428 = arith.constant 0 : index
    %c8_429 = arith.constant 8 : index
    %801 = memref.load %arg2[%c0_428, %c8_429] : memref<1x20xf32, #tpu.memory_space<smem>>
    %802 = vector.broadcast %801 : f32 to vector<16x128xf32>
    %803 = arith.addf %800, %802 : vector<16x128xf32>
    %804 = arith.mulf %803, %1 : vector<16x128xf32>
    %c0_430 = arith.constant 0 : index
    %c9_431 = arith.constant 9 : index
    %805 = memref.load %arg1[%c0_430, %c9_431] : memref<6x20xf32, #tpu.memory_space<smem>>
    %806 = vector.broadcast %805 : f32 to vector<16x128xf32>
    %807 = arith.mulf %806, %11 : vector<16x128xf32>
    %c1_432 = arith.constant 1 : index
    %c9_433 = arith.constant 9 : index
    %808 = memref.load %arg1[%c1_432, %c9_433] : memref<6x20xf32, #tpu.memory_space<smem>>
    %809 = vector.broadcast %808 : f32 to vector<16x128xf32>
    %810 = arith.mulf %809, %13 : vector<16x128xf32>
    %811 = arith.addf %807, %810 : vector<16x128xf32>
    %c2_434 = arith.constant 2 : index
    %c9_435 = arith.constant 9 : index
    %812 = memref.load %arg1[%c2_434, %c9_435] : memref<6x20xf32, #tpu.memory_space<smem>>
    %813 = vector.broadcast %812 : f32 to vector<16x128xf32>
    %814 = arith.mulf %813, %15 : vector<16x128xf32>
    %815 = arith.addf %811, %814 : vector<16x128xf32>
    %c3_436 = arith.constant 3 : index
    %c9_437 = arith.constant 9 : index
    %816 = memref.load %arg1[%c3_436, %c9_437] : memref<6x20xf32, #tpu.memory_space<smem>>
    %817 = vector.broadcast %816 : f32 to vector<16x128xf32>
    %818 = arith.mulf %817, %17 : vector<16x128xf32>
    %819 = arith.addf %815, %818 : vector<16x128xf32>
    %c4_438 = arith.constant 4 : index
    %c9_439 = arith.constant 9 : index
    %820 = memref.load %arg1[%c4_438, %c9_439] : memref<6x20xf32, #tpu.memory_space<smem>>
    %821 = vector.broadcast %820 : f32 to vector<16x128xf32>
    %822 = arith.mulf %821, %19 : vector<16x128xf32>
    %823 = arith.addf %819, %822 : vector<16x128xf32>
    %c5_440 = arith.constant 5 : index
    %c9_441 = arith.constant 9 : index
    %824 = memref.load %arg1[%c5_440, %c9_441] : memref<6x20xf32, #tpu.memory_space<smem>>
    %825 = vector.broadcast %824 : f32 to vector<16x128xf32>
    %826 = arith.mulf %825, %21 : vector<16x128xf32>
    %827 = arith.addf %823, %826 : vector<16x128xf32>
    %c0_442 = arith.constant 0 : index
    %c9_443 = arith.constant 9 : index
    %828 = memref.load %arg2[%c0_442, %c9_443] : memref<1x20xf32, #tpu.memory_space<smem>>
    %829 = vector.broadcast %828 : f32 to vector<16x128xf32>
    %830 = arith.addf %827, %829 : vector<16x128xf32>
    %831 = arith.mulf %830, %1 : vector<16x128xf32>
    %c0_444 = arith.constant 0 : index
    %c10_445 = arith.constant 10 : index
    %832 = memref.load %arg1[%c0_444, %c10_445] : memref<6x20xf32, #tpu.memory_space<smem>>
    %833 = vector.broadcast %832 : f32 to vector<16x128xf32>
    %834 = arith.mulf %833, %11 : vector<16x128xf32>
    %c1_446 = arith.constant 1 : index
    %c10_447 = arith.constant 10 : index
    %835 = memref.load %arg1[%c1_446, %c10_447] : memref<6x20xf32, #tpu.memory_space<smem>>
    %836 = vector.broadcast %835 : f32 to vector<16x128xf32>
    %837 = arith.mulf %836, %13 : vector<16x128xf32>
    %838 = arith.addf %834, %837 : vector<16x128xf32>
    %c2_448 = arith.constant 2 : index
    %c10_449 = arith.constant 10 : index
    %839 = memref.load %arg1[%c2_448, %c10_449] : memref<6x20xf32, #tpu.memory_space<smem>>
    %840 = vector.broadcast %839 : f32 to vector<16x128xf32>
    %841 = arith.mulf %840, %15 : vector<16x128xf32>
    %842 = arith.addf %838, %841 : vector<16x128xf32>
    %c3_450 = arith.constant 3 : index
    %c10_451 = arith.constant 10 : index
    %843 = memref.load %arg1[%c3_450, %c10_451] : memref<6x20xf32, #tpu.memory_space<smem>>
    %844 = vector.broadcast %843 : f32 to vector<16x128xf32>
    %845 = arith.mulf %844, %17 : vector<16x128xf32>
    %846 = arith.addf %842, %845 : vector<16x128xf32>
    %c4_452 = arith.constant 4 : index
    %c10_453 = arith.constant 10 : index
    %847 = memref.load %arg1[%c4_452, %c10_453] : memref<6x20xf32, #tpu.memory_space<smem>>
    %848 = vector.broadcast %847 : f32 to vector<16x128xf32>
    %849 = arith.mulf %848, %19 : vector<16x128xf32>
    %850 = arith.addf %846, %849 : vector<16x128xf32>
    %c5_454 = arith.constant 5 : index
    %c10_455 = arith.constant 10 : index
    %851 = memref.load %arg1[%c5_454, %c10_455] : memref<6x20xf32, #tpu.memory_space<smem>>
    %852 = vector.broadcast %851 : f32 to vector<16x128xf32>
    %853 = arith.mulf %852, %21 : vector<16x128xf32>
    %854 = arith.addf %850, %853 : vector<16x128xf32>
    %c0_456 = arith.constant 0 : index
    %c10_457 = arith.constant 10 : index
    %855 = memref.load %arg2[%c0_456, %c10_457] : memref<1x20xf32, #tpu.memory_space<smem>>
    %856 = vector.broadcast %855 : f32 to vector<16x128xf32>
    %857 = arith.addf %854, %856 : vector<16x128xf32>
    %858 = arith.mulf %857, %1 : vector<16x128xf32>
    %c0_458 = arith.constant 0 : index
    %c11_459 = arith.constant 11 : index
    %859 = memref.load %arg1[%c0_458, %c11_459] : memref<6x20xf32, #tpu.memory_space<smem>>
    %860 = vector.broadcast %859 : f32 to vector<16x128xf32>
    %861 = arith.mulf %860, %11 : vector<16x128xf32>
    %c1_460 = arith.constant 1 : index
    %c11_461 = arith.constant 11 : index
    %862 = memref.load %arg1[%c1_460, %c11_461] : memref<6x20xf32, #tpu.memory_space<smem>>
    %863 = vector.broadcast %862 : f32 to vector<16x128xf32>
    %864 = arith.mulf %863, %13 : vector<16x128xf32>
    %865 = arith.addf %861, %864 : vector<16x128xf32>
    %c2_462 = arith.constant 2 : index
    %c11_463 = arith.constant 11 : index
    %866 = memref.load %arg1[%c2_462, %c11_463] : memref<6x20xf32, #tpu.memory_space<smem>>
    %867 = vector.broadcast %866 : f32 to vector<16x128xf32>
    %868 = arith.mulf %867, %15 : vector<16x128xf32>
    %869 = arith.addf %865, %868 : vector<16x128xf32>
    %c3_464 = arith.constant 3 : index
    %c11_465 = arith.constant 11 : index
    %870 = memref.load %arg1[%c3_464, %c11_465] : memref<6x20xf32, #tpu.memory_space<smem>>
    %871 = vector.broadcast %870 : f32 to vector<16x128xf32>
    %872 = arith.mulf %871, %17 : vector<16x128xf32>
    %873 = arith.addf %869, %872 : vector<16x128xf32>
    %c4_466 = arith.constant 4 : index
    %c11_467 = arith.constant 11 : index
    %874 = memref.load %arg1[%c4_466, %c11_467] : memref<6x20xf32, #tpu.memory_space<smem>>
    %875 = vector.broadcast %874 : f32 to vector<16x128xf32>
    %876 = arith.mulf %875, %19 : vector<16x128xf32>
    %877 = arith.addf %873, %876 : vector<16x128xf32>
    %c5_468 = arith.constant 5 : index
    %c11_469 = arith.constant 11 : index
    %878 = memref.load %arg1[%c5_468, %c11_469] : memref<6x20xf32, #tpu.memory_space<smem>>
    %879 = vector.broadcast %878 : f32 to vector<16x128xf32>
    %880 = arith.mulf %879, %21 : vector<16x128xf32>
    %881 = arith.addf %877, %880 : vector<16x128xf32>
    %c0_470 = arith.constant 0 : index
    %c11_471 = arith.constant 11 : index
    %882 = memref.load %arg2[%c0_470, %c11_471] : memref<1x20xf32, #tpu.memory_space<smem>>
    %883 = vector.broadcast %882 : f32 to vector<16x128xf32>
    %884 = arith.addf %881, %883 : vector<16x128xf32>
    %885 = arith.mulf %884, %1 : vector<16x128xf32>
    %c0_472 = arith.constant 0 : index
    %c12_473 = arith.constant 12 : index
    %886 = memref.load %arg1[%c0_472, %c12_473] : memref<6x20xf32, #tpu.memory_space<smem>>
    %887 = vector.broadcast %886 : f32 to vector<16x128xf32>
    %888 = arith.mulf %887, %11 : vector<16x128xf32>
    %c1_474 = arith.constant 1 : index
    %c12_475 = arith.constant 12 : index
    %889 = memref.load %arg1[%c1_474, %c12_475] : memref<6x20xf32, #tpu.memory_space<smem>>
    %890 = vector.broadcast %889 : f32 to vector<16x128xf32>
    %891 = arith.mulf %890, %13 : vector<16x128xf32>
    %892 = arith.addf %888, %891 : vector<16x128xf32>
    %c2_476 = arith.constant 2 : index
    %c12_477 = arith.constant 12 : index
    %893 = memref.load %arg1[%c2_476, %c12_477] : memref<6x20xf32, #tpu.memory_space<smem>>
    %894 = vector.broadcast %893 : f32 to vector<16x128xf32>
    %895 = arith.mulf %894, %15 : vector<16x128xf32>
    %896 = arith.addf %892, %895 : vector<16x128xf32>
    %c3_478 = arith.constant 3 : index
    %c12_479 = arith.constant 12 : index
    %897 = memref.load %arg1[%c3_478, %c12_479] : memref<6x20xf32, #tpu.memory_space<smem>>
    %898 = vector.broadcast %897 : f32 to vector<16x128xf32>
    %899 = arith.mulf %898, %17 : vector<16x128xf32>
    %900 = arith.addf %896, %899 : vector<16x128xf32>
    %c4_480 = arith.constant 4 : index
    %c12_481 = arith.constant 12 : index
    %901 = memref.load %arg1[%c4_480, %c12_481] : memref<6x20xf32, #tpu.memory_space<smem>>
    %902 = vector.broadcast %901 : f32 to vector<16x128xf32>
    %903 = arith.mulf %902, %19 : vector<16x128xf32>
    %904 = arith.addf %900, %903 : vector<16x128xf32>
    %c5_482 = arith.constant 5 : index
    %c12_483 = arith.constant 12 : index
    %905 = memref.load %arg1[%c5_482, %c12_483] : memref<6x20xf32, #tpu.memory_space<smem>>
    %906 = vector.broadcast %905 : f32 to vector<16x128xf32>
    %907 = arith.mulf %906, %21 : vector<16x128xf32>
    %908 = arith.addf %904, %907 : vector<16x128xf32>
    %c0_484 = arith.constant 0 : index
    %c12_485 = arith.constant 12 : index
    %909 = memref.load %arg2[%c0_484, %c12_485] : memref<1x20xf32, #tpu.memory_space<smem>>
    %910 = vector.broadcast %909 : f32 to vector<16x128xf32>
    %911 = arith.addf %908, %910 : vector<16x128xf32>
    %912 = arith.mulf %911, %1 : vector<16x128xf32>
    %c0_486 = arith.constant 0 : index
    %c13_487 = arith.constant 13 : index
    %913 = memref.load %arg1[%c0_486, %c13_487] : memref<6x20xf32, #tpu.memory_space<smem>>
    %914 = vector.broadcast %913 : f32 to vector<16x128xf32>
    %915 = arith.mulf %914, %11 : vector<16x128xf32>
    %c1_488 = arith.constant 1 : index
    %c13_489 = arith.constant 13 : index
    %916 = memref.load %arg1[%c1_488, %c13_489] : memref<6x20xf32, #tpu.memory_space<smem>>
    %917 = vector.broadcast %916 : f32 to vector<16x128xf32>
    %918 = arith.mulf %917, %13 : vector<16x128xf32>
    %919 = arith.addf %915, %918 : vector<16x128xf32>
    %c2_490 = arith.constant 2 : index
    %c13_491 = arith.constant 13 : index
    %920 = memref.load %arg1[%c2_490, %c13_491] : memref<6x20xf32, #tpu.memory_space<smem>>
    %921 = vector.broadcast %920 : f32 to vector<16x128xf32>
    %922 = arith.mulf %921, %15 : vector<16x128xf32>
    %923 = arith.addf %919, %922 : vector<16x128xf32>
    %c3_492 = arith.constant 3 : index
    %c13_493 = arith.constant 13 : index
    %924 = memref.load %arg1[%c3_492, %c13_493] : memref<6x20xf32, #tpu.memory_space<smem>>
    %925 = vector.broadcast %924 : f32 to vector<16x128xf32>
    %926 = arith.mulf %925, %17 : vector<16x128xf32>
    %927 = arith.addf %923, %926 : vector<16x128xf32>
    %c4_494 = arith.constant 4 : index
    %c13_495 = arith.constant 13 : index
    %928 = memref.load %arg1[%c4_494, %c13_495] : memref<6x20xf32, #tpu.memory_space<smem>>
    %929 = vector.broadcast %928 : f32 to vector<16x128xf32>
    %930 = arith.mulf %929, %19 : vector<16x128xf32>
    %931 = arith.addf %927, %930 : vector<16x128xf32>
    %c5_496 = arith.constant 5 : index
    %c13_497 = arith.constant 13 : index
    %932 = memref.load %arg1[%c5_496, %c13_497] : memref<6x20xf32, #tpu.memory_space<smem>>
    %933 = vector.broadcast %932 : f32 to vector<16x128xf32>
    %934 = arith.mulf %933, %21 : vector<16x128xf32>
    %935 = arith.addf %931, %934 : vector<16x128xf32>
    %c0_498 = arith.constant 0 : index
    %c13_499 = arith.constant 13 : index
    %936 = memref.load %arg2[%c0_498, %c13_499] : memref<1x20xf32, #tpu.memory_space<smem>>
    %937 = vector.broadcast %936 : f32 to vector<16x128xf32>
    %938 = arith.addf %935, %937 : vector<16x128xf32>
    %939 = arith.mulf %938, %1 : vector<16x128xf32>
    %c0_500 = arith.constant 0 : index
    %c14_501 = arith.constant 14 : index
    %940 = memref.load %arg1[%c0_500, %c14_501] : memref<6x20xf32, #tpu.memory_space<smem>>
    %941 = vector.broadcast %940 : f32 to vector<16x128xf32>
    %942 = arith.mulf %941, %11 : vector<16x128xf32>
    %c1_502 = arith.constant 1 : index
    %c14_503 = arith.constant 14 : index
    %943 = memref.load %arg1[%c1_502, %c14_503] : memref<6x20xf32, #tpu.memory_space<smem>>
    %944 = vector.broadcast %943 : f32 to vector<16x128xf32>
    %945 = arith.mulf %944, %13 : vector<16x128xf32>
    %946 = arith.addf %942, %945 : vector<16x128xf32>
    %c2_504 = arith.constant 2 : index
    %c14_505 = arith.constant 14 : index
    %947 = memref.load %arg1[%c2_504, %c14_505] : memref<6x20xf32, #tpu.memory_space<smem>>
    %948 = vector.broadcast %947 : f32 to vector<16x128xf32>
    %949 = arith.mulf %948, %15 : vector<16x128xf32>
    %950 = arith.addf %946, %949 : vector<16x128xf32>
    %c3_506 = arith.constant 3 : index
    %c14_507 = arith.constant 14 : index
    %951 = memref.load %arg1[%c3_506, %c14_507] : memref<6x20xf32, #tpu.memory_space<smem>>
    %952 = vector.broadcast %951 : f32 to vector<16x128xf32>
    %953 = arith.mulf %952, %17 : vector<16x128xf32>
    %954 = arith.addf %950, %953 : vector<16x128xf32>
    %c4_508 = arith.constant 4 : index
    %c14_509 = arith.constant 14 : index
    %955 = memref.load %arg1[%c4_508, %c14_509] : memref<6x20xf32, #tpu.memory_space<smem>>
    %956 = vector.broadcast %955 : f32 to vector<16x128xf32>
    %957 = arith.mulf %956, %19 : vector<16x128xf32>
    %958 = arith.addf %954, %957 : vector<16x128xf32>
    %c5_510 = arith.constant 5 : index
    %c14_511 = arith.constant 14 : index
    %959 = memref.load %arg1[%c5_510, %c14_511] : memref<6x20xf32, #tpu.memory_space<smem>>
    %960 = vector.broadcast %959 : f32 to vector<16x128xf32>
    %961 = arith.mulf %960, %21 : vector<16x128xf32>
    %962 = arith.addf %958, %961 : vector<16x128xf32>
    %c0_512 = arith.constant 0 : index
    %c14_513 = arith.constant 14 : index
    %963 = memref.load %arg2[%c0_512, %c14_513] : memref<1x20xf32, #tpu.memory_space<smem>>
    %964 = vector.broadcast %963 : f32 to vector<16x128xf32>
    %965 = arith.addf %962, %964 : vector<16x128xf32>
    %966 = arith.mulf %965, %1 : vector<16x128xf32>
    %c0_514 = arith.constant 0 : index
    %c15_515 = arith.constant 15 : index
    %967 = memref.load %arg1[%c0_514, %c15_515] : memref<6x20xf32, #tpu.memory_space<smem>>
    %968 = vector.broadcast %967 : f32 to vector<16x128xf32>
    %969 = arith.mulf %968, %11 : vector<16x128xf32>
    %c1_516 = arith.constant 1 : index
    %c15_517 = arith.constant 15 : index
    %970 = memref.load %arg1[%c1_516, %c15_517] : memref<6x20xf32, #tpu.memory_space<smem>>
    %971 = vector.broadcast %970 : f32 to vector<16x128xf32>
    %972 = arith.mulf %971, %13 : vector<16x128xf32>
    %973 = arith.addf %969, %972 : vector<16x128xf32>
    %c2_518 = arith.constant 2 : index
    %c15_519 = arith.constant 15 : index
    %974 = memref.load %arg1[%c2_518, %c15_519] : memref<6x20xf32, #tpu.memory_space<smem>>
    %975 = vector.broadcast %974 : f32 to vector<16x128xf32>
    %976 = arith.mulf %975, %15 : vector<16x128xf32>
    %977 = arith.addf %973, %976 : vector<16x128xf32>
    %c3_520 = arith.constant 3 : index
    %c15_521 = arith.constant 15 : index
    %978 = memref.load %arg1[%c3_520, %c15_521] : memref<6x20xf32, #tpu.memory_space<smem>>
    %979 = vector.broadcast %978 : f32 to vector<16x128xf32>
    %980 = arith.mulf %979, %17 : vector<16x128xf32>
    %981 = arith.addf %977, %980 : vector<16x128xf32>
    %c4_522 = arith.constant 4 : index
    %c15_523 = arith.constant 15 : index
    %982 = memref.load %arg1[%c4_522, %c15_523] : memref<6x20xf32, #tpu.memory_space<smem>>
    %983 = vector.broadcast %982 : f32 to vector<16x128xf32>
    %984 = arith.mulf %983, %19 : vector<16x128xf32>
    %985 = arith.addf %981, %984 : vector<16x128xf32>
    %c5_524 = arith.constant 5 : index
    %c15_525 = arith.constant 15 : index
    %986 = memref.load %arg1[%c5_524, %c15_525] : memref<6x20xf32, #tpu.memory_space<smem>>
    %987 = vector.broadcast %986 : f32 to vector<16x128xf32>
    %988 = arith.mulf %987, %21 : vector<16x128xf32>
    %989 = arith.addf %985, %988 : vector<16x128xf32>
    %c0_526 = arith.constant 0 : index
    %c15_527 = arith.constant 15 : index
    %990 = memref.load %arg2[%c0_526, %c15_527] : memref<1x20xf32, #tpu.memory_space<smem>>
    %991 = vector.broadcast %990 : f32 to vector<16x128xf32>
    %992 = arith.addf %989, %991 : vector<16x128xf32>
    %993 = arith.mulf %992, %1 : vector<16x128xf32>
    %c0_528 = arith.constant 0 : index
    %c16_529 = arith.constant 16 : index
    %994 = memref.load %arg1[%c0_528, %c16_529] : memref<6x20xf32, #tpu.memory_space<smem>>
    %995 = vector.broadcast %994 : f32 to vector<16x128xf32>
    %996 = arith.mulf %995, %11 : vector<16x128xf32>
    %c1_530 = arith.constant 1 : index
    %c16_531 = arith.constant 16 : index
    %997 = memref.load %arg1[%c1_530, %c16_531] : memref<6x20xf32, #tpu.memory_space<smem>>
    %998 = vector.broadcast %997 : f32 to vector<16x128xf32>
    %999 = arith.mulf %998, %13 : vector<16x128xf32>
    %1000 = arith.addf %996, %999 : vector<16x128xf32>
    %c2_532 = arith.constant 2 : index
    %c16_533 = arith.constant 16 : index
    %1001 = memref.load %arg1[%c2_532, %c16_533] : memref<6x20xf32, #tpu.memory_space<smem>>
    %1002 = vector.broadcast %1001 : f32 to vector<16x128xf32>
    %1003 = arith.mulf %1002, %15 : vector<16x128xf32>
    %1004 = arith.addf %1000, %1003 : vector<16x128xf32>
    %c3_534 = arith.constant 3 : index
    %c16_535 = arith.constant 16 : index
    %1005 = memref.load %arg1[%c3_534, %c16_535] : memref<6x20xf32, #tpu.memory_space<smem>>
    %1006 = vector.broadcast %1005 : f32 to vector<16x128xf32>
    %1007 = arith.mulf %1006, %17 : vector<16x128xf32>
    %1008 = arith.addf %1004, %1007 : vector<16x128xf32>
    %c4_536 = arith.constant 4 : index
    %c16_537 = arith.constant 16 : index
    %1009 = memref.load %arg1[%c4_536, %c16_537] : memref<6x20xf32, #tpu.memory_space<smem>>
    %1010 = vector.broadcast %1009 : f32 to vector<16x128xf32>
    %1011 = arith.mulf %1010, %19 : vector<16x128xf32>
    %1012 = arith.addf %1008, %1011 : vector<16x128xf32>
    %c5_538 = arith.constant 5 : index
    %c16_539 = arith.constant 16 : index
    %1013 = memref.load %arg1[%c5_538, %c16_539] : memref<6x20xf32, #tpu.memory_space<smem>>
    %1014 = vector.broadcast %1013 : f32 to vector<16x128xf32>
    %1015 = arith.mulf %1014, %21 : vector<16x128xf32>
    %1016 = arith.addf %1012, %1015 : vector<16x128xf32>
    %c0_540 = arith.constant 0 : index
    %c16_541 = arith.constant 16 : index
    %1017 = memref.load %arg2[%c0_540, %c16_541] : memref<1x20xf32, #tpu.memory_space<smem>>
    %1018 = vector.broadcast %1017 : f32 to vector<16x128xf32>
    %1019 = arith.addf %1016, %1018 : vector<16x128xf32>
    %1020 = arith.mulf %1019, %1 : vector<16x128xf32>
    %c0_542 = arith.constant 0 : index
    %c17_543 = arith.constant 17 : index
    %1021 = memref.load %arg1[%c0_542, %c17_543] : memref<6x20xf32, #tpu.memory_space<smem>>
    %1022 = vector.broadcast %1021 : f32 to vector<16x128xf32>
    %1023 = arith.mulf %1022, %11 : vector<16x128xf32>
    %c1_544 = arith.constant 1 : index
    %c17_545 = arith.constant 17 : index
    %1024 = memref.load %arg1[%c1_544, %c17_545] : memref<6x20xf32, #tpu.memory_space<smem>>
    %1025 = vector.broadcast %1024 : f32 to vector<16x128xf32>
    %1026 = arith.mulf %1025, %13 : vector<16x128xf32>
    %1027 = arith.addf %1023, %1026 : vector<16x128xf32>
    %c2_546 = arith.constant 2 : index
    %c17_547 = arith.constant 17 : index
    %1028 = memref.load %arg1[%c2_546, %c17_547] : memref<6x20xf32, #tpu.memory_space<smem>>
    %1029 = vector.broadcast %1028 : f32 to vector<16x128xf32>
    %1030 = arith.mulf %1029, %15 : vector<16x128xf32>
    %1031 = arith.addf %1027, %1030 : vector<16x128xf32>
    %c3_548 = arith.constant 3 : index
    %c17_549 = arith.constant 17 : index
    %1032 = memref.load %arg1[%c3_548, %c17_549] : memref<6x20xf32, #tpu.memory_space<smem>>
    %1033 = vector.broadcast %1032 : f32 to vector<16x128xf32>
    %1034 = arith.mulf %1033, %17 : vector<16x128xf32>
    %1035 = arith.addf %1031, %1034 : vector<16x128xf32>
    %c4_550 = arith.constant 4 : index
    %c17_551 = arith.constant 17 : index
    %1036 = memref.load %arg1[%c4_550, %c17_551] : memref<6x20xf32, #tpu.memory_space<smem>>
    %1037 = vector.broadcast %1036 : f32 to vector<16x128xf32>
    %1038 = arith.mulf %1037, %19 : vector<16x128xf32>
    %1039 = arith.addf %1035, %1038 : vector<16x128xf32>
    %c5_552 = arith.constant 5 : index
    %c17_553 = arith.constant 17 : index
    %1040 = memref.load %arg1[%c5_552, %c17_553] : memref<6x20xf32, #tpu.memory_space<smem>>
    %1041 = vector.broadcast %1040 : f32 to vector<16x128xf32>
    %1042 = arith.mulf %1041, %21 : vector<16x128xf32>
    %1043 = arith.addf %1039, %1042 : vector<16x128xf32>
    %c0_554 = arith.constant 0 : index
    %c17_555 = arith.constant 17 : index
    %1044 = memref.load %arg2[%c0_554, %c17_555] : memref<1x20xf32, #tpu.memory_space<smem>>
    %1045 = vector.broadcast %1044 : f32 to vector<16x128xf32>
    %1046 = arith.addf %1043, %1045 : vector<16x128xf32>
    %1047 = arith.mulf %1046, %1 : vector<16x128xf32>
    %c0_556 = arith.constant 0 : index
    %c18_557 = arith.constant 18 : index
    %1048 = memref.load %arg1[%c0_556, %c18_557] : memref<6x20xf32, #tpu.memory_space<smem>>
    %1049 = vector.broadcast %1048 : f32 to vector<16x128xf32>
    %1050 = arith.mulf %1049, %11 : vector<16x128xf32>
    %c1_558 = arith.constant 1 : index
    %c18_559 = arith.constant 18 : index
    %1051 = memref.load %arg1[%c1_558, %c18_559] : memref<6x20xf32, #tpu.memory_space<smem>>
    %1052 = vector.broadcast %1051 : f32 to vector<16x128xf32>
    %1053 = arith.mulf %1052, %13 : vector<16x128xf32>
    %1054 = arith.addf %1050, %1053 : vector<16x128xf32>
    %c2_560 = arith.constant 2 : index
    %c18_561 = arith.constant 18 : index
    %1055 = memref.load %arg1[%c2_560, %c18_561] : memref<6x20xf32, #tpu.memory_space<smem>>
    %1056 = vector.broadcast %1055 : f32 to vector<16x128xf32>
    %1057 = arith.mulf %1056, %15 : vector<16x128xf32>
    %1058 = arith.addf %1054, %1057 : vector<16x128xf32>
    %c3_562 = arith.constant 3 : index
    %c18_563 = arith.constant 18 : index
    %1059 = memref.load %arg1[%c3_562, %c18_563] : memref<6x20xf32, #tpu.memory_space<smem>>
    %1060 = vector.broadcast %1059 : f32 to vector<16x128xf32>
    %1061 = arith.mulf %1060, %17 : vector<16x128xf32>
    %1062 = arith.addf %1058, %1061 : vector<16x128xf32>
    %c4_564 = arith.constant 4 : index
    %c18_565 = arith.constant 18 : index
    %1063 = memref.load %arg1[%c4_564, %c18_565] : memref<6x20xf32, #tpu.memory_space<smem>>
    %1064 = vector.broadcast %1063 : f32 to vector<16x128xf32>
    %1065 = arith.mulf %1064, %19 : vector<16x128xf32>
    %1066 = arith.addf %1062, %1065 : vector<16x128xf32>
    %c5_566 = arith.constant 5 : index
    %c18_567 = arith.constant 18 : index
    %1067 = memref.load %arg1[%c5_566, %c18_567] : memref<6x20xf32, #tpu.memory_space<smem>>
    %1068 = vector.broadcast %1067 : f32 to vector<16x128xf32>
    %1069 = arith.mulf %1068, %21 : vector<16x128xf32>
    %1070 = arith.addf %1066, %1069 : vector<16x128xf32>
    %c0_568 = arith.constant 0 : index
    %c18_569 = arith.constant 18 : index
    %1071 = memref.load %arg2[%c0_568, %c18_569] : memref<1x20xf32, #tpu.memory_space<smem>>
    %1072 = vector.broadcast %1071 : f32 to vector<16x128xf32>
    %1073 = arith.addf %1070, %1072 : vector<16x128xf32>
    %1074 = arith.mulf %1073, %1 : vector<16x128xf32>
    %c0_570 = arith.constant 0 : index
    %c19_571 = arith.constant 19 : index
    %1075 = memref.load %arg1[%c0_570, %c19_571] : memref<6x20xf32, #tpu.memory_space<smem>>
    %1076 = vector.broadcast %1075 : f32 to vector<16x128xf32>
    %1077 = arith.mulf %1076, %11 : vector<16x128xf32>
    %c1_572 = arith.constant 1 : index
    %c19_573 = arith.constant 19 : index
    %1078 = memref.load %arg1[%c1_572, %c19_573] : memref<6x20xf32, #tpu.memory_space<smem>>
    %1079 = vector.broadcast %1078 : f32 to vector<16x128xf32>
    %1080 = arith.mulf %1079, %13 : vector<16x128xf32>
    %1081 = arith.addf %1077, %1080 : vector<16x128xf32>
    %c2_574 = arith.constant 2 : index
    %c19_575 = arith.constant 19 : index
    %1082 = memref.load %arg1[%c2_574, %c19_575] : memref<6x20xf32, #tpu.memory_space<smem>>
    %1083 = vector.broadcast %1082 : f32 to vector<16x128xf32>
    %1084 = arith.mulf %1083, %15 : vector<16x128xf32>
    %1085 = arith.addf %1081, %1084 : vector<16x128xf32>
    %c3_576 = arith.constant 3 : index
    %c19_577 = arith.constant 19 : index
    %1086 = memref.load %arg1[%c3_576, %c19_577] : memref<6x20xf32, #tpu.memory_space<smem>>
    %1087 = vector.broadcast %1086 : f32 to vector<16x128xf32>
    %1088 = arith.mulf %1087, %17 : vector<16x128xf32>
    %1089 = arith.addf %1085, %1088 : vector<16x128xf32>
    %c4_578 = arith.constant 4 : index
    %c19_579 = arith.constant 19 : index
    %1090 = memref.load %arg1[%c4_578, %c19_579] : memref<6x20xf32, #tpu.memory_space<smem>>
    %1091 = vector.broadcast %1090 : f32 to vector<16x128xf32>
    %1092 = arith.mulf %1091, %19 : vector<16x128xf32>
    %1093 = arith.addf %1089, %1092 : vector<16x128xf32>
    %c5_580 = arith.constant 5 : index
    %c19_581 = arith.constant 19 : index
    %1094 = memref.load %arg1[%c5_580, %c19_581] : memref<6x20xf32, #tpu.memory_space<smem>>
    %1095 = vector.broadcast %1094 : f32 to vector<16x128xf32>
    %1096 = arith.mulf %1095, %21 : vector<16x128xf32>
    %1097 = arith.addf %1093, %1096 : vector<16x128xf32>
    %c0_582 = arith.constant 0 : index
    %c19_583 = arith.constant 19 : index
    %1098 = memref.load %arg2[%c0_582, %c19_583] : memref<1x20xf32, #tpu.memory_space<smem>>
    %1099 = vector.broadcast %1098 : f32 to vector<16x128xf32>
    %1100 = arith.addf %1097, %1099 : vector<16x128xf32>
    %1101 = arith.mulf %1100, %1 : vector<16x128xf32>
    %c0_584 = arith.constant 0 : index
    %c0_585 = arith.constant 0 : index
    %c0_586 = arith.constant 0 : index
    %c0_587 = arith.constant 0 : index
    %1102 = vector.load %arg8[%c0_584, %c0_585, %c0_586, %c0_587] : memref<1x10x16x128xf32, #tpu.memory_space<vmem>>, vector<1x1x16x128xf32>
    %1103 = vector.shape_cast %1102 : vector<1x1x16x128xf32> to vector<16x128xf32>
    %1104 = vector.shape_cast %48 : vector<16x128xf32> to vector<1x1x16x128xf32>
    tpu.vector_store %arg8[%c0_584, %c0_585, %c0_586, %c0_587], %1104 {strides = array<i32>} : memref<1x10x16x128xf32, #tpu.memory_space<vmem>>, vector<1x1x16x128xf32>,
    %c0_588 = arith.constant 0 : index
    %c0_589 = arith.constant 0 : index
    %c0_590 = arith.constant 0 : index
    %c0_591 = arith.constant 0 : index
    %1105 = vector.load %arg9[%c0_588, %c0_589, %c0_590, %c0_591] : memref<1x10x16x128xf32, #tpu.memory_space<vmem>>, vector<1x1x16x128xf32>
    %1106 = vector.shape_cast %1105 : vector<1x1x16x128xf32> to vector<16x128xf32>
    %1107 = vector.shape_cast %318 : vector<16x128xf32> to vector<1x1x16x128xf32>
    tpu.vector_store %arg9[%c0_588, %c0_589, %c0_590, %c0_591], %1107 {strides = array<i32>} : memref<1x10x16x128xf32, #tpu.memory_space<vmem>>, vector<1x1x16x128xf32>,
    %c0_592 = arith.constant 0 : index
    %c0_593 = arith.constant 0 : index
    %c0_594 = arith.constant 0 : index
    %c0_595 = arith.constant 0 : index
    %1108 = vector.load %arg10[%c0_592, %c0_593, %c0_594, %c0_595] : memref<1x10x16x128xf32, #tpu.memory_space<vmem>>, vector<1x1x16x128xf32>
    %1109 = vector.shape_cast %1108 : vector<1x1x16x128xf32> to vector<16x128xf32>
    %1110 = vector.shape_cast %588 : vector<16x128xf32> to vector<1x1x16x128xf32>
    tpu.vector_store %arg10[%c0_592, %c0_593, %c0_594, %c0_595], %1110 {strides = array<i32>} : memref<1x10x16x128xf32, #tpu.memory_space<vmem>>, vector<1x1x16x128xf32>,
    %c0_596 = arith.constant 0 : index
    %c0_597 = arith.constant 0 : index
    %c0_598 = arith.constant 0 : index
    %c0_599 = arith.constant 0 : index
    %1111 = vector.load %arg11[%c0_596, %c0_597, %c0_598, %c0_599] : memref<1x10x16x128xf32, #tpu.memory_space<vmem>>, vector<1x1x16x128xf32>
    %1112 = vector.shape_cast %1111 : vector<1x1x16x128xf32> to vector<16x128xf32>
    %1113 = vector.shape_cast %858 : vector<16x128xf32> to vector<1x1x16x128xf32>
    tpu.vector_store %arg11[%c0_596, %c0_597, %c0_598, %c0_599], %1113 {strides = array<i32>} : memref<1x10x16x128xf32, #tpu.memory_space<vmem>>, vector<1x1x16x128xf32>,
    %c0_600 = arith.constant 0 : index
    %c1_601 = arith.constant 1 : index
    %c0_602 = arith.constant 0 : index
    %c0_603 = arith.constant 0 : index
    %1114 = vector.load %arg8[%c0_600, %c1_601, %c0_602, %c0_603] : memref<1x10x16x128xf32, #tpu.memory_space<vmem>>, vector<1x1x16x128xf32>
    %1115 = vector.shape_cast %1114 : vector<1x1x16x128xf32> to vector<16x128xf32>
    %1116 = vector.shape_cast %75 : vector<16x128xf32> to vector<1x1x16x128xf32>
    tpu.vector_store %arg8[%c0_600, %c1_601, %c0_602, %c0_603], %1116 {strides = array<i32>} : memref<1x10x16x128xf32, #tpu.memory_space<vmem>>, vector<1x1x16x128xf32>,
    %c0_604 = arith.constant 0 : index
    %c1_605 = arith.constant 1 : index
    %c0_606 = arith.constant 0 : index
    %c0_607 = arith.constant 0 : index
    %1117 = vector.load %arg9[%c0_604, %c1_605, %c0_606, %c0_607] : memref<1x10x16x128xf32, #tpu.memory_space<vmem>>, vector<1x1x16x128xf32>
    %1118 = vector.shape_cast %1117 : vector<1x1x16x128xf32> to vector<16x128xf32>
    %1119 = vector.shape_cast %345 : vector<16x128xf32> to vector<1x1x16x128xf32>
    tpu.vector_store %arg9[%c0_604, %c1_605, %c0_606, %c0_607], %1119 {strides = array<i32>} : memref<1x10x16x128xf32, #tpu.memory_space<vmem>>, vector<1x1x16x128xf32>,
    %c0_608 = arith.constant 0 : index
    %c1_609 = arith.constant 1 : index
    %c0_610 = arith.constant 0 : index
    %c0_611 = arith.constant 0 : index
    %1120 = vector.load %arg10[%c0_608, %c1_609, %c0_610, %c0_611] : memref<1x10x16x128xf32, #tpu.memory_space<vmem>>, vector<1x1x16x128xf32>
    %1121 = vector.shape_cast %1120 : vector<1x1x16x128xf32> to vector<16x128xf32>
    %1122 = vector.shape_cast %615 : vector<16x128xf32> to vector<1x1x16x128xf32>
    tpu.vector_store %arg10[%c0_608, %c1_609, %c0_610, %c0_611], %1122 {strides = array<i32>} : memref<1x10x16x128xf32, #tpu.memory_space<vmem>>, vector<1x1x16x128xf32>,
    %c0_612 = arith.constant 0 : index
    %c1_613 = arith.constant 1 : index
    %c0_614 = arith.constant 0 : index
    %c0_615 = arith.constant 0 : index
    %1123 = vector.load %arg11[%c0_612, %c1_613, %c0_614, %c0_615] : memref<1x10x16x128xf32, #tpu.memory_space<vmem>>, vector<1x1x16x128xf32>
    %1124 = vector.shape_cast %1123 : vector<1x1x16x128xf32> to vector<16x128xf32>
    %1125 = vector.shape_cast %885 : vector<16x128xf32> to vector<1x1x16x128xf32>
    tpu.vector_store %arg11[%c0_612, %c1_613, %c0_614, %c0_615], %1125 {strides = array<i32>} : memref<1x10x16x128xf32, #tpu.memory_space<vmem>>, vector<1x1x16x128xf32>,
    %c0_616 = arith.constant 0 : index
    %c2_617 = arith.constant 2 : index
    %c0_618 = arith.constant 0 : index
    %c0_619 = arith.constant 0 : index
    %1126 = vector.load %arg8[%c0_616, %c2_617, %c0_618, %c0_619] : memref<1x10x16x128xf32, #tpu.memory_space<vmem>>, vector<1x1x16x128xf32>
    %1127 = vector.shape_cast %1126 : vector<1x1x16x128xf32> to vector<16x128xf32>
    %1128 = vector.shape_cast %102 : vector<16x128xf32> to vector<1x1x16x128xf32>
    tpu.vector_store %arg8[%c0_616, %c2_617, %c0_618, %c0_619], %1128 {strides = array<i32>} : memref<1x10x16x128xf32, #tpu.memory_space<vmem>>, vector<1x1x16x128xf32>,
    %c0_620 = arith.constant 0 : index
    %c2_621 = arith.constant 2 : index
    %c0_622 = arith.constant 0 : index
    %c0_623 = arith.constant 0 : index
    %1129 = vector.load %arg9[%c0_620, %c2_621, %c0_622, %c0_623] : memref<1x10x16x128xf32, #tpu.memory_space<vmem>>, vector<1x1x16x128xf32>
    %1130 = vector.shape_cast %1129 : vector<1x1x16x128xf32> to vector<16x128xf32>
    %1131 = vector.shape_cast %372 : vector<16x128xf32> to vector<1x1x16x128xf32>
    tpu.vector_store %arg9[%c0_620, %c2_621, %c0_622, %c0_623], %1131 {strides = array<i32>} : memref<1x10x16x128xf32, #tpu.memory_space<vmem>>, vector<1x1x16x128xf32>,
    %c0_624 = arith.constant 0 : index
    %c2_625 = arith.constant 2 : index
    %c0_626 = arith.constant 0 : index
    %c0_627 = arith.constant 0 : index
    %1132 = vector.load %arg10[%c0_624, %c2_625, %c0_626, %c0_627] : memref<1x10x16x128xf32, #tpu.memory_space<vmem>>, vector<1x1x16x128xf32>
    %1133 = vector.shape_cast %1132 : vector<1x1x16x128xf32> to vector<16x128xf32>
    %1134 = vector.shape_cast %642 : vector<16x128xf32> to vector<1x1x16x128xf32>
    tpu.vector_store %arg10[%c0_624, %c2_625, %c0_626, %c0_627], %1134 {strides = array<i32>} : memref<1x10x16x128xf32, #tpu.memory_space<vmem>>, vector<1x1x16x128xf32>,
    %c0_628 = arith.constant 0 : index
    %c2_629 = arith.constant 2 : index
    %c0_630 = arith.constant 0 : index
    %c0_631 = arith.constant 0 : index
    %1135 = vector.load %arg11[%c0_628, %c2_629, %c0_630, %c0_631] : memref<1x10x16x128xf32, #tpu.memory_space<vmem>>, vector<1x1x16x128xf32>
    %1136 = vector.shape_cast %1135 : vector<1x1x16x128xf32> to vector<16x128xf32>
    %1137 = vector.shape_cast %912 : vector<16x128xf32> to vector<1x1x16x128xf32>
    tpu.vector_store %arg11[%c0_628, %c2_629, %c0_630, %c0_631], %1137 {strides = array<i32>} : memref<1x10x16x128xf32, #tpu.memory_space<vmem>>, vector<1x1x16x128xf32>,
    %c0_632 = arith.constant 0 : index
    %c3_633 = arith.constant 3 : index
    %c0_634 = arith.constant 0 : index
    %c0_635 = arith.constant 0 : index
    %1138 = vector.load %arg8[%c0_632, %c3_633, %c0_634, %c0_635] : memref<1x10x16x128xf32, #tpu.memory_space<vmem>>, vector<1x1x16x128xf32>
    %1139 = vector.shape_cast %1138 : vector<1x1x16x128xf32> to vector<16x128xf32>
    %1140 = vector.shape_cast %129 : vector<16x128xf32> to vector<1x1x16x128xf32>
    tpu.vector_store %arg8[%c0_632, %c3_633, %c0_634, %c0_635], %1140 {strides = array<i32>} : memref<1x10x16x128xf32, #tpu.memory_space<vmem>>, vector<1x1x16x128xf32>,
    %c0_636 = arith.constant 0 : index
    %c3_637 = arith.constant 3 : index
    %c0_638 = arith.constant 0 : index
    %c0_639 = arith.constant 0 : index
    %1141 = vector.load %arg9[%c0_636, %c3_637, %c0_638, %c0_639] : memref<1x10x16x128xf32, #tpu.memory_space<vmem>>, vector<1x1x16x128xf32>
    %1142 = vector.shape_cast %1141 : vector<1x1x16x128xf32> to vector<16x128xf32>
    %1143 = vector.shape_cast %399 : vector<16x128xf32> to vector<1x1x16x128xf32>
    tpu.vector_store %arg9[%c0_636, %c3_637, %c0_638, %c0_639], %1143 {strides = array<i32>} : memref<1x10x16x128xf32, #tpu.memory_space<vmem>>, vector<1x1x16x128xf32>,
    %c0_640 = arith.constant 0 : index
    %c3_641 = arith.constant 3 : index
    %c0_642 = arith.constant 0 : index
    %c0_643 = arith.constant 0 : index
    %1144 = vector.load %arg10[%c0_640, %c3_641, %c0_642, %c0_643] : memref<1x10x16x128xf32, #tpu.memory_space<vmem>>, vector<1x1x16x128xf32>
    %1145 = vector.shape_cast %1144 : vector<1x1x16x128xf32> to vector<16x128xf32>
    %1146 = vector.shape_cast %669 : vector<16x128xf32> to vector<1x1x16x128xf32>
    tpu.vector_store %arg10[%c0_640, %c3_641, %c0_642, %c0_643], %1146 {strides = array<i32>} : memref<1x10x16x128xf32, #tpu.memory_space<vmem>>, vector<1x1x16x128xf32>,
    %c0_644 = arith.constant 0 : index
    %c3_645 = arith.constant 3 : index
    %c0_646 = arith.constant 0 : index
    %c0_647 = arith.constant 0 : index
    %1147 = vector.load %arg11[%c0_644, %c3_645, %c0_646, %c0_647] : memref<1x10x16x128xf32, #tpu.memory_space<vmem>>, vector<1x1x16x128xf32>
    %1148 = vector.shape_cast %1147 : vector<1x1x16x128xf32> to vector<16x128xf32>
    %1149 = vector.shape_cast %939 : vector<16x128xf32> to vector<1x1x16x128xf32>
    tpu.vector_store %arg11[%c0_644, %c3_645, %c0_646, %c0_647], %1149 {strides = array<i32>} : memref<1x10x16x128xf32, #tpu.memory_space<vmem>>, vector<1x1x16x128xf32>,
    %c0_648 = arith.constant 0 : index
    %c4_649 = arith.constant 4 : index
    %c0_650 = arith.constant 0 : index
    %c0_651 = arith.constant 0 : index
    %1150 = vector.load %arg8[%c0_648, %c4_649, %c0_650, %c0_651] : memref<1x10x16x128xf32, #tpu.memory_space<vmem>>, vector<1x1x16x128xf32>
    %1151 = vector.shape_cast %1150 : vector<1x1x16x128xf32> to vector<16x128xf32>
    %1152 = vector.shape_cast %156 : vector<16x128xf32> to vector<1x1x16x128xf32>
    tpu.vector_store %arg8[%c0_648, %c4_649, %c0_650, %c0_651], %1152 {strides = array<i32>} : memref<1x10x16x128xf32, #tpu.memory_space<vmem>>, vector<1x1x16x128xf32>,
    %c0_652 = arith.constant 0 : index
    %c4_653 = arith.constant 4 : index
    %c0_654 = arith.constant 0 : index
    %c0_655 = arith.constant 0 : index
    %1153 = vector.load %arg9[%c0_652, %c4_653, %c0_654, %c0_655] : memref<1x10x16x128xf32, #tpu.memory_space<vmem>>, vector<1x1x16x128xf32>
    %1154 = vector.shape_cast %1153 : vector<1x1x16x128xf32> to vector<16x128xf32>
    %1155 = vector.shape_cast %426 : vector<16x128xf32> to vector<1x1x16x128xf32>
    tpu.vector_store %arg9[%c0_652, %c4_653, %c0_654, %c0_655], %1155 {strides = array<i32>} : memref<1x10x16x128xf32, #tpu.memory_space<vmem>>, vector<1x1x16x128xf32>,
    %c0_656 = arith.constant 0 : index
    %c4_657 = arith.constant 4 : index
    %c0_658 = arith.constant 0 : index
    %c0_659 = arith.constant 0 : index
    %1156 = vector.load %arg10[%c0_656, %c4_657, %c0_658, %c0_659] : memref<1x10x16x128xf32, #tpu.memory_space<vmem>>, vector<1x1x16x128xf32>
    %1157 = vector.shape_cast %1156 : vector<1x1x16x128xf32> to vector<16x128xf32>
    %1158 = vector.shape_cast %696 : vector<16x128xf32> to vector<1x1x16x128xf32>
    tpu.vector_store %arg10[%c0_656, %c4_657, %c0_658, %c0_659], %1158 {strides = array<i32>} : memref<1x10x16x128xf32, #tpu.memory_space<vmem>>, vector<1x1x16x128xf32>,
    %c0_660 = arith.constant 0 : index
    %c4_661 = arith.constant 4 : index
    %c0_662 = arith.constant 0 : index
    %c0_663 = arith.constant 0 : index
    %1159 = vector.load %arg11[%c0_660, %c4_661, %c0_662, %c0_663] : memref<1x10x16x128xf32, #tpu.memory_space<vmem>>, vector<1x1x16x128xf32>
    %1160 = vector.shape_cast %1159 : vector<1x1x16x128xf32> to vector<16x128xf32>
    %1161 = vector.shape_cast %966 : vector<16x128xf32> to vector<1x1x16x128xf32>
    tpu.vector_store %arg11[%c0_660, %c4_661, %c0_662, %c0_663], %1161 {strides = array<i32>} : memref<1x10x16x128xf32, #tpu.memory_space<vmem>>, vector<1x1x16x128xf32>,
    %c0_664 = arith.constant 0 : index
    %c5_665 = arith.constant 5 : index
    %c0_666 = arith.constant 0 : index
    %c0_667 = arith.constant 0 : index
    %1162 = vector.load %arg8[%c0_664, %c5_665, %c0_666, %c0_667] : memref<1x10x16x128xf32, #tpu.memory_space<vmem>>, vector<1x1x16x128xf32>
    %1163 = vector.shape_cast %1162 : vector<1x1x16x128xf32> to vector<16x128xf32>
    %1164 = vector.shape_cast %183 : vector<16x128xf32> to vector<1x1x16x128xf32>
    tpu.vector_store %arg8[%c0_664, %c5_665, %c0_666, %c0_667], %1164 {strides = array<i32>} : memref<1x10x16x128xf32, #tpu.memory_space<vmem>>, vector<1x1x16x128xf32>,
    %c0_668 = arith.constant 0 : index
    %c5_669 = arith.constant 5 : index
    %c0_670 = arith.constant 0 : index
    %c0_671 = arith.constant 0 : index
    %1165 = vector.load %arg9[%c0_668, %c5_669, %c0_670, %c0_671] : memref<1x10x16x128xf32, #tpu.memory_space<vmem>>, vector<1x1x16x128xf32>
    %1166 = vector.shape_cast %1165 : vector<1x1x16x128xf32> to vector<16x128xf32>
    %1167 = vector.shape_cast %453 : vector<16x128xf32> to vector<1x1x16x128xf32>
    tpu.vector_store %arg9[%c0_668, %c5_669, %c0_670, %c0_671], %1167 {strides = array<i32>} : memref<1x10x16x128xf32, #tpu.memory_space<vmem>>, vector<1x1x16x128xf32>,
    %c0_672 = arith.constant 0 : index
    %c5_673 = arith.constant 5 : index
    %c0_674 = arith.constant 0 : index
    %c0_675 = arith.constant 0 : index
    %1168 = vector.load %arg10[%c0_672, %c5_673, %c0_674, %c0_675] : memref<1x10x16x128xf32, #tpu.memory_space<vmem>>, vector<1x1x16x128xf32>
    %1169 = vector.shape_cast %1168 : vector<1x1x16x128xf32> to vector<16x128xf32>
    %1170 = vector.shape_cast %723 : vector<16x128xf32> to vector<1x1x16x128xf32>
    tpu.vector_store %arg10[%c0_672, %c5_673, %c0_674, %c0_675], %1170 {strides = array<i32>} : memref<1x10x16x128xf32, #tpu.memory_space<vmem>>, vector<1x1x16x128xf32>,
    %c0_676 = arith.constant 0 : index
    %c5_677 = arith.constant 5 : index
    %c0_678 = arith.constant 0 : index
    %c0_679 = arith.constant 0 : index
    %1171 = vector.load %arg11[%c0_676, %c5_677, %c0_678, %c0_679] : memref<1x10x16x128xf32, #tpu.memory_space<vmem>>, vector<1x1x16x128xf32>
    %1172 = vector.shape_cast %1171 : vector<1x1x16x128xf32> to vector<16x128xf32>
    %1173 = vector.shape_cast %993 : vector<16x128xf32> to vector<1x1x16x128xf32>
    tpu.vector_store %arg11[%c0_676, %c5_677, %c0_678, %c0_679], %1173 {strides = array<i32>} : memref<1x10x16x128xf32, #tpu.memory_space<vmem>>, vector<1x1x16x128xf32>,
    %c0_680 = arith.constant 0 : index
    %c6_681 = arith.constant 6 : index
    %c0_682 = arith.constant 0 : index
    %c0_683 = arith.constant 0 : index
    %1174 = vector.load %arg8[%c0_680, %c6_681, %c0_682, %c0_683] : memref<1x10x16x128xf32, #tpu.memory_space<vmem>>, vector<1x1x16x128xf32>
    %1175 = vector.shape_cast %1174 : vector<1x1x16x128xf32> to vector<16x128xf32>
    %1176 = vector.shape_cast %210 : vector<16x128xf32> to vector<1x1x16x128xf32>
    tpu.vector_store %arg8[%c0_680, %c6_681, %c0_682, %c0_683], %1176 {strides = array<i32>} : memref<1x10x16x128xf32, #tpu.memory_space<vmem>>, vector<1x1x16x128xf32>,
    %c0_684 = arith.constant 0 : index
    %c6_685 = arith.constant 6 : index
    %c0_686 = arith.constant 0 : index
    %c0_687 = arith.constant 0 : index
    %1177 = vector.load %arg9[%c0_684, %c6_685, %c0_686, %c0_687] : memref<1x10x16x128xf32, #tpu.memory_space<vmem>>, vector<1x1x16x128xf32>
    %1178 = vector.shape_cast %1177 : vector<1x1x16x128xf32> to vector<16x128xf32>
    %1179 = vector.shape_cast %480 : vector<16x128xf32> to vector<1x1x16x128xf32>
    tpu.vector_store %arg9[%c0_684, %c6_685, %c0_686, %c0_687], %1179 {strides = array<i32>} : memref<1x10x16x128xf32, #tpu.memory_space<vmem>>, vector<1x1x16x128xf32>,
    %c0_688 = arith.constant 0 : index
    %c6_689 = arith.constant 6 : index
    %c0_690 = arith.constant 0 : index
    %c0_691 = arith.constant 0 : index
    %1180 = vector.load %arg10[%c0_688, %c6_689, %c0_690, %c0_691] : memref<1x10x16x128xf32, #tpu.memory_space<vmem>>, vector<1x1x16x128xf32>
    %1181 = vector.shape_cast %1180 : vector<1x1x16x128xf32> to vector<16x128xf32>
    %1182 = vector.shape_cast %750 : vector<16x128xf32> to vector<1x1x16x128xf32>
    tpu.vector_store %arg10[%c0_688, %c6_689, %c0_690, %c0_691], %1182 {strides = array<i32>} : memref<1x10x16x128xf32, #tpu.memory_space<vmem>>, vector<1x1x16x128xf32>,
    %c0_692 = arith.constant 0 : index
    %c6_693 = arith.constant 6 : index
    %c0_694 = arith.constant 0 : index
    %c0_695 = arith.constant 0 : index
    %1183 = vector.load %arg11[%c0_692, %c6_693, %c0_694, %c0_695] : memref<1x10x16x128xf32, #tpu.memory_space<vmem>>, vector<1x1x16x128xf32>
    %1184 = vector.shape_cast %1183 : vector<1x1x16x128xf32> to vector<16x128xf32>
    %1185 = vector.shape_cast %1020 : vector<16x128xf32> to vector<1x1x16x128xf32>
    tpu.vector_store %arg11[%c0_692, %c6_693, %c0_694, %c0_695], %1185 {strides = array<i32>} : memref<1x10x16x128xf32, #tpu.memory_space<vmem>>, vector<1x1x16x128xf32>,
    %c0_696 = arith.constant 0 : index
    %c7_697 = arith.constant 7 : index
    %c0_698 = arith.constant 0 : index
    %c0_699 = arith.constant 0 : index
    %1186 = vector.load %arg8[%c0_696, %c7_697, %c0_698, %c0_699] : memref<1x10x16x128xf32, #tpu.memory_space<vmem>>, vector<1x1x16x128xf32>
    %1187 = vector.shape_cast %1186 : vector<1x1x16x128xf32> to vector<16x128xf32>
    %1188 = vector.shape_cast %237 : vector<16x128xf32> to vector<1x1x16x128xf32>
    tpu.vector_store %arg8[%c0_696, %c7_697, %c0_698, %c0_699], %1188 {strides = array<i32>} : memref<1x10x16x128xf32, #tpu.memory_space<vmem>>, vector<1x1x16x128xf32>,
    %c0_700 = arith.constant 0 : index
    %c7_701 = arith.constant 7 : index
    %c0_702 = arith.constant 0 : index
    %c0_703 = arith.constant 0 : index
    %1189 = vector.load %arg9[%c0_700, %c7_701, %c0_702, %c0_703] : memref<1x10x16x128xf32, #tpu.memory_space<vmem>>, vector<1x1x16x128xf32>
    %1190 = vector.shape_cast %1189 : vector<1x1x16x128xf32> to vector<16x128xf32>
    %1191 = vector.shape_cast %507 : vector<16x128xf32> to vector<1x1x16x128xf32>
    tpu.vector_store %arg9[%c0_700, %c7_701, %c0_702, %c0_703], %1191 {strides = array<i32>} : memref<1x10x16x128xf32, #tpu.memory_space<vmem>>, vector<1x1x16x128xf32>,
    %c0_704 = arith.constant 0 : index
    %c7_705 = arith.constant 7 : index
    %c0_706 = arith.constant 0 : index
    %c0_707 = arith.constant 0 : index
    %1192 = vector.load %arg10[%c0_704, %c7_705, %c0_706, %c0_707] : memref<1x10x16x128xf32, #tpu.memory_space<vmem>>, vector<1x1x16x128xf32>
    %1193 = vector.shape_cast %1192 : vector<1x1x16x128xf32> to vector<16x128xf32>
    %1194 = vector.shape_cast %777 : vector<16x128xf32> to vector<1x1x16x128xf32>
    tpu.vector_store %arg10[%c0_704, %c7_705, %c0_706, %c0_707], %1194 {strides = array<i32>} : memref<1x10x16x128xf32, #tpu.memory_space<vmem>>, vector<1x1x16x128xf32>,
    %c0_708 = arith.constant 0 : index
    %c7_709 = arith.constant 7 : index
    %c0_710 = arith.constant 0 : index
    %c0_711 = arith.constant 0 : index
    %1195 = vector.load %arg11[%c0_708, %c7_709, %c0_710, %c0_711] : memref<1x10x16x128xf32, #tpu.memory_space<vmem>>, vector<1x1x16x128xf32>
    %1196 = vector.shape_cast %1195 : vector<1x1x16x128xf32> to vector<16x128xf32>
    %1197 = vector.shape_cast %1047 : vector<16x128xf32> to vector<1x1x16x128xf32>
    tpu.vector_store %arg11[%c0_708, %c7_709, %c0_710, %c0_711], %1197 {strides = array<i32>} : memref<1x10x16x128xf32, #tpu.memory_space<vmem>>, vector<1x1x16x128xf32>,
    %c0_712 = arith.constant 0 : index
    %c8_713 = arith.constant 8 : index
    %c0_714 = arith.constant 0 : index
    %c0_715 = arith.constant 0 : index
    %1198 = vector.load %arg8[%c0_712, %c8_713, %c0_714, %c0_715] : memref<1x10x16x128xf32, #tpu.memory_space<vmem>>, vector<1x1x16x128xf32>
    %1199 = vector.shape_cast %1198 : vector<1x1x16x128xf32> to vector<16x128xf32>
    %1200 = vector.shape_cast %264 : vector<16x128xf32> to vector<1x1x16x128xf32>
    tpu.vector_store %arg8[%c0_712, %c8_713, %c0_714, %c0_715], %1200 {strides = array<i32>} : memref<1x10x16x128xf32, #tpu.memory_space<vmem>>, vector<1x1x16x128xf32>,
    %c0_716 = arith.constant 0 : index
    %c8_717 = arith.constant 8 : index
    %c0_718 = arith.constant 0 : index
    %c0_719 = arith.constant 0 : index
    %1201 = vector.load %arg9[%c0_716, %c8_717, %c0_718, %c0_719] : memref<1x10x16x128xf32, #tpu.memory_space<vmem>>, vector<1x1x16x128xf32>
    %1202 = vector.shape_cast %1201 : vector<1x1x16x128xf32> to vector<16x128xf32>
    %1203 = vector.shape_cast %534 : vector<16x128xf32> to vector<1x1x16x128xf32>
    tpu.vector_store %arg9[%c0_716, %c8_717, %c0_718, %c0_719], %1203 {strides = array<i32>} : memref<1x10x16x128xf32, #tpu.memory_space<vmem>>, vector<1x1x16x128xf32>,
    %c0_720 = arith.constant 0 : index
    %c8_721 = arith.constant 8 : index
    %c0_722 = arith.constant 0 : index
    %c0_723 = arith.constant 0 : index
    %1204 = vector.load %arg10[%c0_720, %c8_721, %c0_722, %c0_723] : memref<1x10x16x128xf32, #tpu.memory_space<vmem>>, vector<1x1x16x128xf32>
    %1205 = vector.shape_cast %1204 : vector<1x1x16x128xf32> to vector<16x128xf32>
    %1206 = vector.shape_cast %804 : vector<16x128xf32> to vector<1x1x16x128xf32>
    tpu.vector_store %arg10[%c0_720, %c8_721, %c0_722, %c0_723], %1206 {strides = array<i32>} : memref<1x10x16x128xf32, #tpu.memory_space<vmem>>, vector<1x1x16x128xf32>,
    %c0_724 = arith.constant 0 : index
    %c8_725 = arith.constant 8 : index
    %c0_726 = arith.constant 0 : index
    %c0_727 = arith.constant 0 : index
    %1207 = vector.load %arg11[%c0_724, %c8_725, %c0_726, %c0_727] : memref<1x10x16x128xf32, #tpu.memory_space<vmem>>, vector<1x1x16x128xf32>
    %1208 = vector.shape_cast %1207 : vector<1x1x16x128xf32> to vector<16x128xf32>
    %1209 = vector.shape_cast %1074 : vector<16x128xf32> to vector<1x1x16x128xf32>
    tpu.vector_store %arg11[%c0_724, %c8_725, %c0_726, %c0_727], %1209 {strides = array<i32>} : memref<1x10x16x128xf32, #tpu.memory_space<vmem>>, vector<1x1x16x128xf32>,
    %c0_728 = arith.constant 0 : index
    %c9_729 = arith.constant 9 : index
    %c0_730 = arith.constant 0 : index
    %c0_731 = arith.constant 0 : index
    %1210 = vector.load %arg8[%c0_728, %c9_729, %c0_730, %c0_731] : memref<1x10x16x128xf32, #tpu.memory_space<vmem>>, vector<1x1x16x128xf32>
    %1211 = vector.shape_cast %1210 : vector<1x1x16x128xf32> to vector<16x128xf32>
    %1212 = vector.shape_cast %291 : vector<16x128xf32> to vector<1x1x16x128xf32>
    tpu.vector_store %arg8[%c0_728, %c9_729, %c0_730, %c0_731], %1212 {strides = array<i32>} : memref<1x10x16x128xf32, #tpu.memory_space<vmem>>, vector<1x1x16x128xf32>,
    %c0_732 = arith.constant 0 : index
    %c9_733 = arith.constant 9 : index
    %c0_734 = arith.constant 0 : index
    %c0_735 = arith.constant 0 : index
    %1213 = vector.load %arg9[%c0_732, %c9_733, %c0_734, %c0_735] : memref<1x10x16x128xf32, #tpu.memory_space<vmem>>, vector<1x1x16x128xf32>
    %1214 = vector.shape_cast %1213 : vector<1x1x16x128xf32> to vector<16x128xf32>
    %1215 = vector.shape_cast %561 : vector<16x128xf32> to vector<1x1x16x128xf32>
    tpu.vector_store %arg9[%c0_732, %c9_733, %c0_734, %c0_735], %1215 {strides = array<i32>} : memref<1x10x16x128xf32, #tpu.memory_space<vmem>>, vector<1x1x16x128xf32>,
    %c0_736 = arith.constant 0 : index
    %c9_737 = arith.constant 9 : index
    %c0_738 = arith.constant 0 : index
    %c0_739 = arith.constant 0 : index
    %1216 = vector.load %arg10[%c0_736, %c9_737, %c0_738, %c0_739] : memref<1x10x16x128xf32, #tpu.memory_space<vmem>>, vector<1x1x16x128xf32>
    %1217 = vector.shape_cast %1216 : vector<1x1x16x128xf32> to vector<16x128xf32>
    %1218 = vector.shape_cast %831 : vector<16x128xf32> to vector<1x1x16x128xf32>
    tpu.vector_store %arg10[%c0_736, %c9_737, %c0_738, %c0_739], %1218 {strides = array<i32>} : memref<1x10x16x128xf32, #tpu.memory_space<vmem>>, vector<1x1x16x128xf32>,
    %c0_740 = arith.constant 0 : index
    %c9_741 = arith.constant 9 : index
    %c0_742 = arith.constant 0 : index
    %c0_743 = arith.constant 0 : index
    %1219 = vector.load %arg11[%c0_740, %c9_741, %c0_742, %c0_743] : memref<1x10x16x128xf32, #tpu.memory_space<vmem>>, vector<1x1x16x128xf32>
    %1220 = vector.shape_cast %1219 : vector<1x1x16x128xf32> to vector<16x128xf32>
    %1221 = vector.shape_cast %1101 : vector<16x128xf32> to vector<1x1x16x128xf32>
    tpu.vector_store %arg11[%c0_740, %c9_741, %c0_742, %c0_743], %1221 {strides = array<i32>} : memref<1x10x16x128xf32, #tpu.memory_space<vmem>>, vector<1x1x16x128xf32>,
    %1222 = tpu.iota {dimensions = array<i32: 0>} : vector<16x128xi32>
    %1223 = tpu.iota {dimensions = array<i32: 1>} : vector<16x128xi32>
    %c127_i32 = arith.constant 127 : i32
    %1224 = vector.broadcast %c127_i32 : i32 to vector<16x128xi32>
    %1225 = arith.cmpi slt, %1223, %1224 : vector<16x128xi32>
    %c0_i32 = arith.constant 0 : i32
    %1226 = vector.broadcast %c0_i32 : i32 to vector<16x128xi32>
    %1227 = arith.cmpi sgt, %1223, %1226 : vector<16x128xi32>
    %c15_i32 = arith.constant 15 : i32
    %1228 = vector.broadcast %c15_i32 : i32 to vector<16x128xi32>
    %1229 = arith.cmpi slt, %1222, %1228 : vector<16x128xi32>
    %c0_i32_744 = arith.constant 0 : i32
    %1230 = vector.broadcast %c0_i32_744 : i32 to vector<16x128xi32>
    %1231 = arith.cmpi sgt, %1222, %1230 : vector<16x128xi32>
    %c127_i32_745 = arith.constant 127 : i32
    %1232 = tpu.dynamic_rotate %48 by %c127_i32_745 dim 1 : vector<16x128xf32>, i32 -> vector<16x128xf32>
    %cst = arith.constant 0.000000e+00 : f32
    %1233 = vector.broadcast %cst : f32 to vector<16x128xf32>
    %1234 = arith.select %1225, %1232, %1233 : vector<16x128xi1>, vector<16x128xf32>
    %1235 = arith.addf %1234, %75 : vector<16x128xf32>
    %c1_i32 = arith.constant 1 : i32
    %1236 = tpu.dynamic_rotate %102 by %c1_i32 dim 1 : vector<16x128xf32>, i32 -> vector<16x128xf32>
    %cst_746 = arith.constant 0.000000e+00 : f32
    %1237 = vector.broadcast %cst_746 : f32 to vector<16x128xf32>
    %1238 = arith.select %1227, %1236, %1237 : vector<16x128xi1>, vector<16x128xf32>
    %1239 = arith.addf %1235, %1238 : vector<16x128xf32>
    %c127_i32_747 = arith.constant 127 : i32
    %1240 = tpu.dynamic_rotate %129 by %c127_i32_747 dim 1 : vector<16x128xf32>, i32 -> vector<16x128xf32>
    %cst_748 = arith.constant 0.000000e+00 : f32
    %1241 = vector.broadcast %cst_748 : f32 to vector<16x128xf32>
    %1242 = arith.select %1225, %1240, %1241 : vector<16x128xi1>, vector<16x128xf32>
    %1243 = arith.addf %1242, %156 : vector<16x128xf32>
    %c1_i32_749 = arith.constant 1 : i32
    %1244 = tpu.dynamic_rotate %183 by %c1_i32_749 dim 1 : vector<16x128xf32>, i32 -> vector<16x128xf32>
    %cst_750 = arith.constant 0.000000e+00 : f32
    %1245 = vector.broadcast %cst_750 : f32 to vector<16x128xf32>
    %1246 = arith.select %1227, %1244, %1245 : vector<16x128xi1>, vector<16x128xf32>
    %1247 = arith.addf %1243, %1246 : vector<16x128xf32>
    %c127_i32_751 = arith.constant 127 : i32
    %1248 = tpu.dynamic_rotate %210 by %c127_i32_751 dim 1 : vector<16x128xf32>, i32 -> vector<16x128xf32>
    %cst_752 = arith.constant 0.000000e+00 : f32
    %1249 = vector.broadcast %cst_752 : f32 to vector<16x128xf32>
    %1250 = arith.select %1225, %1248, %1249 : vector<16x128xi1>, vector<16x128xf32>
    %1251 = arith.addf %1250, %237 : vector<16x128xf32>
    %c1_i32_753 = arith.constant 1 : i32
    %1252 = tpu.dynamic_rotate %264 by %c1_i32_753 dim 1 : vector<16x128xf32>, i32 -> vector<16x128xf32>
    %cst_754 = arith.constant 0.000000e+00 : f32
    %1253 = vector.broadcast %cst_754 : f32 to vector<16x128xf32>
    %1254 = arith.select %1227, %1252, %1253 : vector<16x128xi1>, vector<16x128xf32>
    %1255 = arith.addf %1251, %1254 : vector<16x128xf32>
    %c15_i32_755 = arith.constant 15 : i32
    %1256 = tpu.dynamic_rotate %1239 by %c15_i32_755 dim 0 : vector<16x128xf32>, i32 -> vector<16x128xf32>
    %cst_756 = arith.constant 0.000000e+00 : f32
    %1257 = vector.broadcast %cst_756 : f32 to vector<16x128xf32>
    %1258 = arith.select %1229, %1256, %1257 : vector<16x128xi1>, vector<16x128xf32>
    %1259 = arith.addf %1258, %1247 : vector<16x128xf32>
    %c1_i32_757 = arith.constant 1 : i32
    %1260 = tpu.dynamic_rotate %1255 by %c1_i32_757 dim 0 : vector<16x128xf32>, i32 -> vector<16x128xf32>
    %cst_758 = arith.constant 0.000000e+00 : f32
    %1261 = vector.broadcast %cst_758 : f32 to vector<16x128xf32>
    %1262 = arith.select %1231, %1260, %1261 : vector<16x128xi1>, vector<16x128xf32>
    %1263 = arith.addf %1259, %1262 : vector<16x128xf32>
    %1264 = arith.mulf %291, %3 : vector<16x128xf32>
    %1265 = arith.addf %1263, %1264 : vector<16x128xf32>
    %1266 = arith.addf %318, %345 : vector<16x128xf32>
    %1267 = arith.addf %1266, %372 : vector<16x128xf32>
    %1268 = arith.addf %1267, %399 : vector<16x128xf32>
    %1269 = arith.addf %1268, %426 : vector<16x128xf32>
    %1270 = arith.addf %1269, %453 : vector<16x128xf32>
    %1271 = arith.addf %1270, %480 : vector<16x128xf32>
    %1272 = arith.addf %1271, %507 : vector<16x128xf32>
    %1273 = arith.addf %1272, %534 : vector<16x128xf32>
    %1274 = arith.addf %588, %615 : vector<16x128xf32>
    %1275 = arith.addf %1274, %642 : vector<16x128xf32>
    %1276 = arith.addf %1275, %669 : vector<16x128xf32>
    %1277 = arith.addf %1276, %696 : vector<16x128xf32>
    %1278 = arith.addf %1277, %723 : vector<16x128xf32>
    %1279 = arith.addf %1278, %750 : vector<16x128xf32>
    %1280 = arith.addf %1279, %777 : vector<16x128xf32>
    %1281 = arith.addf %1280, %804 : vector<16x128xf32>
    %c127_i32_759 = arith.constant 127 : i32
    %1282 = tpu.dynamic_rotate %858 by %c127_i32_759 dim 1 : vector<16x128xf32>, i32 -> vector<16x128xf32>
    %cst_760 = arith.constant 0.000000e+00 : f32
    %1283 = vector.broadcast %cst_760 : f32 to vector<16x128xf32>
    %1284 = arith.select %1225, %1282, %1283 : vector<16x128xi1>, vector<16x128xf32>
    %1285 = arith.addf %1284, %885 : vector<16x128xf32>
    %c1_i32_761 = arith.constant 1 : i32
    %1286 = tpu.dynamic_rotate %912 by %c1_i32_761 dim 1 : vector<16x128xf32>, i32 -> vector<16x128xf32>
    %cst_762 = arith.constant 0.000000e+00 : f32
    %1287 = vector.broadcast %cst_762 : f32 to vector<16x128xf32>
    %1288 = arith.select %1227, %1286, %1287 : vector<16x128xi1>, vector<16x128xf32>
    %1289 = arith.addf %1285, %1288 : vector<16x128xf32>
    %c127_i32_763 = arith.constant 127 : i32
    %1290 = tpu.dynamic_rotate %939 by %c127_i32_763 dim 1 : vector<16x128xf32>, i32 -> vector<16x128xf32>
    %cst_764 = arith.constant 0.000000e+00 : f32
    %1291 = vector.broadcast %cst_764 : f32 to vector<16x128xf32>
    %1292 = arith.select %1225, %1290, %1291 : vector<16x128xi1>, vector<16x128xf32>
    %1293 = arith.addf %1292, %966 : vector<16x128xf32>
    %c1_i32_765 = arith.constant 1 : i32
    %1294 = tpu.dynamic_rotate %993 by %c1_i32_765 dim 1 : vector<16x128xf32>, i32 -> vector<16x128xf32>
    %cst_766 = arith.constant 0.000000e+00 : f32
    %1295 = vector.broadcast %cst_766 : f32 to vector<16x128xf32>
    %1296 = arith.select %1227, %1294, %1295 : vector<16x128xi1>, vector<16x128xf32>
    %1297 = arith.addf %1293, %1296 : vector<16x128xf32>
    %c127_i32_767 = arith.constant 127 : i32
    %1298 = tpu.dynamic_rotate %1020 by %c127_i32_767 dim 1 : vector<16x128xf32>, i32 -> vector<16x128xf32>
    %cst_768 = arith.constant 0.000000e+00 : f32
    %1299 = vector.broadcast %cst_768 : f32 to vector<16x128xf32>
    %1300 = arith.select %1225, %1298, %1299 : vector<16x128xi1>, vector<16x128xf32>
    %1301 = arith.addf %1300, %1047 : vector<16x128xf32>
    %c1_i32_769 = arith.constant 1 : i32
    %1302 = tpu.dynamic_rotate %1074 by %c1_i32_769 dim 1 : vector<16x128xf32>, i32 -> vector<16x128xf32>
    %cst_770 = arith.constant 0.000000e+00 : f32
    %1303 = vector.broadcast %cst_770 : f32 to vector<16x128xf32>
    %1304 = arith.select %1227, %1302, %1303 : vector<16x128xi1>, vector<16x128xf32>
    %1305 = arith.addf %1301, %1304 : vector<16x128xf32>
    %c15_i32_771 = arith.constant 15 : i32
    %1306 = tpu.dynamic_rotate %1289 by %c15_i32_771 dim 0 : vector<16x128xf32>, i32 -> vector<16x128xf32>
    %cst_772 = arith.constant 0.000000e+00 : f32
    %1307 = vector.broadcast %cst_772 : f32 to vector<16x128xf32>
    %1308 = arith.select %1229, %1306, %1307 : vector<16x128xi1>, vector<16x128xf32>
    %1309 = arith.addf %1308, %1297 : vector<16x128xf32>
    %c1_i32_773 = arith.constant 1 : i32
    %1310 = tpu.dynamic_rotate %1305 by %c1_i32_773 dim 0 : vector<16x128xf32>, i32 -> vector<16x128xf32>
    %cst_774 = arith.constant 0.000000e+00 : f32
    %1311 = vector.broadcast %cst_774 : f32 to vector<16x128xf32>
    %1312 = arith.select %1231, %1310, %1311 : vector<16x128xi1>, vector<16x128xf32>
    %1313 = arith.addf %1309, %1312 : vector<16x128xf32>
    %1314 = arith.mulf %1101, %3 : vector<16x128xf32>
    %1315 = arith.addf %1313, %1314 : vector<16x128xf32>
    %1316 = arith.addf %48, %75 : vector<16x128xf32>
    %1317 = arith.addf %1316, %102 : vector<16x128xf32>
    %1318 = arith.addf %1317, %129 : vector<16x128xf32>
    %1319 = arith.addf %1318, %156 : vector<16x128xf32>
    %1320 = arith.addf %1319, %183 : vector<16x128xf32>
    %1321 = arith.addf %1320, %210 : vector<16x128xf32>
    %1322 = arith.addf %1321, %237 : vector<16x128xf32>
    %1323 = arith.addf %1322, %264 : vector<16x128xf32>
    %c127_i32_775 = arith.constant 127 : i32
    %1324 = tpu.dynamic_rotate %318 by %c127_i32_775 dim 1 : vector<16x128xf32>, i32 -> vector<16x128xf32>
    %cst_776 = arith.constant 0.000000e+00 : f32
    %1325 = vector.broadcast %cst_776 : f32 to vector<16x128xf32>
    %1326 = arith.select %1225, %1324, %1325 : vector<16x128xi1>, vector<16x128xf32>
    %1327 = arith.addf %1326, %345 : vector<16x128xf32>
    %c1_i32_777 = arith.constant 1 : i32
    %1328 = tpu.dynamic_rotate %372 by %c1_i32_777 dim 1 : vector<16x128xf32>, i32 -> vector<16x128xf32>
    %cst_778 = arith.constant 0.000000e+00 : f32
    %1329 = vector.broadcast %cst_778 : f32 to vector<16x128xf32>
    %1330 = arith.select %1227, %1328, %1329 : vector<16x128xi1>, vector<16x128xf32>
    %1331 = arith.addf %1327, %1330 : vector<16x128xf32>
    %c127_i32_779 = arith.constant 127 : i32
    %1332 = tpu.dynamic_rotate %399 by %c127_i32_779 dim 1 : vector<16x128xf32>, i32 -> vector<16x128xf32>
    %cst_780 = arith.constant 0.000000e+00 : f32
    %1333 = vector.broadcast %cst_780 : f32 to vector<16x128xf32>
    %1334 = arith.select %1225, %1332, %1333 : vector<16x128xi1>, vector<16x128xf32>
    %1335 = arith.addf %1334, %426 : vector<16x128xf32>
    %c1_i32_781 = arith.constant 1 : i32
    %1336 = tpu.dynamic_rotate %453 by %c1_i32_781 dim 1 : vector<16x128xf32>, i32 -> vector<16x128xf32>
    %cst_782 = arith.constant 0.000000e+00 : f32
    %1337 = vector.broadcast %cst_782 : f32 to vector<16x128xf32>
    %1338 = arith.select %1227, %1336, %1337 : vector<16x128xi1>, vector<16x128xf32>
    %1339 = arith.addf %1335, %1338 : vector<16x128xf32>
    %c127_i32_783 = arith.constant 127 : i32
    %1340 = tpu.dynamic_rotate %480 by %c127_i32_783 dim 1 : vector<16x128xf32>, i32 -> vector<16x128xf32>
    %cst_784 = arith.constant 0.000000e+00 : f32
    %1341 = vector.broadcast %cst_784 : f32 to vector<16x128xf32>
    %1342 = arith.select %1225, %1340, %1341 : vector<16x128xi1>, vector<16x128xf32>
    %1343 = arith.addf %1342, %507 : vector<16x128xf32>
    %c1_i32_785 = arith.constant 1 : i32
    %1344 = tpu.dynamic_rotate %534 by %c1_i32_785 dim 1 : vector<16x128xf32>, i32 -> vector<16x128xf32>
    %cst_786 = arith.constant 0.000000e+00 : f32
    %1345 = vector.broadcast %cst_786 : f32 to vector<16x128xf32>
    %1346 = arith.select %1227, %1344, %1345 : vector<16x128xi1>, vector<16x128xf32>
    %1347 = arith.addf %1343, %1346 : vector<16x128xf32>
    %c15_i32_787 = arith.constant 15 : i32
    %1348 = tpu.dynamic_rotate %1331 by %c15_i32_787 dim 0 : vector<16x128xf32>, i32 -> vector<16x128xf32>
    %cst_788 = arith.constant 0.000000e+00 : f32
    %1349 = vector.broadcast %cst_788 : f32 to vector<16x128xf32>
    %1350 = arith.select %1229, %1348, %1349 : vector<16x128xi1>, vector<16x128xf32>
    %1351 = arith.addf %1350, %1339 : vector<16x128xf32>
    %c1_i32_789 = arith.constant 1 : i32
    %1352 = tpu.dynamic_rotate %1347 by %c1_i32_789 dim 0 : vector<16x128xf32>, i32 -> vector<16x128xf32>
    %cst_790 = arith.constant 0.000000e+00 : f32
    %1353 = vector.broadcast %cst_790 : f32 to vector<16x128xf32>
    %1354 = arith.select %1231, %1352, %1353 : vector<16x128xi1>, vector<16x128xf32>
    %1355 = arith.addf %1351, %1354 : vector<16x128xf32>
    %1356 = arith.mulf %561, %3 : vector<16x128xf32>
    %1357 = arith.addf %1355, %1356 : vector<16x128xf32>
    %c127_i32_791 = arith.constant 127 : i32
    %1358 = tpu.dynamic_rotate %588 by %c127_i32_791 dim 1 : vector<16x128xf32>, i32 -> vector<16x128xf32>
    %cst_792 = arith.constant 0.000000e+00 : f32
    %1359 = vector.broadcast %cst_792 : f32 to vector<16x128xf32>
    %1360 = arith.select %1225, %1358, %1359 : vector<16x128xi1>, vector<16x128xf32>
    %1361 = arith.addf %1360, %615 : vector<16x128xf32>
    %c1_i32_793 = arith.constant 1 : i32
    %1362 = tpu.dynamic_rotate %642 by %c1_i32_793 dim 1 : vector<16x128xf32>, i32 -> vector<16x128xf32>
    %cst_794 = arith.constant 0.000000e+00 : f32
    %1363 = vector.broadcast %cst_794 : f32 to vector<16x128xf32>
    %1364 = arith.select %1227, %1362, %1363 : vector<16x128xi1>, vector<16x128xf32>
    %1365 = arith.addf %1361, %1364 : vector<16x128xf32>
    %c127_i32_795 = arith.constant 127 : i32
    %1366 = tpu.dynamic_rotate %669 by %c127_i32_795 dim 1 : vector<16x128xf32>, i32 -> vector<16x128xf32>
    %cst_796 = arith.constant 0.000000e+00 : f32
    %1367 = vector.broadcast %cst_796 : f32 to vector<16x128xf32>
    %1368 = arith.select %1225, %1366, %1367 : vector<16x128xi1>, vector<16x128xf32>
    %1369 = arith.addf %1368, %696 : vector<16x128xf32>
    %c1_i32_797 = arith.constant 1 : i32
    %1370 = tpu.dynamic_rotate %723 by %c1_i32_797 dim 1 : vector<16x128xf32>, i32 -> vector<16x128xf32>
    %cst_798 = arith.constant 0.000000e+00 : f32
    %1371 = vector.broadcast %cst_798 : f32 to vector<16x128xf32>
    %1372 = arith.select %1227, %1370, %1371 : vector<16x128xi1>, vector<16x128xf32>
    %1373 = arith.addf %1369, %1372 : vector<16x128xf32>
    %c127_i32_799 = arith.constant 127 : i32
    %1374 = tpu.dynamic_rotate %750 by %c127_i32_799 dim 1 : vector<16x128xf32>, i32 -> vector<16x128xf32>
    %cst_800 = arith.constant 0.000000e+00 : f32
    %1375 = vector.broadcast %cst_800 : f32 to vector<16x128xf32>
    %1376 = arith.select %1225, %1374, %1375 : vector<16x128xi1>, vector<16x128xf32>
    %1377 = arith.addf %1376, %777 : vector<16x128xf32>
    %c1_i32_801 = arith.constant 1 : i32
    %1378 = tpu.dynamic_rotate %804 by %c1_i32_801 dim 1 : vector<16x128xf32>, i32 -> vector<16x128xf32>
    %cst_802 = arith.constant 0.000000e+00 : f32
    %1379 = vector.broadcast %cst_802 : f32 to vector<16x128xf32>
    %1380 = arith.select %1227, %1378, %1379 : vector<16x128xi1>, vector<16x128xf32>
    %1381 = arith.addf %1377, %1380 : vector<16x128xf32>
    %c15_i32_803 = arith.constant 15 : i32
    %1382 = tpu.dynamic_rotate %1365 by %c15_i32_803 dim 0 : vector<16x128xf32>, i32 -> vector<16x128xf32>
    %cst_804 = arith.constant 0.000000e+00 : f32
    %1383 = vector.broadcast %cst_804 : f32 to vector<16x128xf32>
    %1384 = arith.select %1229, %1382, %1383 : vector<16x128xi1>, vector<16x128xf32>
    %1385 = arith.addf %1384, %1373 : vector<16x128xf32>
    %c1_i32_805 = arith.constant 1 : i32
    %1386 = tpu.dynamic_rotate %1381 by %c1_i32_805 dim 0 : vector<16x128xf32>, i32 -> vector<16x128xf32>
    %cst_806 = arith.constant 0.000000e+00 : f32
    %1387 = vector.broadcast %cst_806 : f32 to vector<16x128xf32>
    %1388 = arith.select %1231, %1386, %1387 : vector<16x128xi1>, vector<16x128xf32>
    %1389 = arith.addf %1385, %1388 : vector<16x128xf32>
    %1390 = arith.mulf %831, %3 : vector<16x128xf32>
    %1391 = arith.addf %1389, %1390 : vector<16x128xf32>
    %1392 = arith.addf %858, %885 : vector<16x128xf32>
    %1393 = arith.addf %1392, %912 : vector<16x128xf32>
    %1394 = arith.addf %1393, %939 : vector<16x128xf32>
    %1395 = arith.addf %1394, %966 : vector<16x128xf32>
    %1396 = arith.addf %1395, %993 : vector<16x128xf32>
    %1397 = arith.addf %1396, %1020 : vector<16x128xf32>
    %1398 = arith.addf %1397, %1047 : vector<16x128xf32>
    %1399 = arith.addf %1398, %1074 : vector<16x128xf32>
    %1400 = arith.addf %1265, %1273 : vector<16x128xf32>
    %1401 = arith.addf %1400, %1281 : vector<16x128xf32>
    %1402 = arith.addf %1401, %1315 : vector<16x128xf32>
    %cst_807 = arith.constant 2.500000e-01 : f32
    %1403 = vector.broadcast %cst_807 : f32 to vector<16x128xf32>
    %1404 = arith.mulf %1402, %1403 : vector<16x128xf32>
    %c0_808 = arith.constant 0 : index
    %c0_809 = arith.constant 0 : index
    %c0_810 = arith.constant 0 : index
    %c0_811 = arith.constant 0 : index
    %1405 = vector.load %arg12[%c0_808, %c0_809, %c0_810, %c0_811] : memref<1x9x16x128xf32, #tpu.memory_space<vmem>>, vector<1x1x16x128xf32>
    %1406 = vector.shape_cast %1405 : vector<1x1x16x128xf32> to vector<16x128xf32>
    %1407 = vector.shape_cast %1265 : vector<16x128xf32> to vector<1x1x16x128xf32>
    tpu.vector_store %arg12[%c0_808, %c0_809, %c0_810, %c0_811], %1407 {strides = array<i32>} : memref<1x9x16x128xf32, #tpu.memory_space<vmem>>, vector<1x1x16x128xf32>,
    %c0_812 = arith.constant 0 : index
    %c1_813 = arith.constant 1 : index
    %c0_814 = arith.constant 0 : index
    %c0_815 = arith.constant 0 : index
    %1408 = vector.load %arg12[%c0_812, %c1_813, %c0_814, %c0_815] : memref<1x9x16x128xf32, #tpu.memory_space<vmem>>, vector<1x1x16x128xf32>
    %1409 = vector.shape_cast %1408 : vector<1x1x16x128xf32> to vector<16x128xf32>
    %1410 = vector.shape_cast %1273 : vector<16x128xf32> to vector<1x1x16x128xf32>
    tpu.vector_store %arg12[%c0_812, %c1_813, %c0_814, %c0_815], %1410 {strides = array<i32>} : memref<1x9x16x128xf32, #tpu.memory_space<vmem>>, vector<1x1x16x128xf32>,
    %c0_816 = arith.constant 0 : index
    %c2_817 = arith.constant 2 : index
    %c0_818 = arith.constant 0 : index
    %c0_819 = arith.constant 0 : index
    %1411 = vector.load %arg12[%c0_816, %c2_817, %c0_818, %c0_819] : memref<1x9x16x128xf32, #tpu.memory_space<vmem>>, vector<1x1x16x128xf32>
    %1412 = vector.shape_cast %1411 : vector<1x1x16x128xf32> to vector<16x128xf32>
    %1413 = vector.shape_cast %1281 : vector<16x128xf32> to vector<1x1x16x128xf32>
    tpu.vector_store %arg12[%c0_816, %c2_817, %c0_818, %c0_819], %1413 {strides = array<i32>} : memref<1x9x16x128xf32, #tpu.memory_space<vmem>>, vector<1x1x16x128xf32>,
    %c0_820 = arith.constant 0 : index
    %c3_821 = arith.constant 3 : index
    %c0_822 = arith.constant 0 : index
    %c0_823 = arith.constant 0 : index
    %1414 = vector.load %arg12[%c0_820, %c3_821, %c0_822, %c0_823] : memref<1x9x16x128xf32, #tpu.memory_space<vmem>>, vector<1x1x16x128xf32>
    %1415 = vector.shape_cast %1414 : vector<1x1x16x128xf32> to vector<16x128xf32>
    %1416 = vector.shape_cast %1315 : vector<16x128xf32> to vector<1x1x16x128xf32>
    tpu.vector_store %arg12[%c0_820, %c3_821, %c0_822, %c0_823], %1416 {strides = array<i32>} : memref<1x9x16x128xf32, #tpu.memory_space<vmem>>, vector<1x1x16x128xf32>,
    %c0_824 = arith.constant 0 : index
    %c4_825 = arith.constant 4 : index
    %c0_826 = arith.constant 0 : index
    %c0_827 = arith.constant 0 : index
    %1417 = vector.load %arg12[%c0_824, %c4_825, %c0_826, %c0_827] : memref<1x9x16x128xf32, #tpu.memory_space<vmem>>, vector<1x1x16x128xf32>
    %1418 = vector.shape_cast %1417 : vector<1x1x16x128xf32> to vector<16x128xf32>
    %1419 = vector.shape_cast %1323 : vector<16x128xf32> to vector<1x1x16x128xf32>
    tpu.vector_store %arg12[%c0_824, %c4_825, %c0_826, %c0_827], %1419 {strides = array<i32>} : memref<1x9x16x128xf32, #tpu.memory_space<vmem>>, vector<1x1x16x128xf32>,
    %c0_828 = arith.constant 0 : index
    %c5_829 = arith.constant 5 : index
    %c0_830 = arith.constant 0 : index
    %c0_831 = arith.constant 0 : index
    %1420 = vector.load %arg12[%c0_828, %c5_829, %c0_830, %c0_831] : memref<1x9x16x128xf32, #tpu.memory_space<vmem>>, vector<1x1x16x128xf32>
    %1421 = vector.shape_cast %1420 : vector<1x1x16x128xf32> to vector<16x128xf32>
    %1422 = vector.shape_cast %1357 : vector<16x128xf32> to vector<1x1x16x128xf32>
    tpu.vector_store %arg12[%c0_828, %c5_829, %c0_830, %c0_831], %1422 {strides = array<i32>} : memref<1x9x16x128xf32, #tpu.memory_space<vmem>>, vector<1x1x16x128xf32>,
    %c0_832 = arith.constant 0 : index
    %c6_833 = arith.constant 6 : index
    %c0_834 = arith.constant 0 : index
    %c0_835 = arith.constant 0 : index
    %1423 = vector.load %arg12[%c0_832, %c6_833, %c0_834, %c0_835] : memref<1x9x16x128xf32, #tpu.memory_space<vmem>>, vector<1x1x16x128xf32>
    %1424 = vector.shape_cast %1423 : vector<1x1x16x128xf32> to vector<16x128xf32>
    %1425 = vector.shape_cast %1391 : vector<16x128xf32> to vector<1x1x16x128xf32>
    tpu.vector_store %arg12[%c0_832, %c6_833, %c0_834, %c0_835], %1425 {strides = array<i32>} : memref<1x9x16x128xf32, #tpu.memory_space<vmem>>, vector<1x1x16x128xf32>,
    %c0_836 = arith.constant 0 : index
    %c7_837 = arith.constant 7 : index
    %c0_838 = arith.constant 0 : index
    %c0_839 = arith.constant 0 : index
    %1426 = vector.load %arg12[%c0_836, %c7_837, %c0_838, %c0_839] : memref<1x9x16x128xf32, #tpu.memory_space<vmem>>, vector<1x1x16x128xf32>
    %1427 = vector.shape_cast %1426 : vector<1x1x16x128xf32> to vector<16x128xf32>
    %1428 = vector.shape_cast %1399 : vector<16x128xf32> to vector<1x1x16x128xf32>
    tpu.vector_store %arg12[%c0_836, %c7_837, %c0_838, %c0_839], %1428 {strides = array<i32>} : memref<1x9x16x128xf32, #tpu.memory_space<vmem>>, vector<1x1x16x128xf32>,
    %c0_840 = arith.constant 0 : index
    %c8_841 = arith.constant 8 : index
    %c0_842 = arith.constant 0 : index
    %c0_843 = arith.constant 0 : index
    %1429 = vector.load %arg12[%c0_840, %c8_841, %c0_842, %c0_843] : memref<1x9x16x128xf32, #tpu.memory_space<vmem>>, vector<1x1x16x128xf32>
    %1430 = vector.shape_cast %1429 : vector<1x1x16x128xf32> to vector<16x128xf32>
    %1431 = vector.shape_cast %1404 : vector<16x128xf32> to vector<1x1x16x128xf32>
    tpu.vector_store %arg12[%c0_840, %c8_841, %c0_842, %c0_843], %1431 {strides = array<i32>} : memref<1x9x16x128xf32, #tpu.memory_space<vmem>>, vector<1x1x16x128xf32>,
    return
  }
  func.func @transform_0(%arg0: i32) -> (i32, i32) {
    %c0_i32 = arith.constant 0 : i32
    %c0_i32_0 = arith.constant 0 : i32
    %c0_i32_1 = arith.constant 0 : i32
    return %c0_i32, %c0_i32_0 : i32, i32
  }
  func.func @transform_1(%arg0: i32) -> (i32, i32) {
    %c0_i32 = arith.constant 0 : i32
    %c0_i32_0 = arith.constant 0 : i32
    %c0_i32_1 = arith.constant 0 : i32
    return %c0_i32, %c0_i32_0 : i32, i32
  }
  func.func @transform_2(%arg0: i32) -> (i32, i32, i32, i32) {
    %c0_i32 = arith.constant 0 : i32
    %c0_i32_0 = arith.constant 0 : i32
    %c0_i32_1 = arith.constant 0 : i32
    %c0_i32_2 = arith.constant 0 : i32
    return %arg0, %c0_i32, %c0_i32_0, %c0_i32_1 : i32, i32, i32, i32
  }
  func.func @transform_3(%arg0: i32) -> (i32, i32, i32, i32) {
    %c0_i32 = arith.constant 0 : i32
    %c0_i32_0 = arith.constant 0 : i32
    %c0_i32_1 = arith.constant 0 : i32
    %c0_i32_2 = arith.constant 0 : i32
    return %arg0, %c0_i32, %c0_i32_0, %c0_i32_1 : i32, i32, i32, i32
  }
  func.func @transform_4(%arg0: i32) -> (i32, i32, i32, i32) {
    %c0_i32 = arith.constant 0 : i32
    %c0_i32_0 = arith.constant 0 : i32
    %c0_i32_1 = arith.constant 0 : i32
    %c0_i32_2 = arith.constant 0 : i32
    return %arg0, %c0_i32, %c0_i32_0, %c0_i32_1 : i32, i32, i32, i32
  }
  func.func @transform_5(%arg0: i32) -> (i32, i32, i32, i32) {
    %c0_i32 = arith.constant 0 : i32
    %c0_i32_0 = arith.constant 0 : i32
    %c0_i32_1 = arith.constant 0 : i32
    %c0_i32_2 = arith.constant 0 : i32
    return %arg0, %c0_i32, %c0_i32_0, %c0_i32_1 : i32, i32, i32, i32
  }
  func.func @transform_6(%arg0: i32) -> (i32, i32, i32, i32) {
    %c0_i32 = arith.constant 0 : i32
    %c0_i32_0 = arith.constant 0 : i32
    %c0_i32_1 = arith.constant 0 : i32
    %c0_i32_2 = arith.constant 0 : i32
    return %arg0, %c0_i32, %c0_i32_0, %c0_i32_1 : i32, i32, i32, i32
  }
  func.func @transform_7(%arg0: i32) -> (i32, i32, i32, i32) {
    %c0_i32 = arith.constant 0 : i32
    %c0_i32_0 = arith.constant 0 : i32
    %c0_i32_1 = arith.constant 0 : i32
    %c0_i32_2 = arith.constant 0 : i32
    return %arg0, %c0_i32, %c0_i32_0, %c0_i32_1 : i32, i32, i32, i32
  }
  func.func @transform_8(%arg0: i32) -> (i32, i32, i32, i32) {
    %c0_i32 = arith.constant 0 : i32
    %c0_i32_0 = arith.constant 0 : i32
    %c0_i32_1 = arith.constant 0 : i32
    %c0_i32_2 = arith.constant 0 : i32
    return %arg0, %c0_i32, %c0_i32_0, %c0_i32_1 : i32, i32, i32, i32
  }
  func.func @transform_9(%arg0: i32) -> (i32, i32, i32, i32) {
    %c0_i32 = arith.constant 0 : i32
    %c0_i32_0 = arith.constant 0 : i32
    %c0_i32_1 = arith.constant 0 : i32
    %c0_i32_2 = arith.constant 0 : i32
    return %arg0, %c0_i32, %c0_i32_0, %c0_i32_1 : i32, i32, i32, i32
  }
  func.func @transform_10(%arg0: i32) -> (i32, i32, i32, i32) {
    %c0_i32 = arith.constant 0 : i32
    %c0_i32_0 = arith.constant 0 : i32
    %c0_i32_1 = arith.constant 0 : i32
    %c0_i32_2 = arith.constant 0 : i32
    return %arg0, %c0_i32, %c0_i32_0, %c0_i32_1 : i32, i32, i32, i32
  }
  func.func @transform_11(%arg0: i32) -> (i32, i32, i32, i32) {
    %c0_i32 = arith.constant 0 : i32
    %c0_i32_0 = arith.constant 0 : i32
    %c0_i32_1 = arith.constant 0 : i32
    %c0_i32_2 = arith.constant 0 : i32
    return %arg0, %c0_i32, %c0_i32_0, %c0_i32_1 : i32, i32, i32, i32
  }
}

</mosaic_0001>

<bundles_post_ra>
// kernel: tpu_custom_call.1
= control target key start
LH: loop header
LB: loop body
LE: loop exit
PB: predicated region body
PF: predicated region fallthrough
CT: control target
= control target key end

     0   :  { %s7026_s0 = inlined_call_operand.hbm [shape: f32[6,20], index: 0, kind: input, shape index: {}]   ;;  %s7027_s1 = inlined_call_operand.vmem [shape: f32[1,20], index: 1, kind: input, shape index: {}]   ;;  %s7028_s2 = inlined_call_operand.hbm [shape: f32[2,3,16,128], index: 2, kind: input, shape index: {}]   ;;  %s7029_s3 = inlined_call_operand.hbm [shape: f32[2,3,16,128], index: 3, kind: input, shape index: {}]   ;;  %s7030_s4 = inlined_call_operand.hbm [shape: f32[2,3,16,128], index: 4, kind: input, shape index: {}]   ;;  %s7031_s5 = inlined_call_operand.hbm [shape: f32[2,1,16,128], index: 5, kind: input, shape index: {}]   ;;  %s7032_s6 = inlined_call_operand.hbm [shape: f32[2,1,16,128], index: 6, kind: input, shape index: {}]   ;;  %s7033_s7 = inlined_call_operand.hbm [shape: f32[2,10,16,128], index: 7, kind: output, shape index: {0}]   ;;  %s7034_s8 = inlined_call_operand.hbm [shape: f32[2,10,16,128], index: 8, kind: output, shape index: {1}]   ;;  %s7035_s9 = inlined_call_operand.hbm [shape: f32[2,10,16,128], index: 9, kind: output, shape index: {2}]   ;;  %s7036_s10 = inlined_call_operand.hbm [shape: f32[2,10,16,128], index: 10, kind: output, shape index: {3}]   ;;  %s7037_s11 = inlined_call_operand.hbm [shape: f32[2,9,16,128], index: 11, kind: output, shape index: {4}]  }
   0x1   :  { %7264 = sst [smem:[#allocation95_spill]] %s7026_s0 }
   0x2   :  { %7265 = sst [smem:[#allocation96_spill]] %s7027_s1 }
   0x3   :  { %7266 = sst [smem:[#allocation97_spill]] %s7028_s2 }
   0x4   :  { %7267 = sst [smem:[#allocation98_spill]] %s7029_s3 }
   0x5   :  { %7268 = sst [smem:[#allocation99_spill]] %s7031_s5 }
   0x6   :  { %7269 = sst [smem:[#allocation100_spill]] %s7033_s7 }
   0x7   :  { %7270 = sst [smem:[#allocation101_spill]] %s7034_s8 }
   0x8   :  { %7271 = sst [smem:[#allocation102_spill]] %s7035_s9 }
   0x9   :  { %7272 = sst [smem:[#allocation103_spill]] %s7036_s10 }
   0xa   :  { %7273 = sst [smem:[#allocation104_spill]] %s7037_s11 }
   0xb   :  { %17 = vsyncpa [#allocation5], 0 }
   0xc   :  { %18 = vsyncpa [#allocation6], 0 }
   0xd   :  { %19 = vsyncpa [#allocation3], 0 }
   0xe   :  { %21 = vsyncpa [#allocation3 + $0x1], 0 }
   0xf   :  { %22 = vsyncpa [#allocation10], 0 }
  0x10   :  { %24 = vsyncpa [#allocation10 + $0x1], 0 }
  0x11   :  { %25 = vsyncpa [#allocation13], 0 }
  0x12   :  { %27 = vsyncpa [#allocation13 + $0x1], 0 }
  0x13   :  { %28 = vsyncpa [#allocation4], 0 }
  0x14   :  { %30 = vsyncpa [#allocation4 + $0x1], 0 }
  0x15   :  { %31 = vsyncpa [#allocation17], 0 }
  0x16   :  { %33 = vsyncpa [#allocation17 + $0x1], 0 }
  0x17   :  { %34 = vsyncpa [#allocation20], 0 }
  0x18   :  { %36 = vsyncpa [#allocation20 + $0x1], 0  ;;  %s3820_s17 = smov 0   ;;  %s3822_s18 = smov 0  }
  0x19   :  { %s3824_s19 = smov 0   ;;  %s3826_s20 = smov 0  }
  0x1a LB: > { %7274 = sst [smem:[#allocation30_spill]] %s3728_s17  ;;  %s3841_s21 = sadd.s32 1, %s3740_s20   ;;  %s3740_s20 = sphi %s3826_s20, %s7551_s20   ;;  %s3736_s19 = sphi %s3824_s19, %s7553_s19   ;;  %s3732_s18 = sphi %s3822_s18, %s7555_s18   ;;  %s3728_s17 = sphi %s3820_s17, %s7554_s17  }
  0x1b   : > { %7275 = sst [smem:[#allocation31_spill]] %s3736_s19  ;;  %s91_s22 = sadd.s32 1, %s3736_s19 }
  0x1c   : > { %7276 = sst [smem:[#allocation32_spill]] %s3740_s20  ;;  %s88_s23 = ssub.s32 %s3740_s20, %s3841_s21 }
  0x1d   : > { %7277 = sst [smem:[#allocation33_spill]] %s3841_s21  ;;  %p7041_p0 = scmp.ne.s32.totalorder %s3736_s19, %s3732_s18 }
  0x1e   : > { %p89_p1 = scmp.eq.s32.totalorder %s88_s23, 0  ;;  %p99_p2 = scmp.eq.s32.totalorder %s3740_s20, 0 }
  0x1f   : > { %p3218_p4 = scmp.lt.s32.totalorder %s3740_s20, 2  ;;  %s3858_s25 = sand.u32 1, %s3736_s19  }
  0x20   : > { %s3852_s24 = scalar_select %p89_p1, %s3736_s19, %s91_s22  }
  0x21   : > { %p100_p5 = por %p99_p2, %p7041_p0  ;;  %s3861_s26 = smul.u32 48, %s3858_s25 }
  0x22   : > { %7278 = sst [smem:[#allocation34_spill]] %s3852_s24  ;;  %s3864_s27 = smul.u32 768, %s3740_s20 }
  0x23   : > { %p3866_p6 = pnand %p3218_p4, %p100_p5  ;;  %s7040_s29 = sand.u32 1, %s3740_s20  }
  0x24   : > { %s7280_s3 = sld [smem:[#allocation98_spill]]  ;;  %s407_s14 = scalar_lea.vmem [#allocation9], %s3861_s26 }
  0x25   : > { %s414_s15 = sshll.u32 %s407_s14, 4  ;;  %s3883_s22 = scalar_lea.sflag [#allocation10], %s7040_s29  ;;  %s3878_s15 = int_to_ptr.vmem [resolvable:$true] %s414_s15 }
  0x26   : > { %p3889_p8 = pneg %p3866_p6 }
  0x2a   : > { %s3875_s13 = scalar_lea.hbm %s7280_s3, %s3864_s27  ;;  %s3365_s14 = scalar_lea.hbm %s7280_s3, 1536 }
  0x2b   : > { %s3360_s23 = scalar_lea.hbm %s3875_s13, 768  ;;  %p3366_p11 = scmp.lt.u32.totalorder %s3875_s13, %s7280_s3 }
  0x2c   : > { %p3361_p7 = scmp.ne.s32.totalorder %s3875_s13, %s3360_s23  ;;  %p3367_p12 = scmp.lt.u32.totalorder %s3365_s14, %s3360_s23 }
  0x2d   : > { %p3369_p1 = scmp.lt.u32.totalorder %s3360_s23, %s3875_s13 }
  0x2e   : > { %p3363_p9 = pnand %p3889_p8, %p3361_p7  ;;  %p3368_p13 = por %p3367_p12, %p3366_p11 }
  0x30   : > { %p3364_p10 = pneg %p3363_p9  ;;  %p3370_p2 = por %p3369_p1, %p3368_p13 }
  0x32   : > { %p3371_p4 = pnand %p3370_p2, %p3364_p10 }
  0x34   : > { %3374 = shalt.err (!%p3371_p4)
}
  0x35   : > { %s3375_s29 = scalar_lea.vmem %s3878_s15, 768  ;;  %s3742_s30 = smov [#allocation9]  }
  0x36   : > { %p3376_p5 = scmp.ne.s32.totalorder %s3878_s15, %s3375_s29  ;;  %s3380_s12 = sshll.u32 %s3742_s30, 4  ;;  %s3381_s12 = int_to_ptr.vmem [resolvable:$false] %s3380_s12 }
  0x37   : > { %s3382_s21 = scalar_lea.vmem %s3381_s12, 1536  ;;  %p3383_p3 = scmp.lt.s32.totalorder %s3878_s15, %s3381_s12 }
  0x38   : > { %p3378_p7 = pnand %p3376_p5, %p3889_p8  ;;  %p3384_p0 = scmp.lt.s32.totalorder %s3382_s21, %s3375_s29 }
  0x3a   : > { %p3379_p9 = pneg %p3378_p7  ;;  %p3385_p11 = por %p3384_p0, %p3383_p3 }
  0x3c   : > { %p3386_p12 = pnand %p3385_p11, %p3379_p9 }
  0x3e   : > { %3389 = shalt.err (!%p3386_p12)
}
  0x3f   : > { %s7046_s16 = smov 128   ;;  %s7049_s23 = smov 8  }
  0x40   : > { %3190 = dma.hbm_to_vmem [thread:$0]  (!%p3866_p6), %s3875_s13, 768, %s3878_s15, %s3883_s22, %s7046_s16, %s7046_s16, %s7049_s23  }
  0x41   : > { %s7045_s29 = sshll.u32 %s3740_s20, 8  ;;  %s7282_s5 = sld [smem:[#allocation99_spill]] }
  0x42   : > { %s7283_s21 = sshll.u32 %s3858_s25, 4  ;;  %s7284_s9 = sand.u32 1, %s3740_s20  }
  0x43   : > { %s449_s3 = scalar_lea.vmem [#allocation12], %s7283_s21  ;;  %s3930_s8 = scalar_lea.sflag [#allocation13], %s7284_s9 }
  0x44   : > { %s456_s11 = sshll.u32 %s449_s3, 4  ;;  %s3926_s11 = int_to_ptr.vmem [resolvable:$true] %s456_s11 }
  0x47   : > { %s3922_s12 = scalar_lea.hbm %s7282_s5, %s7045_s29  ;;  %s3395_s30 = scalar_lea.hbm %s7282_s5, 512 }
  0x48   : > { %s3390_s13 = scalar_lea.hbm %s3922_s12, 256  ;;  %p3396_p13 = scmp.lt.u32.totalorder %s3922_s12, %s7282_s5 }
  0x49   : > { %p3391_p0 = scmp.ne.s32.totalorder %s3922_s12, %s3390_s13  ;;  %p3397_p1 = scmp.lt.u32.totalorder %s3395_s30, %s3390_s13 }
  0x4a   : > { %p3399_p4 = scmp.lt.u32.totalorder %s3390_s13, %s3922_s12 }
  0x4b   : > { %p3393_p3 = pnand %p3391_p0, %p3889_p8  ;;  %p3398_p2 = por %p3397_p1, %p3396_p13 }
  0x4d   : > { %p3394_p10 = pneg %p3393_p3  ;;  %p3400_p5 = por %p3399_p4, %p3398_p2 }
  0x4f   : > { %p3401_p7 = pnand %p3400_p5, %p3394_p10 }
  0x51   : > { %3404 = shalt.err (!%p3401_p7)
}
  0x52   : > { %s3405_s3 = scalar_lea.vmem %s3926_s11, 256  ;;  %s3745_s9 = smov [#allocation12]  }
  0x53   : > { %p3406_p9 = scmp.ne.s32.totalorder %s3926_s11, %s3405_s3  ;;  %s3410_s21 = sshll.u32 %s3745_s9, 4  ;;  %s3411_s21 = int_to_ptr.vmem [resolvable:$false] %s3410_s21 }
  0x54   : > { %s3412_s16 = scalar_lea.vmem %s3411_s21, 512  ;;  %p3413_p0 = scmp.lt.s32.totalorder %s3926_s11, %s3411_s21 }
  0x55   : > { %p3408_p11 = pnand %p3406_p9, %p3889_p8  ;;  %p3414_p3 = scmp.lt.s32.totalorder %s3412_s16, %s3405_s3 }
  0x57   : > { %p3409_p12 = pneg %p3408_p11  ;;  %p3415_p13 = por %p3414_p3, %p3413_p0 }
  0x59   : > { %p3416_p1 = pnand %p3415_p13, %p3409_p12 }
  0x5b   : > { %3419 = shalt.err (!%p3416_p1)
}
  0x5c   : > { %s7285_s29 = smov 128   ;;  %s7286_s13 = sshll.u32 %s3740_s20, 8 }
  0x5d   : > { %3196 = dma.hbm_to_vmem [thread:$0]  (!%p3866_p6), %s3922_s12, 256, %s3926_s11, %s3930_s8, %s7285_s29, %s7285_s29, %s7049_s23  }
  0x5e   : > { %s3962_s30 = scalar_lea.hbm %s7032_s6, %s7286_s13  ;;  %s7287_s3 = sshll.u32 %s3858_s25, 4 }
  0x5f   : > { %s3966_s9 = scalar_lea.vmem [#allocation14], %s7287_s3  ;;  %s3970_s16 = sadd.s32 4294967295, %s3740_s20  }
  0x60   : > { %s7048_s5 = sadd.s32 4294967294, %s3740_s20   ;;  %p104_p10 = scmp.ne.s32.totalorder %s3732_s18, %s3728_s17 }
  0x61   : > { %p7062_p2 = scmp.eq.s32.totalorder %s3970_s16, 0  ;;  %p232_p4 = scmp.eq.s32.totalorder %s3970_s16, 1 }
  0x62   : > { %p238_p5 = scmp.eq.s32.totalorder %s7048_s5, 1  ;;  %p2870_p7 = scmp.ge.s32.totalorder %s3740_s20, 1 }
  0x63   : > { %p3982_p9 = por %p7062_p2, %p104_p10  ;;  %p7290_p11 = scmp.ne.s32.totalorder %s3736_s19, %s3732_s18 }
  0x64   : > { %p3993_p0 = por %p238_p5, %p104_p10  ;;  %p349_p3 = scmp.lt.s32.totalorder %s3740_s20, 3 }
  0x65   : > { %s7288_s11 = scalar_select %p3982_p9, 1, 0 }
  0x66   : > { %p3989_p12 = por %p232_p4, %p7290_p11  ;;  %p3998_p13 = pnand %p2870_p7, %p349_p3 }
  0x67   : > { %7289 = sst [smem:[#allocation35_spill]] %s7288_s11  ;;  %s7296_s1 = sld [smem:[#allocation96_spill]] }
  0x68   : > { %s7291_s12 = scalar_select %p3989_p12, 1, 0 }
  0x69   : > { %s7293_s13 = scalar_select %p3993_p0, 1, 0 }
  0x6a   : > { %7292 = sst [smem:[#allocation36_spill]] %s7291_s12  ;;  %p3177_p1 = pneg %p3998_p13 }
  0x6b   : > { %7294 = sst [smem:[#allocation37_spill]] %s7293_s13  ;;  %s7297_s2 = sld [smem:[#allocation97_spill]] }
  0x6c   : > { %s7295_s15 = scalar_select %p3998_p13, 1, 0 }
  0x6d   : > { %s371_s5 = sshll.u32 %s7296_s1, 4  ;;  %p4015_p10 = pnand %p3177_p1, %p7062_p2  ;;  %s372_s5 = int_to_ptr.vmem [resolvable:$true] %s371_s5 }
  0x6e   : > { %s386_s13 = scalar_lea.vmem [#allocation8], %s3861_s26  ;;  %s4026_s1 = scalar_lea.hbm %s7030_s4, %s3864_s27 }
  0x6f   : > { %s393_s17 = sshll.u32 %s386_s13, 4  ;;  %s7299_s0 = sld [smem:[#allocation95_spill]]  ;;  %s4020_s17 = int_to_ptr.vmem [resolvable:$true] %s393_s17 }
  0x70   : > { %p3422_p5 = pneg %p4015_p10 }
  0x71   : > { %s4011_s19 = scalar_lea.hbm %s7297_s2, %s3864_s27 }
  0x75   : > { %s3420_s23 = scalar_lea.hbm %s7299_s0, 128 }
  0x76   : > { %p3421_p4 = scmp.ne.s32.totalorder %s7299_s0, %s3420_s23  ;;  %p3427_p3 = scmp.lt.u32.totalorder %s3420_s23, %s7299_s0 }
  0x78   : > { %p3423_p7 = pnand %p3422_p5, %p3421_p4 }
  0x7a   : > { %p3424_p11 = pneg %p3423_p7 }
  0x7c   : > { %p3429_p1 = pnand %p3427_p3, %p3424_p11 }
  0x7e   : > { %3432 = shalt.err (!%p3429_p1)
}
  0x7f   : > { %s3746_s27 = smov [#allocation2]   ;;  %s3433_s12 = scalar_lea.vmem %s372_s5, 16 }
  0x80   : > { %3180 = dma.hbm_to_smem (!%p4015_p10), %s7299_s0, 128, %s3746_s27, [#allocation5]  }
  0x81   : > { %p3434_p2 = scmp.ne.s32.totalorder %s372_s5, %s3433_s12  ;;  %p3441_p9 = scmp.lt.s32.totalorder %s372_s5, %s372_s5 }
  0x82   : > { %p3442_p4 = scmp.lt.s32.totalorder %s3433_s12, %s3433_s12 }
  0x83   : > { %p3436_p0 = pnand %p3434_p2, %p3422_p5 }
  0x84   : > { %p3443_p7 = por %p3442_p4, %p3441_p9 }
  0x85   : > { %p3437_p12 = pneg %p3436_p0 }
  0x87   : > { %p3444_p13 = pnand %p3443_p7, %p3437_p12 }
  0x89   : > { %3447 = shalt.err (!%p3444_p13)
}
  0x8a   : > { %s3747_s7 = smov [#allocation7]   ;;  %s383_s11 = scalar_lea.sflag [#allocation3], %s3858_s25 }
  0x8b   : > { %3183 = dma.vmem_to_smem (!%p4015_p10), %s372_s5, 16, %s3747_s7, [#allocation6]  }
  0x8c   : > { %s3448_s3 = scalar_lea.hbm %s4011_s19, 768  ;;  %s3453_s13 = scalar_lea.hbm %s7297_s2, 1536 }
  0x8d   : > { %p3449_p11 = scmp.ne.s32.totalorder %s4011_s19, %s3448_s3  ;;  %p3454_p9 = scmp.lt.u32.totalorder %s4011_s19, %s7297_s2 }
  0x8e   : > { %p3455_p12 = scmp.lt.u32.totalorder %s3453_s13, %s3448_s3  ;;  %p3457_p5 = scmp.lt.u32.totalorder %s3448_s3, %s4011_s19 }
  0x8f   : > { %p3451_p2 = pnand %p3449_p11, %p3889_p8 }
  0x90   : > { %p3456_p13 = por %p3455_p12, %p3454_p9 }
  0x91   : > { %p3452_p0 = pneg %p3451_p2 }
  0x92   : > { %p3458_p3 = por %p3457_p5, %p3456_p13 }
  0x94   : > { %p3459_p1 = pnand %p3458_p3, %p3452_p0 }
  0x96   : > { %3462 = shalt.err (!%p3459_p1)
}
  0x97   : > { %s3463_s5 = scalar_lea.vmem %s4020_s17, 768  ;;  %s3748_s20 = smov [#allocation8]  }
  0x98   : > { %p3464_p10 = scmp.ne.s32.totalorder %s4020_s17, %s3463_s5  ;;  %s3468_s10 = sshll.u32 %s3748_s20, 4  ;;  %s3469_s10 = int_to_ptr.vmem [resolvable:$false] %s3468_s10 }
  0x99   : > { %s3470_s12 = scalar_lea.vmem %s3469_s10, 1536  ;;  %p3471_p11 = scmp.lt.s32.totalorder %s4020_s17, %s3469_s10 }
  0x9a   : > { %p3466_p4 = pnand %p3464_p10, %p3889_p8  ;;  %p3472_p2 = scmp.lt.s32.totalorder %s3470_s12, %s3463_s5 }
  0x9c   : > { %p3467_p7 = pneg %p3466_p4  ;;  %p3473_p9 = por %p3472_p2, %p3471_p11 }
  0x9e   : > { %p3474_p12 = pnand %p3473_p9, %p3467_p7 }
  0xa0   : > { %3477 = shalt.err (!%p3474_p12)
}
  0xa1   : > { %s7300_s7 = smov 8   ;;  %s7301_s3 = sshll.u32 %s3966_s9, 4  ;;  %s4075_s3 = int_to_ptr.vmem [resolvable:$true] %s7301_s3 }
  0xa2   : > { %3187 = dma.hbm_to_vmem [thread:$0]  (!%p3866_p6), %s4011_s19, 768, %s4020_s17, %s383_s11, %s7285_s29, %s7285_s29, %s7300_s7  }
  0xa3   : > { %s428_s23 = scalar_lea.vmem [#allocation11], %s3861_s26  ;;  %s3478_s13 = scalar_lea.hbm %s4026_s1, 768 }
  0xa4   : > { %s435_s21 = sshll.u32 %s428_s23, 4  ;;  %p3479_p0 = scmp.ne.s32.totalorder %s4026_s1, %s3478_s13  ;;  %s4078_s21 = int_to_ptr.vmem [resolvable:$true] %s435_s21 }
  0xa5   : > { %s3483_s14 = scalar_lea.hbm %s7030_s4, 1536  ;;  %p3484_p3 = scmp.lt.u32.totalorder %s4026_s1, %s7030_s4 }
  0xa6   : > { %p3481_p13 = pnand %p3479_p0, %p3889_p8  ;;  %p3485_p1 = scmp.lt.u32.totalorder %s3483_s14, %s3478_s13 }
  0xa7   : > { %p3487_p4 = scmp.lt.u32.totalorder %s3478_s13, %s4026_s1 }
  0xa8   : > { %p3482_p5 = pneg %p3481_p13  ;;  %p3486_p10 = por %p3485_p1, %p3484_p3 }
  0xaa   : > { %p3488_p7 = por %p3487_p4, %p3486_p10 }
  0xac   : > { %p3489_p11 = pnand %p3488_p7, %p3482_p5 }
  0xae   : > { %3492 = shalt.err (!%p3489_p11)
}
  0xaf   : > { %s3493_s17 = scalar_lea.vmem %s4078_s21, 768  ;;  %s3749_s19 = smov [#allocation11]  }
  0xb0   : > { %p3494_p2 = scmp.ne.s32.totalorder %s4078_s21, %s3493_s17  ;;  %s3498_s26 = sshll.u32 %s3749_s19, 4  ;;  %s3499_s26 = int_to_ptr.vmem [resolvable:$false] %s3498_s26 }
  0xb1   : > { %s3500_s9 = scalar_lea.vmem %s3499_s26, 1536  ;;  %p3501_p0 = scmp.lt.s32.totalorder %s4078_s21, %s3499_s26 }
  0xb2   : > { %p3496_p9 = pnand %p3494_p2, %p3889_p8  ;;  %p3502_p13 = scmp.lt.s32.totalorder %s3500_s9, %s3493_s17 }
  0xb4   : > { %p3497_p12 = pneg %p3496_p9  ;;  %p3503_p3 = por %p3502_p13, %p3501_p0 }
  0xb6   : > { %p3504_p1 = pnand %p3503_p3, %p3497_p12 }
  0xb8   : > { %3507 = shalt.err (!%p3504_p1)
}
  0xb9   : > { %3193 = dma.hbm_to_vmem [thread:$0]  (!%p3866_p6), %s4026_s1, 768, %s4078_s21, %s3883_s22, %s7285_s29, %s7285_s29, %s7300_s7  }
  0xba   : > { %s3508_s11 = scalar_lea.hbm %s3962_s30, 256  ;;  %s3513_s23 = scalar_lea.hbm %s7032_s6, 512 }
  0xbb   : > { %p3509_p5 = scmp.ne.s32.totalorder %s3962_s30, %s3508_s11  ;;  %p3514_p7 = scmp.lt.u32.totalorder %s3962_s30, %s7032_s6 }
  0xbc   : > { %p3515_p11 = scmp.lt.u32.totalorder %s3513_s23, %s3508_s11  ;;  %p3517_p9 = scmp.lt.u32.totalorder %s3508_s11, %s3962_s30 }
  0xbd   : > { %p3511_p10 = pnand %p3509_p5, %p3889_p8 }
  0xbe   : > { %p3516_p2 = por %p3515_p11, %p3514_p7 }
  0xbf   : > { %p3512_p4 = pneg %p3511_p10 }
  0xc0   : > { %p3518_p12 = por %p3517_p9, %p3516_p2 }
  0xc2   : > { %p3519_p0 = pnand %p3518_p12, %p3512_p4 }
  0xc4   : > { %3522 = shalt.err (!%p3519_p0)
}
  0xc5   : > { %s3523_s1 = scalar_lea.vmem %s4075_s3, 256  ;;  %s3750_s22 = smov [#allocation14]  }
  0xc6   : > { %p3524_p13 = scmp.ne.s32.totalorder %s4075_s3, %s3523_s1  ;;  %s3528_s21 = sshll.u32 %s3750_s22, 4  ;;  %s3529_s21 = int_to_ptr.vmem [resolvable:$false] %s3528_s21 }
  0xc7   : > { %s3530_s27 = scalar_lea.vmem %s3529_s21, 512  ;;  %p3531_p5 = scmp.lt.s32.totalorder %s4075_s3, %s3529_s21 }
  0xc8   : > { %p3526_p3 = pnand %p3524_p13, %p3889_p8  ;;  %p3532_p10 = scmp.lt.s32.totalorder %s3530_s27, %s3523_s1 }
  0xca   : > { %p3527_p1 = pneg %p3526_p3  ;;  %p3533_p7 = por %p3532_p10, %p3531_p5 }
  0xcc   : > { %p3534_p11 = pnand %p3533_p7, %p3527_p1 }
  0xce   : > { %3537 = shalt.err (!%p3534_p11)
}
  0xcf   : > { %3199 = dma.hbm_to_vmem [thread:$0]  (!%p3866_p6), %s3962_s30, 256, %s4075_s3, %s3930_s8, %s7285_s29, %s7285_s29, %s7300_s7  }
  0xd0   : > { %p7302_p8 = scmp.ne.s32.totalorder %s7295_s15, 0 }
  0xd2   : > { %489 = sbr.rel (%p7302_p8) target bundleno = 713 (0x2c9), region = 48 }
  0xd9   : > { %p7303_p4 = scmp.eq.s32.totalorder %s3970_s16, 0 }
  0xdb   : > { %3695 = dma.done.wait (%p7303_p4), [#allocation5], 128   ;;  %p7304_p2 = pmov %p7303_p4 }
  0xdd   : > { %3697 = vsyncadd (%p7304_p2), [#allocation5], 4294967168  ;;  %p7305_p9 = pmov %p7304_p2 }
  0xde   : > { %p7306_p12 = pmov %p7304_p2 }
  0xdf   : > { %3699 = dma.done.wait (%p7305_p9), [#allocation6], 16  }
  0xe0   : > { %3701 = vsyncadd (%p7306_p12), [#allocation6], 4294967280  ;;  %s7307_s24 = sld [smem:[#allocation35_spill]]  ;;  %s4141_s28 = sand.u32 1, %s3732_s18  }
  0xe1   : > { %s3141_s8 = smul.u32 48, %s4141_s28  ;;  %s500_s29 = scalar_lea.sflag [#allocation3], %s4141_s28 }
  0xe3   : > { %s4145_s30 = scalar_lea.vmem [#allocation8], %s3141_s8 }
  0xe6   : > { %p7308_p6 = scmp.ne.s32.totalorder %s7307_s24, 0 }
  0xe8   : > { %3703 = dma.done.wait (%p7308_p6), %s500_s29, 768  }
  0xe9   : > { %3705 = vsyncadd (%p7308_p6), %s500_s29, 4294966528  ;;  %s4152_s15 = sand.u32 1, %s3970_s16   ;;  %s4155_s3 = scalar_lea.vmem [#allocation9], %s3141_s8 }
  0xea   : > { %s509_s7 = scalar_lea.sflag [#allocation10], %s4152_s15 }
  0xeb   : > { %3707 = dma.done.wait (%p7308_p6), %s509_s7, 1536  }
  0xec   : > { %3709 = vsyncadd (%p7308_p6), %s509_s7, 4294965760  ;;  %s2886_s14 = sshll.u32 %s4141_s28, 4  ;;  %s4162_s5 = scalar_lea.vmem [#allocation11], %s3141_s8 }
  0xed   : > { %s527_s20 = scalar_lea.sflag [#allocation13], %s4152_s15  ;;  %s4165_s17 = scalar_lea.vmem [#allocation12], %s2886_s14 }
  0xee   : > { %3711 = dma.done.wait (%p7308_p6), %s527_s20, 512  }
  0xef   : > { %3713 = vsyncadd (%p7308_p6), %s527_s20, 4294966784  ;;  %s4171_s19 = scalar_lea.vmem [#allocation14], %s2886_s14 }
  0xf0   : > { %544 = sfence }
  0xf1   : > { %s2912_s26 = sld [smem:[#allocation2 + $0x2]]  ;;  %v4174_v0 = vld [vmem:[%s4145_s30] sm:$0xff]  ;;  %v4179_v1 = vld [vmem:[%s4145_s30 + $0x8] sm:$0xff]  ;;  %v4182_v2 = vld [vmem:[%s4145_s30 + $0x10] sm:$0xff]  ;;  %s647_s25 = sld [smem:[#allocation2]] }
  0xf2   : > { %s2913_s9 = sld [smem:[#allocation2 + $0x82]]  ;;  %s2900_s1 = sld [smem:[#allocation2 + $0x80]]  ;;  %v4185_v3 = vld [vmem:[%s4145_s30 + $0x18] sm:$0xff]  ;;  %v4188_v4 = vld [vmem:[%s4145_s30 + $0x20] sm:$0xff]  ;;  %v4200_v7 = vld [vmem:[%s4155_s3 + $0x10] sm:$0xff] }
  0xf3   : > { %s2914_s11 = sld [smem:[#allocation2 + $0x102]]  ;;  %v4191_v5 = vld [vmem:[%s4155_s3] sm:$0xff]  ;;  %s4195_s22 = sld [smem:[#allocation2 + $0x100]]  ;;  %v4224_v15 = vld [vmem:[%s4145_s30 + $0x28] sm:$0xff]  ;;  %v4262_v34 = vld [vmem:[%s4155_s3 + $0x18] sm:$0xff] }
  0xf4   : > { %s2915_s10 = sld [smem:[#allocation2 + $0x182]]  ;;  %s4197_s21 = sld [smem:[#allocation2 + $0x180]]  ;;  %v4203_v8 = vld [vmem:[%s4155_s3 + $0x20] sm:$0xff]  ;;  %v4259_v33 = vld [vmem:[%s4155_s3 + $0x8] sm:$0xff] }
  0xf5   : > { %s2916_s12 = sld [smem:[#allocation2 + $0x202]]  ;;  %s4209_s27 = sld [smem:[#allocation2 + $0x200]]  ;;  %v4278_v39 = vld [vmem:[%s4155_s3 + $0x28] sm:$0xff]  ;;  %v4319_v60 = vld [vmem:[%s4165_s17] sm:$0xff] }
  0xf6   : > { %s2917_s23 = sld [smem:[#allocation2 + $0x282]]  ;;  %s4211_s24 = sld [smem:[#allocation2 + $0x280]] }
  0xf7   : > { %s4176_s13 = sld [smem:[#allocation7 + $0x2]]  ;;  %v4193_v6 = vstv %s2912_s26  ;;  %s4221_s8 = sld [smem:[#allocation7]]  ;;  %v4243_v25 = vstv %s647_s25 }
  0xf8   : > { %7309 = vst [vmem:[#allocation38_spill] sm:$0xff] %v4193_v6  ;;  %v729_v9 = vmul.f32 %v4193_v6, %v4174_v0  ;;  %v4207_v10 = vstv %s2913_s9  ;;  %v730_v11 = vmul.f32 %v4193_v6, %v4179_v1  ;;  %v4245_v26 = vstv %s2900_s1  ;;  %s4249_s29 = sld [smem:[#allocation2 + $0x3]]  ;;  %s4352_s25 = sld [smem:[#allocation2 + $0x185]] }
  0xf9   : > { %7310 = vst [vmem:[#allocation39_spill] sm:$0xff] %v4207_v10  ;;  %v733_v12 = vmul.f32 %v4182_v2, %v4207_v10  ;;  %v4217_v13 = vstv %s2914_s11  ;;  %v734_v16 = vmul.f32 %v4185_v3, %v4207_v10  ;;  %v649_v30 = vmul.f32 %v4243_v25, %v4174_v0  ;;  %s4264_s7 = sld [smem:[#allocation2 + $0x83]]  ;;  %s3751_s1 = smov 1  }
  0xfa   : > { %7311 = vst [vmem:[#allocation40_spill] sm:$0xff] %v4217_v13  ;;  %v4219_v14 = vstv %s2915_s10  ;;  %v739_v17 = vmul.f32 %v4188_v4, %v4217_v13  ;;  %v740_v28 = vmul.f32 %v4224_v15, %v4217_v13  ;;  %v653_v31 = vmul.f32 %v4182_v2, %v4245_v26  ;;  %s4280_s14 = sld [smem:[#allocation2 + $0x103]]  ;;  %s4306_s10 = smul.u32 160, %s4141_s28 }
  0xfb   : > { %7312 = vst [vmem:[#allocation41_spill] sm:$0xff] %v4219_v14  ;;  %v745_v18 = vmul.f32 %v4219_v14, %v4191_v5  ;;  %v4232_v19 = vstv %s2916_s12  ;;  %v735_v21 = vadd.f32 %v733_v12, %v729_v9  ;;  %v736_v27 = vadd.f32 %v734_v16, %v730_v11  ;;  %s4286_s20 = sld [smem:[#allocation2 + $0x183]]  ;;  %s4332_s12 = sld [smem:[#allocation2 + $0x5]] }
  0xfc   : > { %7313 = vst [vmem:[#allocation42_spill] sm:$0xff] %v4232_v19  ;;  %v4234_v20 = vstv %s2917_s23  ;;  %v751_v22 = vmul.f32 %v4200_v7, %v4232_v19  ;;  %v4256_v32 = vstv %s4195_s22  ;;  %v4269_v36 = vstv %s4197_s21  ;;  %s4295_s26 = sld [smem:[#allocation2 + $0x203]]  ;;  %s4339_s23 = sld [smem:[#allocation2 + $0x85]] }
  0xfd   : > { %7314 = vst [vmem:[#allocation43_spill] sm:$0xff] %v4234_v20  ;;  %v757_v23 = vmul.f32 %v4203_v8, %v4234_v20  ;;  %v4241_v24 = vstv %s4176_s13  ;;  %v741_v29 = vadd.f32 %v739_v17, %v735_v21  ;;  %v659_v35 = vmul.f32 %v4188_v4, %v4256_v32  ;;  %s4301_s9 = sld [smem:[#allocation2 + $0x283]]  ;;  %s4350_s13 = sld [smem:[#allocation2 + $0x105]] }
  0xfe   : > { %7315 = vst [vmem:[#allocation44_spill] sm:$0xff] %v4241_v24  ;;  %v4272_v37 = vstv %s4209_s27  ;;  %v4275_v38 = vstv %s4211_s24  ;;  %v655_v41 = vadd.f32 %v653_v31, %v649_v30  ;;  %v665_v42 = vmul.f32 %v4269_v36, %v4191_v5  ;;  %s4303_s11 = sld [smem:[#allocation7 + $0x3]]  ;;  %s4359_s22 = scalar_lea.vmem [#allocation15], %s4306_s10 }
  0xff   : > { %v747_v40 = vadd.f32 %v745_v18, %v741_v29  ;;  %v671_v43 = vmul.f32 %v4200_v7, %v4272_v37  ;;  %v677_v44 = vmul.f32 %v4203_v8, %v4275_v38  ;;  %v4291_v45 = vstv %s4221_s8  ;;  %v4343_v29 = vld [vmem:[%s4165_s17 + $0x8] sm:$0xff]  ;;  %s4372_s21 = sld [smem:[#allocation2 + $0x205]]  ;;  %s3752_s8 = smov 127  }
 0x100   : > { %v742_v46 = vadd.f32 %v740_v28, %v736_v27  ;;  %v746_v47 = vmul.f32 %v4219_v14, %v4259_v33  ;;  %v661_v49 = vadd.f32 %v659_v35, %v655_v41  ;;  %v752_v50 = vmul.f32 %v4262_v34, %v4232_v19  ;;  %s4374_s27 = sld [smem:[#allocation2 + $0x285]] }
 0x101   : > { %v753_v48 = vadd.f32 %v751_v22, %v747_v40  ;;  %v758_v51 = vmul.f32 %v4278_v39, %v4234_v20  ;;  %v650_v53 = vmul.f32 %v4243_v25, %v4179_v1  ;;  %v654_v54 = vmul.f32 %v4185_v3, %v4245_v26  ;;  %s4391_s24 = sld [smem:[#allocation7 + $0x5]] }
 0x102   : > { %v748_v52 = vadd.f32 %v746_v47, %v742_v46  ;;  %v660_v55 = vmul.f32 %v4224_v15, %v4256_v32  ;;  %v667_v57 = vadd.f32 %v665_v42, %v661_v49  ;;  %v666_v58 = vmul.f32 %v4269_v36, %v4259_v33 }
 0x103   : > { %v759_v56 = vadd.f32 %v757_v23, %v753_v48  ;;  %v672_v59 = vmul.f32 %v4262_v34, %v4272_v37  ;;  %v656_v62 = vadd.f32 %v654_v54, %v650_v53  ;;  %v678_v63 = vmul.f32 %v4278_v39, %v4275_v38 }
 0x104   : > { %v754_v61 = vadd.f32 %v752_v50, %v748_v52  ;;  %v4324_v9 = vstv %s4249_s29  ;;  %v673_v12 = vadd.f32 %v671_v43, %v667_v57  ;;  %v4330_v17 = vstv %s4264_s7  ;;  %s4403_s29 = sld [smem:[#allocation2 + $0x6]] }
 0x105   : > { %7316 = vst [vmem:[#allocation45_spill] sm:$0xff] %v4324_v9  ;;  %v763_v11 = vadd.f32 %v4241_v24, %v759_v56  ;;  %v770_v16 = vmul.f32 %v4324_v9, %v4179_v1  ;;  %7317 = vst [vmem:[#allocation46_spill] sm:$0xff] %v4330_v17  ;;  %v662_v21 = vadd.f32 %v660_v55, %v656_v62  ;;  %v4337_v23 = vstv %s4280_s14  ;;  %s4411_s7 = sld [smem:[#allocation2 + $0x86]] }
 0x106   : > { %v760_v18 = vadd.f32 %v758_v51, %v754_v61  ;;  %v774_v22 = vmul.f32 %v4185_v3, %v4330_v17  ;;  %7318 = vst [vmem:[#allocation47_spill] sm:$0xff] %v4337_v23  ;;  %v679_v28 = vadd.f32 %v677_v44, %v673_v12  ;;  %v780_v30 = vmul.f32 %v4224_v15, %v4337_v23  ;;  %s4413_s14 = sld [smem:[#allocation2 + $0x106]] }
 0x107   : > { %v765_v27 = vmul.f32 %v763_v11, %v4319_v60  ;;  %v4348_v31 = vstv %s4286_s20  ;;  %v668_v40 = vadd.f32 %v666_v58, %v662_v21  ;;  %v4364_v44 = vstv %s4295_s26  ;;  %s4428_s20 = sld [smem:[#allocation2 + $0x186]] }
 0x108   : > { %7319 = vst [vmem:[#allocation48_spill] sm:$0xff] %v4348_v31  ;;  %v764_v35 = vadd.f32 %v4241_v24, %v760_v18  ;;  %v776_v41 = vadd.f32 %v774_v22, %v770_v16  ;;  %v786_v42 = vmul.f32 %v4348_v31, %v4259_v33  ;;  %v683_v43 = vadd.f32 %v4291_v45, %v679_v28  ;;  %s4430_s26 = sld [smem:[#allocation2 + $0x206]] }
 0x109   : > { %2102 = vrot.lane.b32.xlu1 %v765_v27, %s3751_s1  ;;  %3046 = vst [vmem:[%s4359_s22 + $0x20] sm:$0xff] %v765_v27  ;;  %7320 = vst [vmem:[#allocation49_spill] sm:$0xff] %v4364_v44  ;;  %v4367_v46 = vstv %s4301_s9  ;;  %v4370_v47 = vstv %s4303_s11  ;;  %v674_v49 = vadd.f32 %v672_v59, %v668_v40  ;;  %v792_v51 = vmul.f32 %v4262_v34, %v4364_v44  ;;  %s4445_s9 = sld [smem:[#allocation2 + $0x286]] }
 0x10a   : > { %7321 = vst [vmem:[#allocation50_spill] sm:$0xff] %v4367_v46  ;;  %7322 = vst [vmem:[#allocation51_spill] sm:$0xff] %v4370_v47  ;;  %v766_v48 = vmul.f32 %v764_v35, %v4343_v29  ;;  %v782_v50 = vadd.f32 %v780_v30, %v776_v41  ;;  %v685_v52 = vmul.f32 %v683_v43, %v4319_v60  ;;  %v4401_v11 = vstv %s4332_s12  ;;  %s4455_s11 = sld [smem:[#allocation7 + $0x6]]  ;;  %s4480_s12 = sld [smem:[#allocation2 + $0x8]] }
 0x10b   : > { %v798_v53 = vmul.f32 %v4278_v39, %v4367_v46  ;;  %v769_v54 = vmul.f32 %v4324_v9, %v4174_v0  ;;  %v773_v55 = vmul.f32 %v4182_v2, %v4330_v17  ;;  %v680_v56 = vadd.f32 %v678_v63, %v674_v49  ;;  %7323 = vst [vmem:[#allocation52_spill] sm:$0xff] %v4401_v11  ;;  %v4675_v9 = vld [vmem:[%s4162_s5 + $0x20] sm:$0xff] }
 0x10c   : > { %3047 = vst [vmem:[%s4359_s22 + $0x28] sm:$0xff] %v766_v48  ;;  %v788_v57 = vadd.f32 %v786_v42, %v782_v50  ;;  %v779_v58 = vmul.f32 %v4188_v4, %v4337_v23  ;;  %v785_v59 = vmul.f32 %v4348_v31, %v4191_v5  ;;  %2094 = vrot.lane.b32.xlu0 %v685_v52, %s3752_s8  ;;  %1967 = vst [vmem:[%s4359_s22] sm:$0xff] %v685_v52 }
 0x10d   : > { %2104 = vrot.lane.b32.xlu1 %v766_v48, %s3751_s1  ;;  %v775_v61 = vadd.f32 %v773_v55, %v769_v54  ;;  %v791_v62 = vmul.f32 %v4200_v7, %v4364_v44  ;;  %v797_v63 = vmul.f32 %v4203_v8, %v4367_v46  ;;  %v684_v12 = vadd.f32 %v4291_v45, %v680_v56 }
 0x10e   : > { %v794_v16 = vadd.f32 %v792_v51, %v788_v57  ;;  %v850_v18 = vmul.f32 %v4401_v11, %v4179_v1  ;;  %v4409_v21 = vstv %s4339_s23  ;;  %v4418_v28 = vstv %s4350_s13  ;;  %s4482_s23 = sld [smem:[#allocation2 + $0x88]] }
 0x10f   : > { %7324 = vst [vmem:[#allocation53_spill] sm:$0xff] %v4409_v21  ;;  %v781_v22 = vadd.f32 %v779_v58, %v775_v61  ;;  %v854_v27 = vmul.f32 %v4185_v3, %v4409_v21  ;;  %7325 = vst [vmem:[#allocation54_spill] sm:$0xff] %v4418_v28  ;;  %v4421_v30 = vstv %s4352_s25  ;;  %v686_v35 = vmul.f32 %v684_v12, %v4343_v29  ;;  %s4487_s13 = sld [smem:[#allocation2 + $0x108]] }
 0x110   : > { %7326 = vst [vmem:[#allocation55_spill] sm:$0xff] %v4421_v30  ;;  %v800_v40 = vadd.f32 %v798_v53, %v794_v16  ;;  %v860_v41 = vmul.f32 %v4224_v15, %v4418_v28  ;;  %v866_v42 = vmul.f32 %v4421_v30, %v4259_v33  ;;  %v4433_v49 = vstv %s4372_s21  ;;  %s4499_s25 = sld [smem:[#allocation2 + $0x188]] }
 0x111   : > { %v787_v43 = vadd.f32 %v785_v59, %v781_v22  ;;  %v856_v48 = vadd.f32 %v854_v27, %v850_v18  ;;  %7327 = vst [vmem:[#allocation56_spill] sm:$0xff] %v4433_v49  ;;  %v4436_v50 = vstv %s4374_s27  ;;  %2096 = vrot.lane.b32.xlu0 %v686_v35, %s3752_s8  ;;  %1968 = vst [vmem:[%s4359_s22 + $0x8] sm:$0xff] %v686_v35  ;;  %v4459_v61 = vstv %s4391_s24  ;;  %s4502_s21 = sld [smem:[#allocation2 + $0x208]] }
 0x112   : > { %7328 = vst [vmem:[#allocation57_spill] sm:$0xff] %v4436_v50  ;;  %v804_v51 = vadd.f32 %v4370_v47, %v800_v40  ;;  %v872_v52 = vmul.f32 %v4262_v34, %v4433_v49  ;;  %v878_v53 = vmul.f32 %v4278_v39, %v4436_v50  ;;  %v4449_v54 = vmul.f32 %v4193_v6, %v4259_v33  ;;  %s4515_s27 = sld [smem:[#allocation2 + $0x288]] }
 0x113   : > { %v793_v55 = vadd.f32 %v791_v62, %v787_v43  ;;  %v862_v56 = vadd.f32 %v860_v41, %v856_v48  ;;  %v849_v57 = vmul.f32 %v4401_v11, %v4174_v0  ;;  %v853_v58 = vmul.f32 %v4182_v2, %v4409_v21  ;;  %7330 = vst [vmem:[#allocation59_spill] sm:$0xff] %v4459_v61  ;;  %s4536_s24 = sld [smem:[#allocation7 + $0x8]] }
 0x114   : > { %7329 = vst [vmem:[#allocation58_spill] sm:$0xff] %v4449_v54  ;;  %v806_v59 = vmul.f32 %v804_v51, %v4343_v29  ;;  %v859_v12 = vmul.f32 %v4188_v4, %v4418_v28  ;;  %v865_v62 = vmul.f32 %v4421_v30, %v4191_v5  ;;  %v871_v27 = vmul.f32 %v4200_v7, %v4433_v49 }
 0x115   : > { %v799_v16 = vadd.f32 %v797_v63, %v793_v55  ;;  %v868_v18 = vadd.f32 %v866_v42, %v862_v56  ;;  %v855_v22 = vadd.f32 %v853_v58, %v849_v57  ;;  %v877_v35 = vmul.f32 %v4203_v8, %v4436_v50 }
 0x116   : > { %2112 = vrot.lane.b32.xlu1 %v806_v59, %s3752_s8  ;;  %3055 = vst [vmem:[%s4359_s22 + $0x38] sm:$0xff] %v806_v59  ;;  %v4472_v40 = vstv %s4403_s29  ;;  %v4475_v41 = vstv %s4411_s7  ;;  %s4544_s29 = sld [smem:[#allocation2 + $0xa]] }
 0x117   : > { %7331 = vst [vmem:[#allocation60_spill] sm:$0xff] %v4472_v40  ;;  %7332 = vst [vmem:[#allocation61_spill] sm:$0xff] %v4475_v41  ;;  %v4478_v43 = vstv %s4413_s14  ;;  %v803_v63 = vadd.f32 %v4370_v47, %v799_v16  ;;  %v874_v42 = vadd.f32 %v872_v52, %v868_v18  ;;  %v861_v48 = vadd.f32 %v859_v12, %v855_v22  ;;  %s4556_s7 = sld [smem:[#allocation2 + $0x8a]] }
 0x118   : > { %7333 = vst [vmem:[#allocation62_spill] sm:$0xff] %v4478_v43  ;;  %v890_v51 = vmul.f32 %v4472_v40, %v4179_v1  ;;  %v894_v55 = vmul.f32 %v4185_v3, %v4475_v41  ;;  %v900_v56 = vmul.f32 %v4224_v15, %v4478_v43  ;;  %v4494_v57 = vstv %s4428_s20  ;;  %s4558_s14 = sld [smem:[#allocation2 + $0x10a]] }
 0x119   : > { %7334 = vst [vmem:[#allocation63_spill] sm:$0xff] %v4494_v57  ;;  %v4497_v58 = vstv %s4430_s26  ;;  %v805_v52 = vmul.f32 %v803_v63, %v4319_v60  ;;  %v880_v59 = vadd.f32 %v878_v53, %v874_v42  ;;  %v867_v12 = vadd.f32 %v865_v62, %v861_v48  ;;  %s4565_s20 = sld [smem:[#allocation2 + $0x18a]] }
 0x11a   : > { %7335 = vst [vmem:[#allocation64_spill] sm:$0xff] %v4497_v58  ;;  %v4506_v16 = vmul.f32 %v4243_v25, %v4259_v33  ;;  %v896_v18 = vadd.f32 %v894_v55, %v890_v51  ;;  %v906_v22 = vmul.f32 %v4494_v57, %v4259_v33  ;;  %v912_v50 = vmul.f32 %v4262_v34, %v4497_v58  ;;  %s4567_s26 = sld [smem:[#allocation2 + $0x20a]] }
 0x11b   : > { %v4513_v49 = vstv %s4445_s9  ;;  %2110 = vrot.lane.b32.xlu0 %v805_v52, %s3752_s8  ;;  %3054 = vst [vmem:[%s4359_s22 + $0x30] sm:$0xff] %v805_v52  ;;  %v884_v53 = vadd.f32 %v4459_v61, %v880_v59  ;;  %v873_v62 = vadd.f32 %v871_v27, %v867_v12  ;;  %v4521_v63 = vstv %s4455_s11  ;;  %s4575_s9 = sld [smem:[#allocation2 + $0x28a]] }
 0x11c   : > { %7336 = vst [vmem:[#allocation65_spill] sm:$0xff] %v4513_v49  ;;  %7337 = vst [vmem:[#allocation66_spill] sm:$0xff] %v4521_v63  ;;  %v889_v42 = vmul.f32 %v4472_v40, %v4174_v0  ;;  %v902_v48 = vadd.f32 %v900_v56, %v896_v18  ;;  %v918_v51 = vmul.f32 %v4278_v39, %v4513_v49  ;;  %v4539_v28 = vstv %s4480_s12  ;;  %s4582_s11 = sld [smem:[#allocation7 + $0xa]]  ;;  %s4608_s12 = sld [smem:[#allocation2 + $0xc]] }
 0x11d   : > { %v893_v55 = vmul.f32 %v4182_v2, %v4475_v41  ;;  %v899_v52 = vmul.f32 %v4188_v4, %v4478_v43  ;;  %v886_v59 = vmul.f32 %v884_v53, %v4343_v29  ;;  %v879_v27 = vadd.f32 %v877_v35, %v873_v62  ;;  %7338 = vst [vmem:[#allocation67_spill] sm:$0xff] %v4539_v28 }
 0x11e   : > { %v905_v12 = vmul.f32 %v4494_v57, %v4191_v5  ;;  %v911_v30 = vmul.f32 %v4200_v7, %v4497_v58  ;;  %v908_v56 = vadd.f32 %v906_v22, %v902_v48  ;;  %v4542_v21 = vstv %s4482_s23  ;;  %s4621_s23 = sld [smem:[#allocation2 + $0x8c]] }
 0x11f   : > { %v895_v18 = vadd.f32 %v893_v55, %v889_v42  ;;  %7339 = vst [vmem:[#allocation68_spill] sm:$0xff] %v4542_v21  ;;  %2120 = vrot.lane.b32.xlu1 %v886_v59, %s3751_s1  ;;  %3071 = vst [vmem:[%s4359_s22 + $0x58] sm:$0xff] %v886_v59  ;;  %v883_v35 = vadd.f32 %v4459_v61, %v879_v27  ;;  %v970_v53 = vmul.f32 %v4539_v28, %v4179_v1 }
 0x120   : > { %v974_v22 = vmul.f32 %v4185_v3, %v4542_v21  ;;  %v4554_v62 = vstv %s4487_s13  ;;  %v914_v42 = vadd.f32 %v912_v50, %v908_v56  ;;  %v4563_v59 = vstv %s4499_s25  ;;  %s4623_s13 = sld [smem:[#allocation2 + $0x10c]] }
 0x121   : > { %7340 = vst [vmem:[#allocation69_spill] sm:$0xff] %v4554_v62  ;;  %v901_v48 = vadd.f32 %v899_v52, %v895_v18  ;;  %v980_v55 = vmul.f32 %v4224_v15, %v4554_v62  ;;  %7341 = vst [vmem:[#allocation70_spill] sm:$0xff] %v4563_v59  ;;  %v885_v27 = vmul.f32 %v883_v35, %v4319_v60  ;;  %v4573_v47 = vstv %s4502_s21  ;;  %s4637_s25 = sld [smem:[#allocation2 + $0x18c]] }
 0x122   : > { %v976_v61 = vadd.f32 %v974_v22, %v970_v53  ;;  %v986_v11 = vmul.f32 %v4563_v59, %v4259_v33  ;;  %7342 = vst [vmem:[#allocation71_spill] sm:$0xff] %v4573_v47  ;;  %v920_v50 = vadd.f32 %v918_v51, %v914_v42  ;;  %v917_v56 = vmul.f32 %v4203_v8, %v4513_v49  ;;  %s4639_s21 = sld [smem:[#allocation2 + $0x20c]] }
 0x123   : > { %v907_v52 = vadd.f32 %v905_v12, %v901_v48  ;;  %v4580_v18 = vstv %s4515_s27  ;;  %2118 = vrot.lane.b32.xlu0 %v885_v27, %s3751_s1  ;;  %3070 = vst [vmem:[%s4359_s22 + $0x50] sm:$0xff] %v885_v27  ;;  %v992_v53 = vmul.f32 %v4262_v34, %v4573_v47  ;;  %v969_v12 = vmul.f32 %v4539_v28, %v4174_v0  ;;  %s4648_s27 = sld [smem:[#allocation2 + $0x28c]] }
 0x124   : > { %7343 = vst [vmem:[#allocation72_spill] sm:$0xff] %v4580_v18  ;;  %v982_v35 = vadd.f32 %v980_v55, %v976_v61  ;;  %v998_v51 = vmul.f32 %v4278_v39, %v4580_v18  ;;  %v924_v22 = vadd.f32 %v4521_v63, %v920_v50  ;;  %v973_v48 = vmul.f32 %v4182_v2, %v4542_v21 }
 0x125   : > { %v913_v42 = vadd.f32 %v911_v30, %v907_v52  ;;  %v979_v61 = vmul.f32 %v4188_v4, %v4554_v62  ;;  %v4598_v27 = vstv %s4536_s24  ;;  %v985_v46 = vmul.f32 %v4563_v59, %v4191_v5  ;;  %v4613_v59 = vld [vmem:[%s4162_s5 + $0x8] sm:$0xff]  ;;  %s4662_s24 = sld [smem:[#allocation7 + $0xc]] }
 0x126   : > { %v988_v55 = vadd.f32 %v986_v11, %v982_v35  ;;  %7344 = vst [vmem:[#allocation73_spill] sm:$0xff] %v4598_v27  ;;  %v991_v28 = vmul.f32 %v4200_v7, %v4573_v47  ;;  %v926_v50 = vmul.f32 %v924_v22, %v4343_v29  ;;  %v975_v52 = vadd.f32 %v973_v48, %v969_v12  ;;  %v4629_v12 = vld [vmem:[%s4162_s5 + $0x18] sm:$0xff] }
 0x127   : > { %v919_v30 = vadd.f32 %v917_v56, %v913_v42  ;;  %v4606_v21 = vstv %s4544_s29  ;;  %v997_v35 = vmul.f32 %v4203_v8, %v4580_v18  ;;  %v4616_v62 = vstv %s4556_s7  ;;  %v4652_v18 = vld [vmem:[%s4162_s5 + $0x28] sm:$0xff]  ;;  %s4693_s29 = sld [smem:[#allocation2 + $0x10]] }
 0x128   : > { %v994_v11 = vadd.f32 %v992_v53, %v988_v55  ;;  %v4619_v47 = vstv %s4558_s14  ;;  %2128 = vrot.lane.b32.xlu1 %v926_v50, %s3752_s8  ;;  %3079 = vst [vmem:[%s4359_s22 + $0x68] sm:$0xff] %v926_v50  ;;  %v981_v53 = vadd.f32 %v979_v61, %v975_v52  ;;  %v4632_v22 = vstv %s4565_s20  ;;  %s4705_s7 = sld [smem:[#allocation2 + $0x90]] }
 0x129   : > { %v923_v56 = vadd.f32 %v4521_v63, %v919_v30  ;;  %v4635_v42 = vstv %s4567_s26  ;;  %v4642_v55 = vstv %s4575_s9  ;;  %v1708_v50 = vmul.f32 %v4606_v21, %v4259_v33  ;;  %s4707_s14 = sld [smem:[#allocation2 + $0x110]] }
 0x12a   : > { %v1000_v48 = vadd.f32 %v998_v51, %v994_v11  ;;  %v1710_v61 = vmul.f32 %v4262_v34, %v4616_v62  ;;  %v987_v52 = vadd.f32 %v985_v46, %v981_v53  ;;  %v4655_v44 = vstv %s4582_s11  ;;  %v4660_v11 = vld [vmem:[%s4162_s5] sm:$0xff]  ;;  %s4716_s20 = sld [smem:[#allocation2 + $0x190]] }
 0x12b   : > { %v925_v30 = vmul.f32 %v923_v56, %v4319_v60  ;;  %v1714_v51 = vmul.f32 %v4278_v39, %v4619_v47  ;;  %v1718_v17 = vmul.f32 %v4632_v22, %v4613_v59  ;;  %v1722_v46 = vmul.f32 %v4629_v12, %v4635_v42  ;;  %v4670_v56 = vld [vmem:[%s4162_s5 + $0x10] sm:$0xff]  ;;  %s4718_s26 = sld [smem:[#allocation2 + $0x210]] }
 0x12c   : > { %v1004_v31 = vadd.f32 %v4598_v27, %v1000_v48  ;;  %v1712_v23 = vadd.f32 %v1710_v61, %v1708_v50  ;;  %v993_v53 = vadd.f32 %v991_v28, %v987_v52  ;;  %v1707_v48 = vmul.f32 %v4606_v21, %v4191_v5  ;;  %s4727_s9 = sld [smem:[#allocation2 + $0x290]] }
 0x12d   : > { %2126 = vrot.lane.b32.xlu0 %v925_v30, %s3752_s8  ;;  %3078 = vst [vmem:[%s4359_s22 + $0x60] sm:$0xff] %v925_v30  ;;  %v1709_v50 = vmul.f32 %v4200_v7, %v4616_v62  ;;  %v1713_v61 = vmul.f32 %v4203_v8, %v4619_v47  ;;  %v1726_v30 = vmul.f32 %v4652_v18, %v4642_v55  ;;  %v4691_v57 = vstv %s4608_s12  ;;  %s4739_s11 = sld [smem:[#allocation7 + $0x10]]  ;;  %s4759_s12 = sld [smem:[#allocation2 + $0xd]] }
 0x12e   : > { %v1006_v63 = vmul.f32 %v1004_v31, %v4343_v29  ;;  %v1716_v24 = vadd.f32 %v1714_v51, %v1712_v23  ;;  %v1717_v28 = vmul.f32 %v4632_v22, %v4660_v11  ;;  %v999_v52 = vadd.f32 %v997_v35, %v993_v53 }
 0x12f   : > { %v1711_v49 = vadd.f32 %v1709_v50, %v1707_v48  ;;  %v1721_v58 = vmul.f32 %v4670_v56, %v4635_v42  ;;  %v1725_v31 = vmul.f32 %v4675_v9, %v4642_v55  ;;  %v4700_v51 = vstv %s4621_s23  ;;  %s4768_s23 = sld [smem:[#allocation2 + $0x8d]] }
 0x130   : > { %2136 = vrot.lane.b32.xlu1 %v1006_v63, %s3751_s1  ;;  %3095 = vst [vmem:[%s4359_s22 + $0x88] sm:$0xff] %v1006_v63  ;;  %v1720_v23 = vadd.f32 %v1718_v17, %v1716_v24  ;;  %v4703_v35 = vstv %s4623_s13  ;;  %v1003_v53 = vadd.f32 %v4598_v27, %v999_v52  ;;  %v4711_v50 = vstv %s4637_s25  ;;  %s4770_s13 = sld [smem:[#allocation2 + $0x10d]] }
 0x131   : > { %7345 = vst [vmem:[#allocation74_spill] sm:$0xff] %v4703_v35  ;;  %v1715_v48 = vadd.f32 %v1713_v61, %v1711_v49  ;;  %7346 = vst [vmem:[#allocation75_spill] sm:$0xff] %v4711_v50  ;;  %v4714_v43 = vstv %s4639_s21  ;;  %v4721_v17 = vstv %s4648_s27  ;;  %v1760_v63 = vmul.f32 %v4691_v57, %v4259_v33  ;;  %s4779_s25 = sld [smem:[#allocation2 + $0x18d]]  ;;  %s4783_s21 = scalar_lea.vmem [#allocation19], %s4306_s10 }
 0x132   : > { %7347 = vst [vmem:[#allocation76_spill] sm:$0xff] %v4714_v43  ;;  %v1724_v24 = vadd.f32 %v1722_v46, %v1720_v23  ;;  %7348 = vst [vmem:[#allocation77_spill] sm:$0xff] %v4721_v17  ;;  %v1762_v41 = vmul.f32 %v4262_v34, %v4700_v51  ;;  %v1005_v49 = vmul.f32 %v1003_v53, %v4319_v60  ;;  %v4731_v52 = vstv %s4662_s24  ;;  %s4793_s27 = sld [smem:[#allocation2 + $0x20d]] }
 0x133   : > { %v1719_v61 = vadd.f32 %v1717_v28, %v1715_v48  ;;  %7349 = vst [vmem:[#allocation78_spill] sm:$0xff] %v4731_v52  ;;  %v1766_v27 = vmul.f32 %v4278_v39, %v4703_v35  ;;  %v1770_v23 = vmul.f32 %v4711_v50, %v4613_v59  ;;  %v1774_v20 = vmul.f32 %v4629_v12, %v4714_v43  ;;  %s4795_s24 = sld [smem:[#allocation2 + $0x28d]] }
 0x134   : > { %v1728_v40 = vadd.f32 %v1726_v30, %v1724_v24  ;;  %v1764_v46 = vadd.f32 %v1762_v41, %v1760_v63  ;;  %2134 = vrot.lane.b32.xlu0 %v1005_v49, %s3751_s1  ;;  %3094 = vst [vmem:[%s4359_s22 + $0x80] sm:$0xff] %v1005_v49  ;;  %v1759_v53 = vmul.f32 %v4691_v57, %v4191_v5  ;;  %v4757_v19 = vstv %s4693_s29  ;;  %s4809_s29 = sld [smem:[#allocation7 + $0xd]] }
 0x135   : > { %v1723_v28 = vadd.f32 %v1721_v58, %v1719_v61  ;;  %v1761_v41 = vmul.f32 %v4200_v7, %v4700_v51  ;;  %v1765_v30 = vmul.f32 %v4203_v8, %v4703_v35  ;;  %v1778_v63 = vmul.f32 %v4652_v18, %v4721_v17  ;;  %7350 = vst [vmem:[#allocation79_spill] sm:$0xff] %v4757_v19 }
 0x136   : > { %v1730_v48 = vadd.f32 %v1728_v40, %v4655_v44  ;;  %v1768_v24 = vadd.f32 %v1766_v27, %v1764_v46  ;;  %v1769_v58 = vmul.f32 %v4711_v50, %v4660_v11  ;;  %v1773_v6 = vmul.f32 %v4670_v56, %v4714_v43 }
 0x137   : > { %v1727_v49 = vadd.f32 %v1725_v31, %v1723_v28  ;;  %v1763_v61 = vadd.f32 %v1761_v41, %v1759_v53  ;;  %v4763_v46 = vstv %s4705_s7  ;;  %v4766_v14 = vstv %s4707_s14  ;;  %s4826_s7 = sld [smem:[#allocation2 + $0x12]] }
 0x138   : > { %v1732_v40 = vmul.f32 %v1730_v48, %v4343_v29  ;;  %v1772_v27 = vadd.f32 %v1770_v23, %v1768_v24  ;;  %7351 = vst [vmem:[#allocation80_spill] sm:$0xff] %v4763_v46  ;;  %7352 = vst [vmem:[#allocation81_spill] sm:$0xff] %v4766_v14  ;;  %v4774_v53 = vstv %s4716_s20  ;;  %v4777_v41 = vstv %s4718_s26  ;;  %s4838_s14 = sld [smem:[#allocation2 + $0x92]] }
 0x139   : > { %v1729_v31 = vadd.f32 %v1727_v49, %v4655_v44  ;;  %v1767_v28 = vadd.f32 %v1765_v30, %v1763_v61  ;;  %7353 = vst [vmem:[#allocation82_spill] sm:$0xff] %v4774_v53  ;;  %7354 = vst [vmem:[#allocation83_spill] sm:$0xff] %v4777_v41  ;;  %v1777_v48 = vmul.f32 %v4675_v9, %v4721_v17  ;;  %v4789_v24 = vstv %s4727_s9  ;;  %s4840_s20 = sld [smem:[#allocation2 + $0x112]] }
 0x13a   : > { %2198 = vrot.lane.b32.xlu1 %v1732_v40, %s3752_s8  ;;  %1974 = vst [vmem:[%s4783_s21 + $0x8] sm:$0xff] %v1732_v40  ;;  %v1776_v23 = vadd.f32 %v1774_v20, %v1772_v27  ;;  %7355 = vst [vmem:[#allocation84_spill] sm:$0xff] %v4789_v24  ;;  %v1864_v30 = vmul.f32 %v4757_v19, %v4259_v33  ;;  %v1866_v40 = vmul.f32 %v4262_v34, %v4763_v46  ;;  %s4846_s26 = sld [smem:[#allocation2 + $0x192]] }
 0x13b   : > { %v1731_v49 = vmul.f32 %v1729_v31, %v4319_v60  ;;  %v1771_v61 = vadd.f32 %v1769_v58, %v1767_v28  ;;  %v1870_v20 = vmul.f32 %v4278_v39, %v4766_v14  ;;  %v4803_v54 = vstv %s4739_s11  ;;  %s4860_s9 = sld [smem:[#allocation2 + $0x212]] }
 0x13c   : > { %v1780_v27 = vadd.f32 %v1778_v63, %v1776_v23  ;;  %v1874_v13 = vmul.f32 %v4774_v53, %v4613_v59  ;;  %v1878_v10 = vmul.f32 %v4629_v12, %v4777_v41  ;;  %v1868_v31 = vadd.f32 %v1866_v40, %v1864_v30  ;;  %s4862_s11 = sld [smem:[#allocation2 + $0x292]] }
 0x13d   : > { %2196 = vrot.lane.b32.xlu0 %v1731_v49, %s3752_s8  ;;  %1973 = vst [vmem:[%s4783_s21] sm:$0xff] %v1731_v49  ;;  %v1775_v58 = vadd.f32 %v1773_v6, %v1771_v61  ;;  %v1863_v63 = vmul.f32 %v4757_v19, %v4191_v5  ;;  %v1865_v28 = vmul.f32 %v4200_v7, %v4763_v46  ;;  %v4830_v46 = vstv %s4759_s12  ;;  %s4876_s12 = sld [smem:[#allocation7 + $0x12]] }
 0x13e   : > { %v1782_v23 = vadd.f32 %v1780_v27, %v4731_v52  ;;  %v1882_v17 = vmul.f32 %v4652_v18, %v4789_v24  ;;  %v1869_v43 = vmul.f32 %v4203_v8, %v4766_v14  ;;  %v1873_v6 = vmul.f32 %v4774_v53, %v4660_v11  ;;  %7356 = vst [vmem:[#allocation85_spill] sm:$0xff] %v4830_v46 }
 0x13f   : > { %v1779_v49 = vadd.f32 %v1777_v48, %v1775_v58  ;;  %v1872_v30 = vadd.f32 %v1870_v20, %v1868_v31  ;;  %v1867_v61 = vadd.f32 %v1865_v28, %v1863_v63  ;;  %v1877_v40 = vmul.f32 %v4670_v56, %v4777_v41 }
 0x140   : > { %v1784_v27 = vmul.f32 %v1782_v23, %v4343_v29  ;;  %v4833_v14 = vstv %s4768_s23  ;;  %v4836_v19 = vstv %s4770_s13  ;;  %v4844_v31 = vstv %s4779_s25  ;;  %s4973_s23 = sld [smem:[#allocation2 + $0xf]] }
 0x141   : > { %7357 = vst [vmem:[#allocation86_spill] sm:$0xff] %v4833_v14  ;;  %7358 = vst [vmem:[#allocation87_spill] sm:$0xff] %v4836_v19  ;;  %v1781_v48 = vadd.f32 %v1779_v49, %v4731_v52  ;;  %v1876_v20 = vadd.f32 %v1874_v13, %v1872_v30  ;;  %v1871_v58 = vadd.f32 %v1869_v43, %v1867_v61  ;;  %v4853_v28 = vstv %s4793_s27  ;;  %s4975_s13 = sld [smem:[#allocation2 + $0x8f]] }
 0x142   : > { %7359 = vst [vmem:[#allocation88_spill] sm:$0xff] %v4844_v31  ;;  %2206 = vrot.lane.b32.xlu1 %v1784_v27, %s3751_s1  ;;  %3053 = vst [vmem:[%s4783_s21 + $0x28] sm:$0xff] %v1784_v27  ;;  %v1881_v63 = vmul.f32 %v4675_v9, %v4789_v24  ;;  %v4856_v23 = vstv %s4795_s24  ;;  %v1786_v13 = vmul.f32 %v4830_v46, %v4259_v33  ;;  %v4868_v27 = vstv %s4809_s29  ;;  %s4983_s25 = sld [smem:[#allocation2 + $0x10f]] }
 0x143   : > { %7360 = vst [vmem:[#allocation89_spill] sm:$0xff] %v4853_v28  ;;  %7361 = vst [vmem:[#allocation90_spill] sm:$0xff] %v4856_v23  ;;  %v1783_v43 = vmul.f32 %v1781_v48, %v4319_v60  ;;  %v1880_v49 = vadd.f32 %v1878_v10, %v1876_v20  ;;  %v1875_v30 = vadd.f32 %v1873_v6, %v1871_v58  ;;  %s4990_s27 = sld [smem:[#allocation2 + $0x18f]] }
 0x144   : > { %v1788_v61 = vmul.f32 %v4262_v34, %v4833_v14  ;;  %v1792_v52 = vmul.f32 %v4278_v39, %v4836_v19  ;;  %v1796_v24 = vmul.f32 %v4844_v31, %v4613_v59  ;;  %v1800_v41 = vmul.f32 %v4629_v12, %v4853_v28  ;;  %s4992_s24 = sld [smem:[#allocation2 + $0x20f]] }
 0x145   : > { %2204 = vrot.lane.b32.xlu0 %v1783_v43, %s3751_s1  ;;  %3052 = vst [vmem:[%s4783_s21 + $0x20] sm:$0xff] %v1783_v43  ;;  %v1884_v10 = vadd.f32 %v1882_v17, %v1880_v49  ;;  %v1879_v6 = vadd.f32 %v1877_v40, %v1875_v30  ;;  %v1785_v20 = vmul.f32 %v4830_v46, %v4191_v5  ;;  %v4900_v46 = vstv %s4840_s20  ;;  %s4997_s29 = sld [smem:[#allocation2 + $0x28f]]  ;;  %s5105_s20 = scalar_lea.vmem [#allocation18], %s4306_s10 }
 0x146   : > { %v1790_v48 = vadd.f32 %v1788_v61, %v1786_v13  ;;  %v1804_v58 = vmul.f32 %v4652_v18, %v4856_v23  ;;  %v1787_v53 = vmul.f32 %v4200_v7, %v4833_v14  ;;  %v1791_v50 = vmul.f32 %v4203_v8, %v4836_v19  ;;  %7364 = vst [vmem:[#allocation93_spill] sm:$0xff] %v4900_v46 }
 0x147   : > { %v1795_v43 = vmul.f32 %v4844_v31, %v4660_v11  ;;  %v1886_v17 = vadd.f32 %v1884_v10, %v4803_v54  ;;  %v1883_v40 = vadd.f32 %v1881_v63, %v1879_v6  ;;  %v1799_v49 = vmul.f32 %v4670_v56, %v4853_v28 }
 0x148   : > { %v1794_v13 = vadd.f32 %v1792_v52, %v1790_v48  ;;  %v1789_v30 = vadd.f32 %v1787_v53, %v1785_v20  ;;  %v4894_v61 = vstv %s4826_s7  ;;  %v4897_v14 = vstv %s4838_s14  ;;  %s5007_s7 = sld [smem:[#allocation7 + $0xf]]  ;;  %s5053_s14 = scalar_lea.vmem [#allocation16], %s4306_s10 }
 0x149   : > { %7362 = vst [vmem:[#allocation91_spill] sm:$0xff] %v4894_v61  ;;  %7363 = vst [vmem:[#allocation92_spill] sm:$0xff] %v4897_v14  ;;  %v1888_v19 = vmul.f32 %v1886_v17, %v4343_v29  ;;  %v1885_v31 = vadd.f32 %v1883_v40, %v4803_v54  ;;  %v4905_v10 = vstv %s4846_s26  ;;  %v1803_v63 = vmul.f32 %v4675_v9, %v4856_v23  ;;  %s5424_s10 = sld [smem:[#allocation2 + $0x1]] }
 0x14a   : > { %v1798_v35 = vadd.f32 %v1796_v24, %v1794_v13  ;;  %v1793_v52 = vadd.f32 %v1791_v50, %v1789_v30  ;;  %v4910_v53 = vstv %s4860_s9  ;;  %v4913_v6 = vstv %s4862_s11  ;;  %s5433_s26 = sld [smem:[#allocation2 + $0x81]] }
 0x14b   : > { %7365 = vst [vmem:[#allocation94_spill] sm:$0xff] %v4910_v53  ;;  %2230 = vrot.lane.b32.xlu1 %v1888_v19, %s3752_s8  ;;  %3085 = vst [vmem:[%s4783_s21 + $0x68] sm:$0xff] %v1888_v19  ;;  %v1887_v48 = vmul.f32 %v1885_v31, %v4319_v60  ;;  %v1916_v24 = vmul.f32 %v4894_v61, %v4259_v33  ;;  %v1918_v17 = vmul.f32 %v4262_v34, %v4897_v14  ;;  %s5446_s9 = sld [smem:[#allocation2 + $0x181]] }
 0x14c   : > { %v1802_v20 = vadd.f32 %v1800_v41, %v1798_v35  ;;  %v1797_v50 = vadd.f32 %v1795_v43, %v1793_v52  ;;  %v4923_v40 = vstv %s4876_s12  ;;  %v1922_v13 = vmul.f32 %v4278_v39, %v4900_v46  ;;  %s5451_s11 = sld [smem:[#allocation2 + $0x201]] }
 0x14d   : > { %v1926_v30 = vmul.f32 %v4905_v10, %v4613_v59  ;;  %2228 = vrot.lane.b32.xlu0 %v1887_v48, %s3752_s8  ;;  %3084 = vst [vmem:[%s4783_s21 + $0x60] sm:$0xff] %v1887_v48  ;;  %v1920_v35 = vadd.f32 %v1918_v17, %v1916_v24  ;;  %v1930_v41 = vmul.f32 %v4629_v12, %v4910_v53  ;;  %s5464_s12 = sld [smem:[#allocation2 + $0x281]] }
 0x14e   : > { %v1806_v19 = vadd.f32 %v1804_v58, %v1802_v20  ;;  %v1915_v31 = vmul.f32 %v4894_v61, %v4191_v5  ;;  %v1801_v43 = vadd.f32 %v1799_v49, %v1797_v50  ;;  %v1934_v52 = vmul.f32 %v4652_v18, %v4913_v6 }
 0x14f   : > { %v1917_v23 = vmul.f32 %v4200_v7, %v4897_v14  ;;  %v1921_v28 = vmul.f32 %v4203_v8, %v4900_v46  ;;  %v1924_v58 = vadd.f32 %v1922_v13, %v1920_v35  ;;  %v1925_v20 = vmul.f32 %v4905_v10, %v4660_v11 }
 0x150   : > { %v1808_v48 = vadd.f32 %v1806_v19, %v4868_v27  ;;  %v1929_v24 = vmul.f32 %v4670_v56, %v4910_v53  ;;  %v1805_v49 = vadd.f32 %v1803_v63, %v1801_v43  ;;  %v1050_v50 = vmul.f32 %v4606_v21, %v4179_v1 }
 0x151   : > { %v1919_v17 = vadd.f32 %v1917_v23, %v1915_v31  ;;  %v1054_v14 = vmul.f32 %v4185_v3, %v4616_v62  ;;  %v1928_v61 = vadd.f32 %v1926_v30, %v1924_v58  ;;  %v1933_v13 = vmul.f32 %v4675_v9, %v4913_v6 }
 0x152   : > { %v1810_v46 = vmul.f32 %v1808_v48, %v4343_v29  ;;  %v1060_v19 = vmul.f32 %v4224_v15, %v4619_v47  ;;  %v1807_v35 = vadd.f32 %v1805_v49, %v4868_v27  ;;  %v1066_v23 = vmul.f32 %v4632_v22, %v4259_v33 }
 0x153   : > { %v1923_v53 = vadd.f32 %v1921_v28, %v1919_v17  ;;  %v1056_v63 = vadd.f32 %v1054_v14, %v1050_v50  ;;  %v1932_v1 = vadd.f32 %v1930_v41, %v1928_v61  ;;  %v1072_v3 = vmul.f32 %v4262_v34, %v4635_v42  ;;  %v5020_v50 = vld [vmem:[%s4155_s3 + $0x20] sm:$0xff] }
 0x154   : > { %2214 = vrot.lane.b32.xlu1 %v1810_v46, %s3752_s8  ;;  %3061 = vst [vmem:[%s4783_s21 + $0x38] sm:$0xff] %v1810_v46  ;;  %v1049_v30 = vmul.f32 %v4606_v21, %v4174_v0  ;;  %v1053_v15 = vmul.f32 %v4182_v2, %v4616_v62  ;;  %v1809_v28 = vmul.f32 %v1807_v35, %v4319_v60 }
 0x155   : > { %v1927_v14 = vadd.f32 %v1925_v20, %v1923_v53  ;;  %v1062_v31 = vadd.f32 %v1060_v19, %v1056_v63  ;;  %v1059_v33 = vmul.f32 %v4188_v4, %v4619_v47  ;;  %v1936_v43 = vadd.f32 %v1934_v52, %v1932_v1  ;;  %v5003_v52 = vld [vmem:[%s4155_s3] sm:$0xff] }
 0x156   : > { %v1078_v46 = vmul.f32 %v4278_v39, %v4642_v55  ;;  %v1055_v61 = vadd.f32 %v1053_v15, %v1049_v30  ;;  %v1065_v41 = vmul.f32 %v4632_v22, %v4191_v5  ;;  %2212 = vrot.lane.b32.xlu0 %v1809_v28, %s3752_s8  ;;  %3060 = vst [vmem:[%s4783_s21 + $0x30] sm:$0xff] %v1809_v28  ;;  %v5031_v30 = vstv %s4973_s23  ;;  %s5488_s23 = sld [smem:[#allocation7 + $0x1]] }
 0x157   : > { %v1931_v0 = vadd.f32 %v1929_v24, %v1927_v14  ;;  %v1068_v2 = vadd.f32 %v1066_v23, %v1062_v31  ;;  %v1071_v4 = vmul.f32 %v4200_v7, %v4635_v42  ;;  %v1450_v47 = vmul.f32 %v4262_v34, %v4245_v26  ;;  %v5011_v24 = vld [vmem:[%s4155_s3 + $0x10] sm:$0xff] }
 0x158   : > { %v1938_v5 = vadd.f32 %v1936_v43, %v4923_v40  ;;  %v1061_v21 = vadd.f32 %v1059_v33, %v1055_v61  ;;  %v1077_v62 = vmul.f32 %v4203_v8, %v4642_v55  ;;  %v1454_v22 = vmul.f32 %v4278_v39, %v4256_v32 }
 0x159   : > { %v1935_v7 = vadd.f32 %v1933_v13, %v1931_v0  ;;  %v1074_v42 = vadd.f32 %v1072_v3, %v1068_v2  ;;  %v1452_v34 = vadd.f32 %v1450_v47, %v4506_v16  ;;  %v1458_v53 = vmul.f32 %v4269_v36, %v4613_v59 }
 0x15a   : > { %v1940_v8 = vmul.f32 %v1938_v5, %v4343_v29  ;;  %v1067_v55 = vadd.f32 %v1065_v41, %v1061_v21  ;;  %v1462_v39 = vmul.f32 %v4629_v12, %v4272_v37  ;;  %v1447_v48 = vmul.f32 %v5003_v52, %v4243_v25  ;;  %v5074_v5 = vld [vmem:[%s4155_s3 + $0x28] sm:$0xff] }
 0x15b   : > { %v1937_v16 = vadd.f32 %v1935_v7, %v4923_v40  ;;  %v1080_v58 = vadd.f32 %v1078_v46, %v1074_v42  ;;  %v1456_v20 = vadd.f32 %v1454_v22, %v1452_v34  ;;  %v1449_v49 = vmul.f32 %v5011_v24, %v4245_v26 }
 0x15c   : > { %2238 = vrot.lane.b32.xlu1 %v1940_v8, %s3751_s1  ;;  %3101 = vst [vmem:[%s4783_s21 + $0x88] sm:$0xff] %v1940_v8  ;;  %v1073_v17 = vadd.f32 %v1071_v4, %v1067_v55  ;;  %v1466_v25 = vmul.f32 %v4652_v18, %v4275_v38  ;;  %v1453_v13 = vmul.f32 %v5020_v50, %v4256_v32  ;;  %v5034_v15 = vstv %s4975_s13  ;;  %v5069_v4 = vld [vmem:[%s4155_s3 + $0x18] sm:$0xff]  ;;  %s5500_s13 = sld [smem:[#allocation2 + $0x4]] }
 0x15d   : > { %v1457_v19 = vmul.f32 %v4269_v36, %v4660_v11  ;;  %v1939_v35 = vmul.f32 %v1937_v16, %v4319_v60  ;;  %v1084_v26 = vadd.f32 %v4655_v44, %v1080_v58  ;;  %v1460_v63 = vadd.f32 %v1458_v53, %v1456_v20 }
 0x15e   : > { %v1451_v23 = vadd.f32 %v1449_v49, %v1447_v48  ;;  %v1079_v1 = vadd.f32 %v1077_v62, %v1073_v17  ;;  %v1461_v3 = vmul.f32 %v4670_v56, %v4272_v37  ;;  %v5040_v14 = vstv %s4983_s25  ;;  %v5099_v17 = vld [vmem:[%s4145_s30 + $0x8] sm:$0xff]  ;;  %s5502_s25 = sld [smem:[#allocation2 + $0x84]] }
 0x15f   : > { %2236 = vrot.lane.b32.xlu0 %v1939_v35, %s3751_s1  ;;  %3100 = vst [vmem:[%s4783_s21 + $0x80] sm:$0xff] %v1939_v35  ;;  %v1086_v32 = vmul.f32 %v1084_v26, %v4343_v29  ;;  %v1464_v36 = vadd.f32 %v1462_v39, %v1460_v63  ;;  %v1465_v37 = vmul.f32 %v4675_v9, %v4275_v38  ;;  %v5046_v33 = vstv %s4990_s27  ;;  %v5117_v26 = vld [vmem:[%s4145_s30 + $0x28] sm:$0xff]  ;;  %v7366_v63 = vld [vmem:[#allocation74_spill] sm:$0xff]  ;;  %s5508_s27 = sld [smem:[#allocation2 + $0x104]] }
 0x160   : > { %v1455_v28 = vadd.f32 %v1453_v13, %v1451_v23  ;;  %v1083_v31 = vadd.f32 %v4655_v44, %v1079_v1  ;;  %v5049_v43 = vstv %s4992_s24  ;;  %v5057_v41 = vstv %s4997_s29  ;;  %v5060_v44 = vld [vmem:[%s4155_s3 + $0x8] sm:$0xff]  ;;  %s5510_s24 = sld [smem:[#allocation2 + $0x184]] }
 0x161   : > { %2282 = vrot.lane.b32.xlu1 %v1086_v32, %s3752_s8  ;;  %1970 = vst [vmem:[%s5053_s14 + $0x8] sm:$0xff] %v1086_v32  ;;  %v1468_v46 = vadd.f32 %v1466_v25, %v1464_v36  ;;  %v1838_v38 = vmul.f32 %v5060_v44, %v5031_v30  ;;  %v5066_v2 = vstv %s5007_s7  ;;  %v1840_v47 = vmul.f32 %v5069_v4, %v5034_v15  ;;  %v7367_v32 = vld [vmem:[#allocation75_spill] sm:$0xff]  ;;  %v7368_v36 = vld [vmem:[#allocation76_spill] sm:$0xff]  ;;  %s5523_s29 = sld [smem:[#allocation2 + $0x204]] }
 0x162   : > { %v1459_v61 = vadd.f32 %v1457_v19, %v1455_v28  ;;  %v1085_v0 = vmul.f32 %v1083_v31, %v4319_v60  ;;  %v1844_v21 = vmul.f32 %v5074_v5, %v5040_v14  ;;  %v1848_v7 = vmul.f32 %v5046_v33, %v4613_v59  ;;  %v5112_v19 = vld [vmem:[%s4145_s30 + $0x18] sm:$0xff]  ;;  %v5126_v31 = vld [vmem:[%s4165_s17] sm:$0xff]  ;;  %s5527_s7 = sld [smem:[#allocation2 + $0x284]] }
 0x163   : > { %v1470_v62 = vadd.f32 %v1468_v46, %v4291_v45  ;;  %v1852_v60 = vmul.f32 %v4629_v12, %v5049_v43  ;;  %v1842_v42 = vadd.f32 %v1840_v47, %v1838_v38  ;;  %v1837_v34 = vmul.f32 %v5003_v52, %v5031_v30 }
 0x164   : > { %v1463_v22 = vadd.f32 %v1461_v3, %v1459_v61  ;;  %2280 = vrot.lane.b32.xlu0 %v1085_v0, %s3752_s8  ;;  %1969 = vst [vmem:[%s5053_s14] sm:$0xff] %v1085_v0  ;;  %v1839_v53 = vmul.f32 %v5011_v24, %v5034_v15  ;;  %v1843_v8 = vmul.f32 %v5020_v50, %v5040_v14  ;;  %v5130_v61 = vld [vmem:[%s4145_s30] sm:$0xff]  ;;  %v5135_v0 = vld [vmem:[%s4145_s30 + $0x10] sm:$0xff] }
 0x165   : > { %v1472_v55 = vmul.f32 %v1470_v62, %v4343_v29  ;;  %v1856_v48 = vmul.f32 %v4652_v18, %v5057_v41  ;;  %v1847_v16 = vmul.f32 %v5046_v33, %v4660_v11  ;;  %v1846_v58 = vadd.f32 %v1844_v21, %v1842_v42  ;;  %v5142_v42 = vld [vmem:[%s4145_s30 + $0x20] sm:$0xff] }
 0x166   : > { %v1467_v39 = vadd.f32 %v1465_v37, %v1463_v22  ;;  %v1841_v20 = vadd.f32 %v1839_v53, %v1837_v34  ;;  %v1851_v49 = vmul.f32 %v4670_v56, %v5049_v43  ;;  %v1130_v25 = vmul.f32 %v5099_v17, %v4691_v57  ;;  %v7369_v22 = vld [vmem:[#allocation77_spill] sm:$0xff] }
 0x167   : > { %2350 = vrot.lane.b32.xlu1 %v1472_v55, %s3752_s8  ;;  %1972 = vst [vmem:[%s5105_s20 + $0x8] sm:$0xff] %v1472_v55  ;;  %v1855_v13 = vmul.f32 %v4675_v9, %v5057_v41  ;;  %v1134_v35 = vmul.f32 %v5112_v19, %v4700_v51  ;;  %v1140_v23 = vmul.f32 %v5117_v26, %v7366_v63 }
 0x168   : > { %v1469_v29 = vadd.f32 %v1467_v39, %v4291_v45  ;;  %v1850_v1 = vadd.f32 %v1848_v7, %v1846_v58  ;;  %v1845_v3 = vadd.f32 %v1843_v8, %v1841_v20  ;;  %v1146_v45 = vmul.f32 %v5060_v44, %v7367_v32  ;;  %v7370_v39 = vld [vmem:[#allocation79_spill] sm:$0xff]  ;;  %v7371_v58 = vld [vmem:[#allocation80_spill] sm:$0xff] }
 0x169   : > { %v1152_v28 = vmul.f32 %v5069_v4, %v7368_v36  ;;  %v1136_v46 = vadd.f32 %v1134_v35, %v1130_v25  ;;  %v1129_v38 = vmul.f32 %v5130_v61, %v4691_v57  ;;  %v1133_v47 = vmul.f32 %v5135_v0, %v4700_v51 }
 0x16a   : > { %v1471_v37 = vmul.f32 %v5126_v31, %v1469_v29  ;;  %v1854_v21 = vadd.f32 %v1852_v60, %v1850_v1  ;;  %v1849_v62 = vadd.f32 %v1847_v16, %v1845_v3  ;;  %v1158_v7 = vmul.f32 %v5074_v5, %v7369_v22 }
 0x16b   : > { %v1139_v34 = vmul.f32 %v5142_v42, %v7366_v63  ;;  %v1142_v53 = vadd.f32 %v1140_v23, %v1136_v46  ;;  %v1135_v57 = vadd.f32 %v1133_v47, %v1129_v38  ;;  %v1145_v8 = vmul.f32 %v5003_v52, %v7367_v32  ;;  %v7372_v63 = vld [vmem:[#allocation81_spill] sm:$0xff]  ;;  %v7373_v32 = vld [vmem:[#allocation82_spill] sm:$0xff]  ;;  %v7374_v46 = vld [vmem:[#allocation83_spill] sm:$0xff] }
 0x16c   : > { %2348 = vrot.lane.b32.xlu0 %v1471_v37, %s3752_s8  ;;  %1971 = vst [vmem:[%s5105_s20] sm:$0xff] %v1471_v37  ;;  %v1151_v51 = vmul.f32 %v5011_v24, %v7368_v36  ;;  %v1858_v60 = vadd.f32 %v1856_v48, %v1854_v21  ;;  %v1853_v55 = vadd.f32 %v1851_v49, %v1849_v62  ;;  %v5168_v47 = vld [vmem:[%s4165_s17 + $0x8] sm:$0xff] }
 0x16d   : > { %v1290_v16 = vmul.f32 %v5099_v17, %v7370_v39  ;;  %v1294_v20 = vmul.f32 %v5112_v19, %v7371_v58  ;;  %v1148_v25 = vadd.f32 %v1146_v45, %v1142_v53  ;;  %v1141_v29 = vadd.f32 %v1139_v34, %v1135_v57  ;;  %v7375_v53 = vld [vmem:[#allocation84_spill] sm:$0xff] }
 0x16e   : > { %v1157_v35 = vmul.f32 %v5020_v50, %v7369_v22  ;;  %v1300_v23 = vmul.f32 %v5117_v26, %v7372_v63  ;;  %v1860_v1 = vadd.f32 %v1858_v60, %v5066_v2  ;;  %v1857_v3 = vadd.f32 %v1855_v13, %v1853_v55 }
 0x16f   : > { %v1296_v48 = vadd.f32 %v1294_v20, %v1290_v16  ;;  %v1306_v49 = vmul.f32 %v5060_v44, %v7373_v32  ;;  %v1154_v36 = vadd.f32 %v1152_v28, %v1148_v25  ;;  %v1147_v37 = vadd.f32 %v1145_v8, %v1141_v29  ;;  %v7377_v25 = vld [vmem:[#allocation39_spill] sm:$0xff] }
 0x170   : > { %v1312_v45 = vmul.f32 %v5069_v4, %v7374_v46  ;;  %v1289_v38 = vmul.f32 %v5130_v61, %v7370_v39  ;;  %v1862_v21 = vmul.f32 %v5168_v47, %v1860_v1  ;;  %v1859_v62 = vadd.f32 %v1857_v3, %v5066_v2  ;;  %v7378_v3 = vld [vmem:[#allocation40_spill] sm:$0xff] }
 0x171   : > { %v1302_v13 = vadd.f32 %v1300_v23, %v1296_v48  ;;  %v1293_v22 = vmul.f32 %v5135_v0, %v7371_v58  ;;  %v1160_v34 = vadd.f32 %v1158_v7, %v1154_v36  ;;  %v1153_v28 = vadd.f32 %v1151_v51, %v1147_v37  ;;  %v7376_v58 = vld [vmem:[#allocation78_spill] sm:$0xff]  ;;  %v7380_v37 = vld [vmem:[#allocation41_spill] sm:$0xff] }
 0x172   : > { %v1318_v57 = vmul.f32 %v5074_v5, %v7375_v53  ;;  %v1299_v8 = vmul.f32 %v5142_v42, %v7372_v63  ;;  %2222 = vrot.lane.b32.xlu1 %v1862_v21, %s3751_s1  ;;  %3077 = vst [vmem:[%s4783_s21 + $0x58] sm:$0xff] %v1862_v21  ;;  %v1861_v60 = vmul.f32 %v5126_v31, %v1859_v62 }
 0x173   : > { %v1308_v55 = vadd.f32 %v1306_v49, %v1302_v13  ;;  %v1295_v39 = vadd.f32 %v1293_v22, %v1289_v38  ;;  %v1305_v16 = vmul.f32 %v5003_v52, %v7373_v32  ;;  %v1164_v20 = vadd.f32 %v7376_v58, %v1160_v34  ;;  %v7379_v49 = vld [vmem:[#allocation58_spill] sm:$0xff] }
 0x174   : > { %v1159_v7 = vadd.f32 %v1157_v35, %v1153_v28  ;;  %v1311_v51 = vmul.f32 %v5011_v24, %v7374_v46  ;;  %v1502_v29 = vmul.f32 %v5069_v4, %v7377_v25  ;;  %2220 = vrot.lane.b32.xlu0 %v1861_v60, %s3751_s1  ;;  %3076 = vst [vmem:[%s4783_s21 + $0x50] sm:$0xff] %v1861_v60  ;;  %v7382_v13 = vld [vmem:[#allocation38_spill] sm:$0xff] }
 0x175   : > { %v1314_v63 = vadd.f32 %v1312_v45, %v1308_v55  ;;  %v1301_v23 = vadd.f32 %v1299_v8, %v1295_v39  ;;  %v1317_v1 = vmul.f32 %v5020_v50, %v7375_v53  ;;  %v1506_v48 = vmul.f32 %v5074_v5, %v7378_v3  ;;  %v7381_v45 = vld [vmem:[#allocation42_spill] sm:$0xff]  ;;  %v7383_v55 = vld [vmem:[#allocation43_spill] sm:$0xff] }
 0x176   : > { %v1166_v35 = vmul.f32 %v5168_v47, %v1164_v20  ;;  %v1163_v32 = vadd.f32 %v7376_v58, %v1159_v7  ;;  %v1504_v36 = vadd.f32 %v1502_v29, %v7379_v49  ;;  %v1510_v46 = vmul.f32 %v7380_v37, %v4613_v59 }
 0x177   : > { %v1320_v38 = vadd.f32 %v1318_v57, %v1314_v63  ;;  %v1307_v21 = vadd.f32 %v1305_v16, %v1301_v23  ;;  %v1514_v62 = vmul.f32 %v4629_v12, %v7381_v45  ;;  %v1499_v22 = vmul.f32 %v5003_v52, %v7382_v13  ;;  %v7385_v23 = vld [vmem:[#allocation61_spill] sm:$0xff] }
 0x178   : > { %2290 = vrot.lane.b32.xlu1 %v1166_v35, %s3751_s1  ;;  %3049 = vst [vmem:[%s5053_s14 + $0x28] sm:$0xff] %v1166_v35  ;;  %v1165_v34 = vmul.f32 %v5126_v31, %v1163_v32  ;;  %v1508_v28 = vadd.f32 %v1506_v48, %v1504_v36  ;;  %v1501_v53 = vmul.f32 %v5011_v24, %v7377_v25  ;;  %v7384_v25 = vld [vmem:[#allocation60_spill] sm:$0xff]  ;;  %v7386_v48 = vld [vmem:[#allocation62_spill] sm:$0xff] }
 0x179   : > { %v1505_v8 = vmul.f32 %v5020_v50, %v7378_v3  ;;  %v1324_v57 = vadd.f32 %v4803_v54, %v1320_v38  ;;  %v1313_v60 = vadd.f32 %v1311_v51, %v1307_v21  ;;  %v1518_v39 = vmul.f32 %v4652_v18, %v7383_v55  ;;  %v7388_v21 = vld [vmem:[#allocation64_spill] sm:$0xff] }
 0x17a   : > { %v1509_v16 = vmul.f32 %v7380_v37, %v4660_v11  ;;  %2288 = vrot.lane.b32.xlu0 %v1165_v34, %s3751_s1  ;;  %3048 = vst [vmem:[%s5053_s14 + $0x20] sm:$0xff] %v1165_v34  ;;  %v1512_v58 = vadd.f32 %v1510_v46, %v1508_v28  ;;  %v1503_v20 = vadd.f32 %v1501_v53, %v1499_v22  ;;  %v7387_v37 = vld [vmem:[#allocation63_spill] sm:$0xff] }
 0x17b   : > { %v1513_v7 = vmul.f32 %v4670_v56, %v7381_v45  ;;  %v1604_v29 = vmul.f32 %v5060_v44, %v7384_v25  ;;  %v1326_v51 = vmul.f32 %v5168_v47, %v1324_v57  ;;  %v1319_v63 = vadd.f32 %v1317_v1, %v1313_v60 }
 0x17c   : > { %v1606_v3 = vmul.f32 %v5069_v4, %v7385_v23  ;;  %v1610_v35 = vmul.f32 %v5074_v5, %v7386_v48  ;;  %v1516_v32 = vadd.f32 %v1514_v62, %v1512_v58  ;;  %v1507_v49 = vadd.f32 %v1505_v8, %v1503_v20 }
 0x17d   : > { %v1517_v36 = vmul.f32 %v4675_v9, %v7383_v55  ;;  %v1614_v46 = vmul.f32 %v7387_v37, %v4613_v59  ;;  %2314 = vrot.lane.b32.xlu1 %v1326_v51, %s3752_s8  ;;  %3081 = vst [vmem:[%s5053_s14 + $0x68] sm:$0xff] %v1326_v51  ;;  %v1323_v38 = vadd.f32 %v4803_v54, %v1319_v63  ;;  %v7389_v54 = vld [vmem:[#allocation65_spill] sm:$0xff]  ;;  %v7390_v55 = vld [vmem:[#allocation44_spill] sm:$0xff]  ;;  %v7392_v63 = vld [vmem:[#allocation86_spill] sm:$0xff] }
 0x17e   : > { %v1608_v1 = vadd.f32 %v1606_v3, %v1604_v29  ;;  %v1618_v45 = vmul.f32 %v4629_v12, %v7388_v21  ;;  %v1603_v62 = vmul.f32 %v5003_v52, %v7384_v25  ;;  %v1520_v13 = vadd.f32 %v1518_v39, %v1516_v32  ;;  %v7391_v29 = vld [vmem:[#allocation85_spill] sm:$0xff]  ;;  %v7393_v3 = vld [vmem:[#allocation87_spill] sm:$0xff] }
 0x17f   : > { %v1511_v22 = vadd.f32 %v1509_v16, %v1507_v49  ;;  %v1605_v34 = vmul.f32 %v5011_v24, %v7385_v23  ;;  %v1609_v28 = vmul.f32 %v5020_v50, %v7386_v48  ;;  %v1325_v53 = vmul.f32 %v5126_v31, %v1323_v38 }
 0x180   : > { %v1612_v8 = vadd.f32 %v1610_v35, %v1608_v1  ;;  %v1622_v57 = vmul.f32 %v4652_v18, %v7389_v54  ;;  %v1613_v60 = vmul.f32 %v7387_v37, %v4660_v11  ;;  %v1522_v58 = vadd.f32 %v1520_v13, %v7390_v55  ;;  %v7394_v1 = vld [vmem:[#allocation88_spill] sm:$0xff] }
 0x181   : > { %v1515_v20 = vadd.f32 %v1513_v7, %v1511_v22  ;;  %v1607_v39 = vadd.f32 %v1605_v34, %v1603_v62  ;;  %v1617_v16 = vmul.f32 %v4670_v56, %v7388_v21  ;;  %2312 = vrot.lane.b32.xlu0 %v1325_v53, %s3752_s8  ;;  %3080 = vst [vmem:[%s5053_s14 + $0x60] sm:$0xff] %v1325_v53  ;;  %v7395_v21 = vld [vmem:[#allocation89_spill] sm:$0xff]  ;;  %v7396_v53 = vld [vmem:[#allocation90_spill] sm:$0xff] }
 0x182   : > { %v1616_v25 = vadd.f32 %v1614_v46, %v1612_v8  ;;  %v1170_v51 = vmul.f32 %v5099_v17, %v7391_v29  ;;  %v1174_v23 = vmul.f32 %v5112_v19, %v7392_v63  ;;  %v1180_v48 = vmul.f32 %v5117_v26, %v7393_v3 }
 0x183   : > { %v1524_v7 = vmul.f32 %v5168_v47, %v1522_v58  ;;  %v1519_v35 = vadd.f32 %v1517_v36, %v1515_v20  ;;  %v1611_v32 = vadd.f32 %v1609_v28, %v1607_v39  ;;  %v1621_v49 = vmul.f32 %v4675_v9, %v7389_v54  ;;  %v7397_v39 = vld [vmem:[#allocation66_spill] sm:$0xff] }
 0x184   : > { %v1620_v37 = vadd.f32 %v1618_v45, %v1616_v25  ;;  %v1176_v38 = vadd.f32 %v1174_v23, %v1170_v51  ;;  %v1186_v46 = vmul.f32 %v5060_v44, %v7394_v1  ;;  %v1192_v62 = vmul.f32 %v5069_v4, %v7395_v21  ;;  %v7398_v51 = vld [vmem:[#allocation91_spill] sm:$0xff] }
 0x185   : > { %2358 = vrot.lane.b32.xlu1 %v1524_v7, %s3751_s1  ;;  %3051 = vst [vmem:[%s5105_s20 + $0x28] sm:$0xff] %v1524_v7  ;;  %v1521_v13 = vadd.f32 %v1519_v35, %v7390_v55  ;;  %v1615_v22 = vadd.f32 %v1613_v60, %v1611_v32  ;;  %v1169_v36 = vmul.f32 %v5130_v61, %v7391_v29  ;;  %v7400_v7 = vld [vmem:[#allocation93_spill] sm:$0xff] }
 0x186   : > { %v1173_v45 = vmul.f32 %v5135_v0, %v7392_v63  ;;  %v1624_v34 = vadd.f32 %v1622_v57, %v1620_v37  ;;  %v1182_v28 = vadd.f32 %v1180_v48, %v1176_v38  ;;  %v1198_v8 = vmul.f32 %v5074_v5, %v7396_v53 }
 0x187   : > { %v1179_v54 = vmul.f32 %v5142_v42, %v7393_v3  ;;  %v1523_v58 = vmul.f32 %v5126_v31, %v1521_v13  ;;  %v1619_v20 = vadd.f32 %v1617_v16, %v1615_v22  ;;  %v1185_v60 = vmul.f32 %v5003_v52, %v7394_v1  ;;  %v7399_v16 = vld [vmem:[#allocation92_spill] sm:$0xff]  ;;  %v7401_v13 = vld [vmem:[#allocation94_spill] sm:$0xff] }
 0x188   : > { %v1175_v55 = vadd.f32 %v1173_v45, %v1169_v36  ;;  %v1626_v25 = vadd.f32 %v1624_v34, %v7397_v39  ;;  %v1188_v29 = vadd.f32 %v1186_v46, %v1182_v28  ;;  %v1191_v57 = vmul.f32 %v5011_v24, %v7395_v21 }
 0x189   : > { %v1370_v63 = vmul.f32 %v5099_v17, %v7398_v51  ;;  %2356 = vrot.lane.b32.xlu0 %v1523_v58, %s3751_s1  ;;  %3050 = vst [vmem:[%s5105_s20 + $0x20] sm:$0xff] %v1523_v58  ;;  %v1623_v23 = vadd.f32 %v1621_v49, %v1619_v20  ;;  %v1374_v48 = vmul.f32 %v5112_v19, %v7399_v16 }
 0x18a   : > { %v1181_v3 = vadd.f32 %v1179_v54, %v1175_v55  ;;  %v1380_v35 = vmul.f32 %v5117_v26, %v7400_v7  ;;  %v1628_v32 = vmul.f32 %v5168_v47, %v1626_v25  ;;  %v1194_v37 = vadd.f32 %v1192_v62, %v1188_v29  ;;  %v7402_v29 = vld [vmem:[#allocation45_spill] sm:$0xff] }
 0x18b   : > { %v1197_v38 = vmul.f32 %v5020_v50, %v7396_v53  ;;  %v1386_v1 = vmul.f32 %v5060_v44, %v4905_v10  ;;  %v1625_v46 = vadd.f32 %v1623_v23, %v7397_v39  ;;  %v1376_v49 = vadd.f32 %v1374_v48, %v1370_v63 }
 0x18c   : > { %v1187_v21 = vadd.f32 %v1185_v60, %v1181_v3  ;;  %v1392_v22 = vmul.f32 %v5069_v4, %v7401_v13  ;;  %2382 = vrot.lane.b32.xlu1 %v1628_v32, %s3752_s8  ;;  %3083 = vst [vmem:[%s5105_s20 + $0x68] sm:$0xff] %v1628_v32  ;;  %v1200_v36 = vadd.f32 %v1198_v8, %v1194_v37  ;;  %v7405_v37 = vld [vmem:[#allocation48_spill] sm:$0xff] }
 0x18d   : > { %v1369_v62 = vmul.f32 %v5130_v61, %v7398_v51  ;;  %v1373_v45 = vmul.f32 %v5135_v0, %v7399_v16  ;;  %v1379_v34 = vmul.f32 %v5142_v42, %v7400_v7  ;;  %v1627_v28 = vmul.f32 %v5126_v31, %v1625_v46  ;;  %v7403_v51 = vld [vmem:[#allocation46_spill] sm:$0xff]  ;;  %v7404_v16 = vld [vmem:[#allocation47_spill] sm:$0xff]  ;;  %v7406_v46 = vld [vmem:[#allocation49_spill] sm:$0xff] }
 0x18e   : > { %v1193_v53 = vadd.f32 %v1191_v57, %v1187_v21  ;;  %v1382_v54 = vadd.f32 %v1380_v35, %v1376_v49  ;;  %v1398_v58 = vmul.f32 %v5074_v5, %v4913_v6  ;;  %v1204_v20 = vadd.f32 %v4868_v27, %v1200_v36 }
 0x18f   : > { %v1375_v55 = vadd.f32 %v1373_v45, %v1369_v62  ;;  %v1385_v8 = vmul.f32 %v5003_v52, %v4905_v10  ;;  %v1391_v60 = vmul.f32 %v5011_v24, %v7401_v13  ;;  %2380 = vrot.lane.b32.xlu0 %v1627_v28, %s3752_s8  ;;  %3082 = vst [vmem:[%s5105_s20 + $0x60] sm:$0xff] %v1627_v28  ;;  %v7407_v62 = vld [vmem:[#allocation50_spill] sm:$0xff] }
 0x190   : > { %v1199_v39 = vadd.f32 %v1197_v38, %v1193_v53  ;;  %v1388_v25 = vadd.f32 %v1386_v1, %v1382_v54  ;;  %v1526_v57 = vmul.f32 %v5060_v44, %v7402_v29  ;;  %v1528_v63 = vmul.f32 %v5069_v4, %v7403_v51 }
 0x191   : > { %v1206_v23 = vmul.f32 %v5168_v47, %v1204_v20  ;;  %v1381_v3 = vadd.f32 %v1379_v34, %v1375_v55  ;;  %v1397_v10 = vmul.f32 %v5020_v50, %v4913_v6  ;;  %v1532_v48 = vmul.f32 %v5074_v5, %v7404_v16 }
 0x192   : > { %v1203_v7 = vadd.f32 %v4868_v27, %v1199_v39  ;;  %v1394_v35 = vadd.f32 %v1392_v22, %v1388_v25  ;;  %v1530_v32 = vadd.f32 %v1528_v63, %v1526_v57  ;;  %v1536_v38 = vmul.f32 %v7405_v37, %v4613_v59 }
 0x193   : > { %2298 = vrot.lane.b32.xlu1 %v1206_v23, %s3752_s8  ;;  %3057 = vst [vmem:[%s5053_s14 + $0x38] sm:$0xff] %v1206_v23  ;;  %v1387_v1 = vadd.f32 %v1385_v8, %v1381_v3  ;;  %v1540_v21 = vmul.f32 %v4629_v12, %v7406_v46  ;;  %v1525_v6 = vmul.f32 %v5003_v52, %v7402_v29  ;;  %v7409_v8 = vld [vmem:[#allocation68_spill] sm:$0xff] }
 0x194   : > { %v1527_v49 = vmul.f32 %v5011_v24, %v7403_v51  ;;  %v1205_v27 = vmul.f32 %v5126_v31, %v1203_v7  ;;  %v1400_v13 = vadd.f32 %v1398_v58, %v1394_v35  ;;  %v1534_v22 = vadd.f32 %v1532_v48, %v1530_v32  ;;  %v7408_v58 = vld [vmem:[#allocation67_spill] sm:$0xff] }
 0x195   : > { %v1531_v59 = vmul.f32 %v5020_v50, %v7404_v16  ;;  %v1393_v36 = vadd.f32 %v1391_v60, %v1387_v1  ;;  %v1544_v45 = vmul.f32 %v4652_v18, %v7407_v62  ;;  %v1535_v12 = vmul.f32 %v7405_v37, %v4660_v11  ;;  %v7410_v11 = vld [vmem:[#allocation69_spill] sm:$0xff]  ;;  %v7412_v48 = vld [vmem:[#allocation71_spill] sm:$0xff] }
 0x196   : > { %v1529_v34 = vadd.f32 %v1527_v49, %v1525_v6  ;;  %2296 = vrot.lane.b32.xlu0 %v1205_v27, %s3752_s8  ;;  %3056 = vst [vmem:[%s5053_s14 + $0x30] sm:$0xff] %v1205_v27  ;;  %v1404_v28 = vadd.f32 %v4923_v40, %v1400_v13  ;;  %v1538_v53 = vadd.f32 %v1536_v38, %v1534_v22  ;;  %v5357_v51 = vld [vmem:[%s4162_s5 + $0x8] sm:$0xff]  ;;  %v5363_v16 = vld [vmem:[%s4162_s5 + $0x18] sm:$0xff] }
 0x197   : > { %v1539_v54 = vmul.f32 %v4670_v56, %v7406_v46  ;;  %v1656_v20 = vmul.f32 %v5060_v44, %v7408_v58  ;;  %v1399_v18 = vadd.f32 %v1397_v10, %v1393_v36  ;;  %v1658_v60 = vmul.f32 %v5069_v4, %v7409_v8  ;;  %v7411_v56 = vld [vmem:[#allocation70_spill] sm:$0xff]  ;;  %v5377_v46 = vld [vmem:[%s4162_s5 + $0x28] sm:$0xff] }
 0x198   : > { %v1533_v55 = vadd.f32 %v1531_v59, %v1529_v34  ;;  %v1662_v39 = vmul.f32 %v5074_v5, %v7410_v11  ;;  %v1406_v25 = vmul.f32 %v5168_v47, %v1404_v28  ;;  %v1542_v29 = vadd.f32 %v1540_v21, %v1538_v53  ;;  %v7413_v21 = vld [vmem:[#allocation72_spill] sm:$0xff]  ;;  %v7414_v49 = vld [vmem:[#allocation51_spill] sm:$0xff] }
 0x199   : > { %v1543_v57 = vmul.f32 %v4675_v9, %v7407_v62  ;;  %v1666_v63 = vmul.f32 %v5357_v51, %v7411_v56  ;;  %v1403_v23 = vadd.f32 %v4923_v40, %v1399_v18  ;;  %v1660_v10 = vadd.f32 %v1658_v60, %v1656_v20  ;;  %v5383_v22 = vld [vmem:[%s4162_s5] sm:$0xff]  ;;  %v5388_v36 = vld [vmem:[%s4162_s5 + $0x10] sm:$0xff] }
 0x19a   : > { %v1537_v3 = vadd.f32 %v1535_v12, %v1533_v55  ;;  %v1670_v7 = vmul.f32 %v5363_v16, %v7412_v48  ;;  %2322 = vrot.lane.b32.xlu1 %v1406_v25, %s3751_s1  ;;  %3097 = vst [vmem:[%s5053_s14 + $0x88] sm:$0xff] %v1406_v25  ;;  %v1546_v9 = vadd.f32 %v1544_v45, %v1542_v29 }
 0x19b   : > { %v1655_v35 = vmul.f32 %v5003_v52, %v7408_v58  ;;  %v1657_v40 = vmul.f32 %v5011_v24, %v7409_v8  ;;  %v1661_v32 = vmul.f32 %v5020_v50, %v7410_v11  ;;  %v1405_v37 = vmul.f32 %v5126_v31, %v1403_v23  ;;  %v5400_v58 = vld [vmem:[%s4162_s5 + $0x20] sm:$0xff] }
 0x19c   : > { %v1541_v38 = vadd.f32 %v1539_v54, %v1537_v3  ;;  %v1664_v1 = vadd.f32 %v1662_v39, %v1660_v10  ;;  %v1674_v6 = vmul.f32 %v5377_v46, %v7413_v21  ;;  %v1548_v27 = vadd.f32 %v1546_v9, %v7414_v49 }
 0x19d   : > { %v1659_v13 = vadd.f32 %v1657_v40, %v1655_v35  ;;  %v1665_v59 = vmul.f32 %v5383_v22, %v7411_v56  ;;  %v1669_v62 = vmul.f32 %v5388_v36, %v7412_v48  ;;  %2320 = vrot.lane.b32.xlu0 %v1405_v37, %s3751_s1  ;;  %3096 = vst [vmem:[%s5053_s14 + $0x80] sm:$0xff] %v1405_v37 }
 0x19e   : > { %v1545_v45 = vadd.f32 %v1543_v57, %v1541_v38  ;;  %v1668_v34 = vadd.f32 %v1666_v63, %v1664_v1  ;;  %v1250_v12 = vmul.f32 %v5099_v17, %v5031_v30  ;;  %v1254_v28 = vmul.f32 %v5112_v19, %v5034_v15 }
 0x19f   : > { %v1550_v53 = vmul.f32 %v5168_v47, %v1548_v27  ;;  %v1663_v54 = vadd.f32 %v1661_v32, %v1659_v13  ;;  %v1673_v20 = vmul.f32 %v5400_v58, %v7413_v21  ;;  %v1260_v18 = vmul.f32 %v5117_v26, %v5040_v14  ;;  %v7418_v21 = vld [vmem:[#allocation54_spill] sm:$0xff]  ;;  %v7419_v13 = vld [vmem:[#allocation55_spill] sm:$0xff] }
 0x1a0   : > { %v1547_v55 = vadd.f32 %v1545_v45, %v7414_v49  ;;  %v1672_v8 = vadd.f32 %v1670_v7, %v1668_v34  ;;  %v1256_v60 = vadd.f32 %v1254_v28, %v1250_v12  ;;  %v1266_v11 = vmul.f32 %v5060_v44, %v5046_v33  ;;  %v7420_v12 = vld [vmem:[#allocation56_spill] sm:$0xff] }
 0x1a1   : > { %2366 = vrot.lane.b32.xlu1 %v1550_v53, %s3752_s8  ;;  %3059 = vst [vmem:[%s5105_s20 + $0x38] sm:$0xff] %v1550_v53  ;;  %v1667_v39 = vadd.f32 %v1665_v59, %v1663_v54  ;;  %v1272_v25 = vmul.f32 %v5069_v4, %v5049_v43  ;;  %v1249_v29 = vmul.f32 %v5130_v61, %v5031_v30  ;;  %v7415_v30 = vld [vmem:[#allocation73_spill] sm:$0xff] }
 0x1a2   : > { %v1253_v57 = vmul.f32 %v5135_v0, %v5034_v15  ;;  %v1549_v56 = vmul.f32 %v5126_v31, %v1547_v55  ;;  %v1676_v63 = vadd.f32 %v1674_v6, %v1672_v8  ;;  %v1262_v23 = vadd.f32 %v1260_v18, %v1256_v60  ;;  %v7421_v60 = vld [vmem:[#allocation57_spill] sm:$0xff] }
 0x1a3   : > { %v1259_v3 = vmul.f32 %v5142_v42, %v5040_v14  ;;  %v1671_v10 = vadd.f32 %v1669_v62, %v1667_v39  ;;  %v1278_v48 = vmul.f32 %v5074_v5, %v5057_v41  ;;  %v1265_v9 = vmul.f32 %v5003_v52, %v5046_v33  ;;  %v7416_v14 = vld [vmem:[#allocation52_spill] sm:$0xff]  ;;  %v7417_v33 = vld [vmem:[#allocation53_spill] sm:$0xff] }
 0x1a4   : > { %v1255_v7 = vadd.f32 %v1253_v57, %v1249_v29  ;;  %2364 = vrot.lane.b32.xlu0 %v1549_v56, %s3752_s8  ;;  %3058 = vst [vmem:[%s5105_s20 + $0x30] sm:$0xff] %v1549_v56  ;;  %v1678_v15 = vadd.f32 %v1676_v63, %v7415_v30  ;;  %v1268_v35 = vadd.f32 %v1266_v11, %v1262_v23  ;;  %s5444_s8 = sld [smem:[#allocation2 + $0x101]]  ;;  %v2083_v23 = vlaneseq }
 0x1a5   : > { %v1271_v40 = vmul.f32 %v5011_v24, %v5049_v43  ;;  %v1578_v32 = vmul.f32 %v5060_v44, %v7416_v14  ;;  %v1675_v37 = vadd.f32 %v1673_v20, %v1671_v10  ;;  %v1580_v1 = vmul.f32 %v5069_v4, %v7417_v33 }
 0x1a6   : > { %v1261_v38 = vadd.f32 %v1259_v3, %v1255_v7  ;;  %v1584_v6 = vmul.f32 %v5074_v5, %v7418_v21  ;;  %v1680_v49 = vmul.f32 %v5168_v47, %v1678_v15  ;;  %v1274_v27 = vadd.f32 %v1272_v25, %v1268_v35 }
 0x1a7   : > { %v1277_v43 = vmul.f32 %v5020_v50, %v5057_v41  ;;  %v1588_v59 = vmul.f32 %v5357_v51, %v7419_v13  ;;  %v1677_v62 = vadd.f32 %v1675_v37, %v7415_v30  ;;  %v1582_v34 = vadd.f32 %v1580_v1, %v1578_v32  ;;  %v2103_v1 = vpop.permute.xlu1 %2102 }
 0x1a8   : > { %v1267_v45 = vadd.f32 %v1265_v9, %v1261_v38  ;;  %v1592_v28 = vmul.f32 %v5363_v16, %v7420_v12  ;;  %2390 = vrot.lane.b32.xlu1 %v1680_v49, %s3751_s1  ;;  %3099 = vst [vmem:[%s5105_s20 + $0x88] sm:$0xff] %v1680_v49  ;;  %v1280_v41 = vadd.f32 %v1278_v48, %v1274_v27  ;;  %v5474_v3 = vstv %s5424_s10  ;;  %s5568_s10 = sld [smem:[#allocation7 + $0x4]] }
 0x1a9   : > { %v1577_v53 = vmul.f32 %v5003_v52, %v7416_v14  ;;  %v1579_v54 = vmul.f32 %v5011_v24, %v7417_v33  ;;  %v1583_v20 = vmul.f32 %v5020_v50, %v7418_v21  ;;  %v1679_v18 = vmul.f32 %v5126_v31, %v1677_v62 }
 0x1aa   : > { %v1273_v55 = vadd.f32 %v1271_v40, %v1267_v45  ;;  %v1586_v8 = vadd.f32 %v1584_v6, %v1582_v34  ;;  %v1596_v11 = vmul.f32 %v5377_v46, %v7421_v60  ;;  %v1284_v39 = vadd.f32 %v5066_v2, %v1280_v41 }
 0x1ab   : > { %v1581_v25 = vadd.f32 %v1579_v54, %v1577_v53  ;;  %v1587_v29 = vmul.f32 %v5383_v22, %v7419_v13  ;;  %v1591_v57 = vmul.f32 %v5388_v36, %v7420_v12  ;;  %2388 = vrot.lane.b32.xlu0 %v1679_v18, %s3751_s1  ;;  %3098 = vst [vmem:[%s5105_s20 + $0x80] sm:$0xff] %v1679_v18  ;;  %v5480_v9 = vstv %s5433_s26  ;;  %v7422_v13 = vld [vmem:[#allocation59_spill] sm:$0xff]  ;;  %s5599_s26 = sld [smem:[#allocation2 + $0x87]] }
 0x1ac   : > { %v1279_v56 = vadd.f32 %v1277_v43, %v1273_v55  ;;  %v1590_v63 = vadd.f32 %v1588_v59, %v1586_v8  ;;  %v1286_v10 = vmul.f32 %v5168_v47, %v1284_v39  ;;  %v689_v7 = vmul.f32 %v5130_v61, %v5474_v3  ;;  %v2105_v39 = vpop.permute.xlu1 %2104 }
 0x1ad   : > { %v1585_v48 = vadd.f32 %v1583_v20, %v1581_v25  ;;  %v5484_v35 = vand.u32 127, %v2083_v23  ;;  %v693_v40 = vmul.f32 %v5135_v0, %v5480_v9  ;;  %v1595_v32 = vmul.f32 %v5400_v58, %v7421_v60 }
 0x1ae   : > { %v1283_v30 = vadd.f32 %v5066_v2, %v1279_v56  ;;  %v1594_v15 = vadd.f32 %v1592_v28, %v1590_v63  ;;  %2306 = vrot.lane.b32.xlu1 %v1286_v10, %s3751_s1  ;;  %3073 = vst [vmem:[%s5053_s14 + $0x58] sm:$0xff] %v1286_v10  ;;  %v5495_v37 = vstv %s5444_s8  ;;  %v5498_v2 = vstv %s5446_s9  ;;  %v2095_v28 = vpop.permute.xlu0 %2094  ;;  %s5610_s8 = sld [smem:[#allocation2 + $0x107]] }
 0x1af   : > { %v1589_v14 = vadd.f32 %v1587_v29, %v1585_v48  ;;  %v695_v21 = vadd.f32 %v693_v40, %v689_v7  ;;  %v5506_v6 = vstv %s5451_s11  ;;  %vm2089_vm0 = vcmp.gt.s32.totalorder %v5484_v35, 0  ;;  %s5612_s9 = sld [smem:[#allocation2 + $0x187]] }
 0x1b0   : > { %v1285_v38 = vmul.f32 %v5126_v31, %v1283_v30  ;;  %v1598_v33 = vadd.f32 %v1596_v11, %v1594_v15  ;;  %v699_v27 = vmul.f32 %v5142_v42, %v5495_v37  ;;  %v705_v43 = vmul.f32 %v5003_v52, %v5498_v2  ;;  %s5624_s11 = sld [smem:[#allocation2 + $0x207]] }
 0x1b1   : > { %v1593_v49 = vadd.f32 %v1591_v57, %v1589_v14  ;;  %v5521_v62 = vstv %s5464_s12  ;;  %v711_v12 = vmul.f32 %v5011_v24, %v5506_v6  ;;  %v5532_v53 = vsel %vm2089_vm0, %v2103_v1, 0.0  ;;  %s5639_s12 = sld [smem:[#allocation2 + $0x287]] }
 0x1b2   : > { %2304 = vrot.lane.b32.xlu0 %v1285_v38, %s3751_s1  ;;  %3072 = vst [vmem:[%s5053_s14 + $0x50] sm:$0xff] %v1285_v38  ;;  %v1600_v59 = vadd.f32 %v1598_v33, %v7422_v13  ;;  %v701_v34 = vadd.f32 %v699_v27, %v695_v21  ;;  %v717_v54 = vmul.f32 %v5020_v50, %v5521_v62  ;;  %v5546_v11 = vstv %s5488_s23  ;;  %s5653_s23 = sld [smem:[#allocation7 + $0x7]] }
 0x1b3   : > { %v1597_v45 = vadd.f32 %v1595_v32, %v1593_v49  ;;  %v690_v20 = vmul.f32 %v5099_v17, %v5474_v3  ;;  %v694_v8 = vmul.f32 %v5112_v19, %v5480_v9  ;;  %v700_v60 = vmul.f32 %v5117_v26, %v5495_v37  ;;  %v2097_v32 = vpop.permute.xlu0 %2096 }
 0x1b4   : > { %v1602_v41 = vmul.f32 %v5168_v47, %v1600_v59  ;;  %v707_v55 = vadd.f32 %v705_v43, %v701_v34  ;;  %vm2088_vm1 = vcmp.lt.s32.totalorder %v5484_v35, 127  ;;  %v706_v25 = vmul.f32 %v5060_v44, %v5498_v2 }
 0x1b5   : > { %v1599_v18 = vadd.f32 %v1597_v45, %v7422_v13  ;;  %v712_v29 = vmul.f32 %v5069_v4, %v5506_v6  ;;  %v696_v63 = vadd.f32 %v694_v8, %v690_v20  ;;  %v5555_v10 = vstv %s5500_s13  ;;  %s5683_s13 = sld [smem:[#allocation2 + $0x9]] }
 0x1b6   : > { %2374 = vrot.lane.b32.xlu1 %v1602_v41, %s3751_s1  ;;  %3075 = vst [vmem:[%s5105_s20 + $0x58] sm:$0xff] %v1602_v41  ;;  %v713_v56 = vadd.f32 %v711_v12, %v707_v55  ;;  %7423 = vst [vmem:[#allocation74_spill] sm:$0xff] %v5555_v10  ;;  %v810_v48 = vmul.f32 %v5099_v17, %v5555_v10  ;;  %v5560_v7 = vstv %s5502_s25  ;;  %v5563_v30 = vstv %s5508_s27  ;;  %s5691_s25 = sld [smem:[#allocation2 + $0x89]] }
 0x1b7   : > { %v1601_v57 = vmul.f32 %v5126_v31, %v1599_v18  ;;  %7424 = vst [vmem:[#allocation75_spill] sm:$0xff] %v5560_v7  ;;  %7425 = vst [vmem:[#allocation76_spill] sm:$0xff] %v5563_v30  ;;  %v5566_v15 = vstv %s5510_s24  ;;  %v702_v14 = vadd.f32 %v700_v60, %v696_v63  ;;  %v814_v38 = vmul.f32 %v5112_v19, %v5560_v7  ;;  %s5693_s27 = sld [smem:[#allocation2 + $0x109]] }
 0x1b8   : > { %7426 = vst [vmem:[#allocation77_spill] sm:$0xff] %v5566_v15  ;;  %v719_v40 = vadd.f32 %v717_v54, %v713_v56  ;;  %v820_v33 = vmul.f32 %v5117_v26, %v5563_v30  ;;  %v2098_v1 = vsel %vm2088_vm1, %v2095_v28, 0.0  ;;  %v718_v21 = vmul.f32 %v5074_v5, %v5521_v62  ;;  %v2113_v28 = vpop.permute.xlu1 %2112  ;;  %v3282_v56 = vld [vmem:[%s4359_s22] sm:$0xff]  ;;  %s5713_s24 = sld [smem:[#allocation2 + $0x189]] }
 0x1b9   : > { %2372 = vrot.lane.b32.xlu0 %v1601_v57, %s3751_s1  ;;  %3074 = vst [vmem:[%s5105_s20 + $0x50] sm:$0xff] %v1601_v57  ;;  %v826_v49 = vmul.f32 %v5060_v44, %v5566_v15  ;;  %v5583_v27 = vstv %s5523_s29  ;;  %v708_v13 = vadd.f32 %v706_v25, %v702_v14  ;;  %v816_v59 = vadd.f32 %v814_v38, %v810_v48  ;;  %s5597_s1 = sld [smem:[#allocation2 + $0x7]]  ;;  %v2111_v14 = vpop.permute.xlu0 %2110  ;;  %s5715_s29 = sld [smem:[#allocation2 + $0x209]] }
 0x1ba   : > { %7427 = vst [vmem:[#allocation79_spill] sm:$0xff] %v5583_v27  ;;  %v723_v43 = vadd.f32 %v5546_v11, %v719_v40  ;;  %v5587_v45 = vstv %s5527_s7  ;;  %v2107_v34 = vsel %vm2089_vm0, %v2105_v39, 0.0  ;;  %v832_v12 = vmul.f32 %v5069_v4, %v5583_v27  ;;  %s5749_s7 = sld [smem:[#allocation2 + $0x289]] }
 0x1bb   : > { %7428 = vst [vmem:[#allocation80_spill] sm:$0xff] %v5587_v45  ;;  %v809_v41 = vmul.f32 %v5130_v61, %v5555_v10  ;;  %v813_v54 = vmul.f32 %v5135_v0, %v5560_v7  ;;  %v714_v18 = vadd.f32 %v712_v29, %v708_v13  ;;  %v822_v55 = vadd.f32 %v820_v33, %v816_v59 }
 0x1bc   : > { %v725_v20 = vmul.f32 %v5126_v31, %v723_v43  ;;  %v819_v8 = vmul.f32 %v5142_v42, %v5563_v30  ;;  %v2099_v60 = vsel %vm2088_vm1, %v2097_v32, 0.0  ;;  %v838_v39 = vmul.f32 %v5074_v5, %v5587_v45 }
 0x1bd   : > { %v815_v25 = vadd.f32 %v813_v54, %v809_v41  ;;  %v825_v57 = vmul.f32 %v5003_v52, %v5566_v15  ;;  %v720_v48 = vadd.f32 %v718_v21, %v714_v18  ;;  %v828_v40 = vadd.f32 %v826_v49, %v822_v55  ;;  %v3283_v52 = vld [vmem:[%s4359_s22 + $0x20] sm:$0xff]  ;;  %v2121_v54 = vpop.permute.xlu1 %2120 }
 0x1be   : > { %3038 = vst [vmem:[%s4359_s22 + $0x10] sm:$0xff] %v725_v20  ;;  %v2100_v29 = vadd.f32 %v2098_v1, %v725_v20  ;;  %v2264_v63 = vadd.f32 %v3282_v56, %v725_v20  ;;  %v5617_v32 = vstv %s5568_s10  ;;  %v831_v33 = vmul.f32 %v5011_v24, %v5583_v27  ;;  %s5774_s10 = sld [smem:[#allocation7 + $0x9]] }
 0x1bf   : > { %7429 = vst [vmem:[#allocation81_spill] sm:$0xff] %v5617_v32  ;;  %v821_v38 = vadd.f32 %v819_v8, %v815_v25  ;;  %v5622_v43 = vshrl.u32 %v2083_v23, 7  ;;  %v724_v1 = vadd.f32 %v5546_v11, %v720_v48  ;;  %v834_v21 = vadd.f32 %v832_v12, %v828_v40  ;;  %v3285_v25 = vld [vmem:[%s4359_s22 + $0x8] sm:$0xff] }
 0x1c0   : > { %v2266_v13 = vadd.f32 %v3283_v52, %v2264_v63  ;;  %v2115_v49 = vsel %vm2088_vm1, %v2113_v28, 0.0  ;;  %v5631_v59 = vadd.f32 %v5532_v53, %v2100_v29  ;;  %v837_v23 = vmul.f32 %v5020_v50, %v5587_v45  ;;  %v3284_v53 = vld [vmem:[%s4359_s22 + $0x30] sm:$0xff] }
 0x1c1   : > { %v827_v24 = vadd.f32 %v825_v57, %v821_v38  ;;  %v5637_v41 = vsel %vm2088_vm1, %v2111_v14, 0.0  ;;  %v726_v12 = vmul.f32 %v5168_v47, %v724_v1  ;;  %v840_v20 = vadd.f32 %v838_v39, %v834_v21  ;;  %v3286_v38 = vld [vmem:[%s4359_s22 + $0x28] sm:$0xff] }
 0x1c2   : > { %v5643_v28 = vadd.s32 8, %v5622_v43  ;;  %vm2144_vm2 = vcmp.lt.s32.totalorder %v5622_v43, 7  ;;  %v2268_v50 = vadd.f32 %v3284_v53, %v2266_v13  ;;  %v5648_v55 = vstv %s5597_s1  ;;  %v3287_v53 = vld [vmem:[%s4359_s22 + $0x38] sm:$0xff]  ;;  %s3143_s1 = smul.u32 144, %s4141_s28 }
 0x1c3   : > { %v833_v18 = vadd.f32 %v831_v33, %v827_v24  ;;  %7431 = vst [vmem:[#allocation83_spill] sm:$0xff] %v5648_v55  ;;  %v5651_v8 = vstv %s5599_s26  ;;  %v2265_v57 = vadd.f32 %v3285_v25, %v726_v12  ;;  %3039 = vst [vmem:[%s4359_s22 + $0x18] sm:$0xff] %v726_v12  ;;  %v2101_v39 = vadd.f32 %v2099_v60, %v726_v12  ;;  %v2129_v12 = vpop.permute.xlu1 %2128  ;;  %s5783_s26 = sld [smem:[#allocation2 + $0xb]] }
 0x1c4   : > { %7430 = vst [vmem:[#allocation82_spill] sm:$0xff] %v5643_v28  ;;  %7432 = vst [vmem:[#allocation84_spill] sm:$0xff] %v5651_v8  ;;  %v844_v29 = vadd.f32 %v5617_v32, %v840_v20  ;;  %v930_v56 = vmul.f32 %v5099_v17, %v5648_v55  ;;  %v934_v48 = vmul.f32 %v5112_v19, %v5651_v8  ;;  %v5663_v40 = vstv %s5610_s8  ;;  %s5788_s8 = sld [smem:[#allocation2 + $0x8b]] }
 0x1c5   : > { %v839_v63 = vadd.f32 %v837_v23, %v833_v18  ;;  %7433 = vst [vmem:[#allocation78_spill] sm:$0xff] %v5663_v40  ;;  %v5666_v14 = vstv %s5612_s9  ;;  %v2267_v33 = vadd.f32 %v3286_v38, %v2265_v57  ;;  %v2109_v52 = vadd.f32 %v2107_v34, %v2101_v39  ;;  %v2119_v57 = vpop.permute.xlu0 %2118  ;;  %s5790_s9 = sld [smem:[#allocation2 + $0x10b]] }
 0x1c6   : > { %7434 = vst [vmem:[#allocation39_spill] sm:$0xff] %v5666_v14  ;;  %v846_v60 = vmul.f32 %v5168_v47, %v844_v29  ;;  %v940_v13 = vmul.f32 %v5117_v26, %v5663_v40  ;;  %v936_v21 = vadd.f32 %v934_v48, %v930_v56  ;;  %v946_v24 = vmul.f32 %v5060_v44, %v5666_v14 }
 0x1c7   : > { %v843_v1 = vadd.f32 %v5617_v32, %v839_v63  ;;  %v5676_v23 = vstv %s5624_s11  ;;  %v2142_v20 = vrot.slane %v5631_v59, 1  ;;  %v2269_v18 = vadd.f32 %v3287_v53, %v2267_v33  ;;  %v3288_v33 = vld [vmem:[%s4359_s22 + $0x58] sm:$0xff]  ;;  %v3289_v53 = vld [vmem:[%s4359_s22 + $0x50] sm:$0xff]  ;;  %s5807_s11 = sld [smem:[#allocation2 + $0x18b]] }
 0x1c8   : > { %7435 = vst [vmem:[#allocation40_spill] sm:$0xff] %v5676_v23  ;;  %v2143_v34 = vrot.slane %v2109_v52, 1  ;;  %3063 = vst [vmem:[%s4359_s22 + $0x48] sm:$0xff] %v846_v60  ;;  %v2123_v25 = vsel %vm2089_vm0, %v2121_v54, 0.0  ;;  %v942_v39 = vadd.f32 %v940_v13, %v936_v21  ;;  %v952_v29 = vmul.f32 %v5069_v4, %v5676_v23 }
 0x1c9   : > { %v845_v44 = vmul.f32 %v5126_v31, %v843_v1  ;;  %v5689_v59 = vstv %s5639_s12  ;;  %v2271_v56 = vadd.f32 %v2269_v18, %v846_v60  ;;  %v2117_v63 = vadd.f32 %v2115_v49, %v846_v60  ;;  %s5815_s12 = sld [smem:[#allocation2 + $0x20b]] }
 0x1ca   : > { %7436 = vst [vmem:[#allocation58_spill] sm:$0xff] %v5689_v59  ;;  %vm2091_vm3 = vcmp.lt.s32.totalorder %v5643_v28, 15  ;;  %v2146_v54 = vsel %vm2144_vm2, %v2143_v34, %v2142_v20  ;;  %v2122_v31 = vsel %vm2089_vm0, %v2119_v57, 0.0  ;;  %v948_v4 = vadd.f32 %v946_v24, %v942_v39 }
 0x1cb   : > { %3062 = vst [vmem:[%s4359_s22 + $0x40] sm:$0xff] %v845_v44  ;;  %v2270_v48 = vadd.f32 %v2268_v50, %v845_v44  ;;  %v5702_v38 = vstv %s5653_s23  ;;  %v2273_v52 = vadd.f32 %v3288_v33, %v2271_v56  ;;  %v5705_v13 = vadd.f32 %v2123_v25, %v2117_v63  ;;  %v3290_v25 = vld [vmem:[%s4359_s22 + $0x68] sm:$0xff]  ;;  %v5738_v63 = vld [vmem:[%s4155_s3 + $0x10] sm:$0xff]  ;;  %s5820_s23 = scalar_lea.vmem [#allocation21], %s3143_s1  ;;  %s5933_s1 = sld [smem:[#allocation2 + $0x291]] }
 0x1cc   : > { %7437 = vst [vmem:[#allocation41_spill] sm:$0xff] %v5702_v38  ;;  %v5709_v49 = vsel %vm2144_vm2, %v2142_v20, %v2143_v34  ;;  %v958_v60 = vmul.f32 %v5074_v5, %v5689_v59  ;;  %v2116_v50 = vadd.f32 %v5637_v41, %v845_v44  ;;  %v2148_v1 = vsel %vm2091_vm3, %v2146_v54, 0.0  ;;  %v2137_v20 = vpop.permute.xlu1 %2136 }
 0x1cd   : > { %v954_v21 = vadd.f32 %v952_v29, %v948_v4  ;;  %v929_v24 = vmul.f32 %v5130_v61, %v5648_v55  ;;  %v2272_v18 = vadd.f32 %v3289_v53, %v2270_v48  ;;  %v2131_v5 = vsel %vm2088_vm1, %v2129_v12, 0.0  ;;  %v5733_v29 = vld [vmem:[%s4155_s3] sm:$0xff] }
 0x1ce   : > { %v933_v34 = vmul.f32 %v5135_v0, %v5651_v8  ;;  %v939_v41 = vmul.f32 %v5142_v42, %v5663_v40  ;;  %v2275_v57 = vadd.f32 %v3290_v25, %v2273_v52  ;;  %v5730_v44 = vadd.f32 %v2122_v31, %v2116_v50  ;;  %v5743_v48 = vld [vmem:[%s4155_s3 + $0x20] sm:$0xff]  ;;  %v2127_v25 = vpop.permute.xlu0 %2126 }
 0x1cf   : > { %v960_v39 = vadd.f32 %v958_v60, %v954_v21  ;;  %v945_v56 = vmul.f32 %v5733_v29, %v5666_v14  ;;  %v951_v54 = vmul.f32 %v5738_v63, %v5676_v23  ;;  %v957_v4 = vmul.f32 %v5743_v48, %v5689_v59  ;;  %v3303_v14 = vld [vmem:[%s4783_s21 + $0x28] sm:$0xff] }
 0x1d0   : > { %v935_v12 = vadd.f32 %v933_v34, %v929_v24  ;;  %v2139_v31 = vsel %vm2089_vm0, %v2137_v20, 0.0  ;;  %v5753_v52 = vstv %s5683_s13  ;;  %v5756_v60 = vstv %s5691_s25  ;;  %s5830_s13 = sld [smem:[#allocation2 + $0x28b]] }
 0x1d1   : > { %v964_v33 = vadd.f32 %v5702_v38, %v960_v39  ;;  %7438 = vst [vmem:[#allocation42_spill] sm:$0xff] %v5753_v52  ;;  %7439 = vst [vmem:[#allocation38_spill] sm:$0xff] %v5756_v60  ;;  %v5759_v50 = vstv %s5693_s27  ;;  %v1009_v24 = vmul.f32 %v5130_v61, %v5753_v52  ;;  %v1010_v20 = vmul.f32 %v5099_v17, %v5753_v52  ;;  %s5883_s25 = sld [smem:[#allocation7 + $0xb]]  ;;  %s5894_s27 = sld [smem:[#allocation2 + $0x11]] }
 0x1d2   : > { %7440 = vst [vmem:[#allocation43_spill] sm:$0xff] %v5759_v50  ;;  %v941_v21 = vadd.f32 %v939_v41, %v935_v12  ;;  %v1013_v53 = vmul.f32 %v5135_v0, %v5756_v60  ;;  %v1014_v39 = vmul.f32 %v5112_v19, %v5756_v60  ;;  %v1019_v32 = vmul.f32 %v5142_v42, %v5759_v50 }
 0x1d3   : > { %v966_v34 = vmul.f32 %v5168_v47, %v964_v33  ;;  %v1020_v41 = vmul.f32 %v5117_v26, %v5759_v50  ;;  %v5778_v0 = vstv %s5713_s24  ;;  %v5781_v47 = vstv %s5715_s29  ;;  %s5896_s24 = sld [smem:[#allocation2 + $0x91]] }
 0x1d4   : > { %v947_v17 = vadd.f32 %v945_v56, %v941_v21  ;;  %v1015_v61 = vadd.f32 %v1013_v53, %v1009_v24  ;;  %7441 = vst [vmem:[#allocation60_spill] sm:$0xff] %v5778_v0  ;;  %7442 = vst [vmem:[#allocation61_spill] sm:$0xff] %v5781_v47  ;;  %v1016_v12 = vadd.f32 %v1014_v39, %v1010_v20  ;;  %v5793_v21 = vld [vmem:[%s4155_s3 + $0x8] sm:$0xff]  ;;  %v5803_v39 = vld [vmem:[%s4155_s3 + $0x18] sm:$0xff]  ;;  %vm2092_vm4 = vcmp.gt.s32.totalorder %v5622_v43, 0  ;;  %s5906_s29 = sld [smem:[#allocation2 + $0x111]] }
 0x1d5   : > { %v2277_v19 = vadd.f32 %v2275_v57, %v966_v34  ;;  %3087 = vst [vmem:[%s4359_s22 + $0x78] sm:$0xff] %v966_v34  ;;  %v2133_v42 = vadd.f32 %v2131_v5, %v966_v34  ;;  %v1025_v26 = vmul.f32 %v5733_v29, %v5778_v0  ;;  %v1026_v57 = vmul.f32 %v5793_v21, %v5778_v0  ;;  %v3295_v24 = vld [vmem:[%s4359_s22 + $0x88] sm:$0xff] }
 0x1d6   : > { %v953_v56 = vadd.f32 %v951_v54, %v947_v17  ;;  %v1021_v33 = vadd.f32 %v1019_v32, %v1015_v61  ;;  %v1031_v5 = vmul.f32 %v5738_v63, %v5781_v47  ;;  %v1022_v34 = vadd.f32 %v1020_v41, %v1016_v12 }
 0x1d7   : > { %v2279_v20 = vadd.f32 %v3295_v24, %v2277_v19  ;;  %v5800_v53 = vadd.f32 %v2139_v31, %v2133_v42  ;;  %v1032_v32 = vmul.f32 %v5803_v39, %v5781_v47  ;;  %v5810_v54 = vadd.f32 %v2148_v1, %v5705_v13  ;;  %v3297_v31 = vld [vmem:[%s4359_s22 + $0x60] sm:$0xff]  ;;  %v5826_v1 = vld [vmem:[%s4155_s3 + $0x28] sm:$0xff]  ;;  %v2135_v42 = vpop.permute.xlu0 %2134 }
 0x1d8   : > { %v959_v17 = vadd.f32 %v957_v4, %v953_v56  ;;  %v1027_v61 = vadd.f32 %v1025_v26, %v1021_v33  ;;  %v5813_v0 = vstv %s5749_s7  ;;  %v2274_v19 = vadd.f32 %v3297_v31, %v2272_v18  ;;  %7444 = vst [vmem:[#allocation63_spill] sm:$0xff] %v5826_v1  ;;  %s5913_s7 = sld [smem:[#allocation2 + $0x191]] }
 0x1d9   : > { %7443 = vst [vmem:[#allocation62_spill] sm:$0xff] %v5813_v0  ;;  %3117 = vst [vmem:[%s5820_s23 + $0x48] sm:$0xff] %v2279_v20  ;;  %v1028_v41 = vadd.f32 %v1026_v57, %v1022_v34  ;;  %v1037_v13 = vmul.f32 %v5743_v48, %v5813_v0  ;;  %v1038_v4 = vmul.f32 %v5826_v1, %v5813_v0  ;;  %v2130_v26 = vsel %vm2088_vm1, %v2127_v25, 0.0  ;;  %v5845_v20 = vld [vmem:[%s4165_s17] sm:$0xff] }
 0x1da   : > { %v5834_v18 = vadd.f32 %v5709_v49, %v5730_v44  ;;  %v963_v12 = vadd.f32 %v5702_v38, %v959_v17  ;;  %v1033_v56 = vadd.f32 %v1031_v5, %v1027_v61  ;;  %v2152_v33 = vrot.slane %v5800_v53, 7  ;;  %7446 = vst [vmem:[#allocation65_spill] sm:$0xff] %v5845_v20 }
 0x1db   : > { %v1034_v57 = vadd.f32 %v1032_v32, %v1028_v41  ;;  %v5841_v24 = vstv %s5774_s10  ;;  %vm2153_vm5 = vcmp.lt.s32.totalorder %v5622_v43, 1  ;;  %v2138_v25 = vsel %vm2089_vm0, %v2135_v42, 0.0  ;;  %v2197_v27 = vpop.permute.xlu0 %2196  ;;  %s5921_s10 = sld [smem:[#allocation2 + $0x211]] }
 0x1dc   : > { %7445 = vst [vmem:[#allocation64_spill] sm:$0xff] %v5841_v24  ;;  %v965_v49 = vmul.f32 %v5845_v20, %v963_v12  ;;  %v1039_v44 = vadd.f32 %v1037_v13, %v1033_v56  ;;  %v5852_v53 = vstv %s5783_s26  ;;  %v5855_v34 = vstv %s5788_s8  ;;  %v5874_v56 = vld [vmem:[%s4171_s19] sm:$0xff]  ;;  %s5957_s26 = sld [smem:[#allocation7 + $0x11]]  ;;  %s5976_s8 = sld [smem:[#allocation2 + $0xe]] }
 0x1dd   : > { %v1040_v5 = vadd.f32 %v1038_v4, %v1034_v57  ;;  %v5858_v32 = vstv %s5790_s9  ;;  %v1734_v41 = vmul.f32 %v5793_v21, %v5852_v53  ;;  %v5866_v4 = vstv %s5807_s11  ;;  %7447 = vst [vmem:[#allocation44_spill] sm:$0xff] %v5874_v56  ;;  %v5877_v57 = vld [vmem:[%s4171_s19 + $0x8] sm:$0xff]  ;;  %s5978_s9 = sld [smem:[#allocation2 + $0x8e]] }
 0x1de   : > { %3086 = vst [vmem:[%s4359_s22 + $0x70] sm:$0xff] %v965_v49  ;;  %v2132_v17 = vadd.f32 %v2130_v26, %v965_v49  ;;  %v2276_v61 = vadd.f32 %v2274_v19, %v965_v49  ;;  %v1043_v31 = vadd.f32 %v5841_v24, %v1039_v44  ;;  %v1736_v42 = vmul.f32 %v5803_v39, %v5855_v34  ;;  %v3300_v26 = vld [vmem:[%s4359_s22 + $0x80] sm:$0xff]  ;;  %s5987_s11 = sld [smem:[#allocation2 + $0x10e]] }
 0x1df   : > { %v1044_v13 = vadd.f32 %v5841_v24, %v1040_v5  ;;  %v1740_v12 = vmul.f32 %v5826_v1, %v5858_v32  ;;  %7448 = vst [vmem:[#allocation85_spill] sm:$0xff] %v5877_v57  ;;  %v5881_v5 = vstv %s5815_s12  ;;  %v5886_v24 = vld [vmem:[%s4165_s17 + $0x8] sm:$0xff]  ;;  %v5890_v47 = vstv %s5830_s13  ;;  %s5994_s12 = sld [smem:[#allocation2 + $0x18e]] }
 0x1e0   : > { %v2278_v19 = vadd.f32 %v3300_v26, %v2276_v61  ;;  %v1045_v49 = vmul.f32 %v5845_v20, %v1043_v31  ;;  %v2140_v44 = vadd.f32 %v2138_v25, %v2132_v17  ;;  %v1738_v50 = vadd.f32 %v1736_v42, %v1734_v41  ;;  %s6006_s13 = sld [smem:[#allocation2 + $0x20e]] }
 0x1e1   : > { %v1046_v0 = vmul.f32 %v5886_v24, %v1044_v13  ;;  %v1744_v61 = vmul.f32 %v5357_v51, %v5866_v4  ;;  %v1748_v17 = vmul.f32 %v5363_v16, %v5881_v5  ;;  %v1733_v31 = vmul.f32 %v5733_v29, %v5852_v53 }
 0x1e2   : > { %3116 = vst [vmem:[%s5820_s23 + $0x40] sm:$0xff] %v2278_v19  ;;  %3102 = vst [vmem:[%s4359_s22 + $0x90] sm:$0xff] %v1045_v49  ;;  %v2151_v25 = vrot.slane %v2140_v44, 7  ;;  %v1735_v13 = vmul.f32 %v5738_v63, %v5855_v34  ;;  %v2160_v41 = vmul.f32 %v1045_v49, %v5874_v56  ;;  %v1742_v26 = vadd.f32 %v1740_v12, %v1738_v50  ;;  %v2199_v19 = vpop.permute.xlu1 %2198 }
 0x1e3   : > { %v2161_v42 = vmul.f32 %v1046_v0, %v5877_v57  ;;  %3103 = vst [vmem:[%s4359_s22 + $0x98] sm:$0xff] %v1046_v0  ;;  %v1739_v44 = vmul.f32 %v5743_v48, %v5858_v32  ;;  %v1743_v49 = vmul.f32 %v5383_v22, %v5866_v4  ;;  %v1752_v15 = vmul.f32 %v5377_v46, %v5890_v47 }
 0x1e4   : > { %v2154_v60 = vsel %vm2153_vm5, %v2151_v25, %v2152_v33  ;;  %v2155_v52 = vsel %vm2153_vm5, %v2152_v33, %v2151_v25  ;;  %v1737_v45 = vadd.f32 %v1735_v13, %v1733_v31  ;;  %v1746_v12 = vadd.f32 %v1744_v61, %v1742_v26 }
 0x1e5   : > { %v2156_v50 = vsel %vm2092_vm4, %v2155_v52, 0.0  ;;  %v2159_v0 = vadd.f32 %v2154_v60, %v5810_v54  ;;  %v1747_v31 = vmul.f32 %v5388_v36, %v5881_v5  ;;  %v5938_v60 = vstv %s5883_s25  ;;  %s6014_s25 = smul.u32 2560, %s3970_s16 }
 0x1e6   : > { %v2158_v33 = vadd.f32 %v2156_v50, %v5834_v18  ;;  %v1741_v25 = vadd.f32 %v1739_v44, %v1737_v45  ;;  %v1750_v30 = vadd.f32 %v1748_v17, %v1746_v12  ;;  %v1751_v61 = vmul.f32 %v5400_v58, %v5890_v47  ;;  %v2205_v44 = vpop.permute.xlu0 %2204 }
 0x1e7   : > { %v5931_v13 = vadd.f32 %v2161_v42, %v2159_v0  ;;  %v2201_v18 = vsel %vm2088_vm1, %v2199_v19, 0.0  ;;  %v2207_v42 = vpop.permute.xlu1 %2206  ;;  %v5947_v17 = vstv %s5894_s27  ;;  %v5950_v26 = vstv %s5896_s24  ;;  %s6026_s27 = sld [smem:[#allocation2 + $0x28e]] }
 0x1e8   : > { %v5935_v52 = vadd.f32 %v2160_v41, %v2158_v33  ;;  %v1745_v54 = vadd.f32 %v1743_v49, %v1741_v25  ;;  %v1754_v45 = vadd.f32 %v1752_v15, %v1750_v30  ;;  %v5955_v49 = vstv %s5906_s29  ;;  %s6028_s24 = sld [smem:[#allocation7 + $0xe]] }
 0x1e9   : > { %7449 = vst [vmem:[#allocation86_spill] sm:$0xff] %v5931_v13  ;;  %2441 = vst [vmem:[%s5820_s23 + $0x8] sm:$0xff] %v5931_v13  ;;  %v1890_v30 = vmul.f32 %v5793_v21, %v5947_v17  ;;  %v1892_v15 = vmul.f32 %v5803_v39, %v5950_v26  ;;  %v2200_v50 = vsel %vm2088_vm1, %v2197_v27, 0.0  ;;  %v5967_v0 = vstv %s5913_s7  ;;  %v3302_v13 = vld [vmem:[%s4783_s21 + $0x8] sm:$0xff] }
 0x1ea   : > { %7450 = vst [vmem:[#allocation87_spill] sm:$0xff] %v5935_v52  ;;  %2440 = vst [vmem:[%s5820_s23] sm:$0xff] %v5935_v52  ;;  %v1749_v41 = vadd.f32 %v1747_v31, %v1745_v54  ;;  %v1756_v19 = vadd.f32 %v1754_v45, %v5938_v60  ;;  %v1896_v12 = vmul.f32 %v5826_v1, %v5955_v49  ;;  %v5972_v25 = vstv %s5921_s10  ;;  %s7456_s10 = sld [smem:[#allocation100_spill]] }
 0x1eb   : > { %v1894_v31 = vadd.f32 %v1892_v15, %v1890_v30  ;;  %v1900_v54 = vmul.f32 %v5357_v51, %v5967_v0  ;;  %v1889_v45 = vmul.f32 %v5733_v29, %v5947_v17  ;;  %v2209_v15 = vsel %vm2089_vm0, %v2207_v42, 0.0  ;;  %v2231_v38 = vpop.permute.xlu1 %2230 }
 0x1ec   : > { %v1753_v33 = vadd.f32 %v1751_v61, %v1749_v41  ;;  %v1758_v27 = vmul.f32 %v5886_v24, %v1756_v19  ;;  %v1891_v61 = vmul.f32 %v5738_v63, %v5950_v26  ;;  %v1895_v41 = vmul.f32 %v5743_v48, %v5955_v49 }
 0x1ed   : > { %v1898_v52 = vadd.f32 %v1896_v12, %v1894_v31  ;;  %v1904_v19 = vmul.f32 %v5363_v16, %v5972_v25  ;;  %v5999_v10 = vstv %s5933_s1  ;;  %v1899_v42 = vmul.f32 %v5383_v22, %v5967_v0 }
 0x1ee   : > { %v1755_v30 = vadd.f32 %v1753_v33, %v5938_v60  ;;  %v2417_v7 = vadd.f32 %v3302_v13, %v1758_v27  ;;  %3045 = vst [vmem:[%s4783_s21 + $0x18] sm:$0xff] %v1758_v27  ;;  %7451 = vst [vmem:[#allocation88_spill] sm:$0xff] %v5999_v10  ;;  %v1893_v59 = vadd.f32 %v1891_v61, %v1889_v45  ;;  %v2229_v13 = vpop.permute.xlu0 %2228  ;;  %v2208_v45 = vsel %vm2089_vm0, %v2205_v44, 0.0 }
 0x1ef   : > { %v2203_v12 = vadd.f32 %v2201_v18, %v1758_v27  ;;  %v1902_v31 = vadd.f32 %v1900_v54, %v1898_v52  ;;  %v1908_v23 = vmul.f32 %v5377_v46, %v5999_v10  ;;  %v1903_v8 = vmul.f32 %v5388_v36, %v5972_v25 }
 0x1f0   : > { %v1757_v33 = vmul.f32 %v5845_v20, %v1755_v30  ;;  %v2419_v40 = vadd.f32 %v3303_v14, %v2417_v7  ;;  %v1897_v61 = vadd.f32 %v1895_v41, %v1893_v59  ;;  %v6020_v18 = vstv %s5957_s26  ;;  %v3304_v14 = vld [vmem:[%s4783_s21] sm:$0xff]  ;;  %s6055_s1 = scalar_lea.hbm %s7456_s10, %s6014_s25  ;;  %s2500_s26 = sshll.u32 %s4359_s22, 4  ;;  %s6065_s26 = int_to_ptr.vmem [resolvable:$true] %s2500_s26 }
 0x1f1   : > { %v6017_v52 = vadd.f32 %v2209_v15, %v2203_v12  ;;  %7452 = vst [vmem:[#allocation89_spill] sm:$0xff] %v6020_v18  ;;  %v1906_v54 = vadd.f32 %v1904_v19, %v1902_v31  ;;  %v6024_v7 = vsel %vm2088_vm1, %v2231_v38, 0.0  ;;  %v1907_v27 = vmul.f32 %v5400_v58, %v5999_v10  ;;  %v3305_v12 = vld [vmem:[%s4783_s21 + $0x38] sm:$0xff] }
 0x1f2   : > { %3044 = vst [vmem:[%s4783_s21 + $0x10] sm:$0xff] %v1757_v33  ;;  %v2416_v59 = vadd.f32 %v3304_v14, %v1757_v33  ;;  %v1901_v44 = vadd.f32 %v1899_v42, %v1897_v61  ;;  %v6035_v41 = vsel %vm2088_vm1, %v2229_v13, 0.0  ;;  %v2202_v30 = vadd.f32 %v2200_v50, %v1757_v33  ;;  %v2215_v33 = vpop.permute.xlu1 %2214  ;;  %v3306_v13 = vld [vmem:[%s4783_s21 + $0x20] sm:$0xff] }
 0x1f3   : > { %v1910_v38 = vadd.f32 %v1908_v23, %v1906_v54  ;;  %v6038_v15 = vstv %s5976_s8  ;;  %v6041_v19 = vstv %s5978_s9  ;;  %v6044_v31 = vadd.f32 %v3305_v12, %v2419_v40  ;;  %s7457_s8 = sld [smem:[#allocation36_spill]]  ;;  %s3538_s9 = scalar_lea.vmem %s6065_s26, 2560 }
 0x1f4   : > { %7453 = vst [vmem:[#allocation90_spill] sm:$0xff] %v6038_v15  ;;  %7454 = vst [vmem:[#allocation66_spill] sm:$0xff] %v6041_v19  ;;  %v1905_v14 = vadd.f32 %v1903_v8, %v1901_v44  ;;  %v6047_v42 = vstv %s5987_s11  ;;  %v1812_v61 = vmul.f32 %v5793_v21, %v6038_v15  ;;  %v6061_v40 = vstv %s5994_s12  ;;  %p3539_p0 = scmp.ne.s32.totalorder %s6065_s26, %s3538_s9  ;;  %s3753_s11 = smov [#allocation15]  }
 0x1f5   : > { %7455 = vst [vmem:[#allocation91_spill] sm:$0xff] %v6047_v42  ;;  %v1912_v50 = vadd.f32 %v1910_v38, %v6020_v18  ;;  %7458 = vst [vmem:[#allocation92_spill] sm:$0xff] %v6061_v40  ;;  %v1814_v8 = vmul.f32 %v5803_v39, %v6041_v19  ;;  %v2418_v54 = vadd.f32 %v3306_v13, %v2416_v59  ;;  %v6072_v38 = vpop.permute.xlu0 %2212  ;;  %s3542_s12 = sshll.u32 %s3753_s11, 4  ;;  %s3543_s12 = int_to_ptr.vmem [resolvable:$false] %s3542_s12 }
 0x1f6   : > { %v6068_v44 = vadd.f32 %v2208_v45, %v2202_v30  ;;  %v1909_v12 = vadd.f32 %v1907_v27, %v1905_v14  ;;  %v1818_v23 = vmul.f32 %v5826_v1, %v6047_v42  ;;  %s3544_s29 = scalar_lea.vmem %s3543_s12, 5120  ;;  %p3545_p5 = scmp.lt.s32.totalorder %s6065_s26, %s3543_s12 }
 0x1f7   : > { %p3546_p10 = scmp.lt.s32.totalorder %s3544_s29, %s3538_s9 }
 0x1f9   : > { %p7459_p13 = scmp.ne.s32.totalorder %s7457_s8, 0  ;;  %p3547_p7 = por %p3546_p10, %p3545_p5 }
 0x1fb   : > { %p3540_p3 = pnand %p3539_p0, %p7459_p13 }
 0x1fd   : > { %p3541_p1 = pneg %p3540_p3 }
 0x1ff   : > { %p3548_p11 = pnand %p3547_p7, %p3541_p1 }
 0x201   : > { %3551 = shalt.err (!%p3548_p11)
}
 0x202   : > { %s3552_s7 = scalar_lea.hbm %s6055_s1, 2560  ;;  %s3556_s11 = scalar_lea.hbm %s7456_s10, 5120 }
 0x203   : > { %p3553_p8 = scmp.ne.s32.totalorder %s6055_s1, %s3552_s7  ;;  %p3557_p9 = scmp.lt.u32.totalorder %s6055_s1, %s7456_s10 }
 0x204   : > { %p3558_p12 = scmp.lt.u32.totalorder %s3556_s11, %s3552_s7  ;;  %p3560_p0 = scmp.lt.u32.totalorder %s3552_s7, %s6055_s1 }
 0x205   : > { %p3554_p4 = pnand %p3553_p8, %p7459_p13 }
 0x206   : > { %p3559_p6 = por %p3558_p12, %p3557_p9 }
 0x207   : > { %p3555_p2 = pneg %p3554_p4 }
 0x208   : > { %p3561_p3 = por %p3560_p0, %p3559_p6 }
 0x20a   : > { %p3562_p1 = pnand %p3561_p3, %p3555_p2 }
 0x20c   : > { %3565 = shalt.err (!%p3562_p1)
}
 0x20d   : > { %s3754_s9 = smov 128   ;;  %s3755_s0 = smov 8   ;;  %v6102_v45 = vmul.f32 %v5886_v24, %v1912_v50  ;;  %v6105_v59 = vstv %s6006_s13  ;;  %v1816_v27 = vadd.f32 %v1814_v8, %v1812_v61  ;;  %v1822_v30 = vmul.f32 %v5357_v51, %v6061_v40  ;;  %v6160_v10 = vld [vmem:[%s4145_s30 + $0x28] sm:$0xff] }
 0x20e   : > { %s7460_s2 = scalar_lea.sflag [#allocation4], %s4141_s28  ;;  %7461 = vst [vmem:[#allocation93_spill] sm:$0xff] %v6105_v59  ;;  %v1911_v14 = vadd.f32 %v1909_v12, %v6020_v18  ;;  %v1811_v13 = vmul.f32 %v5733_v29, %v6038_v15  ;;  %v1813_v55 = vmul.f32 %v5738_v63, %v6041_v19  ;;  %v1817_v56 = vmul.f32 %v5743_v48, %v6047_v42  ;;  %v3307_v12 = vld [vmem:[%s4783_s21 + $0x30] sm:$0xff]  ;;  %s6246_s28 = sld [smem:[#allocation2 + $0x13]] }
 0x20f   : > { %3167 = dma.vmem_to_hbm [thread:$0]  (%p7459_p13), %s6065_s26, 2560, %s6055_s1, %s7460_s2, %s3754_s9, %s3754_s9, %s3755_s0   ;;  %v1820_v51 = vadd.f32 %v1818_v23, %v1816_v27  ;;  %v1826_v8 = vmul.f32 %v5363_v16, %v6105_v59  ;;  %v6127_v15 = vadd.f32 %v3307_v12, %v2418_v54  ;;  %v1821_v42 = vmul.f32 %v5383_v22, %v6061_v40  ;;  %v2239_v27 = vpop.permute.xlu1 %2238 }
 0x210   : > { %3093 = vst [vmem:[%s4783_s21 + $0x78] sm:$0xff] %v6102_v45  ;;  %v6119_v50 = vstv %s6026_s27  ;;  %v6122_v61 = vstv %s6028_s24  ;;  %v6130_v19 = vmul.f32 %v5845_v20, %v1911_v14  ;;  %v1815_v18 = vadd.f32 %v1813_v55, %v1811_v13  ;;  %v6138_v16 = vld [vmem:[%s4145_s30 + $0x8] sm:$0xff]  ;;  %s6255_s13 = sld [smem:[#allocation2 + $0x113]]  ;;  %s2548_s26 = sshll.u32 %s4783_s21, 4  ;;  %s6484_s26 = int_to_ptr.vmem [resolvable:$true] %s2548_s26 }
 0x211   : > { %7462 = vst [vmem:[#allocation94_spill] sm:$0xff] %v6119_v50  ;;  %7463 = vst [vmem:[#allocation45_spill] sm:$0xff] %v6122_v61  ;;  %v1824_v57 = vadd.f32 %v1822_v30, %v1820_v51  ;;  %v1830_v23 = vmul.f32 %v5377_v46, %v6119_v50  ;;  %v1090_v54 = vmul.f32 %v6138_v16, %v5852_v53  ;;  %v6146_v55 = vsel %vm2088_vm1, %v2215_v33, 0.0  ;;  %v2237_v30 = vpop.permute.xlu0 %2236  ;;  %v6151_v13 = vld [vmem:[%s4145_s30 + $0x18] sm:$0xff]  ;;  %s6267_s27 = sld [smem:[#allocation2 + $0x193]]  ;;  %s7485_s7 = sld [smem:[#allocation103_spill]] }
 0x212   : > { %3092 = vst [vmem:[%s4783_s21 + $0x70] sm:$0xff] %v6130_v19  ;;  %v1819_v22 = vadd.f32 %v1817_v56, %v1815_v18  ;;  %v1825_v14 = vmul.f32 %v5388_v36, %v6105_v59  ;;  %v1094_v46 = vmul.f32 %v6151_v13, %v5855_v34  ;;  %v2235_v51 = vadd.f32 %v6024_v7, %v6102_v45  ;;  %s6276_s24 = sld [smem:[#allocation2 + $0x213]]  ;;  %s3566_s12 = scalar_lea.vmem %s6484_s26, 2560 }
 0x213   : > { %v1828_v12 = vadd.f32 %v1826_v8, %v1824_v57  ;;  %v1829_v33 = vmul.f32 %v5400_v58, %v6119_v50  ;;  %v1100_v36 = vmul.f32 %v6160_v10, %v5858_v32  ;;  %v2241_v18 = vsel %vm2089_vm0, %v2239_v27, 0.0  ;;  %v6173_v8 = vld [vmem:[%s4145_s30] sm:$0xff]  ;;  %s6297_s1 = sld [smem:[#allocation2 + $0x293]]  ;;  %p3567_p5 = scmp.ne.s32.totalorder %s6484_s26, %s3566_s12 }
 0x214   : > { %v1823_v56 = vadd.f32 %v1821_v42, %v1819_v22  ;;  %v1096_v59 = vadd.f32 %v1094_v46, %v1090_v54  ;;  %v1106_v40 = vmul.f32 %v5793_v21, %v5866_v4  ;;  %v2234_v57 = vadd.f32 %v6035_v41, %v6130_v19  ;;  %v6180_v54 = vld [vmem:[%s4145_s30 + $0x10] sm:$0xff]  ;;  %s3756_s2 = smov [#allocation19]  }
 0x215   : > { %v1832_v7 = vadd.f32 %v1830_v23, %v1828_v12  ;;  %v2240_v58 = vsel %vm2089_vm0, %v2237_v30, 0.0  ;;  %v1089_v42 = vmul.f32 %v6173_v8, %v5852_v53  ;;  %v1112_v27 = vmul.f32 %v5803_v39, %v5881_v5  ;;  %7464 = vst [vmem:[#allocation46_spill] sm:$0xff] %v6180_v54  ;;  %v6190_v12 = vld [vmem:[%s4145_s30 + $0x20] sm:$0xff]  ;;  %s6253_s30 = sld [smem:[#allocation2 + $0x93]]  ;;  %p3568_p10 = pnand %p3567_p5, %p7459_p13 }
 0x216   : > { %v1827_v22 = vadd.f32 %v1825_v14, %v1823_v56  ;;  %v1102_v50 = vadd.f32 %v1100_v36, %v1096_v59  ;;  %v1093_v46 = vmul.f32 %v6180_v54, %v5855_v34  ;;  %v6185_v23 = vadd.f32 %v2241_v18, %v2235_v51  ;;  %7465 = vst [vmem:[#allocation47_spill] sm:$0xff] %v6190_v12  ;;  %v6201_v18 = vpop.permute.xlu1 %2282 }
 0x217   : > { %v1834_v41 = vadd.f32 %v1832_v7, %v6122_v61  ;;  %v1118_v30 = vmul.f32 %v5826_v1, %v5890_v47  ;;  %v1099_v53 = vmul.f32 %v6190_v12, %v5858_v32  ;;  %v1105_v56 = vmul.f32 %v5733_v29, %v5866_v4  ;;  %v6208_v4 = vpop.permute.xlu0 %2280  ;;  %v6263_v12 = vld [vmem:[%s4162_s5] sm:$0xff]  ;;  %s6482_s11 = scalar_lea.hbm %s7485_s7, %s6014_s25  ;;  %p3569_p7 = pneg %p3568_p10 }
 0x218   : > { %v1831_v59 = vadd.f32 %v1829_v33, %v1827_v22  ;;  %v1108_v14 = vadd.f32 %v1106_v40, %v1102_v50  ;;  %v1095_v36 = vadd.f32 %v1093_v46, %v1089_v42  ;;  %v6199_v51 = vadd.f32 %v2240_v58, %v2234_v57 }
 0x219   : > { %v6197_v34 = vmul.f32 %v5886_v24, %v1834_v41  ;;  %v1111_v7 = vmul.f32 %v5738_v63, %v5881_v5  ;;  %v1474_v32 = vmul.f32 %v5793_v21, %v5474_v3  ;;  %v1476_v57 = vmul.f32 %v5803_v39, %v5480_v9  ;;  %v6232_v5 = vld [vmem:[%s4162_s5 + $0x18] sm:$0xff] }
 0x21a   : > { %v1833_v40 = vadd.f32 %v1831_v59, %v6122_v61  ;;  %v1114_v50 = vadd.f32 %v1112_v27, %v1108_v14  ;;  %v1101_v33 = vadd.f32 %v1099_v53, %v1095_v36  ;;  %v1117_v42 = vmul.f32 %v5743_v48, %v5890_v47  ;;  %v6227_v36 = vld [vmem:[%s4162_s5 + $0x8] sm:$0xff]  ;;  %7467 = vst [vmem:[#allocation49_spill] sm:$0xff] %v6232_v5 }
 0x21b   : > { %v2423_v58 = vadd.f32 %v6044_v31, %v6197_v34  ;;  %3069 = vst [vmem:[%s4783_s21 + $0x48] sm:$0xff] %v6197_v34  ;;  %v1480_v22 = vmul.f32 %v5826_v1, %v5495_v37  ;;  %v1478_v53 = vadd.f32 %v1476_v57, %v1474_v32  ;;  %v3314_v31 = vld [vmem:[%s4783_s21 + $0x58] sm:$0xff]  ;;  %7466 = vst [vmem:[#allocation48_spill] sm:$0xff] %v6227_v36 }
 0x21c   : > { %v6222_v27 = vmul.f32 %v5845_v20, %v1833_v40  ;;  %v1120_v46 = vadd.f32 %v1118_v30, %v1114_v50  ;;  %v1107_v41 = vadd.f32 %v1105_v56, %v1101_v33  ;;  %v1484_v47 = vmul.f32 %v6227_v36, %v5498_v2  ;;  %v6242_v40 = vld [vmem:[%s4162_s5 + $0x28] sm:$0xff] }
 0x21d   : > { %v2425_v59 = vadd.f32 %v3314_v31, %v2423_v58  ;;  %v1488_v61 = vmul.f32 %v6232_v5, %v5506_v6  ;;  %v1492_v50 = vmul.f32 %v6242_v40, %v5521_v62  ;;  %v3318_v33 = vld [vmem:[%s4783_s21 + $0x68] sm:$0xff]  ;;  %v1482_v58 = vadd.f32 %v1480_v22, %v1478_v53  ;;  %v2351_v31 = vpop.permute.xlu1 %2350 }
 0x21e   : > { %v2422_v30 = vadd.f32 %v6127_v15, %v6222_v27  ;;  %3068 = vst [vmem:[%s4783_s21 + $0x40] sm:$0xff] %v6222_v27  ;;  %v1124_v56 = vadd.f32 %v5938_v60, %v1120_v46  ;;  %v1113_v32 = vadd.f32 %v1111_v7, %v1107_v41  ;;  %v1473_v15 = vmul.f32 %v5733_v29, %v5474_v3  ;;  %v3319_v7 = vld [vmem:[%s4783_s21 + $0x50] sm:$0xff]  ;;  %v2349_v3 = vpop.permute.xlu0 %2348 }
 0x21f   : > { %v2427_v57 = vadd.f32 %v3318_v33, %v2425_v59  ;;  %v1475_v46 = vmul.f32 %v5738_v63, %v5480_v9  ;;  %v1479_v22 = vmul.f32 %v5743_v48, %v5495_v37  ;;  %v1486_v14 = vadd.f32 %v1484_v47, %v1482_v58  ;;  %v3323_v47 = vld [vmem:[%s4783_s21 + $0x88] sm:$0xff] }
 0x220   : > { %v2424_v41 = vadd.f32 %v3319_v7, %v2422_v30  ;;  %v1126_v59 = vmul.f32 %v5886_v24, %v1124_v56  ;;  %v1119_v33 = vadd.f32 %v1117_v42, %v1113_v32  ;;  %v1483_v54 = vmul.f32 %v6263_v12, %v5498_v2  ;;  %v3321_v30 = vld [vmem:[%s4783_s21 + $0x60] sm:$0xff]  ;;  %v3322_v42 = vld [vmem:[%s5053_s14 + $0x8] sm:$0xff] }
 0x221   : > { %v2429_v53 = vadd.f32 %v2427_v57, %v6102_v45  ;;  %v1477_v9 = vadd.f32 %v1475_v46, %v1473_v15  ;;  %v2216_v37 = vsel %vm2088_vm1, %v6072_v38, 0.0  ;;  %v1490_v2 = vadd.f32 %v1488_v61, %v1486_v14  ;;  %v6280_v15 = vld [vmem:[%s4162_s5 + $0x10] sm:$0xff] }
 0x222   : > { %v2426_v56 = vadd.f32 %v3321_v30, %v2424_v41  ;;  %v2165_v32 = vadd.f32 %v3322_v42, %v1126_v59  ;;  %3041 = vst [vmem:[%s5053_s14 + $0x18] sm:$0xff] %v1126_v59  ;;  %v1123_v45 = vadd.f32 %v5938_v60, %v1119_v33  ;;  %v1487_v46 = vmul.f32 %v6280_v15, %v5506_v6  ;;  %v3326_v30 = vld [vmem:[%s4783_s21 + $0x80] sm:$0xff]  ;;  %v3327_v42 = vld [vmem:[%s5053_s14 + $0x28] sm:$0xff] }
 0x223   : > { %v2431_v57 = vadd.f32 %v3323_v47, %v2429_v53  ;;  %v1481_v58 = vadd.f32 %v1479_v22, %v1477_v9  ;;  %v7468_v7 = vrot.slane %v6199_v51, 7  ;;  %v7469_v60 = vrot.slane %v6185_v23, 7  ;;  %v6304_v22 = vld [vmem:[%s4162_s5 + $0x20] sm:$0xff]  ;;  %s6325_s5 = sld [smem:[#allocation7 + $0x13]] }
 0x224   : > { %v2428_v38 = vadd.f32 %v2426_v56, %v6130_v19  ;;  %v2285_v61 = vsel %vm2088_vm1, %v6201_v18, 0.0  ;;  %v1125_v14 = vmul.f32 %v5845_v20, %v1123_v45  ;;  %v2284_v6 = vsel %vm2088_vm1, %v6208_v4, 0.0  ;;  %v2223_v18 = vpop.permute.xlu1 %2222 }
 0x225   : > { %v6291_v41 = vsel %vm2153_vm5, %v7469_v60, %v7468_v7  ;;  %3123 = vst [vmem:[%s5820_s23 + $0x78] sm:$0xff] %v2431_v57  ;;  %v1494_v19 = vadd.f32 %v1492_v50, %v1490_v2  ;;  %v1485_v33 = vadd.f32 %v1483_v54, %v1481_v58  ;;  %v1491_v53 = vmul.f32 %v6304_v22, %v5521_v62  ;;  %v6316_v54 = vpop.permute.xlu0 %2220 }
 0x226   : > { %v2219_v9 = vadd.f32 %v6146_v55, %v6197_v34  ;;  %v2430_v56 = vadd.f32 %v3326_v30, %v2428_v38  ;;  %v2167_v45 = vadd.f32 %v3327_v42, %v2165_v32  ;;  %3040 = vst [vmem:[%s5053_s14 + $0x10] sm:$0xff] %v1125_v14  ;;  %v6314_v4 = vstv %s6246_s28  ;;  %v3328_v32 = vld [vmem:[%s5053_s14] sm:$0xff]  ;;  %s3570_s28 = sshll.u32 %s3756_s2, 4  ;;  %s3571_s28 = int_to_ptr.vmem [resolvable:$false] %s3570_s28 }
 0x227   : > { %v1496_v50 = vadd.f32 %v1494_v19, %v5546_v11  ;;  %v1489_v62 = vadd.f32 %v1487_v46, %v1485_v33  ;;  %v6320_v47 = vstv %s6253_s30  ;;  %v6323_v57 = vstv %s6255_s13  ;;  %s3572_s30 = scalar_lea.vmem %s3571_s28, 5120  ;;  %p3573_p11 = scmp.lt.s32.totalorder %s6484_s26, %s3571_s28 }
 0x228   : > { %7470 = vst [vmem:[#allocation50_spill] sm:$0xff] %v6323_v57  ;;  %v6328_v55 = vadd.f32 %v2216_v37, %v6222_v27  ;;  %3122 = vst [vmem:[%s5820_s23 + $0x70] sm:$0xff] %v2430_v56  ;;  %v6331_v34 = vadd.f32 %v2285_v61, %v1126_v59  ;;  %v2164_v2 = vadd.f32 %v3328_v32, %v1125_v14  ;;  %v2353_v58 = vsel %vm2088_vm1, %v2351_v31, 0.0  ;;  %v3329_v61 = vld [vmem:[%s5053_s14 + $0x38] sm:$0xff]  ;;  %p3574_p8 = scmp.lt.s32.totalorder %s3572_s30, %s3566_s12 }
 0x229   : > { %v1498_v46 = vmul.f32 %v5886_v24, %v1496_v50  ;;  %v1493_v38 = vadd.f32 %v1491_v53, %v1489_v62  ;;  %v6338_v7 = vstv %s6267_s27  ;;  %v1942_v27 = vmul.f32 %v5793_v21, %v6314_v4  ;;  %v3330_v53 = vld [vmem:[%s5105_s20 + $0x8] sm:$0xff] }
 0x22a   : > { %7471 = vst [vmem:[#allocation67_spill] sm:$0xff] %v6338_v7  ;;  %v2352_v37 = vsel %vm2088_vm1, %v2349_v3, 0.0  ;;  %v6345_v59 = vstv %s6276_s24  ;;  %v1944_v60 = vmul.f32 %v5803_v39, %v6320_v47  ;;  %v1948_v31 = vmul.f32 %v5826_v1, %v6323_v57  ;;  %v2291_v3 = vpop.permute.xlu1 %2290  ;;  %p3575_p4 = por %p3574_p8, %p3573_p11 }
 0x22b   : > { %v6352_v19 = vadd.f32 %v3329_v61, %v2167_v45  ;;  %v6354_v33 = vadd.f32 %v2284_v6, %v1125_v14  ;;  %v2181_v30 = vadd.f32 %v3330_v53, %v1498_v46  ;;  %3043 = vst [vmem:[%s5105_s20 + $0x18] sm:$0xff] %v1498_v46  ;;  %v1495_v56 = vadd.f32 %v1493_v38, %v5546_v11  ;;  %v2289_v14 = vpop.permute.xlu0 %2288  ;;  %v3331_v6 = vld [vmem:[%s5053_s14 + $0x20] sm:$0xff] }
 0x22c   : > { %v6360_v42 = vstv %s6297_s1  ;;  %v1946_v50 = vadd.f32 %v1944_v60, %v1942_v27  ;;  %v1952_v62 = vmul.f32 %v6227_v36, %v6338_v7  ;;  %v2225_v45 = vsel %vm2089_vm0, %v2223_v18, 0.0  ;;  %v3333_v36 = vld [vmem:[%s5105_s20] sm:$0xff]  ;;  %p3576_p2 = pnand %p3575_p4, %p3569_p7 }
 0x22d   : > { %7472 = vst [vmem:[#allocation68_spill] sm:$0xff] %v6352_v19  ;;  %v2166_v32 = vadd.f32 %v3331_v6, %v2164_v2  ;;  %v1497_v61 = vmul.f32 %v5845_v20, %v1495_v56  ;;  %v1956_v11 = vmul.f32 %v6232_v5, %v6345_v59  ;;  %v7473_v38 = vrot.slane %v6068_v44, 1  ;;  %v3332_v56 = vld [vmem:[%s5105_s20 + $0x28] sm:$0xff] }
 0x22e   : > { %v7474_v27 = vrot.slane %v6017_v52, 1  ;;  %v1950_v53 = vadd.f32 %v1948_v31, %v1946_v50  ;;  %v2227_v19 = vadd.f32 %v2225_v45, %v2219_v9  ;;  %v1941_v18 = vmul.f32 %v5733_v29, %v6314_v4  ;;  %v3334_v45 = vld [vmem:[%s5053_s14 + $0x30] sm:$0xff] }
 0x22f   : > { %v1943_v2 = vmul.f32 %v5738_v63, %v6320_v47  ;;  %v2183_v6 = vadd.f32 %v3332_v56, %v2181_v30  ;;  %v2180_v5 = vadd.f32 %v3333_v36, %v1497_v61  ;;  %3042 = vst [vmem:[%s5105_s20 + $0x10] sm:$0xff] %v1497_v61  ;;  %v6384_v20 = vstv %s6325_s5 }
 0x230   : > { %v2247_v60 = vsel %vm2144_vm2, %v7474_v27, %v7473_v38  ;;  %v1960_v1 = vmul.f32 %v6242_v40, %v6360_v42  ;;  %v1954_v38 = vadd.f32 %v1952_v62, %v1950_v53  ;;  %v1947_v9 = vmul.f32 %v5743_v48, %v6323_v57 }
 0x231   : > { %v1945_v31 = vadd.f32 %v1943_v2, %v1941_v18  ;;  %v1951_v50 = vmul.f32 %v6263_v12, %v6338_v7  ;;  %v6393_v30 = vadd.f32 %v3334_v45, %v2166_v32  ;;  %v6395_v36 = vadd.f32 %v2353_v58, %v1498_v46  ;;  %v6405_v18 = vpop.permute.xlu1 %2314  ;;  %v6409_v58 = vpop.permute.xlu0 %2312  ;;  %v3335_v46 = vld [vmem:[%s5105_s20 + $0x38] sm:$0xff] }
 0x232   : > { %v2249_v27 = vsel %vm2091_vm3, %v2247_v60, 0.0  ;;  %v7475_v56 = vrot.slane %v6185_v23, 7  ;;  %v7476_v62 = vrot.slane %v6199_v51, 7  ;;  %v1958_v2 = vadd.f32 %v1956_v11, %v1954_v38  ;;  %v3336_v60 = vld [vmem:[%s5105_s20 + $0x20] sm:$0xff] }
 0x233   : > { %v2251_v57 = vadd.f32 %v2249_v27, %v2227_v19  ;;  %v1949_v7 = vadd.f32 %v1947_v9, %v1945_v31  ;;  %v1955_v32 = vmul.f32 %v6280_v15, %v6345_v59  ;;  %v6412_v45 = vadd.f32 %v3335_v46, %v2183_v6 }
 0x234   : > { %v2254_v53 = vsel %vm2153_vm5, %v7476_v62, %v7475_v56  ;;  %v2182_v23 = vadd.f32 %v3336_v60, %v2180_v5  ;;  %v6415_v28 = vadd.f32 %v2352_v37, %v1497_v61  ;;  %v2224_v51 = vsel %vm2089_vm0, %v6316_v54, 0.0  ;;  %v7479_v60 = vld [vmem:[#allocation46_spill] sm:$0xff] }
 0x235   : > { %v1962_v56 = vadd.f32 %v1960_v1, %v1958_v2  ;;  %v1953_v11 = vadd.f32 %v1951_v50, %v1949_v7  ;;  %v1959_v19 = vmul.f32 %v6304_v22, %v6360_v42  ;;  %v2226_v38 = vadd.f32 %v2224_v51, %v6328_v55  ;;  %v6445_v62 = vpop.permute.xlu1 %2358 }
 0x236   : > { %v2293_v31 = vsel %vm2089_vm0, %v2291_v3, 0.0  ;;  %v1330_v6 = vmul.f32 %v6138_v16, %v5947_v17  ;;  %v1334_v5 = vmul.f32 %v6151_v13, %v5950_v26  ;;  %v1340_v37 = vmul.f32 %v6160_v10, %v5955_v49 }
 0x237   : > { %v1964_v1 = vadd.f32 %v1962_v56, %v6384_v20  ;;  %v2259_v54 = vadd.f32 %v2254_v53, %v2251_v57  ;;  %v1957_v7 = vadd.f32 %v1955_v32, %v1953_v11  ;;  %v7477_v61 = vrot.slane %v6017_v52, 1  ;;  %v6451_v32 = vpop.permute.xlu0 %2356  ;;  %v7480_v56 = vld [vmem:[#allocation85_spill] sm:$0xff] }
 0x238   : > { %v7478_v55 = vrot.slane %v6068_v44, 1  ;;  %v2256_v9 = vsel %vm2092_vm4, %v6291_v41, 0.0  ;;  %v2292_v50 = vsel %vm2089_vm0, %v2289_v14, 0.0  ;;  %v1336_v27 = vadd.f32 %v1334_v5, %v1330_v6  ;;  %v7482_v5 = vld [vmem:[#allocation88_spill] sm:$0xff] }
 0x239   : > { %v1346_v57 = vmul.f32 %v5793_v21, %v5967_v0  ;;  %v1966_v52 = vmul.f32 %v5886_v24, %v1964_v1  ;;  %v1961_v44 = vadd.f32 %v1959_v19, %v1957_v7  ;;  %v6449_v2 = vadd.f32 %v2293_v31, %v6331_v34  ;;  %v3337_v7 = vld [vmem:[%s5105_s20 + $0x30] sm:$0xff] }
 0x23a   : > { %v2246_v3 = vsel %vm2144_vm2, %v7478_v55, %v7477_v61  ;;  %v1342_v41 = vadd.f32 %v1340_v37, %v1336_v27  ;;  %v1352_v14 = vmul.f32 %v5803_v39, %v5972_v25  ;;  %v1329_v46 = vmul.f32 %v6173_v8, %v5947_v17  ;;  %v7483_v37 = vld [vmem:[#allocation63_spill] sm:$0xff] }
 0x23b   : > { %v2250_v53 = vadd.f32 %v2246_v3, %v2226_v38  ;;  %v1333_v51 = vmul.f32 %v7479_v60, %v5950_v26  ;;  %v2261_v11 = vmul.f32 %v1966_v52, %v7480_v56  ;;  %3109 = vst [vmem:[%s4783_s21 + $0x98] sm:$0xff] %v1966_v52  ;;  %v1963_v34 = vadd.f32 %v1961_v44, %v6384_v20  ;;  %v7481_v38 = vld [vmem:[#allocation47_spill] sm:$0xff] }
 0x23c   : > { %v6464_v19 = vadd.f32 %v2292_v50, %v6354_v33  ;;  %v1339_v31 = vmul.f32 %v7481_v38, %v5955_v49  ;;  %v1348_v6 = vadd.f32 %v1346_v57, %v1342_v41  ;;  %v1358_v17 = vmul.f32 %v7483_v37, %v7482_v5  ;;  %v7484_v33 = vld [vmem:[#allocation65_spill] sm:$0xff]  ;;  %v7487_v44 = vld [vmem:[#allocation83_spill] sm:$0xff]  ;;  %v7488_v41 = vld [vmem:[#allocation84_spill] sm:$0xff] }
 0x23d   : > { %v1335_v1 = vadd.f32 %v1333_v51, %v1329_v46  ;;  %v1345_v26 = vmul.f32 %v5733_v29, %v5967_v0  ;;  %v6473_v61 = vadd.f32 %v3337_v7, %v2182_v23  ;;  %v6475_v55 = vadd.f32 %v2261_v11, %v2259_v54  ;;  %v6489_v54 = vpop.permute.xlu1 %2382  ;;  %v6500_v46 = vpop.permute.xlu0 %2380  ;;  %v7489_v11 = vld [vmem:[#allocation78_spill] sm:$0xff] }
 0x23e   : > { %v1965_v3 = vmul.f32 %v7484_v33, %v1963_v34  ;;  %v2258_v50 = vadd.f32 %v2256_v9, %v2250_v53  ;;  %v1354_v27 = vadd.f32 %v1352_v14, %v1348_v6  ;;  %v1351_v23 = vmul.f32 %v5738_v63, %v5972_v25  ;;  %v7486_v9 = vld [vmem:[#allocation44_spill] sm:$0xff] }
 0x23f   : > { %v1341_v0 = vadd.f32 %v1339_v31, %v1335_v1  ;;  %3115 = vst [vmem:[%s5820_s23 + $0x38] sm:$0xff] %v6475_v55  ;;  %v1630_v53 = vmul.f32 %v5793_v21, %v7487_v44  ;;  %v1632_v14 = vmul.f32 %v5803_v39, %v7488_v41  ;;  %v1357_v56 = vmul.f32 %v5743_v48, %v7482_v5 }
 0x240   : > { %v2260_v57 = vmul.f32 %v1965_v3, %v7486_v9  ;;  %3108 = vst [vmem:[%s4783_s21 + $0x90] sm:$0xff] %v1965_v3  ;;  %v1360_v25 = vadd.f32 %v1358_v17, %v1354_v27  ;;  %v1636_v34 = vmul.f32 %v7483_v37, %v7489_v11  ;;  %s2482_s21 = scalar_lea.sflag [#allocation20], %s4152_s15 }
 0x241   : > { %v1347_v51 = vadd.f32 %v1345_v26, %v1341_v0 }
 0x242   : > { %3579 = shalt.err (!%p3576_p2)
}
 0x243   : > { %s3580_s13 = scalar_lea.hbm %s6482_s11, 2560  ;;  %s3584_s1 = scalar_lea.hbm %s7485_s7, 5120 }
 0x244   : > { %p3581_p9 = scmp.ne.s32.totalorder %s6482_s11, %s3580_s13  ;;  %p3585_p0 = scmp.lt.u32.totalorder %s6482_s11, %s7485_s7 }
 0x245   : > { %p3586_p3 = scmp.lt.u32.totalorder %s3584_s1, %s3580_s13  ;;  %p3588_p5 = scmp.lt.u32.totalorder %s3580_s13, %s6482_s11 }
 0x246   : > { %p3582_p12 = pnand %p3581_p9, %p7459_p13 }
 0x247   : > { %p3587_p1 = por %p3586_p3, %p3585_p0 }
 0x248   : > { %p3583_p6 = pneg %p3582_p12 }
 0x249   : > { %p3589_p10 = por %p3588_p5, %p3587_p1 }
 0x24b   : > { %p3590_p7 = pnand %p3589_p10, %p3583_p6 }
 0x24d   : > { %3593 = shalt.err (!%p3590_p7)
}
 0x24e   : > { %3170 = dma.vmem_to_hbm [thread:$0]  (%p7459_p13), %s6484_s26, 2560, %s6482_s11, %s2482_s21, %s3754_s9, %s3754_s9, %s3755_s0   ;;  %v6533_v31 = vadd.f32 %v2260_v57, %v2258_v50  ;;  %v2361_v6 = vsel %vm2089_vm0, %v6445_v62, 0.0  ;;  %v1634_v5 = vadd.f32 %v1632_v14, %v1630_v53  ;;  %v7491_v17 = vld [vmem:[#allocation39_spill] sm:$0xff]  ;;  %v7492_v1 = vld [vmem:[#allocation48_spill] sm:$0xff]  ;;  %v7493_v7 = vld [vmem:[#allocation89_spill] sm:$0xff]  ;;  %v2317_v27 = vsel %vm2088_vm1, %v6405_v18, 0.0 }
 0x24f   : > { %v1640_v26 = vmul.f32 %v7492_v1, %v7491_v17  ;;  %v1364_v3 = vadd.f32 %v7493_v7, %v1360_v25  ;;  %v1353_v0 = vadd.f32 %v1351_v23, %v1347_v51  ;;  %v2360_v50 = vsel %vm2089_vm0, %v6451_v32, 0.0  ;;  %v7494_v62 = vld [vmem:[#allocation40_spill] sm:$0xff]  ;;  %v7495_v57 = vld [vmem:[#allocation49_spill] sm:$0xff]  ;;  %v7497_v49 = vld [vmem:[#allocation58_spill] sm:$0xff]  ;;  %s7539_s29 = sld [smem:[#allocation101_spill]]  ;;  %s2472_s12 = scalar_lea.sflag [#allocation17], %s4152_s15 }
 0x250   : > { %7490 = vst [vmem:[#allocation69_spill] sm:$0xff] %v6533_v31  ;;  %3114 = vst [vmem:[%s5820_s23 + $0x30] sm:$0xff] %v6533_v31  ;;  %v1638_v9 = vadd.f32 %v1636_v34, %v1634_v5  ;;  %v1644_v53 = vmul.f32 %v7495_v57, %v7494_v62  ;;  %v1629_v14 = vmul.f32 %v5733_v29, %v7487_v44  ;;  %v6563_v34 = vpop.permute.xlu1 %2298  ;;  %v6569_v44 = vpop.permute.xlu0 %2296 }
 0x251   : > { %v1631_v25 = vmul.f32 %v5738_v63, %v7488_v41  ;;  %v6556_v18 = vmul.f32 %v5886_v24, %v1364_v3  ;;  %v1359_v23 = vadd.f32 %v1357_v56, %v1353_v0  ;;  %v6559_v51 = vadd.f32 %v2361_v6, %v6395_v36  ;;  %v7499_v56 = vld [vmem:[#allocation90_spill] sm:$0xff]  ;;  %v7501_v0 = vld [vmem:[#allocation91_spill] sm:$0xff] }
 0x252   : > { %v1635_v32 = vmul.f32 %v5743_v48, %v7489_v11  ;;  %v1642_v5 = vadd.f32 %v1640_v26, %v1638_v9  ;;  %v1648_v52 = vmul.f32 %v6242_v40, %v7497_v49  ;;  %v1639_v63 = vmul.f32 %v6263_v12, %v7491_v17  ;;  %v7500_v3 = vld [vmem:[#allocation66_spill] sm:$0xff] }
 0x253   : > { %7496 = vst [vmem:[#allocation70_spill] sm:$0xff] %v6559_v51  ;;  %v1633_v29 = vadd.f32 %v1631_v25, %v1629_v14  ;;  %3089 = vst [vmem:[%s5053_s14 + $0x78] sm:$0xff] %v6556_v18  ;;  %v1363_v36 = vadd.f32 %v7493_v7, %v1359_v23  ;;  %v6575_v41 = vadd.f32 %v2360_v50, %v6415_v28  ;;  %v2316_v28 = vsel %vm2088_vm1, %v6409_v58, 0.0  ;;  %v7502_v23 = vld [vmem:[#allocation92_spill] sm:$0xff] }
 0x254   : > { %v1643_v48 = vmul.f32 %v6280_v15, %v7494_v62  ;;  %v1210_v11 = vmul.f32 %v6138_v16, %v7499_v56  ;;  %v1646_v6 = vadd.f32 %v1644_v53, %v1642_v5  ;;  %v1214_v17 = vmul.f32 %v6151_v13, %v7500_v3  ;;  %v2321_v50 = vpop.permute.xlu0 %2320  ;;  %v6612_v51 = vld [vmem:[%s4155_s3] sm:$0xff] }
 0x255   : > { %7498 = vst [vmem:[#allocation71_spill] sm:$0xff] %v6575_v41  ;;  %v1637_v26 = vadd.f32 %v1635_v32, %v1633_v29  ;;  %v1220_v9 = vmul.f32 %v6160_v10, %v7501_v0  ;;  %v6586_v7 = vmul.f32 %v7484_v33, %v1363_v36  ;;  %v1647_v62 = vmul.f32 %v6304_v22, %v7497_v49  ;;  %v7506_v41 = vld [vmem:[#allocation74_spill] sm:$0xff]  ;;  %s6864_s11 = scalar_lea.hbm %s7539_s29, %s6014_s25 }
 0x256   : > { %v1650_v53 = vadd.f32 %v1648_v52, %v1646_v6  ;;  %v1216_v25 = vadd.f32 %v1214_v17, %v1210_v11  ;;  %v1226_v32 = vmul.f32 %v5793_v21, %v7502_v23  ;;  %v1209_v29 = vmul.f32 %v6173_v8, %v7499_v56  ;;  %v2323_v52 = vpop.permute.xlu1 %2322  ;;  %v7505_v56 = vld [vmem:[#allocation94_spill] sm:$0xff] }
 0x257   : > { %v1641_v14 = vadd.f32 %v1639_v63, %v1637_v26  ;;  %3088 = vst [vmem:[%s5053_s14 + $0x70] sm:$0xff] %v6586_v7  ;;  %v1213_v58 = vmul.f32 %v7479_v60, %v7500_v3  ;;  %v1219_v49 = vmul.f32 %v7481_v38, %v7501_v0  ;;  %v7503_v63 = vld [vmem:[#allocation41_spill] sm:$0xff]  ;;  %v2319_v5 = vadd.f32 %v2317_v27, %v6556_v18  ;;  %v6622_v27 = vld [vmem:[%s4155_s3 + $0x10] sm:$0xff] }
 0x258   : > { %v1652_v36 = vadd.f32 %v1650_v53, %v7503_v63  ;;  %v1222_v6 = vadd.f32 %v1220_v9, %v1216_v25  ;;  %v7504_v26 = vld [vmem:[#allocation93_spill] sm:$0xff]  ;;  %v1238_v31 = vmul.f32 %v7483_v37, %v7505_v56  ;;  %v1225_v0 = vmul.f32 %v6612_v51, %v7502_v23 }
 0x259   : > { %v1645_v11 = vadd.f32 %v1643_v48, %v1641_v14  ;;  %v1232_v17 = vmul.f32 %v5803_v39, %v7504_v26  ;;  %v1215_v3 = vadd.f32 %v1213_v58, %v1209_v29  ;;  %v2325_v14 = vsel %vm2089_vm0, %v2323_v52, 0.0 }
 0x25a   : > { %v6617_v48 = vmul.f32 %v5886_v24, %v1652_v36  ;;  %v1228_v53 = vadd.f32 %v1226_v32, %v1222_v6  ;;  %v1231_v29 = vmul.f32 %v6622_v27, %v7504_v26  ;;  %v2324_v58 = vsel %vm2089_vm0, %v2321_v50, 0.0  ;;  %v7507_v50 = vld [vmem:[#allocation75_spill] sm:$0xff] }
 0x25b   : > { %v1649_v9 = vadd.f32 %v1647_v62, %v1645_v11  ;;  %v1221_v25 = vadd.f32 %v1219_v49, %v1215_v3  ;;  %v1552_v23 = vmul.f32 %v5793_v21, %v7506_v41  ;;  %v2318_v36 = vadd.f32 %v2316_v28, %v6586_v7  ;;  %v6637_v11 = vld [vmem:[%s4155_s3 + $0x20] sm:$0xff]  ;;  %v2367_v3 = vpop.permute.xlu1 %2366 }
 0x25c   : > { %3091 = vst [vmem:[%s5105_s20 + $0x78] sm:$0xff] %v6617_v48  ;;  %v1234_v32 = vadd.f32 %v1232_v17, %v1228_v53  ;;  %v6634_v49 = vadd.f32 %v2325_v14, %v2319_v5  ;;  %v1237_v6 = vmul.f32 %v6637_v11, %v7505_v56  ;;  %v1554_v26 = vmul.f32 %v5803_v39, %v7507_v50  ;;  %v7508_v21 = vld [vmem:[#allocation76_spill] sm:$0xff]  ;;  %v7509_v53 = vld [vmem:[#allocation77_spill] sm:$0xff] }
 0x25d   : > { %v1651_v62 = vadd.f32 %v1649_v9, %v7503_v63  ;;  %v1227_v52 = vadd.f32 %v1225_v0, %v1221_v25  ;;  %v1558_v28 = vmul.f32 %v7483_v37, %v7508_v21  ;;  %v2385_v63 = vsel %vm2088_vm1, %v6489_v54, 0.0  ;;  %v7510_v14 = vld [vmem:[#allocation45_spill] sm:$0xff] }
 0x25e   : > { %v1240_v17 = vadd.f32 %v1238_v31, %v1234_v32  ;;  %v6651_v0 = vadd.f32 %v2324_v58, %v2318_v36  ;;  %v2384_v56 = vsel %vm2088_vm1, %v6500_v46, 0.0  ;;  %v1556_v39 = vadd.f32 %v1554_v26, %v1552_v23  ;;  %v7511_v58 = vld [vmem:[#allocation79_spill] sm:$0xff]  ;;  %v7512_v26 = vld [vmem:[#allocation80_spill] sm:$0xff] }
 0x25f   : > { %v6649_v5 = vmul.f32 %v7484_v33, %v1651_v62  ;;  %v1233_v9 = vadd.f32 %v1231_v29, %v1227_v52  ;;  %v1562_v37 = vmul.f32 %v7492_v1, %v7509_v53  ;;  %v2301_v54 = vsel %vm2088_vm1, %v6563_v34, 0.0  ;;  %v7513_v31 = vld [vmem:[#allocation68_spill] sm:$0xff] }
 0x260   : > { %v1244_v25 = vadd.f32 %v7510_v14, %v1240_v17  ;;  %v1566_v36 = vmul.f32 %v7495_v57, %v7511_v58  ;;  %v1560_v46 = vadd.f32 %v1558_v28, %v1556_v39  ;;  %v1551_v29 = vmul.f32 %v6612_v51, %v7506_v41  ;;  %v2391_v39 = vpop.permute.xlu1 %2390 }
 0x261   : > { %3090 = vst [vmem:[%s5105_s20 + $0x70] sm:$0xff] %v6649_v5  ;;  %v1239_v62 = vadd.f32 %v1237_v6, %v1233_v9  ;;  %v1553_v23 = vmul.f32 %v6622_v27, %v7507_v50  ;;  %v1570_v34 = vmul.f32 %v6242_v40, %v7512_v26  ;;  %v1557_v17 = vmul.f32 %v6637_v11, %v7508_v21 }
 0x262   : > { %v1246_v32 = vmul.f32 %v5886_v24, %v1244_v25  ;;  %v1564_v28 = vadd.f32 %v1562_v37, %v1560_v46  ;;  %v1561_v41 = vmul.f32 %v6263_v12, %v7509_v53  ;;  %v2387_v50 = vadd.f32 %v2385_v63, %v6617_v48  ;;  %v2365_v37 = vpop.permute.xlu0 %2364  ;;  %v3341_v46 = vld [vmem:[%s5053_s14 + $0x58] sm:$0xff] }
 0x263   : > { %v1243_v6 = vadd.f32 %v7510_v14, %v1239_v62  ;;  %v1555_v9 = vadd.f32 %v1553_v23, %v1551_v29  ;;  %v6682_v25 = vadd.f32 %v2384_v56, %v6649_v5  ;;  %v2300_v21 = vsel %vm2088_vm1, %v6569_v44, 0.0 }
 0x264   : > { %v2171_v52 = vadd.f32 %v7513_v31, %v1246_v32  ;;  %3065 = vst [vmem:[%s5053_s14 + $0x48] sm:$0xff] %v1246_v32  ;;  %v1568_v62 = vadd.f32 %v1566_v36, %v1564_v28  ;;  %v1565_v63 = vmul.f32 %v6280_v15, %v7511_v58  ;;  %v7514_v29 = vrot.slane %v6651_v0, 7 }
 0x265   : > { %v1245_v14 = vmul.f32 %v7484_v33, %v1243_v6  ;;  %v1559_v53 = vadd.f32 %v1557_v17, %v1555_v9  ;;  %v7515_v31 = vrot.slane %v6634_v49, 7  ;;  %v1410_v44 = vmul.f32 %v6138_v16, %v6314_v4  ;;  %v3342_v6 = vld [vmem:[%s5053_s14 + $0x68] sm:$0xff] }
 0x266   : > { %v2173_v56 = vadd.f32 %v3341_v46, %v2171_v52  ;;  %v1414_v33 = vmul.f32 %v6151_v13, %v6320_v47  ;;  %v1572_v58 = vadd.f32 %v1570_v34, %v1568_v62  ;;  %v1569_v52 = vmul.f32 %v6304_v22, %v7512_v26  ;;  %v3343_v13 = vld [vmem:[%s5053_s14 + $0x50] sm:$0xff]  ;;  %v7517_v62 = vld [vmem:[#allocation50_spill] sm:$0xff] }
 0x267   : > { %v6699_v23 = vsel %vm2153_vm5, %v7515_v31, %v7514_v29  ;;  %v2170_v36 = vadd.f32 %v6393_v30, %v1245_v14  ;;  %3064 = vst [vmem:[%s5053_s14 + $0x40] sm:$0xff] %v1245_v14  ;;  %v1563_v17 = vadd.f32 %v1561_v41, %v1559_v53  ;;  %v2369_v9 = vsel %vm2088_vm1, %v2367_v3, 0.0  ;;  %v7516_v30 = vld [vmem:[#allocation81_spill] sm:$0xff]  ;;  %v2307_v53 = vpop.permute.xlu1 %2306 }
 0x268   : > { %v2175_v28 = vadd.f32 %v3342_v6, %v2173_v56  ;;  %v2393_v16 = vsel %vm2089_vm0, %v2391_v39, 0.0  ;;  %v1416_v46 = vadd.f32 %v1414_v33, %v1410_v44  ;;  %v1574_v34 = vadd.f32 %v1572_v58, %v7516_v30  ;;  %v2389_v39 = vpop.permute.xlu0 %2388  ;;  %v6724_v44 = vld [vmem:[%s4155_s3 + $0x8] sm:$0xff]  ;;  %v3347_v6 = vld [vmem:[%s4155_s3 + $0x18] sm:$0xff] }
 0x269   : > { %v2172_v29 = vadd.f32 %v3343_v13, %v2170_v36  ;;  %v1567_v41 = vadd.f32 %v1565_v63, %v1563_v17  ;;  %v1420_v26 = vmul.f32 %v6160_v10, %v7517_v62  ;;  %v2303_v31 = vadd.f32 %v2301_v54, %v1246_v32  ;;  %v7518_v33 = vld [vmem:[#allocation67_spill] sm:$0xff]  ;;  %v3345_v63 = vld [vmem:[%s5053_s14 + $0x60] sm:$0xff] }
 0x26a   : > { %v2177_v56 = vadd.f32 %v2175_v28, %v6556_v18  ;;  %v6721_v3 = vsel %vm2088_vm1, %v2365_v37, 0.0  ;;  %v1426_v36 = vmul.f32 %v6724_v44, %v7518_v33  ;;  %v1576_v10 = vmul.f32 %v5886_v24, %v1574_v34  ;;  %v3346_v54 = vld [vmem:[%s5053_s14 + $0x88] sm:$0xff] }
 0x26b   : > { %v2174_v58 = vadd.f32 %v3345_v63, %v2172_v29  ;;  %v1571_v17 = vadd.f32 %v1569_v52, %v1567_v41  ;;  %v1422_v18 = vadd.f32 %v1420_v26, %v1416_v46  ;;  %v6731_v37 = vadd.f32 %v2393_v16, %v2387_v50  ;;  %v3348_v16 = vld [vmem:[%s4155_s3 + $0x28] sm:$0xff]  ;;  %v6755_v63 = vld [vmem:[%s4165_s17] sm:$0xff]  ;;  %s2516_s3 = sshll.u32 %s5053_s14, 4  ;;  %s6866_s3 = int_to_ptr.vmem [resolvable:$true] %s2516_s3 }
 0x26c   : > { %v2179_v32 = vadd.f32 %v3346_v54, %v2177_v56  ;;  %v1432_v28 = vmul.f32 %v3347_v6, %v6345_v59  ;;  %v2309_v13 = vsel %vm2089_vm0, %v2307_v53, 0.0  ;;  %v2187_v24 = vadd.f32 %v6412_v45, %v1576_v10  ;;  %3067 = vst [vmem:[%s5105_s20 + $0x48] sm:$0xff] %v1576_v10  ;;  %v3349_v53 = vld [vmem:[%s5053_s14 + $0x80] sm:$0xff]  ;;  %v3350_v56 = vld [vmem:[%s5105_s20 + $0x58] sm:$0xff]  ;;  %s3594_s2 = scalar_lea.vmem %s6866_s3, 2560 }
 0x26d   : > { %v2176_v29 = vadd.f32 %v2174_v58, %v6586_v7  ;;  %v1573_v52 = vadd.f32 %v1571_v17, %v7516_v30  ;;  %v2392_v46 = vsel %vm2089_vm0, %v2389_v39, 0.0  ;;  %v1428_v50 = vadd.f32 %v1426_v36, %v1422_v18  ;;  %p3595_p11 = scmp.ne.s32.totalorder %s6866_s3, %s3594_s2 }
 0x26e   : > { %3111 = vst [vmem:[%s5820_s23 + $0x18] sm:$0xff] %v2179_v32  ;;  %v1438_v34 = vmul.f32 %v3348_v16, %v6360_v42  ;;  %v2311_v41 = vadd.f32 %v2309_v13, %v2303_v31  ;;  %v7519_v26 = vrot.slane %v6464_v19, 1  ;;  %v7520_v7 = vrot.slane %v6449_v2, 1 }
 0x26f   : > { %v2178_v30 = vadd.f32 %v3349_v53, %v2176_v29  ;;  %v2189_v39 = vadd.f32 %v3350_v56, %v2187_v24  ;;  %v6758_v36 = vmul.f32 %v6755_v63, %v1573_v52  ;;  %v2302_v17 = vadd.f32 %v2300_v21, %v1245_v14  ;;  %v7522_v21 = vld [vmem:[#allocation86_spill] sm:$0xff]  ;;  %v6799_v56 = vld [vmem:[%s4165_s17 + $0x8] sm:$0xff]  ;;  %p3596_p8 = pnand %p3595_p11, %p7459_p13 }
 0x270   : > { %v2331_v45 = vsel %vm2144_vm2, %v7520_v7, %v7519_v26  ;;  %v1434_v18 = vadd.f32 %v1432_v28, %v1428_v50  ;;  %v1409_v13 = vmul.f32 %v6173_v8, %v6314_v4  ;;  %v3352_v26 = vld [vmem:[%s5105_s20 + $0x68] sm:$0xff]  ;;  %v6766_v7 = vadd.f32 %v2369_v9, %v1576_v10  ;;  %v2305_v9 = vpop.permute.xlu0 %2304  ;;  %v3355_v53 = vld [vmem:[%s5105_s20 + $0x60] sm:$0xff] }
 0x271   : > { %v2333_v31 = vsel %vm2091_vm3, %v2331_v45, 0.0  ;;  %3110 = vst [vmem:[%s5820_s23 + $0x10] sm:$0xff] %v2178_v30  ;;  %v2191_v29 = vadd.f32 %v3352_v26, %v2189_v39  ;;  %v2186_v24 = vadd.f32 %v6473_v61, %v6758_v36  ;;  %3066 = vst [vmem:[%s5105_s20 + $0x40] sm:$0xff] %v6758_v36  ;;  %v6773_v52 = vadd.f32 %v2392_v46, %v6682_v25  ;;  %v7523_v10 = vld [vmem:[#allocation87_spill] sm:$0xff]  ;;  %p3597_p4 = pneg %p3596_p8 }
 0x272   : > { %v2335_v54 = vadd.f32 %v2333_v31, %v2311_v41  ;;  %v2433_v14 = vadd.f32 %v2179_v32, %v7522_v21  ;;  %v1440_v28 = vadd.f32 %v1438_v34, %v1434_v18  ;;  %v1413_v8 = vmul.f32 %v7479_v60, %v6320_v47  ;;  %v3353_v41 = vld [vmem:[%s5105_s20 + $0x50] sm:$0xff]  ;;  %v3354_v34 = vld [vmem:[%s5105_s20 + $0x88] sm:$0xff] }
 0x273   : > { %v1419_v4 = vmul.f32 %v7481_v38, %v7517_v62  ;;  %v2432_v61 = vadd.f32 %v2178_v30, %v7523_v10  ;;  %v2193_v50 = vadd.f32 %v2191_v29, %v6617_v48  ;;  %v2188_v45 = vadd.f32 %v3353_v41, %v2186_v24  ;;  %v7527_v29 = vld [vmem:[#allocation38_spill] sm:$0xff]  ;;  %v7531_v41 = vld [vmem:[#allocation60_spill] sm:$0xff] }
 0x274   : > { %v7524_v25 = vrot.slane %v6634_v49, 7  ;;  %v7525_v32 = vrot.slane %v6651_v0, 7  ;;  %v1444_v47 = vadd.f32 %v6384_v20, %v1440_v28  ;;  %v1415_v38 = vadd.f32 %v1413_v8, %v1409_v13  ;;  %v6809_v28 = vld [vmem:[%s4171_s19 + $0x8] sm:$0xff] }
 0x275   : > { %v1425_v62 = vmul.f32 %v6612_v51, %v7518_v33  ;;  %v2195_v48 = vadd.f32 %v3354_v34, %v2193_v50  ;;  %v2190_v30 = vadd.f32 %v3355_v53, %v2188_v45  ;;  %v1431_v49 = vmul.f32 %v6622_v27, %v6345_v59  ;;  %v7526_v33 = vld [vmem:[#allocation42_spill] sm:$0xff]  ;;  %v7528_v59 = vld [vmem:[#allocation43_spill] sm:$0xff] }
 0x276   : > { %v2338_v46 = vsel %vm2153_vm5, %v7525_v32, %v7524_v25  ;;  %v2308_v0 = vsel %vm2089_vm0, %v2305_v9, 0.0  ;;  %v1446_v39 = vmul.f32 %v6799_v56, %v1444_v47  ;;  %v1421_v31 = vadd.f32 %v1419_v4, %v1415_v38  ;;  %v3358_v9 = vld [vmem:[%s5105_s20 + $0x80] sm:$0xff] }
 0x277   : > { %v2343_v60 = vadd.f32 %v2338_v46, %v2335_v54  ;;  %v2310_v18 = vadd.f32 %v2308_v0, %v2302_v17  ;;  %v1682_v54 = vmul.f32 %v6724_v44, %v7526_v33  ;;  %v2435_v13 = vadd.f32 %v2433_v14, %v2195_v48  ;;  %3113 = vst [vmem:[%s5820_s23 + $0x28] sm:$0xff] %v2195_v48  ;;  %v7533_v48 = vld [vmem:[#allocation62_spill] sm:$0xff] }
 0x278   : > { %v2192_v26 = vadd.f32 %v2190_v30, %v6649_v5  ;;  %v1684_v24 = vmul.f32 %v3347_v6, %v7527_v29  ;;  %v1688_v21 = vmul.f32 %v3348_v16, %v7528_v59  ;;  %v2345_v8 = vmul.f32 %v6809_v28, %v1446_v39  ;;  %3105 = vst [vmem:[%s5053_s14 + $0x98] sm:$0xff] %v1446_v39  ;;  %v2375_v6 = vpop.permute.xlu1 %2374  ;;  %v7536_v30 = vld [vmem:[#allocation70_spill] sm:$0xff] }
 0x279   : > { %v1427_v4 = vadd.f32 %v1425_v62, %v1421_v31  ;;  %v1437_v17 = vmul.f32 %v6637_v11, %v6360_v42  ;;  %v7529_v44 = vrot.slane %v6449_v2, 1  ;;  %v7530_v14 = vrot.slane %v6464_v19, 1  ;;  %v7532_v2 = vld [vmem:[#allocation61_spill] sm:$0xff] }
 0x27a   : > { %v2437_v16 = vadd.f32 %v2435_v13, %v6475_v55  ;;  %v2194_v10 = vadd.f32 %v3358_v9, %v2192_v26  ;;  %v1686_v50 = vadd.f32 %v1684_v24, %v1682_v54  ;;  %v1692_v45 = vmul.f32 %v7492_v1, %v7531_v41  ;;  %v2373_v24 = vpop.permute.xlu0 %2372 }
 0x27b   : > { %v2330_v5 = vsel %vm2144_vm2, %v7530_v14, %v7529_v44  ;;  %v2347_v25 = vadd.f32 %v2345_v8, %v2343_v60  ;;  %v1433_v42 = vadd.f32 %v1431_v49, %v1427_v4  ;;  %v1696_v19 = vmul.f32 %v7495_v57, %v7532_v2  ;;  %v7534_v60 = vld [vmem:[#allocation71_spill] sm:$0xff] }
 0x27c   : > { %v2334_v32 = vadd.f32 %v2330_v5, %v2310_v18  ;;  %v2439_v46 = vmul.f32 0.25, %v2437_v16  ;;  %v2434_v47 = vadd.f32 %v2432_v61, %v2194_v10  ;;  %3112 = vst [vmem:[%s5820_s23 + $0x20] sm:$0xff] %v2194_v10  ;;  %v1690_v38 = vadd.f32 %v1688_v21, %v1686_v50  ;;  %v7538_v61 = vld [vmem:[#allocation69_spill] sm:$0xff] }
 0x27d   : > { %v2377_v55 = vsel %vm2089_vm0, %v2375_v6, 0.0  ;;  %v2405_v62 = vrot.slane %v6731_v37, 7  ;;  %3119 = vst [vmem:[%s5820_s23 + $0x58] sm:$0xff] %v2347_v25  ;;  %v1439_v34 = vadd.f32 %v1437_v17, %v1433_v42  ;;  %v1700_v1 = vmul.f32 %v6242_v40, %v7533_v48  ;;  %v3359_v17 = vld [vmem:[%s4171_s19] sm:$0xff]  ;;  %s3757_s19 = smov [#allocation16]  }
 0x27e   : > { %v7535_v53 = vrot.slane %v7534_v60, 1  ;;  %v7537_v49 = vrot.slane %v7536_v30, 1  ;;  %3125 = vst [vmem:[%s5820_s23 + $0x88] sm:$0xff] %v2439_v46  ;;  %v2436_v0 = vadd.f32 %v2434_v47, %v7538_v61  ;;  %v1694_v39 = vadd.f32 %v1692_v45, %v1690_v38  ;;  %v7542_v6 = vld [vmem:[#allocation64_spill] sm:$0xff]  ;;  %s3598_s28 = sshll.u32 %s3757_s19, 4  ;;  %s3599_s28 = int_to_ptr.vmem [resolvable:$false] %s3598_s28 }
 0x27f   : > { %v2379_v31 = vadd.f32 %v2377_v55, %v6766_v7  ;;  %v1681_v18 = vmul.f32 %v6612_v51, %v7526_v33  ;;  %v1443_v40 = vadd.f32 %v6384_v20, %v1439_v34  ;;  %v2340_v54 = vsel %vm2092_vm4, %v6699_v23, 0.0  ;;  %p3601_p2 = scmp.lt.s32.totalorder %s6866_s3, %s3599_s28 }
 0x280   : > { %v2399_v57 = vsel %vm2144_vm2, %v7537_v49, %v7535_v53  ;;  %v1683_v13 = vmul.f32 %v6622_v27, %v7527_v29  ;;  %v1687_v26 = vmul.f32 %v6637_v11, %v7528_v59  ;;  %v2438_v7 = vmul.f32 0.25, %v2436_v0 }
 0x281   : > { %v2404_v21 = vrot.slane %v6773_v52, 7  ;;  %v2342_v51 = vadd.f32 %v2340_v54, %v2334_v32  ;;  %v1698_v33 = vadd.f32 %v1696_v19, %v1694_v39  ;;  %v1445_v20 = vmul.f32 %v6755_v63, %v1443_v40 }
 0x282   : > { %v2401_v8 = vsel %vm2091_vm3, %v2399_v57, 0.0  ;;  %v1685_v23 = vadd.f32 %v1683_v13, %v1681_v18  ;;  %v1691_v27 = vmul.f32 %v6263_v12, %v7531_v41  ;;  %3124 = vst [vmem:[%s5820_s23 + $0x80] sm:$0xff] %v2438_v7  ;;  %v7540_v58 = vmov %v7537_v49 }
 0x283   : > { %v1702_v11 = vadd.f32 %v1700_v1, %v1698_v33  ;;  %v2403_v52 = vadd.f32 %v2401_v8, %v2379_v31  ;;  %v7541_v29 = vmov %v7535_v53  ;;  %v2376_v59 = vsel %vm2089_vm0, %v2373_v24, 0.0  ;;  %3104 = vst [vmem:[%s5053_s14 + $0x90] sm:$0xff] %v1445_v20  ;;  %s3600_s14 = scalar_lea.vmem %s3599_s28, 5120 }
 0x284   : > { %v2398_v12 = vsel %vm2144_vm2, %v7541_v29, %v7540_v58  ;;  %v2370_v4 = vadd.f32 %v6721_v3, %v6758_v36  ;;  %v2344_v44 = vmul.f32 %v3359_v17, %v1445_v20  ;;  %v1689_v14 = vadd.f32 %v1687_v26, %v1685_v23  ;;  %p3602_p9 = scmp.lt.s32.totalorder %s3600_s14, %s3594_s2 }
 0x285   : > { %v1695_v5 = vmul.f32 %v6280_v15, %v7532_v2  ;;  %v1704_v16 = vadd.f32 %v1702_v11, %v7542_v6  ;;  %v2406_v9 = vsel %vm2153_vm5, %v2404_v21, %v2405_v62 }
 0x286   : > { %p3603_p12 = por %p3602_p9, %p3601_p2 }
 0x288   : > { %p3604_p6 = pnand %p3603_p12, %p3597_p4 }
 0x28a   : > { %3607 = shalt.err (!%p3604_p6)
}
 0x28b   : > { %s3608_s30 = scalar_lea.hbm %s6864_s11, 2560  ;;  %s3612_s24 = scalar_lea.hbm %s7539_s29, 5120 }
 0x28c   : > { %p3609_p0 = scmp.ne.s32.totalorder %s6864_s11, %s3608_s30  ;;  %p3613_p5 = scmp.lt.u32.totalorder %s6864_s11, %s7539_s29 }
 0x28d   : > { %p3614_p10 = scmp.lt.u32.totalorder %s3612_s24, %s3608_s30  ;;  %p3616_p11 = scmp.lt.u32.totalorder %s3608_s30, %s6864_s11 }
 0x28e   : > { %p3610_p3 = pnand %p3609_p0, %p7459_p13 }
 0x28f   : > { %p3615_p7 = por %p3614_p10, %p3613_p5 }
 0x290   : > { %p3611_p1 = pneg %p3610_p3 }
 0x291   : > { %p3617_p8 = por %p3616_p11, %p3615_p7 }
 0x293   : > { %p3618_p4 = pnand %p3617_p8, %p3611_p1 }
 0x295   : > { %3621 = shalt.err (!%p3618_p4)
}
 0x296   : > { %3168 = dma.vmem_to_hbm [thread:$0]  (%p7459_p13), %s6866_s3, 2560, %s6864_s11, %s2472_s12, %s3754_s9, %s3754_s9, %s3755_s0   ;;  %v2346_v35 = vadd.f32 %v2344_v44, %v2342_v51  ;;  %v1693_v15 = vadd.f32 %v1691_v27, %v1689_v14  ;;  %v1699_v3 = vmul.f32 %v6304_v22, %v7533_v48  ;;  %v2378_v36 = vadd.f32 %v2376_v59, %v2370_v4 }
 0x297   : > { %v1706_v10 = vmul.f32 %v6799_v56, %v1704_v16  ;;  %v2411_v50 = vadd.f32 %v2406_v9, %v2403_v52  ;;  %v2407_v25 = vsel %vm2153_vm5, %v2405_v62, %v2404_v21  ;;  %s2532_s22 = sshll.u32 %s5105_s20, 4  ;;  %s7543_s26 = sld [smem:[#allocation102_spill]]  ;;  %s6937_s22 = int_to_ptr.vmem [resolvable:$true] %s2532_s22 }
 0x298   : > { %3118 = vst [vmem:[%s5820_s23 + $0x50] sm:$0xff] %v2346_v35  ;;  %v1697_v41 = vadd.f32 %v1695_v5, %v1693_v15  ;;  %v2402_v22 = vadd.f32 %v2398_v12, %v2378_v36  ;;  %v2408_v2 = vsel %vm2092_vm4, %v2407_v25, 0.0  ;;  %s3148_s2 = smul.u32 2304, %s3970_s16  ;;  %s2564_s19 = sshll.u32 %s5820_s23, 4  ;;  %s6977_s19 = int_to_ptr.vmem [resolvable:$true] %s2564_s19 }
 0x299   : > { %v2413_v45 = vmul.f32 %v6809_v28, %v1706_v10  ;;  %3107 = vst [vmem:[%s5105_s20 + $0x98] sm:$0xff] %v1706_v10  ;;  %s3622_s28 = scalar_lea.vmem %s6937_s22, 2560  ;;  %s3758_s14 = smov [#allocation18]  }
 0x29a   : > { %v1701_v42 = vadd.f32 %v1699_v3, %v1697_v41  ;;  %v2410_v28 = vadd.f32 %v2408_v2, %v2402_v22  ;;  %p3623_p2 = scmp.ne.s32.totalorder %s6937_s22, %s3622_s28 }
 0x29b   : > { %v2415_v32 = vadd.f32 %v2413_v45, %v2411_v50 }
 0x29c   : > { %v1703_v56 = vadd.f32 %v1701_v42, %v7542_v6  ;;  %p3624_p9 = pnand %p3623_p2, %p7459_p13 }
 0x29d   : > { %3121 = vst [vmem:[%s5820_s23 + $0x68] sm:$0xff] %v2415_v32  ;;  %s6934_s11 = scalar_lea.hbm %s7543_s26, %s6014_s25  ;;  %s3626_s25 = sshll.u32 %s3758_s14, 4  ;;  %s3627_s25 = int_to_ptr.vmem [resolvable:$false] %s3626_s25 }
 0x29e   : > { %v1705_v37 = vmul.f32 %v6755_v63, %v1703_v56  ;;  %p3625_p12 = pneg %p3624_p9  ;;  %s3628_s30 = scalar_lea.vmem %s3627_s25, 5120 }
 0x29f   : > { %p3629_p6 = scmp.lt.s32.totalorder %s6937_s22, %s3627_s25  ;;  %p3630_p0 = scmp.lt.s32.totalorder %s3628_s30, %s3622_s28 }
 0x2a0   : > { %v2412_v19 = vmul.f32 %v3359_v17, %v1705_v37  ;;  %3106 = vst [vmem:[%s5105_s20 + $0x90] sm:$0xff] %v1705_v37 }
 0x2a1   : > { %p3631_p3 = por %p3630_p0, %p3629_p6 }
 0x2a3   : > { %p3632_p1 = pnand %p3631_p3, %p3625_p12 }
 0x2a5   : > { %3635 = shalt.err (!%p3632_p1)
}
 0x2a6   : > { %s3636_s20 = scalar_lea.hbm %s6934_s11, 2560  ;;  %s3640_s24 = scalar_lea.hbm %s7543_s26, 5120 }
 0x2a7   : > { %p3637_p5 = scmp.ne.s32.totalorder %s6934_s11, %s3636_s20  ;;  %p3641_p11 = scmp.lt.u32.totalorder %s6934_s11, %s7543_s26 }
 0x2a8   : > { %p3642_p8 = scmp.lt.u32.totalorder %s3640_s24, %s3636_s20  ;;  %p3644_p2 = scmp.lt.u32.totalorder %s3636_s20, %s6934_s11 }
 0x2a9   : > { %p3638_p10 = pnand %p3637_p5, %p7459_p13 }
 0x2aa   : > { %p3643_p4 = por %p3642_p8, %p3641_p11 }
 0x2ab   : > { %p3639_p7 = pneg %p3638_p10 }
 0x2ac   : > { %p3645_p9 = por %p3644_p2, %p3643_p4 }
 0x2ae   : > { %p3646_p12 = pnand %p3645_p9, %p3639_p7 }
 0x2b0   : > { %3649 = shalt.err (!%p3646_p12)
}
 0x2b1   : > { %3169 = dma.vmem_to_hbm [thread:$0]  (%p7459_p13), %s6937_s22, 2560, %s6934_s11, %s2472_s12, %s3754_s9, %s3754_s9, %s3755_s0   ;;  %v2414_v43 = vadd.f32 %v2412_v19, %v2410_v28 }
 0x2b2   : > { %s7544_s28 = sld [smem:[#allocation104_spill]]  ;;  %s3650_s25 = scalar_lea.vmem %s6977_s19, 2304 }
 0x2b3   : > { %3120 = vst [vmem:[%s5820_s23 + $0x60] sm:$0xff] %v2414_v43  ;;  %p3651_p6 = scmp.ne.s32.totalorder %s6977_s19, %s3650_s25  ;;  %s3759_s12 = smov [#allocation21]  }
 0x2b4   : > { %s3654_s22 = sshll.u32 %s3759_s12, 4  ;;  %s3655_s22 = int_to_ptr.vmem [resolvable:$false] %s3654_s22 }
 0x2b5   : > { %p3652_p0 = pnand %p3651_p6, %p7459_p13  ;;  %s3656_s16 = scalar_lea.vmem %s3655_s22, 4608 }
 0x2b6   : > { %p3657_p1 = scmp.lt.s32.totalorder %s6977_s19, %s3655_s22  ;;  %p3658_p5 = scmp.lt.s32.totalorder %s3656_s16, %s3650_s25 }
 0x2b7   : > { %p3653_p3 = pneg %p3652_p0 }
 0x2b8   : > { %s6973_s14 = scalar_lea.hbm %s7544_s28, %s3148_s2  ;;  %p3659_p10 = por %p3658_p5, %p3657_p1 }
 0x2ba   : > { %p3660_p7 = pnand %p3659_p10, %p3653_p3 }
 0x2bc   : > { %3663 = shalt.err (!%p3660_p7)
}
 0x2bd   : > { %s3664_s23 = scalar_lea.hbm %s6973_s14, 2304  ;;  %s3668_s30 = scalar_lea.hbm %s7544_s28, 4608 }
 0x2be   : > { %p3665_p11 = scmp.ne.s32.totalorder %s6973_s14, %s3664_s23  ;;  %p3669_p2 = scmp.lt.u32.totalorder %s6973_s14, %s7544_s28 }
 0x2bf   : > { %p3670_p9 = scmp.lt.u32.totalorder %s3668_s30, %s3664_s23  ;;  %p3672_p6 = scmp.lt.u32.totalorder %s3664_s23, %s6973_s14 }
 0x2c0   : > { %p3666_p8 = pnand %p3665_p11, %p7459_p13 }
 0x2c1   : > { %p3671_p12 = por %p3670_p9, %p3669_p2 }
 0x2c2   : > { %p3667_p4 = pneg %p3666_p8 }
 0x2c3   : > { %p3673_p0 = por %p3672_p6, %p3671_p12 }
 0x2c5   : > { %p3674_p3 = pnand %p3673_p0, %p3667_p4 }
 0x2c7   : > { %3677 = shalt.err (!%p3674_p3)
}
 0x2c8   : > { %3171 = dma.vmem_to_hbm [thread:$0]  (%p7459_p13), %s6977_s19, 2304, %s6973_s14, %s2482_s21, %s3754_s9, %s3754_s9, %s3755_s0  }
 0x2c9 PF: > { %s7545_s27 = sld [smem:[#allocation30_spill]]  ;;  %s7546_s24 = sld [smem:[#allocation37_spill]] }
 0x2ca   : > { %s7547_s1 = sld [smem:[#allocation32_spill]] }
 0x2cf   : > { %s2579_s5 = sand.u32 1, %s7545_s27   ;;  %p7548_p1 = scmp.ne.s32.totalorder %s7546_s24, 0 }
 0x2d0   : > { %p7549_p5 = scmp.ge.s32.totalorder %s7547_s1, 2  ;;  %s2580_s3 = scalar_lea.sflag [#allocation4], %s2579_s5 }
 0x2d2   : > { %p3201_p10 = pnand %p7549_p5, %p7548_p1 }
 0x2d4   : > { %3715 = dma.done.wait (!%p3201_p10), %s2580_s3, 2560  }
 0x2d5   : > { %3717 = vsyncadd (!%p3201_p10), %s2580_s3, 4294964736  ;;  %s7550_s8 = sadd.s32 4294967294, %s7547_s1  }
 0x2d6   : > { %s2588_s17 = sand.u32 1, %s7550_s8  }
 0x2d7   : > { %s2589_s25 = scalar_lea.sflag [#allocation17], %s2588_s17 }
 0x2d8   : > { %3719 = dma.done.wait (!%p3201_p10), %s2589_s25, 5120  }
 0x2d9   : > { %3721 = vsyncadd (!%p3201_p10), %s2589_s25, 4294962176  ;;  %s2607_s15 = scalar_lea.sflag [#allocation20], %s2588_s17 }
 0x2da   : > { %3723 = dma.done.wait (!%p3201_p10), %s2607_s15, 4864  }
 0x2db   : > { %3725 = vsyncadd (!%p3201_p10), %s2607_s15, 4294962432  ;;  %s7551_s20 = sld [smem:[#allocation33_spill]]  ;;  %s7552_s9 = sld [smem:[#allocation31_spill]] }
 0x2dc   : > { %s7553_s19 = sld [smem:[#allocation34_spill]]  ;;  %s7554_s17 = smov %s3732_s18 }
 0x2e1   : > { %p39_p13 = scmp.ge.s32.totalorder %s7551_s20, 4   ;;  %s7555_s18 = smov %s7552_s9 }
 0x2e3   :  { %41 = sbr.rel (!%p39_p13) target bundleno = 26 (0x1a), region = 265 }
 0x2ea   :  { %2621 = vsyncpa [#allocation3], 1 }
 0x2eb   :  { %2623 = vsyncpa [#allocation3 + $0x1], 1 }
 0x2ec   :  { %2624 = vsyncpa [#allocation10], 1 }
 0x2ed   :  { %2626 = vsyncpa [#allocation10 + $0x1], 1 }
 0x2ee   :  { %2627 = vsyncpa [#allocation13], 1 }
 0x2ef   :  { %2629 = vsyncpa [#allocation13 + $0x1], 1 }
 0x2f0   :  { %2630 = vsyncpa [#allocation4], 1 }
 0x2f1   :  { %2632 = vsyncpa [#allocation4 + $0x1], 1 }
 0x2f2   :  { %2633 = vsyncpa [#allocation17], 1 }
 0x2f3   :  { %2635 = vsyncpa [#allocation17 + $0x1], 1 }
 0x2f4   :  { %2636 = vsyncpa [#allocation20], 1 }
 0x2f5   :  { %2638 = vsyncpa [#allocation20 + $0x1], 1 }
 0x2f6   :  { %2639 = vsyncpa [#allocation5], 1 }
 0x2f7   :  { %2641 = vsyncpa [#allocation5 + $0x1], 1 }
 0x2f8   :  { %2642 = vsyncpa [#allocation6], 1 }
 0x2f9   :  { %2644 = vsyncpa [#allocation6 + $0x1], 1 }

</bundles_post_ra>
